<compile_context>
chip_gen: v7x
topology: tpu7x:2x2x1
jax: 0.10.0
libtpu: 0.0.40
codegen_flags: <defaults>
</compile_context>

<pallas_src>
import jax
import jax.numpy as jnp
from jax.experimental import pallas as pl
from jax.experimental.pallas import tpu as pltpu

TN2 = 1024                    # tile width over the 5000-wide hidden dim (mult of 128)
EPS = 1e-5                    # BatchNorm1d eps
WEIGHT_DTYPE = jnp.bfloat16   # weights streamed from HBM in bf16 (net is HBM-bound)


# -----------------------------------------------------------------------------
# Shared math (pure jnp: used both inside the kernel and in the reference)
# -----------------------------------------------------------------------------
def _bn(x, gamma, beta):
    """Training-mode BatchNorm1d: batch stats, biased variance, eps=1e-5."""
    n = x.shape[0]
    mean = jnp.sum(x, axis=0, keepdims=True) * (1.0 / n)
    xc = x - mean
    var = jnp.sum(xc * xc, axis=0, keepdims=True) * (1.0 / n)
    return xc * jax.lax.rsqrt(var + EPS) * gamma + beta


def _mxu_dot(x, w):
    """bf16 x bf16 matmul with f32 accumulation (MXU-native single pass)."""
    return jnp.dot(x.astype(WEIGHT_DTYPE), w, preferred_element_type=jnp.float32)


# -----------------------------------------------------------------------------
# Fused forward kernel
# -----------------------------------------------------------------------------
def _fused_ann_kernel(x_ref, w1_ref, b1_ref,
                      w2_ref, b2_ref, g2_ref, bt2_ref,
                      w3_ref, b3_ref, g3_ref, bt3_ref,
                      w4_ref, b4_ref, w5_ref, b5_ref,
                      o_ref, h1_ref, h3_ref):
    j = pl.program_id(0)

    @pl.when(j == 0)
    def _():
        # Layer 1: Linear(input, 1000) + ReLU; result stays resident in VMEM.
        h1 = _mxu_dot(x_ref[...], w1_ref[...]) + b1_ref[...]
        h1_ref[...] = jnp.maximum(h1, 0.0).astype(h1_ref.dtype)
        h3_ref[...] = jnp.zeros_like(h3_ref)

    # Layer 2, one TN2-wide feature tile: Linear(1000,5000) + ReLU + BatchNorm1d.
    h2 = _mxu_dot(h1_ref[...], w2_ref[...]) + b2_ref[...]
    h2 = _bn(jnp.maximum(h2, 0.0), g2_ref[...], bt2_ref[...])

    # Layer 3 partial product over the 5000-dim: accumulate (B,TN2) @ (TN2,1024).
    h3_ref[...] += _mxu_dot(h2, w3_ref[...])

    @pl.when(j == pl.num_programs(0) - 1)
    def _():
        # Finish layer 3: bias + ReLU + BatchNorm1d(1000).
        h3 = _bn(jnp.maximum(h3_ref[...] + b3_ref[...], 0.0),
                 g3_ref[...], bt3_ref[...])
        # Layer 4: Linear(1000, 100) + ReLU (100 padded to 128 lanes).
        h4 = jnp.maximum(_mxu_dot(h3, w4_ref[...]) + b4_ref[...], 0.0)
        # Layer 5: Linear(100, 1) (output padded to 128 lanes for a dense store).
        o_ref[...] = _mxu_dot(h4, w5_ref[...]) + b5_ref[...]


def ann_forward(x, p):
    """x: (B, input_size) f32; p: padded parameter dict. Returns (B, 1) f32."""
    B, K0 = x.shape
    assert B % 8 == 0, "batch must be a multiple of 8 (TPU sublane tiling)"
    N1 = p["w1"].shape[1]   # 1024
    N2 = p["w2"].shape[1]   # 5120
    N3 = p["w3"].shape[1]   # 1024
    N4 = p["w4"].shape[1]   # 128
    N5 = p["w5"].shape[1]   # 128
    assert N2 % TN2 == 0
    grid = (N2 // TN2,)

    rep = lambda j: (0, 0)   # constant block -> DMA'd once, kept resident
    col = lambda j: (0, j)   # stream column tiles (w2, b2, gamma2, beta2)
    row = lambda j: (j, 0)   # stream row tiles (w3)

    out = pl.pallas_call(
        _fused_ann_kernel,
        out_shape=jax.ShapeDtypeStruct((B, N5), jnp.float32),
        grid_spec=pltpu.PrefetchScalarGridSpec(
            num_scalar_prefetch=0,
            grid=grid,
            in_specs=[
                pl.BlockSpec((B, K0), rep),      # x
                pl.BlockSpec((K0, N1), rep),     # w1
                pl.BlockSpec((1, N1), rep),      # b1
                pl.BlockSpec((N1, TN2), col),    # w2 column tile
                pl.BlockSpec((1, TN2), col),     # b2 tile
                pl.BlockSpec((1, TN2), col),     # gamma2 tile
                pl.BlockSpec((1, TN2), col),     # beta2 tile
                pl.BlockSpec((TN2, N3), row),    # w3 row tile
                pl.BlockSpec((1, N3), rep),      # b3
                pl.BlockSpec((1, N3), rep),      # gamma3
                pl.BlockSpec((1, N3), rep),      # beta3
                pl.BlockSpec((N3, N4), rep),     # w4
                pl.BlockSpec((1, N4), rep),      # b4
                pl.BlockSpec((N4, N5), rep),     # w5
                pl.BlockSpec((1, N5), rep),      # b5
            ],
            out_specs=pl.BlockSpec((B, N5), rep),
            scratch_shapes=[
                pltpu.VMEM((B, N1), WEIGHT_DTYPE),   # layer-1 activations
                pltpu.VMEM((B, N3), jnp.float32),    # layer-3 f32 accumulator
            ],
        ),
        compiler_params=pltpu.CompilerParams(
            dimension_semantics=("arbitrary",),   # single reduction/carry axis
            vmem_limit_bytes=32 << 20,            # ~9 MiB needed; safe on v5e/v6e/v7x
        ),
    )(x, p["w1"], p["b1"], p["w2"], p["b2"], p["g2"], p["bt2"],
      p["w3"], p["b3"], p["g3"], p["bt3"], p["w4"], p["b4"],
      p["w5"], p["b5"])
    return out[:, :1]   # strip feature padding of the final Linear(100, 1)


# -----------------------------------------------------------------------------
# Parameter init / padding (glue, plain JAX)
# -----------------------------------------------------------------------------
def _init_linear(key, fan_in, fan_out):
    # PyTorch nn.Linear default init: U(-1/sqrt(fan_in), 1/sqrt(fan_in)).
    kw, kb = jax.random.split(key)
    bound = 1.0 / float(fan_in) ** 0.5
    w = jax.random.uniform(kw, (fan_in, fan_out), jnp.float32, -bound, bound)
    b = jax.random.uniform(kb, (fan_out,), jnp.float32, -bound, bound)
    return w.astype(WEIGHT_DTYPE), b


def make_params(input_size, key):
    dims = [input_size, 1000, 5000, 1000, 100, 1]
    pads = [input_size, 1024, 5120, 1024, 128, 128]   # per-layer padded widths
    keys = jax.random.split(key, 5)
    raw, padded = {}, {}
    for i in range(5):
        w, b = _init_linear(keys[i], dims[i], dims[i + 1])
        raw[f"w{i+1}"], raw[f"b{i+1}"] = w, b
        padded[f"w{i+1}"] = jnp.pad(
            w, ((0, pads[i] - dims[i]), (0, pads[i + 1] - dims[i + 1])))
        padded[f"b{i+1}"] = jnp.pad(b, (0, pads[i + 1] - dims[i + 1])).reshape(1, -1)
    for tag, width, pad in (("2", 5000, 5120), ("3", 1000, 1024)):
        raw[f"g{tag}"] = jnp.ones((width,), jnp.float32)    # BatchNorm gamma
        raw[f"bt{tag}"] = jnp.zeros((width,), jnp.float32)  # BatchNorm beta
        padded[f"g{tag}"] = jnp.pad(raw[f"g{tag}"], (0, pad - width)).reshape(1, -1)
        padded[f"bt{tag}"] = jnp.pad(raw[f"bt{tag}"], (0, pad - width)).reshape(1, -1)
    return raw, padded


# -----------------------------------------------------------------------------
# Pure-JAX reference (same bf16-weight mixed precision, unpadded shapes)
# -----------------------------------------------------------------------------
def ann_ref(x, r):
    h = jnp.maximum(_mxu_dot(x, r["w1"]) + r["b1"], 0.0)
    h = jnp.maximum(_mxu_dot(h, r["w2"]) + r["b2"], 0.0)
    h = _bn(h, r["g2"], r["bt2"])
    h = jnp.maximum(_mxu_dot(h, r["w3"]) + r["b3"], 0.0)
    h = _bn(h, r["g3"], r["bt3"])
    h = jnp.maximum(_mxu_dot(h, r["w4"]) + r["b4"], 0.0)
    return _mxu_dot(h, r["w5"]) + r["b5"]


# -----------------------------------------------------------------------------
if __name__ == "__main__":
    input_size = 64
    batch = 16   # must be a multiple of 8

    key = jax.random.PRNGKey(0)
    k_param, k_x = jax.random.split(key)
    raw, padded = make_params(input_size, k_param)
    x = jax.random.normal(k_x, (batch, input_size), jnp.float32)

    out = jax.block_until_ready(ann_forward(x, padded))
    ref = jax.block_until_ready(ann_ref(x, raw))

    assert out.shape == (batch, 1), out.shape
    max_err = float(jnp.max(jnp.abs(out - ref)))
    assert jnp.allclose(out, ref, rtol=1e-3, atol=2e-3), max_err
    print("KERNEL_OK")
</pallas_src>

<mosaic_0001>
module attributes {stable_mosaic.version = 11 : i64} {
  func.func @_fused_ann_kernel(%arg0: i32, %arg1: memref<16x64xf32, #tpu.memory_space<vmem>>, %arg2: memref<64x1024xbf16, #tpu.memory_space<vmem>>, %arg3: memref<1x1024xf32, #tpu.memory_space<vmem>>, %arg4: memref<1024x1024xbf16, #tpu.memory_space<vmem>>, %arg5: memref<1x1024xf32, #tpu.memory_space<vmem>>, %arg6: memref<1x1024xf32, #tpu.memory_space<vmem>>, %arg7: memref<1x1024xf32, #tpu.memory_space<vmem>>, %arg8: memref<1024x1024xbf16, #tpu.memory_space<vmem>>, %arg9: memref<1x1024xf32, #tpu.memory_space<vmem>>, %arg10: memref<1x1024xf32, #tpu.memory_space<vmem>>, %arg11: memref<1x1024xf32, #tpu.memory_space<vmem>>, %arg12: memref<1024x128xbf16, #tpu.memory_space<vmem>>, %arg13: memref<1x128xf32, #tpu.memory_space<vmem>>, %arg14: memref<128x128xbf16, #tpu.memory_space<vmem>>, %arg15: memref<1x128xf32, #tpu.memory_space<vmem>>, %arg16: memref<16x128xf32, #tpu.memory_space<vmem>>, %arg17: memref<16x1024xbf16, #tpu.memory_space<vmem>>, %arg18: memref<16x1024xf32, #tpu.memory_space<vmem>>) attributes {dimension_semantics = [#tpu.dimension_semantics<arbitrary>], iteration_bounds = array<i64: 5>, scalar_prefetch = 0 : i64, scratch_operands = 2 : i64, tpu.core_type = #tpu.core_type<tc>, window_params = [{pipeline_mode = #tpu.pipeline_mode<synchronous>, transform_indices = @transform_0, window_bounds = array<i64: 16, 64>}, {pipeline_mode = #tpu.pipeline_mode<synchronous>, transform_indices = @transform_1, window_bounds = array<i64: 64, 1024>}, {pipeline_mode = #tpu.pipeline_mode<synchronous>, transform_indices = @transform_2, window_bounds = array<i64: 1, 1024>}, {transform_indices = @transform_3, window_bounds = array<i64: 1024, 1024>}, {transform_indices = @transform_4, window_bounds = array<i64: 1, 1024>}, {transform_indices = @transform_5, window_bounds = array<i64: 1, 1024>}, {transform_indices = @transform_6, window_bounds = array<i64: 1, 1024>}, {transform_indices = @transform_7, window_bounds = array<i64: 1024, 1024>}, {pipeline_mode = #tpu.pipeline_mode<synchronous>, transform_indices = @transform_8, window_bounds = array<i64: 1, 1024>}, {pipeline_mode = #tpu.pipeline_mode<synchronous>, transform_indices = @transform_9, window_bounds = array<i64: 1, 1024>}, {pipeline_mode = #tpu.pipeline_mode<synchronous>, transform_indices = @transform_10, window_bounds = array<i64: 1, 1024>}, {pipeline_mode = #tpu.pipeline_mode<synchronous>, transform_indices = @transform_11, window_bounds = array<i64: 1024, 128>}, {pipeline_mode = #tpu.pipeline_mode<synchronous>, transform_indices = @transform_12, window_bounds = array<i64: 1, 128>}, {pipeline_mode = #tpu.pipeline_mode<synchronous>, transform_indices = @transform_13, window_bounds = array<i64: 128, 128>}, {pipeline_mode = #tpu.pipeline_mode<synchronous>, transform_indices = @transform_14, window_bounds = array<i64: 1, 128>}, {pipeline_mode = #tpu.pipeline_mode<synchronous>, transform_indices = @transform_15, window_bounds = array<i64: 16, 128>}]} {
    %c0_i32 = arith.constant 0 : i32
    %0 = arith.cmpi eq, %arg0, %c0_i32 : i32
    %1 = arith.extui %0 : i1 to i32
    %c0_i32_0 = arith.constant 0 : i32
    %2 = arith.cmpi ne, %1, %c0_i32_0 : i32
    scf.if %2 {
      %c0_24 = arith.constant 0 : index
      %c0_25 = arith.constant 0 : index
      %42 = vector.load %arg1[%c0_24, %c0_25] : memref<16x64xf32, #tpu.memory_space<vmem>>, vector<16x64xf32>
      %c0_26 = arith.constant 0 : index
      %c0_27 = arith.constant 0 : index
      %43 = vector.load %arg2[%c0_26, %c0_27] : memref<64x1024xbf16, #tpu.memory_space<vmem>>, vector<64x1024xbf16>
      %44 = arith.truncf %42 : vector<16x64xf32> to vector<16x64xbf16>
      %cst_28 = arith.constant dense<0.000000e+00> : vector<16x1024xf32>
      %45 = tpu.matmul %44, %43, %cst_28 {dimension_numbers = #tpu.dot_dimension_numbers<[1], [0], [0], [1], [0, 0, 1, 1], [], []>} : vector<16x64xbf16>, vector<64x1024xbf16>, vector<16x1024xf32> -> vector<16x1024xf32>
      %c0_29 = arith.constant 0 : index
      %c0_30 = arith.constant 0 : index
      %46 = vector.load %arg3[%c0_29, %c0_30] : memref<1x1024xf32, #tpu.memory_space<vmem>>, vector<1x1024xf32>
      %47 = vector.broadcast %46 : vector<1x1024xf32> to vector<16x1024xf32>
      %48 = arith.addf %45, %47 : vector<16x1024xf32>
      %cst_31 = arith.constant 0.000000e+00 : f32
      %49 = vector.broadcast %cst_31 : f32 to vector<16x1024xf32>
      %50 = arith.maximumf %48, %49 : vector<16x1024xf32>
      %51 = arith.truncf %50 : vector<16x1024xf32> to vector<16x1024xbf16>
      %c0_32 = arith.constant 0 : index
      %c0_33 = arith.constant 0 : index
      %52 = vector.load %arg17[%c0_32, %c0_33] : memref<16x1024xbf16, #tpu.memory_space<vmem>>, vector<16x1024xbf16>
      tpu.vector_store %arg17[%c0_32, %c0_33], %51 {strides = array<i32>} : memref<16x1024xbf16, #tpu.memory_space<vmem>>, vector<16x1024xbf16>,
      %cst_34 = arith.constant 0.000000e+00 : f32
      %53 = vector.broadcast %cst_34 : f32 to vector<16x1024xf32>
      %c0_35 = arith.constant 0 : index
      %c0_36 = arith.constant 0 : index
      %54 = vector.load %arg18[%c0_35, %c0_36] : memref<16x1024xf32, #tpu.memory_space<vmem>>, vector<16x1024xf32>
      tpu.vector_store %arg18[%c0_35, %c0_36], %53 {strides = array<i32>} : memref<16x1024xf32, #tpu.memory_space<vmem>>, vector<16x1024xf32>,
    } else {
    }
    %c0 = arith.constant 0 : index
    %c0_1 = arith.constant 0 : index
    %3 = vector.load %arg17[%c0, %c0_1] : memref<16x1024xbf16, #tpu.memory_space<vmem>>, vector<16x1024xbf16>
    %c0_2 = arith.constant 0 : index
    %c0_3 = arith.constant 0 : index
    %4 = vector.load %arg4[%c0_2, %c0_3] : memref<1024x1024xbf16, #tpu.memory_space<vmem>>, vector<1024x1024xbf16>
    %cst = arith.constant dense<0.000000e+00> : vector<16x1024xf32>
    %5 = tpu.matmul %3, %4, %cst {dimension_numbers = #tpu.dot_dimension_numbers<[1], [0], [0], [1], [0, 0, 1, 1], [], []>} : vector<16x1024xbf16>, vector<1024x1024xbf16>, vector<16x1024xf32> -> vector<16x1024xf32>
    %c0_4 = arith.constant 0 : index
    %c0_5 = arith.constant 0 : index
    %6 = vector.load %arg5[%c0_4, %c0_5] : memref<1x1024xf32, #tpu.memory_space<vmem>>, vector<1x1024xf32>
    %7 = vector.broadcast %6 : vector<1x1024xf32> to vector<16x1024xf32>
    %8 = arith.addf %5, %7 : vector<16x1024xf32>
    %cst_6 = arith.constant 0.000000e+00 : f32
    %9 = vector.broadcast %cst_6 : f32 to vector<16x1024xf32>
    %10 = arith.maximumf %8, %9 : vector<16x1024xf32>
    %c0_7 = arith.constant 0 : index
    %c0_8 = arith.constant 0 : index
    %11 = vector.load %arg6[%c0_7, %c0_8] : memref<1x1024xf32, #tpu.memory_space<vmem>>, vector<1x1024xf32>
    %c0_9 = arith.constant 0 : index
    %c0_10 = arith.constant 0 : index
    %12 = vector.load %arg7[%c0_9, %c0_10] : memref<1x1024xf32, #tpu.memory_space<vmem>>, vector<1x1024xf32>
    %cst_11 = arith.constant dense<0.000000e+00> : vector<1024xf32>
    %13 = vector.multi_reduction <add>, %10, %cst_11 [0] : vector<16x1024xf32> to vector<1024xf32>
    %14 = vector.shape_cast %13 : vector<1024xf32> to vector<1x1024xf32>
    %cst_12 = arith.constant 6.250000e-02 : f32
    %15 = vector.broadcast %cst_12 : f32 to vector<1x1024xf32>
    %16 = arith.mulf %14, %15 : vector<1x1024xf32>
    %17 = vector.broadcast %16 : vector<1x1024xf32> to vector<16x1024xf32>
    %18 = arith.subf %10, %17 : vector<16x1024xf32>
    %19 = arith.mulf %18, %18 : vector<16x1024xf32>
    %cst_13 = arith.constant dense<0.000000e+00> : vector<1024xf32>
    %20 = vector.multi_reduction <add>, %19, %cst_13 [0] : vector<16x1024xf32> to vector<1024xf32>
    %21 = vector.shape_cast %20 : vector<1024xf32> to vector<1x1024xf32>
    %cst_14 = arith.constant 6.250000e-02 : f32
    %22 = vector.broadcast %cst_14 : f32 to vector<1x1024xf32>
    %23 = arith.mulf %21, %22 : vector<1x1024xf32>
    %cst_15 = arith.constant 9.99999974E-6 : f32
    %24 = vector.broadcast %cst_15 : f32 to vector<1x1024xf32>
    %25 = arith.addf %23, %24 : vector<1x1024xf32>
    %26 = math.rsqrt %25 : vector<1x1024xf32>
    %27 = vector.broadcast %26 : vector<1x1024xf32> to vector<16x1024xf32>
    %28 = arith.mulf %18, %27 : vector<16x1024xf32>
    %29 = vector.broadcast %11 : vector<1x1024xf32> to vector<16x1024xf32>
    %30 = arith.mulf %28, %29 : vector<16x1024xf32>
    %31 = vector.broadcast %12 : vector<1x1024xf32> to vector<16x1024xf32>
    %32 = arith.addf %30, %31 : vector<16x1024xf32>
    %c0_16 = arith.constant 0 : index
    %c0_17 = arith.constant 0 : index
    %33 = vector.load %arg18[%c0_16, %c0_17] : memref<16x1024xf32, #tpu.memory_space<vmem>>, vector<16x1024xf32>
    %c0_18 = arith.constant 0 : index
    %c0_19 = arith.constant 0 : index
    %34 = vector.load %arg8[%c0_18, %c0_19] : memref<1024x1024xbf16, #tpu.memory_space<vmem>>, vector<1024x1024xbf16>
    %35 = arith.truncf %32 : vector<16x1024xf32> to vector<16x1024xbf16>
    %cst_20 = arith.constant dense<0.000000e+00> : vector<16x1024xf32>
    %36 = tpu.matmul %35, %34, %cst_20 {dimension_numbers = #tpu.dot_dimension_numbers<[1], [0], [0], [1], [0, 0, 1, 1], [], []>} : vector<16x1024xbf16>, vector<1024x1024xbf16>, vector<16x1024xf32> -> vector<16x1024xf32>
    %37 = arith.addf %33, %36 : vector<16x1024xf32>
    %c0_21 = arith.constant 0 : index
    %c0_22 = arith.constant 0 : index
    %38 = vector.load %arg18[%c0_21, %c0_22] : memref<16x1024xf32, #tpu.memory_space<vmem>>, vector<16x1024xf32>
    tpu.vector_store %arg18[%c0_21, %c0_22], %37 {strides = array<i32>} : memref<16x1024xf32, #tpu.memory_space<vmem>>, vector<16x1024xf32>,
    %c4_i32 = arith.constant 4 : i32
    %39 = arith.cmpi eq, %arg0, %c4_i32 : i32
    %40 = arith.extui %39 : i1 to i32
    %c0_i32_23 = arith.constant 0 : i32
    %41 = arith.cmpi ne, %40, %c0_i32_23 : i32
    scf.if %41 {
      %c0_24 = arith.constant 0 : index
      %c0_25 = arith.constant 0 : index
      %42 = vector.load %arg18[%c0_24, %c0_25] : memref<16x1024xf32, #tpu.memory_space<vmem>>, vector<16x1024xf32>
      %c0_26 = arith.constant 0 : index
      %c0_27 = arith.constant 0 : index
      %43 = vector.load %arg9[%c0_26, %c0_27] : memref<1x1024xf32, #tpu.memory_space<vmem>>, vector<1x1024xf32>
      %44 = vector.broadcast %43 : vector<1x1024xf32> to vector<16x1024xf32>
      %45 = arith.addf %42, %44 : vector<16x1024xf32>
      %cst_28 = arith.constant 0.000000e+00 : f32
      %46 = vector.broadcast %cst_28 : f32 to vector<16x1024xf32>
      %47 = arith.maximumf %45, %46 : vector<16x1024xf32>
      %c0_29 = arith.constant 0 : index
      %c0_30 = arith.constant 0 : index
      %48 = vector.load %arg10[%c0_29, %c0_30] : memref<1x1024xf32, #tpu.memory_space<vmem>>, vector<1x1024xf32>
      %c0_31 = arith.constant 0 : index
      %c0_32 = arith.constant 0 : index
      %49 = vector.load %arg11[%c0_31, %c0_32] : memref<1x1024xf32, #tpu.memory_space<vmem>>, vector<1x1024xf32>
      %cst_33 = arith.constant dense<0.000000e+00> : vector<1024xf32>
      %50 = vector.multi_reduction <add>, %47, %cst_33 [0] : vector<16x1024xf32> to vector<1024xf32>
      %51 = vector.shape_cast %50 : vector<1024xf32> to vector<1x1024xf32>
      %cst_34 = arith.constant 6.250000e-02 : f32
      %52 = vector.broadcast %cst_34 : f32 to vector<1x1024xf32>
      %53 = arith.mulf %51, %52 : vector<1x1024xf32>
      %54 = vector.broadcast %53 : vector<1x1024xf32> to vector<16x1024xf32>
      %55 = arith.subf %47, %54 : vector<16x1024xf32>
      %56 = arith.mulf %55, %55 : vector<16x1024xf32>
      %cst_35 = arith.constant dense<0.000000e+00> : vector<1024xf32>
      %57 = vector.multi_reduction <add>, %56, %cst_35 [0] : vector<16x1024xf32> to vector<1024xf32>
      %58 = vector.shape_cast %57 : vector<1024xf32> to vector<1x1024xf32>
      %cst_36 = arith.constant 6.250000e-02 : f32
      %59 = vector.broadcast %cst_36 : f32 to vector<1x1024xf32>
      %60 = arith.mulf %58, %59 : vector<1x1024xf32>
      %cst_37 = arith.constant 9.99999974E-6 : f32
      %61 = vector.broadcast %cst_37 : f32 to vector<1x1024xf32>
      %62 = arith.addf %60, %61 : vector<1x1024xf32>
      %63 = math.rsqrt %62 : vector<1x1024xf32>
      %64 = vector.broadcast %63 : vector<1x1024xf32> to vector<16x1024xf32>
      %65 = arith.mulf %55, %64 : vector<16x1024xf32>
      %66 = vector.broadcast %48 : vector<1x1024xf32> to vector<16x1024xf32>
      %67 = arith.mulf %65, %66 : vector<16x1024xf32>
      %68 = vector.broadcast %49 : vector<1x1024xf32> to vector<16x1024xf32>
      %69 = arith.addf %67, %68 : vector<16x1024xf32>
      %c0_38 = arith.constant 0 : index
      %c0_39 = arith.constant 0 : index
      %70 = vector.load %arg12[%c0_38, %c0_39] : memref<1024x128xbf16, #tpu.memory_space<vmem>>, vector<1024x128xbf16>
      %71 = arith.truncf %69 : vector<16x1024xf32> to vector<16x1024xbf16>
      %cst_40 = arith.constant dense<0.000000e+00> : vector<16x128xf32>
      %72 = tpu.matmul %71, %70, %cst_40 {dimension_numbers = #tpu.dot_dimension_numbers<[1], [0], [0], [1], [0, 0, 1, 1], [], []>} : vector<16x1024xbf16>, vector<1024x128xbf16>, vector<16x128xf32> -> vector<16x128xf32>
      %c0_41 = arith.constant 0 : index
      %c0_42 = arith.constant 0 : index
      %73 = vector.load %arg13[%c0_41, %c0_42] : memref<1x128xf32, #tpu.memory_space<vmem>>, vector<1x128xf32>
      %74 = vector.broadcast %73 : vector<1x128xf32> to vector<16x128xf32>
      %75 = arith.addf %72, %74 : vector<16x128xf32>
      %cst_43 = arith.constant 0.000000e+00 : f32
      %76 = vector.broadcast %cst_43 : f32 to vector<16x128xf32>
      %77 = arith.maximumf %75, %76 : vector<16x128xf32>
      %c0_44 = arith.constant 0 : index
      %c0_45 = arith.constant 0 : index
      %78 = vector.load %arg14[%c0_44, %c0_45] : memref<128x128xbf16, #tpu.memory_space<vmem>>, vector<128x128xbf16>
      %79 = arith.truncf %77 : vector<16x128xf32> to vector<16x128xbf16>
      %cst_46 = arith.constant dense<0.000000e+00> : vector<16x128xf32>
      %80 = tpu.matmul %79, %78, %cst_46 {dimension_numbers = #tpu.dot_dimension_numbers<[1], [0], [0], [1], [0, 0, 1, 1], [], []>} : vector<16x128xbf16>, vector<128x128xbf16>, vector<16x128xf32> -> vector<16x128xf32>
      %c0_47 = arith.constant 0 : index
      %c0_48 = arith.constant 0 : index
      %81 = vector.load %arg15[%c0_47, %c0_48] : memref<1x128xf32, #tpu.memory_space<vmem>>, vector<1x128xf32>
      %82 = vector.broadcast %81 : vector<1x128xf32> to vector<16x128xf32>
      %83 = arith.addf %80, %82 : vector<16x128xf32>
      %c0_49 = arith.constant 0 : index
      %c0_50 = arith.constant 0 : index
      %84 = vector.load %arg16[%c0_49, %c0_50] : memref<16x128xf32, #tpu.memory_space<vmem>>, vector<16x128xf32>
      tpu.vector_store %arg16[%c0_49, %c0_50], %83 {strides = array<i32>} : memref<16x128xf32, #tpu.memory_space<vmem>>, vector<16x128xf32>,
    } else {
    }
    return
  }
  func.func @transform_0(%arg0: i32) -> (i32, i32) {
    %c0_i32 = arith.constant 0 : i32
    %c0_i32_0 = arith.constant 0 : i32
    %c0_i32_1 = arith.constant 0 : i32
    return %c0_i32, %c0_i32_0 : i32, i32
  }
  func.func @transform_1(%arg0: i32) -> (i32, i32) {
    %c0_i32 = arith.constant 0 : i32
    %c0_i32_0 = arith.constant 0 : i32
    %c0_i32_1 = arith.constant 0 : i32
    return %c0_i32, %c0_i32_0 : i32, i32
  }
  func.func @transform_2(%arg0: i32) -> (i32, i32) {
    %c0_i32 = arith.constant 0 : i32
    %c0_i32_0 = arith.constant 0 : i32
    %c0_i32_1 = arith.constant 0 : i32
    return %c0_i32, %c0_i32_0 : i32, i32
  }
  func.func @transform_3(%arg0: i32) -> (i32, i32) {
    %c0_i32 = arith.constant 0 : i32
    %c0_i32_0 = arith.constant 0 : i32
    return %c0_i32, %arg0 : i32, i32
  }
  func.func @transform_4(%arg0: i32) -> (i32, i32) {
    %c0_i32 = arith.constant 0 : i32
    %c0_i32_0 = arith.constant 0 : i32
    return %c0_i32, %arg0 : i32, i32
  }
  func.func @transform_5(%arg0: i32) -> (i32, i32) {
    %c0_i32 = arith.constant 0 : i32
    %c0_i32_0 = arith.constant 0 : i32
    return %c0_i32, %arg0 : i32, i32
  }
  func.func @transform_6(%arg0: i32) -> (i32, i32) {
    %c0_i32 = arith.constant 0 : i32
    %c0_i32_0 = arith.constant 0 : i32
    return %c0_i32, %arg0 : i32, i32
  }
  func.func @transform_7(%arg0: i32) -> (i32, i32) {
    %c0_i32 = arith.constant 0 : i32
    %c0_i32_0 = arith.constant 0 : i32
    return %arg0, %c0_i32 : i32, i32
  }
  func.func @transform_8(%arg0: i32) -> (i32, i32) {
    %c0_i32 = arith.constant 0 : i32
    %c0_i32_0 = arith.constant 0 : i32
    %c0_i32_1 = arith.constant 0 : i32
    return %c0_i32, %c0_i32_0 : i32, i32
  }
  func.func @transform_9(%arg0: i32) -> (i32, i32) {
    %c0_i32 = arith.constant 0 : i32
    %c0_i32_0 = arith.constant 0 : i32
    %c0_i32_1 = arith.constant 0 : i32
    return %c0_i32, %c0_i32_0 : i32, i32
  }
  func.func @transform_10(%arg0: i32) -> (i32, i32) {
    %c0_i32 = arith.constant 0 : i32
    %c0_i32_0 = arith.constant 0 : i32
    %c0_i32_1 = arith.constant 0 : i32
    return %c0_i32, %c0_i32_0 : i32, i32
  }
  func.func @transform_11(%arg0: i32) -> (i32, i32) {
    %c0_i32 = arith.constant 0 : i32
    %c0_i32_0 = arith.constant 0 : i32
    %c0_i32_1 = arith.constant 0 : i32
    return %c0_i32, %c0_i32_0 : i32, i32
  }
  func.func @transform_12(%arg0: i32) -> (i32, i32) {
    %c0_i32 = arith.constant 0 : i32
    %c0_i32_0 = arith.constant 0 : i32
    %c0_i32_1 = arith.constant 0 : i32
    return %c0_i32, %c0_i32_0 : i32, i32
  }
  func.func @transform_13(%arg0: i32) -> (i32, i32) {
    %c0_i32 = arith.constant 0 : i32
    %c0_i32_0 = arith.constant 0 : i32
    %c0_i32_1 = arith.constant 0 : i32
    return %c0_i32, %c0_i32_0 : i32, i32
  }
  func.func @transform_14(%arg0: i32) -> (i32, i32) {
    %c0_i32 = arith.constant 0 : i32
    %c0_i32_0 = arith.constant 0 : i32
    %c0_i32_1 = arith.constant 0 : i32
    return %c0_i32, %c0_i32_0 : i32, i32
  }
  func.func @transform_15(%arg0: i32) -> (i32, i32) {
    %c0_i32 = arith.constant 0 : i32
    %c0_i32_0 = arith.constant 0 : i32
    %c0_i32_1 = arith.constant 0 : i32
    return %c0_i32, %c0_i32_0 : i32, i32
  }
}

</mosaic_0001>

<bundles_post_ra>
// kernel: tpu_custom_call.1
= control target key start
LH: loop header
LB: loop body
LE: loop exit
PB: predicated region body
PF: predicated region fallthrough
CT: control target
= control target key end

     0   :  { %s15072_s0 = inlined_call_operand.hbm [shape: f32[16,64], index: 0, kind: input, shape index: {}]   ;;  %s15073_s1 = inlined_call_operand.hbm [shape: bf16[64,1024], index: 1, kind: input, shape index: {}]   ;;  %s15074_s2 = inlined_call_operand.hbm [shape: f32[1,1024], index: 2, kind: input, shape index: {}]   ;;  %s15075_s3 = inlined_call_operand.hbm [shape: bf16[1024,5120], index: 3, kind: input, shape index: {}]   ;;  %s15076_s4 = inlined_call_operand.hbm [shape: f32[1,5120], index: 4, kind: input, shape index: {}]   ;;  %s15077_s5 = inlined_call_operand.hbm [shape: f32[1,5120], index: 5, kind: input, shape index: {}]   ;;  %s15078_s6 = inlined_call_operand.hbm [shape: f32[1,5120], index: 6, kind: input, shape index: {}]   ;;  %s15079_s7 = inlined_call_operand.hbm [shape: bf16[5120,1024], index: 7, kind: input, shape index: {}]   ;;  %s15080_s8 = inlined_call_operand.hbm [shape: f32[1,1024], index: 8, kind: input, shape index: {}]   ;;  %s15081_s9 = inlined_call_operand.hbm [shape: f32[1,1024], index: 9, kind: input, shape index: {}]   ;;  %s15082_s10 = inlined_call_operand.hbm [shape: f32[1,1024], index: 10, kind: input, shape index: {}]   ;;  %s15083_s11 = inlined_call_operand.hbm [shape: bf16[1024,128], index: 11, kind: input, shape index: {}]   ;;  %s15084_s12 = inlined_call_operand.hbm [shape: f32[1,128], index: 12, kind: input, shape index: {}]   ;;  %s15085_s13 = inlined_call_operand.hbm [shape: bf16[128,128], index: 13, kind: input, shape index: {}]   ;;  %s15086_s14 = inlined_call_operand.hbm [shape: f32[1,128], index: 14, kind: input, shape index: {}]   ;;  %s15087_s15 = inlined_call_operand.hbm [shape: f32[16,128], index: 15, kind: output, shape index: {}]  }
   0x1   :  { %15118 = sst [smem:[#allocation45_spill]] %s15073_s1 }
   0x2   :  { %15119 = sst [smem:[#allocation46_spill]] %s15075_s3 }
   0x3   :  { %15120 = sst [smem:[#allocation47_spill]] %s15076_s4 }
   0x4   :  { %15121 = sst [smem:[#allocation48_spill]] %s15077_s5 }
   0x5   :  { %15122 = sst [smem:[#allocation49_spill]] %s15078_s6 }
   0x6   :  { %15123 = sst [smem:[#allocation50_spill]] %s15079_s7 }
   0x7   :  { %15124 = sst [smem:[#allocation51_spill]] %s15080_s8 }
   0x8   :  { %15125 = sst [smem:[#allocation52_spill]] %s15081_s9 }
   0x9   :  { %15126 = sst [smem:[#allocation53_spill]] %s15083_s11 }
   0xa   :  { %15127 = sst [smem:[#allocation54_spill]] %s15084_s12 }
   0xb   :  { %15128 = sst [smem:[#allocation55_spill]] %s15085_s13 }
   0xc   :  { %15129 = sst [smem:[#allocation56_spill]] %s15086_s14 }
   0xd   :  { %15130 = sst [smem:[#allocation57_spill]] %s15087_s15 }
   0xe   :  { %20 = vsyncpa [#allocation5], 0 }
   0xf   :  { %21 = vsyncpa [#allocation8], 0 }
  0x10   :  { %22 = vsyncpa [#allocation11], 0 }
  0x11   :  { %24 = vsyncpa [#allocation11 + $0x1], 0 }
  0x12   :  { %25 = vsyncpa [#allocation14], 0 }
  0x13   :  { %27 = vsyncpa [#allocation14 + $0x1], 0 }
  0x14   :  { %28 = vsyncpa [#allocation17], 0 }
  0x15   :  { %30 = vsyncpa [#allocation17 + $0x1], 0 }
  0x16   :  { %31 = vsyncpa [#allocation20], 0 }
  0x17   :  { %32 = vsyncpa [#allocation23], 0 }
  0x18   :  { %33 = vsyncpa [#allocation26], 0 }
  0x19   :  { %34 = vsyncpa [#allocation6], 0  ;;  %s13008_s18 = smov 0   ;;  %s13010_s19 = smov 0  }
  0x1a   :  { %s13012_s20 = smov 0   ;;  %s13014_s21 = smov 0  }
  0x1b LB: > { %15131 = sst [smem:[#allocation39_spill]] %s12889_s19  ;;  %s12899_s22 = smov [#allocation7]   ;;  %s12897_s21 = sphi %s13014_s21, %s15184_s21   ;;  %s12893_s20 = sphi %s13012_s20, %s15187_s20   ;;  %s12889_s19 = sphi %s13010_s19, %s15186_s19   ;;  %s12885_s18 = sphi %s13008_s18, %s15185_s18  }
  0x1c   : > { %15132 = sst [smem:[#allocation40_spill]] %s12893_s20  ;;  %s431_s23 = sshll.u32 %s12899_s22, 4  ;;  %s13035_s23 = int_to_ptr.vmem [resolvable:$true] %s431_s23 }
  0x1d   : > { %s13029_s24 = sadd.s32 4294967295, %s12897_s21   ;;  %p10657_p0 = scmp.ge.s32.totalorder %s12897_s21, 1 }
  0x1e   : > { %p15095_p1 = scmp.eq.s32.totalorder %s13029_s24, 0  ;;  %p406_p2 = scmp.lt.s32.totalorder %s12897_s21, 6 }
  0x1f   : > { %s12900_s26 = smov [#allocation18]   ;;  %s12901_s29 = smov [#allocation19]  }
  0x20   : > { %p13037_p4 = pnand %p10657_p0, %p406_p2  ;;  %s456_s27 = sshll.u32 %s12900_s26, 4  ;;  %s13049_s27 = int_to_ptr.vmem [resolvable:$true] %s456_s27 }
  0x21   : > { %s467_s30 = sshll.u32 %s12901_s29, 4  ;;  %s15136_s1 = sld [smem:[#allocation45_spill]]  ;;  %s13051_s30 = int_to_ptr.vmem [resolvable:$true] %s467_s30 }
  0x22   : > { %s15133_s25 = scalar_select %p13037_p4, 1, 0 }
  0x23   : > { %p12130_p5 = pneg %p13037_p4 }
  0x24   : > { %15134 = sst [smem:[#allocation41_spill]] %s15133_s25 }
  0x25   : > { %p13045_p6 = pnand %p12130_p5, %p15095_p1 }
  0x27   : > { %s15135_s28 = scalar_select %p13045_p6, 1, 0 }
  0x28   : > { %s12371_s22 = scalar_lea.hbm %s15136_s1, 4096  ;;  %p13061_p8 = pneg %p13045_p6 }
  0x29   : > { %p12372_p7 = scmp.ne.s32.totalorder %s15136_s1, %s12371_s22  ;;  %p12378_p11 = scmp.lt.u32.totalorder %s12371_s22, %s15136_s1 }
  0x2a   : > { %s15137_s26 = scalar_select %p13061_p8, 1, 0 }
  0x2b   : > { %p12374_p9 = pnand %p13061_p8, %p12372_p7 }
  0x2d   : > { %p12375_p10 = pneg %p12374_p9 }
  0x2f   : > { %p12380_p12 = pnand %p12378_p11, %p12375_p10 }
  0x31   : > { %12383 = shalt.err (!%p12380_p12)
}
  0x32   : > { %s12384_s15 = scalar_lea.vmem %s13035_s23, 4096  ;;  %p12392_p5 = scmp.lt.s32.totalorder %s13035_s23, %s13035_s23 }
  0x33   : > { %p12385_p13 = scmp.ne.s32.totalorder %s13035_s23, %s12384_s15  ;;  %p12393_p3 = scmp.lt.s32.totalorder %s12384_s15, %s12384_s15 }
  0x35   : > { %p12387_p0 = pnand %p12385_p13, %p13061_p8  ;;  %p12394_p7 = por %p12393_p3, %p12392_p5 }
  0x37   : > { %p12388_p2 = pneg %p12387_p0 }
  0x39   : > { %p12395_p9 = pnand %p12394_p7, %p12388_p2 }
  0x3b   : > { %12398 = shalt.err (!%p12395_p9)
}
  0x3c   : > { %s15097_s25 = smov 512   ;;  %s15099_s7 = smov 32  }
  0x3d   : > { %12136 = dma.hbm_to_vmem [thread:$0]  (!%p13045_p6), %s15136_s1, 4096, %s13035_s23, [#allocation8], %s15097_s25, %s15097_s25, %s15099_s7  }
  0x3e   : > { %s15138_s8 = sld [smem:[#allocation51_spill]] }
  0x44   : > { %s12399_s15 = scalar_lea.hbm %s15138_s8, 128 }
  0x45   : > { %p12400_p3 = scmp.ne.s32.totalorder %s15138_s8, %s12399_s15  ;;  %p12406_p12 = scmp.lt.u32.totalorder %s12399_s15, %s15138_s8 }
  0x47   : > { %p12402_p10 = pnand %p12400_p3, %p13061_p8 }
  0x49   : > { %p12403_p11 = pneg %p12402_p10 }
  0x4b   : > { %p12408_p13 = pnand %p12406_p12, %p12403_p11 }
  0x4d   : > { %12411 = shalt.err (!%p12408_p13)
}
  0x4e   : > { %s12412_s23 = scalar_lea.vmem %s13049_s27, 128  ;;  %p12420_p7 = scmp.lt.s32.totalorder %s13049_s27, %s13049_s27 }
  0x4f   : > { %p12413_p0 = scmp.ne.s32.totalorder %s13049_s27, %s12412_s23  ;;  %p12421_p9 = scmp.lt.s32.totalorder %s12412_s23, %s12412_s23 }
  0x51   : > { %p12415_p2 = pnand %p12413_p0, %p13061_p8  ;;  %p12422_p3 = por %p12421_p9, %p12420_p7 }
  0x53   : > { %p12416_p5 = pneg %p12415_p2 }
  0x55   : > { %p12423_p10 = pnand %p12422_p3, %p12416_p5 }
  0x57   : > { %12426 = shalt.err (!%p12423_p10)
}
  0x58   : > { %12142 = dma.hbm_to_vmem [thread:$0]  (!%p13045_p6), %s15138_s8, 128, %s13049_s27, [#allocation17]  }
  0x59   : > { %s15139_s9 = sld [smem:[#allocation52_spill]] }
  0x5f   : > { %s12427_s16 = scalar_lea.hbm %s15139_s9, 128 }
  0x60   : > { %p12428_p11 = scmp.ne.s32.totalorder %s15139_s9, %s12427_s16  ;;  %p12434_p0 = scmp.lt.u32.totalorder %s12427_s16, %s15139_s9 }
  0x62   : > { %p12430_p12 = pnand %p12428_p11, %p13061_p8 }
  0x64   : > { %p12431_p13 = pneg %p12430_p12 }
  0x66   : > { %p12436_p2 = pnand %p12434_p0, %p12431_p13 }
  0x68   : > { %12439 = shalt.err (!%p12436_p2)
}
  0x69   : > { %s12440_s27 = scalar_lea.vmem %s13051_s30, 128  ;;  %p12448_p3 = scmp.lt.s32.totalorder %s13051_s30, %s13051_s30 }
  0x6a   : > { %p12441_p5 = scmp.ne.s32.totalorder %s13051_s30, %s12440_s27  ;;  %p12449_p10 = scmp.lt.s32.totalorder %s12440_s27, %s12440_s27 }
  0x6c   : > { %p12443_p7 = pnand %p12441_p5, %p13061_p8  ;;  %p12450_p11 = por %p12449_p10, %p12448_p3 }
  0x6e   : > { %p12444_p9 = pneg %p12443_p7 }
  0x70   : > { %p12451_p12 = pnand %p12450_p11, %p12444_p9 }
  0x72   : > { %12454 = shalt.err (!%p12451_p12)
}
  0x73   : > { %12145 = dma.hbm_to_vmem [thread:$0]  (!%p13045_p6), %s15139_s9, 128, %s13051_s30, [#allocation20]  }
  0x74   : > { %s12904_s6 = smov [#allocation22]   ;;  %s15140_s11 = sld [smem:[#allocation53_spill]] }
  0x75   : > { %s488_s12 = sshll.u32 %s12904_s6, 4  ;;  %s489_s12 = int_to_ptr.vmem [resolvable:$true] %s488_s12 }
  0x7a   : > { %s12455_s17 = scalar_lea.hbm %s15140_s11, 8192 }
  0x7b   : > { %p12456_p13 = scmp.ne.s32.totalorder %s15140_s11, %s12455_s17  ;;  %p12462_p5 = scmp.lt.u32.totalorder %s12455_s17, %s15140_s11 }
  0x7d   : > { %p12458_p0 = pnand %p12456_p13, %p13061_p8 }
  0x7f   : > { %p12459_p2 = pneg %p12458_p0 }
  0x81   : > { %p12464_p7 = pnand %p12462_p5, %p12459_p2 }
  0x83   : > { %12467 = shalt.err (!%p12464_p7)
}
  0x84   : > { %s12468_s30 = scalar_lea.vmem %s489_s12, 8192  ;;  %p12476_p11 = scmp.lt.s32.totalorder %s489_s12, %s489_s12 }
  0x85   : > { %p12469_p9 = scmp.ne.s32.totalorder %s489_s12, %s12468_s30  ;;  %p12477_p12 = scmp.lt.s32.totalorder %s12468_s30, %s12468_s30 }
  0x87   : > { %p12471_p3 = pnand %p12469_p9, %p13061_p8  ;;  %p12478_p1 = por %p12477_p12, %p12476_p11 }
  0x89   : > { %p12472_p10 = pneg %p12471_p3 }
  0x8b   : > { %p12479_p4 = pnand %p12478_p1, %p12472_p10 }
  0x8d   : > { %12482 = shalt.err (!%p12479_p4)
}
  0x8e   : > { %s12905_s23 = smov 64   ;;  %s12906_s4 = smov 4  }
  0x8f   : > { %12151 = dma.hbm_to_vmem [thread:$0]  (!%p13045_p6), %s15140_s11, 8192, %s489_s12, [#allocation23], %s12905_s23, %s12905_s23, %s12906_s4  }
  0x90   : > { %s12907_s16 = smov [#allocation25]   ;;  %s15141_s13 = sld [smem:[#allocation55_spill]] }
  0x91   : > { %s512_s17 = sshll.u32 %s12907_s16, 4  ;;  %s513_s17 = int_to_ptr.vmem [resolvable:$true] %s512_s17 }
  0x96   : > { %s12483_s15 = scalar_lea.hbm %s15141_s13, 1024 }
  0x97   : > { %p12484_p1 = scmp.ne.s32.totalorder %s15141_s13, %s12483_s15  ;;  %p12490_p0 = scmp.lt.u32.totalorder %s12483_s15, %s15141_s13 }
  0x99   : > { %p12486_p4 = pnand %p12484_p1, %p13061_p8 }
  0x9b   : > { %p12487_p13 = pneg %p12486_p4 }
  0x9d   : > { %p12492_p2 = pnand %p12490_p0, %p12487_p13 }
  0x9f   : > { %12495 = shalt.err (!%p12492_p2)
}
  0xa0   : > { %s12496_s12 = scalar_lea.vmem %s513_s17, 1024  ;;  %p12504_p3 = scmp.lt.s32.totalorder %s513_s17, %s513_s17 }
  0xa1   : > { %p12497_p5 = scmp.ne.s32.totalorder %s513_s17, %s12496_s12  ;;  %p12505_p10 = scmp.lt.s32.totalorder %s12496_s12, %s12496_s12 }
  0xa3   : > { %p12499_p7 = pnand %p12497_p5, %p13061_p8  ;;  %p12506_p11 = por %p12505_p10, %p12504_p3 }
  0xa5   : > { %p12500_p9 = pneg %p12499_p7 }
  0xa7   : > { %p12507_p12 = pnand %p12506_p11, %p12500_p9 }
  0xa9   : > { %12510 = shalt.err (!%p12507_p12)
}
  0xaa   : > { %12157 = dma.hbm_to_vmem [thread:$0]  (!%p13045_p6), %s15141_s13, 1024, %s513_s17, [#allocation26], %s12905_s23, %s12905_s23, %s12906_s4  }
  0xab   : > { %s13168_s25 = sadd.s32 1, %s12897_s21   ;;  %s110_s16 = sadd.s32 1, %s12893_s20 }
  0xac   : > { %15142 = sst [smem:[#allocation42_spill]] %s13168_s25  ;;  %s107_s7 = ssub.s32 %s12897_s21, %s13168_s25 }
  0xad   : > { %p108_p1 = scmp.eq.s32.totalorder %s107_s7, 0  ;;  %p117_p4 = scmp.ne.s32.totalorder %s12893_s20, %s12889_s19 }
  0xae   : > { %p118_p13 = scmp.eq.s32.totalorder %s12897_s21, 0  ;;  %p123_p0 = scmp.ne.s32.totalorder %s12889_s19, %s12885_s18 }
  0xaf   : > { %s13179_s22 = scalar_select %p108_p1, %s12893_s20, %s110_s16  }
  0xb0   : > { %p119_p2 = por %p118_p13, %p117_p4  ;;  %p15144_p5 = scmp.eq.s32.totalorder %s13029_s24, 0 }
  0xb1   : > { %15143 = sst [smem:[#allocation43_spill]] %s13179_s22  ;;  %p12187_p9 = scmp.lt.s32.totalorder %s12897_s21, 5 }
  0xb2   : > { %p13183_p7 = por %p15144_p5, %p123_p0  ;;  %s13189_s15 = sand.u32 1, %s12897_s21  }
  0xb3   : > { %s539_s23 = sand.u32 1, %s12893_s20   ;;  %s11841_s17 = sshll.u32 %s12897_s21, 9 }
  0xb4   : > { %s15145_s29 = scalar_select %p13183_p7, 1, 0 }
  0xb5   : > { %s13192_s4 = sshll.u32 %s539_s23, 12  ;;  %s15147_s3 = sld [smem:[#allocation46_spill]] }
  0xb6   : > { %15146 = sst [smem:[#allocation44_spill]] %s15145_s29  ;;  %s541_s12 = scalar_lea.vmem [#allocation10], %s13192_s4 }
  0xb7   : > { %s548_s6 = sshll.u32 %s541_s12, 4  ;;  %p13201_p3 = pnand %p12187_p9, %p119_p2  ;;  %s13205_s6 = int_to_ptr.vmem [resolvable:$true] %s548_s6 }
  0xb8   : > { %s13207_s7 = sshll.u32 %s539_s23, 3  ;;  %s15106_s16 = scalar_lea.sflag [#allocation11], %s13189_s15 }
  0xb9   : > { %s15148_s14 = scalar_select %p13201_p3, 1, 0 }
  0xba   : > { %p13214_p11 = pneg %p13201_p3 }
  0xbb   : > { %s13198_s18 = scalar_lea.hbm %s15147_s3, %s11841_s17  ;;  %s12516_s12 = scalar_lea.hbm %s15147_s3, 327680 }
  0xbc   : > { %s12511_s1 = scalar_lea.hbm %s13198_s18, 65536  ;;  %p12517_p4 = scmp.lt.u32.totalorder %s13198_s18, %s15147_s3 }
  0xbd   : > { %p12512_p10 = scmp.ne.s32.totalorder %s13198_s18, %s12511_s1  ;;  %p12518_p13 = scmp.lt.u32.totalorder %s12516_s12, %s12511_s1 }
  0xbe   : > { %s15149_s17 = scalar_select %p13214_p11, 1, 0 }
  0xbf   : > { %p12514_p12 = pnand %p13214_p11, %p12512_p10  ;;  %p12519_p0 = por %p12518_p13, %p12517_p4 }
  0xc0   : > { %p12520_p2 = scmp.lt.u32.totalorder %s12511_s1, %s13198_s18 }
  0xc1   : > { %p12515_p1 = pneg %p12514_p12 }
  0xc2   : > { %p12521_p5 = por %p12520_p2, %p12519_p0 }
  0xc4   : > { %p12522_p9 = pnand %p12521_p5, %p12515_p1 }
  0xc6   : > { %12525 = shalt.err (!%p12522_p9)
}
  0xc7   : > { %s12526_s23 = scalar_lea.vmem %s13205_s6, 65536  ;;  %s12908_s27 = smov [#allocation10]  }
  0xc8   : > { %p12527_p10 = scmp.ne.s32.totalorder %s13205_s6, %s12526_s23  ;;  %s12531_s30 = sshll.u32 %s12908_s27, 4  ;;  %s12532_s30 = int_to_ptr.vmem [resolvable:$false] %s12531_s30 }
  0xc9   : > { %s12533_s8 = scalar_lea.vmem %s12532_s30, 131072  ;;  %p12534_p6 = scmp.lt.s32.totalorder %s13205_s6, %s12532_s30 }
  0xca   : > { %p12529_p12 = pnand %p12527_p10, %p13214_p11  ;;  %p12535_p8 = scmp.lt.s32.totalorder %s12533_s8, %s12526_s23 }
  0xcc   : > { %p12530_p7 = pneg %p12529_p12  ;;  %p12536_p4 = por %p12535_p8, %p12534_p6 }
  0xce   : > { %p12537_p13 = pnand %p12536_p4, %p12530_p7 }
  0xd0   : > { %12540 = shalt.err (!%p12537_p13)
}
  0xd1   : > { %s12909_s1 = smov 2560   ;;  %s15150_s9 = smov 32  }
  0xd2   : > { %s15151_s12 = smov 512   ;;  %s13242_s27 = sshll.u32 %s12897_s21, 7 }
  0xd3   : > { %12164 = dma.hbm_to_vmem [thread:$0]  (!%p13201_p3), %s13198_s18, 65536, %s13205_s6, %s15106_s16, %s12909_s1, %s15151_s12, %s15150_s9  }
  0xd4   : > { %s15152_s5 = sld [smem:[#allocation48_spill]]  ;;  %s581_s3 = scalar_lea.vmem [#allocation13], %s13207_s7 }
  0xd5   : > { %s589_s11 = sshll.u32 %s581_s3, 4  ;;  %s12910_s13 = smov [#allocation4]   ;;  %s13251_s11 = int_to_ptr.vmem [resolvable:$true] %s589_s11 }
  0xd6   : > { %s13253_s22 = sshll.u32 %s12910_s13, 4  ;;  %s15110_s18 = scalar_lea.sflag [#allocation14], %s13189_s15  ;;  %s419_s22 = int_to_ptr.vmem [resolvable:$true] %s13253_s22 }
  0xda   : > { %s13248_s8 = scalar_lea.hbm %s15152_s5, %s13242_s27  ;;  %s12546_s30 = scalar_lea.hbm %s15152_s5, 640 }
  0xdb   : > { %s12541_s6 = scalar_lea.hbm %s13248_s8, 128  ;;  %p12547_p1 = scmp.lt.u32.totalorder %s13248_s8, %s15152_s5 }
  0xdc   : > { %p12542_p6 = scmp.ne.s32.totalorder %s13248_s8, %s12541_s6  ;;  %p12548_p0 = scmp.lt.u32.totalorder %s12546_s30, %s12541_s6 }
  0xdd   : > { %p12550_p5 = scmp.lt.u32.totalorder %s12541_s6, %s13248_s8 }
  0xde   : > { %p12544_p8 = pnand %p12542_p6, %p13214_p11  ;;  %p12549_p2 = por %p12548_p0, %p12547_p1 }
  0xe0   : > { %p12545_p7 = pneg %p12544_p8  ;;  %p12551_p9 = por %p12550_p5, %p12549_p2 }
  0xe2   : > { %p12552_p10 = pnand %p12551_p9, %p12545_p7 }
  0xe4   : > { %12555 = shalt.err (!%p12552_p10)
}
  0xe5   : > { %s12556_s3 = scalar_lea.vmem %s13251_s11, 128  ;;  %s12911_s13 = smov [#allocation13]  }
  0xe6   : > { %p12557_p12 = scmp.ne.s32.totalorder %s13251_s11, %s12556_s3  ;;  %s12561_s1 = sshll.u32 %s12911_s13, 4  ;;  %s12562_s1 = int_to_ptr.vmem [resolvable:$false] %s12561_s1 }
  0xe7   : > { %s12563_s20 = scalar_lea.vmem %s12562_s1, 256  ;;  %p12564_p6 = scmp.lt.s32.totalorder %s13251_s11, %s12562_s1 }
  0xe8   : > { %p12559_p4 = pnand %p12557_p12, %p13214_p11  ;;  %p12565_p8 = scmp.lt.s32.totalorder %s12563_s20, %s12556_s3 }
  0xea   : > { %p12560_p13 = pneg %p12559_p4  ;;  %p12566_p1 = por %p12565_p8, %p12564_p6 }
  0xec   : > { %p12567_p0 = pnand %p12566_p1, %p12560_p13 }
  0xee   : > { %12570 = shalt.err (!%p12567_p0)
}
  0xef   : > { %12170 = dma.hbm_to_vmem [thread:$0]  (!%p13201_p3), %s13248_s8, 128, %s13251_s11, %s15110_s18  }
  0xf0   : > { %s12571_s23 = scalar_lea.hbm %s15072_s0, 256  ;;  %p15153_p2 = scmp.ne.s32.totalorder %s15137_s26, 0 }
  0xf1   : > { %p12572_p7 = scmp.ne.s32.totalorder %s15072_s0, %s12571_s23  ;;  %p12578_p10 = scmp.lt.u32.totalorder %s12571_s23, %s15072_s0 }
  0xf3   : > { %p12574_p5 = pnand %p12572_p7, %p15153_p2 }
  0xf5   : > { %p12575_p9 = pneg %p12574_p5 }
  0xf7   : > { %p12580_p12 = pnand %p12578_p10, %p12575_p9 }
  0xf9   : > { %12583 = shalt.err (!%p12580_p12)
}
  0xfa   : > { %s12584_s20 = scalar_lea.vmem %s419_s22, 256  ;;  %p12592_p8 = scmp.lt.s32.totalorder %s419_s22, %s419_s22 }
  0xfb   : > { %p12585_p4 = scmp.ne.s32.totalorder %s419_s22, %s12584_s20  ;;  %p12593_p1 = scmp.lt.s32.totalorder %s12584_s20, %s12584_s20 }
  0xfd   : > { %p12587_p13 = pnand %p12585_p4, %p15153_p2  ;;  %p12594_p0 = por %p12593_p1, %p12592_p8 }
  0xff   : > { %p12588_p6 = pneg %p12587_p13 }
 0x101   : > { %p12595_p3 = pnand %p12594_p0, %p12588_p6 }
 0x103   : > { %12598 = shalt.err (!%p12595_p3)
}
 0x104   : > { %s12912_s11 = smov 128   ;;  %s12913_s8 = smov 8  }
 0x105   : > { %p15154_p7 = scmp.ne.s32.totalorder %s15135_s28, 0  ;;  %s12914_s23 = smov [#allocation9]  }
 0x106   : > { %s445_s30 = sshll.u32 %s12914_s23, 4  ;;  %s12915_s13 = smov [#allocation21]   ;;  %s446_s30 = int_to_ptr.vmem [resolvable:$true] %s445_s30 }
 0x107   : > { %12133 = dma.hbm_to_vmem [thread:$0]  (!%p15154_p7), %s15072_s0, 256, %s419_s22, [#allocation5], %s12912_s11, %s12912_s11, %s12913_s8  }
 0x108   : > { %s478_s3 = sshll.u32 %s12915_s13, 4  ;;  %s12599_s20 = scalar_lea.hbm %s15074_s2, 128  ;;  %s479_s3 = int_to_ptr.vmem [resolvable:$true] %s478_s3 }
 0x109   : > { %p12600_p3 = scmp.ne.s32.totalorder %s15074_s2, %s12599_s20  ;;  %p12606_p10 = scmp.lt.u32.totalorder %s12599_s20, %s15074_s2 }
 0x10b   : > { %p12602_p5 = pnand %p12600_p3, %p15153_p2 }
 0x10d   : > { %p12603_p9 = pneg %p12602_p5 }
 0x10f   : > { %p12608_p12 = pnand %p12606_p10, %p12603_p9 }
 0x111   : > { %12611 = shalt.err (!%p12608_p12)
}
 0x112   : > { %s12612_s22 = scalar_lea.vmem %s446_s30, 128  ;;  %p12620_p8 = scmp.lt.s32.totalorder %s446_s30, %s446_s30 }
 0x113   : > { %p12613_p4 = scmp.ne.s32.totalorder %s446_s30, %s12612_s22  ;;  %p12621_p1 = scmp.lt.s32.totalorder %s12612_s22, %s12612_s22 }
 0x115   : > { %p12615_p13 = pnand %p12613_p4, %p15153_p2  ;;  %p12622_p0 = por %p12621_p1, %p12620_p8 }
 0x117   : > { %p12616_p6 = pneg %p12615_p13 }
 0x119   : > { %p12623_p11 = pnand %p12622_p0, %p12616_p6 }
 0x11b   : > { %12626 = shalt.err (!%p12623_p11)
}
 0x11c   : > { %12139 = dma.hbm_to_vmem [thread:$0]  (!%p15154_p7), %s15074_s2, 128, %s446_s30, [#allocation8]  }
 0x11d   : > { %s12627_s18 = scalar_lea.hbm %s15082_s10, 128 }
 0x11e   : > { %p12628_p3 = scmp.ne.s32.totalorder %s15082_s10, %s12627_s18  ;;  %p12634_p11 = scmp.lt.u32.totalorder %s12627_s18, %s15082_s10 }
 0x120   : > { %p12630_p5 = pnand %p12628_p3, %p15153_p2 }
 0x122   : > { %p12631_p9 = pneg %p12630_p5 }
 0x124   : > { %p12636_p10 = pnand %p12634_p11, %p12631_p9 }
 0x126   : > { %12639 = shalt.err (!%p12636_p10)
}
 0x127   : > { %s12640_s23 = scalar_lea.vmem %s479_s3, 128  ;;  %p12648_p6 = scmp.lt.s32.totalorder %s479_s3, %s479_s3 }
 0x128   : > { %p12641_p12 = scmp.ne.s32.totalorder %s479_s3, %s12640_s23  ;;  %p12649_p8 = scmp.lt.s32.totalorder %s12640_s23, %s12640_s23 }
 0x12a   : > { %p12643_p4 = pnand %p12641_p12, %p15153_p2  ;;  %p12650_p1 = por %p12649_p8, %p12648_p6 }
 0x12c   : > { %p12644_p13 = pneg %p12643_p4 }
 0x12e   : > { %p12651_p0 = pnand %p12650_p1, %p12644_p13 }
 0x130   : > { %12654 = shalt.err (!%p12651_p0)
}
 0x131   : > { %12148 = dma.hbm_to_vmem [thread:$0]  (!%p15154_p7), %s15082_s10, 128, %s479_s3, [#allocation20]  }
 0x132   : > { %s12916_s1 = smov [#allocation24]   ;;  %s12917_s22 = smov [#allocation27]  }
 0x133   : > { %s502_s20 = sshll.u32 %s12916_s1, 4  ;;  %s526_s5 = sshll.u32 %s12917_s22, 4  ;;  %s503_s20 = int_to_ptr.vmem [resolvable:$true] %s502_s20  ;;  %s527_s5 = int_to_ptr.vmem [resolvable:$true] %s526_s5 }
 0x134   : > { %s15155_s29 = sld [smem:[#allocation54_spill]] }
 0x13a   : > { %s12655_s18 = scalar_lea.hbm %s15155_s29, 16 }
 0x13b   : > { %p12656_p3 = scmp.ne.s32.totalorder %s15155_s29, %s12655_s18  ;;  %p12662_p11 = scmp.lt.u32.totalorder %s12655_s18, %s15155_s29 }
 0x13d   : > { %p12658_p5 = pnand %p12656_p3, %p15153_p2 }
 0x13f   : > { %p12659_p9 = pneg %p12658_p5 }
 0x141   : > { %p12664_p10 = pnand %p12662_p11, %p12659_p9 }
 0x143   : > { %12667 = shalt.err (!%p12664_p10)
}
 0x144   : > { %s12668_s3 = scalar_lea.vmem %s503_s20, 16  ;;  %s12675_s23 = scalar_lea.vmem %s503_s20, 32 }
 0x145   : > { %p12669_p12 = scmp.ne.s32.totalorder %s503_s20, %s12668_s3  ;;  %p12676_p6 = scmp.lt.s32.totalorder %s503_s20, %s503_s20 }
 0x146   : > { %p12677_p8 = scmp.lt.s32.totalorder %s12675_s23, %s12668_s3 }
 0x147   : > { %p12671_p4 = pnand %p12669_p12, %p15153_p2 }
 0x148   : > { %p12678_p1 = por %p12677_p8, %p12676_p6 }
 0x149   : > { %p12672_p13 = pneg %p12671_p4 }
 0x14b   : > { %p12679_p0 = pnand %p12678_p1, %p12672_p13 }
 0x14d   : > { %12682 = shalt.err (!%p12679_p0)
}
 0x14e   : > { %12154 = dma.hbm_to_vmem [thread:$0]  (!%p15154_p7), %s15155_s29, 16, %s503_s20, [#allocation23]  }
 0x14f   : > { %s15156_s25 = sld [smem:[#allocation56_spill]] }
 0x155   : > { %s12683_s19 = scalar_lea.hbm %s15156_s25, 16 }
 0x156   : > { %p12684_p3 = scmp.ne.s32.totalorder %s15156_s25, %s12683_s19  ;;  %p12690_p11 = scmp.lt.u32.totalorder %s12683_s19, %s15156_s25 }
 0x158   : > { %p12686_p5 = pnand %p12684_p3, %p15153_p2 }
 0x15a   : > { %p12687_p9 = pneg %p12686_p5 }
 0x15c   : > { %p12692_p10 = pnand %p12690_p11, %p12687_p9 }
 0x15e   : > { %12695 = shalt.err (!%p12692_p10)
}
 0x15f   : > { %s12696_s6 = scalar_lea.vmem %s527_s5, 16  ;;  %s12703_s20 = scalar_lea.vmem %s527_s5, 32 }
 0x160   : > { %p12697_p12 = scmp.ne.s32.totalorder %s527_s5, %s12696_s6  ;;  %p12704_p6 = scmp.lt.s32.totalorder %s527_s5, %s527_s5 }
 0x161   : > { %p12705_p8 = scmp.lt.s32.totalorder %s12703_s20, %s12696_s6 }
 0x162   : > { %p12699_p4 = pnand %p12697_p12, %p15153_p2 }
 0x163   : > { %p12706_p1 = por %p12705_p8, %p12704_p6 }
 0x164   : > { %p12700_p13 = pneg %p12699_p4 }
 0x166   : > { %p12707_p0 = pnand %p12706_p1, %p12700_p13 }
 0x168   : > { %12710 = shalt.err (!%p12707_p0)
}
 0x169   : > { %12160 = dma.hbm_to_vmem [thread:$0]  (!%p15154_p7), %s15156_s25, 16, %s527_s5, [#allocation26]  }
 0x16a   : > { %s15157_s26 = sld [smem:[#allocation47_spill]]  ;;  %s562_s22 = scalar_lea.vmem [#allocation12], %s13207_s7 }
 0x16b   : > { %s570_s19 = sshll.u32 %s562_s22, 4  ;;  %p15158_p3 = scmp.ne.s32.totalorder %s15149_s17, 0  ;;  %s571_s19 = int_to_ptr.vmem [resolvable:$true] %s570_s19 }
 0x170   : > { %s13374_s1 = scalar_lea.hbm %s15157_s26, %s13242_s27  ;;  %s12716_s5 = scalar_lea.hbm %s15157_s26, 640 }
 0x171   : > { %s12711_s28 = scalar_lea.hbm %s13374_s1, 128  ;;  %p12717_p7 = scmp.lt.u32.totalorder %s13374_s1, %s15157_s26 }
 0x172   : > { %p12712_p2 = scmp.ne.s32.totalorder %s13374_s1, %s12711_s28  ;;  %p12718_p11 = scmp.lt.u32.totalorder %s12716_s5, %s12711_s28 }
 0x173   : > { %p12720_p12 = scmp.lt.u32.totalorder %s12711_s28, %s13374_s1 }
 0x174   : > { %p12714_p5 = pnand %p12712_p2, %p15158_p3  ;;  %p12719_p10 = por %p12718_p11, %p12717_p7 }
 0x176   : > { %p12715_p9 = pneg %p12714_p5  ;;  %p12721_p4 = por %p12720_p12, %p12719_p10 }
 0x178   : > { %p12722_p13 = pnand %p12721_p4, %p12715_p9 }
 0x17a   : > { %12725 = shalt.err (!%p12722_p13)
}
 0x17b   : > { %s12726_s6 = scalar_lea.vmem %s571_s19, 128  ;;  %s12918_s20 = smov [#allocation12]  }
 0x17c   : > { %p12727_p6 = scmp.ne.s32.totalorder %s571_s19, %s12726_s6  ;;  %s12731_s3 = sshll.u32 %s12918_s20, 4  ;;  %s12732_s3 = int_to_ptr.vmem [resolvable:$false] %s12731_s3 }
 0x17d   : > { %s12733_s23 = scalar_lea.vmem %s12732_s3, 256  ;;  %p12734_p0 = scmp.lt.s32.totalorder %s571_s19, %s12732_s3 }
 0x17e   : > { %p12729_p8 = pnand %p12727_p6, %p15158_p3  ;;  %p12735_p2 = scmp.lt.s32.totalorder %s12733_s23, %s12726_s6 }
 0x180   : > { %p12730_p1 = pneg %p12729_p8  ;;  %p12736_p5 = por %p12735_p2, %p12734_p0 }
 0x182   : > { %p12737_p7 = pnand %p12736_p5, %p12730_p1 }
 0x184   : > { %12740 = shalt.err (!%p12737_p7)
}
 0x185   : > { %p15159_p11 = scmp.ne.s32.totalorder %s15148_s14, 0  ;;  %s15160_s30 = scalar_lea.sflag [#allocation11], %s13189_s15 }
 0x186   : > { %s15161_s28 = sld [smem:[#allocation49_spill]]  ;;  %s600_s11 = scalar_lea.vmem [#allocation15], %s13207_s7 }
 0x187   : > { %12167 = dma.hbm_to_vmem [thread:$0]  (!%p15159_p11), %s13374_s1, 128, %s571_s19, %s15160_s30  }
 0x188   : > { %s608_s5 = sshll.u32 %s600_s11, 4  ;;  %s609_s5 = int_to_ptr.vmem [resolvable:$true] %s608_s5 }
 0x18c   : > { %s13400_s18 = scalar_lea.hbm %s15161_s28, %s13242_s27  ;;  %s12746_s1 = scalar_lea.hbm %s15161_s28, 640 }
 0x18d   : > { %s12741_s8 = scalar_lea.hbm %s13400_s18, 128  ;;  %p12747_p4 = scmp.lt.u32.totalorder %s13400_s18, %s15161_s28 }
 0x18e   : > { %p12742_p9 = scmp.ne.s32.totalorder %s13400_s18, %s12741_s8  ;;  %p12748_p13 = scmp.lt.u32.totalorder %s12746_s1, %s12741_s8 }
 0x18f   : > { %p12750_p8 = scmp.lt.u32.totalorder %s12741_s8, %s13400_s18 }
 0x190   : > { %p12744_p10 = pnand %p12742_p9, %p15158_p3  ;;  %p12749_p6 = por %p12748_p13, %p12747_p4 }
 0x192   : > { %p12745_p12 = pneg %p12744_p10  ;;  %p12751_p1 = por %p12750_p8, %p12749_p6 }
 0x194   : > { %p12752_p0 = pnand %p12751_p1, %p12745_p12 }
 0x196   : > { %12755 = shalt.err (!%p12752_p0)
}
 0x197   : > { %s12756_s7 = scalar_lea.vmem %s609_s5, 128  ;;  %s12919_s27 = smov [#allocation15]  }
 0x198   : > { %p12757_p2 = scmp.ne.s32.totalorder %s609_s5, %s12756_s7  ;;  %s12761_s3 = sshll.u32 %s12919_s27, 4  ;;  %s12762_s3 = int_to_ptr.vmem [resolvable:$false] %s12761_s3 }
 0x199   : > { %s12763_s23 = scalar_lea.vmem %s12762_s3, 256  ;;  %p12764_p9 = scmp.lt.s32.totalorder %s609_s5, %s12762_s3 }
 0x19a   : > { %p12759_p5 = pnand %p12757_p2, %p15158_p3  ;;  %p12765_p10 = scmp.lt.s32.totalorder %s12763_s23, %s12756_s7 }
 0x19c   : > { %p12760_p7 = pneg %p12759_p5  ;;  %p12766_p11 = por %p12765_p10, %p12764_p9 }
 0x19e   : > { %p12767_p4 = pnand %p12766_p11, %p12760_p7 }
 0x1a0   : > { %12770 = shalt.err (!%p12767_p4)
}
 0x1a1   : > { %p15162_p13 = scmp.ne.s32.totalorder %s15148_s14, 0  ;;  %s15163_s30 = scalar_lea.sflag [#allocation14], %s13189_s15 }
 0x1a2   : > { %s11846_s13 = sshll.u32 %s12897_s21, 16  ;;  %s15164_s8 = sld [smem:[#allocation50_spill]] }
 0x1a3   : > { %12173 = dma.hbm_to_vmem [thread:$0]  (!%p15162_p13), %s13400_s18, 128, %s609_s5, %s15163_s30  }
 0x1a4   : > { %s619_s6 = scalar_lea.vmem [#allocation16], %s13192_s4  ;;  %s616_s19 = scalar_lea.sflag [#allocation17], %s13189_s15 }
 0x1a5   : > { %s627_s1 = sshll.u32 %s619_s6, 4  ;;  %s13429_s1 = int_to_ptr.vmem [resolvable:$true] %s627_s1 }
 0x1a8   : > { %s13426_s16 = scalar_lea.hbm %s15164_s8, %s11846_s13  ;;  %s12776_s5 = scalar_lea.hbm %s15164_s8, 327680 }
 0x1a9   : > { %s12771_s20 = scalar_lea.hbm %s13426_s16, 65536  ;;  %p12777_p8 = scmp.lt.u32.totalorder %s13426_s16, %s15164_s8 }
 0x1aa   : > { %p12772_p11 = scmp.ne.s32.totalorder %s13426_s16, %s12771_s20  ;;  %p12778_p1 = scmp.lt.u32.totalorder %s12776_s5, %s12771_s20 }
 0x1ab   : > { %p12780_p2 = scmp.lt.u32.totalorder %s12771_s20, %s13426_s16 }
 0x1ac   : > { %p12774_p12 = pnand %p12772_p11, %p15158_p3  ;;  %p12779_p0 = por %p12778_p1, %p12777_p8 }
 0x1ae   : > { %p12775_p6 = pneg %p12774_p12  ;;  %p12781_p5 = por %p12780_p2, %p12779_p0 }
 0x1b0   : > { %p12782_p7 = pnand %p12781_p5, %p12775_p6 }
 0x1b2   : > { %12785 = shalt.err (!%p12782_p7)
}
 0x1b3   : > { %s12786_s4 = scalar_lea.vmem %s13429_s1, 65536  ;;  %s12920_s3 = smov [#allocation16]  }
 0x1b4   : > { %p12787_p9 = scmp.ne.s32.totalorder %s13429_s1, %s12786_s4  ;;  %s12791_s23 = sshll.u32 %s12920_s3, 4  ;;  %s12792_s23 = int_to_ptr.vmem [resolvable:$false] %s12791_s23 }
 0x1b5   : > { %s12793_s30 = scalar_lea.vmem %s12792_s23, 131072  ;;  %p12794_p11 = scmp.lt.s32.totalorder %s13429_s1, %s12792_s23 }
 0x1b6   : > { %p12789_p10 = pnand %p12787_p9, %p15158_p3  ;;  %p12795_p12 = scmp.lt.s32.totalorder %s12793_s30, %s12786_s4 }
 0x1b8   : > { %p12790_p4 = pneg %p12789_p10  ;;  %p12796_p8 = por %p12795_p12, %p12794_p11 }
 0x1ba   : > { %p12797_p1 = pnand %p12796_p8, %p12790_p4 }
 0x1bc   : > { %12800 = shalt.err (!%p12797_p1)
}
 0x1bd   : > { %12176 = dma.hbm_to_vmem [thread:$0]  (!%p15162_p13), %s13426_s16, 65536, %s13429_s1, %s616_s19, %s15151_s12, %s15151_s12, %s15150_s9  }
 0x1be   : > { %s15165_s17 = sld [smem:[#allocation41_spill]] }
 0x1c4   : > { %p15166_p3 = scmp.ne.s32.totalorder %s15165_s17, 0 }
 0x1c5   : > { %p15167_p6 = scmp.eq.s32.totalorder (!%p15166_p3), %s13029_s24, 0 }
 0x1c6   : > { %639 = sbr.rel (%p15166_p3) target bundleno = 2667 (0xa6b), region = 80 }
 0x1cd   : > { %12844 = dma.done.wait (%p15167_p6), [#allocation5], 256   ;;  %p15168_p0 = pmov %p15167_p6 }
 0x1cf   : > { %12846 = vsyncadd (%p15168_p0), [#allocation5], 4294967040  ;;  %p15169_p2 = pmov %p15168_p0 }
 0x1d0   : > { %p15170_p5 = pmov %p15168_p0 }
 0x1d1   : > { %12848 = dma.done.wait (%p15169_p2), [#allocation8], 4224  }
 0x1d2   : > { %12850 = vsyncadd (%p15170_p5), [#allocation8], 4294963072  ;;  %s15171_s15 = sld [smem:[#allocation39_spill]]  ;;  %s15172_s14 = sld [smem:[#allocation44_spill]] }
 0x1d3   : > { %s653_s13 = sand.u32 1, %s13029_s24  }
 0x1d4   : > { %s654_s22 = scalar_lea.sflag [#allocation11], %s653_s13 }
 0x1d8   : > { %s655_s9 = sand.u32 1, %s15171_s15   ;;  %p15173_p13 = scmp.ne.s32.totalorder %s15172_s14, 0 }
 0x1d9   : > { %s10689_s12 = sshll.u32 %s655_s9, 12 }
 0x1da   : > { %s13470_s11 = scalar_lea.vmem [#allocation10], %s10689_s12 }
 0x1db   : > { %12852 = dma.done.wait (%p15173_p13), %s654_s22, 65664  }
 0x1dc   : > { %12854 = vsyncadd (%p15173_p13), %s654_s22, 4294901632  ;;  %s13476_s16 = sshll.u32 %s655_s9, 3  ;;  %s672_s1 = scalar_lea.sflag [#allocation14], %s653_s13 }
 0x1dd   : > { %s666_s6 = scalar_lea.vmem [#allocation12], %s13476_s16  ;;  %s675_s19 = scalar_lea.vmem [#allocation13], %s13476_s16 }
 0x1de   : > { %12856 = dma.done.wait (%p15173_p13), %s672_s1, 256  }
 0x1df   : > { %12858 = vsyncadd (%p15173_p13), %s672_s1, 4294967040  ;;  %s684_s20 = scalar_lea.vmem [#allocation15], %s13476_s16  ;;  %s690_s21 = scalar_lea.sflag [#allocation17], %s653_s13 }
 0x1e0   : > { %s13485_s18 = scalar_lea.vmem [#allocation16], %s10689_s12 }
 0x1e1   : > { %12860 = dma.done.wait (%p15173_p13), %s690_s21, 65536  }
 0x1e2   : > { %12862 = vsyncadd (%p15173_p13), %s690_s21, 4294901760  ;;  %p15174_p7 = pmov %p15168_p0 }
 0x1e3   : > { %p15175_p9 = pmov %p15168_p0 }
 0x1e4   : > { %12864 = dma.done.wait (%p15174_p7), [#allocation17], 128  }
 0x1e5   : > { %12866 = vsyncadd (%p15175_p9), [#allocation17], 4294967168  ;;  %p15176_p10 = pmov %p15168_p0 }
 0x1e6   : > { %p15177_p4 = pmov %p15168_p0 }
 0x1e7   : > { %12868 = dma.done.wait (%p15176_p10), [#allocation20], 256  }
 0x1e8   : > { %12870 = vsyncadd (%p15177_p4), [#allocation20], 4294967040  ;;  %p15178_p11 = pmov %p15168_p0 }
 0x1e9   : > { %p15179_p12 = pmov %p15168_p0 }
 0x1ea   : > { %12872 = dma.done.wait (%p15178_p11), [#allocation23], 8208  }
 0x1eb   : > { %12874 = vsyncadd (%p15179_p12), [#allocation23], 4294959088  ;;  %p15180_p8 = pmov %p15168_p0 }
 0x1ec   : > { %p15181_p1 = pmov %p15168_p0 }
 0x1ed   : > { %12876 = dma.done.wait (%p15180_p8), [#allocation26], 1040  }
 0x1ee   : > { %12878 = vsyncadd (%p15181_p1), [#allocation26], 4294966256  ;;  %p15182_p3 = scmp.ne.s32.totalorder %s13029_s24, 0 }
 0x1ef   : > { %v795_v0 = vld [vmem:[#allocation7] sm:$0xff] (!%p15182_p3)  ;;  %v796_v2 = vld [vmem:[#allocation7 + $0x8] sm:$0xff] (!%p15182_p3)  ;;  %v12921_v8 = vmov (!%p15182_p3), 0   ;;  %v797_v31 = vld [vmem:[#allocation7 + $0x10] sm:$0xff] (!%p15182_p3)  ;;  %vm1030_vm0 = vcmask (!%p15182_p3), 523264  }
 0x1f0   : > { %792 = sbr.rel (%p15182_p3) target bundleno = 753 (0x2f1), region = 144  ;;  %v799_v1 = vld [vmem:[#allocation7 + $0x20] sm:$0xff] (!%p15182_p3)  ;;  %v800_v4 = vld [vmem:[#allocation7 + $0x28] sm:$0xff] (!%p15182_p3)  ;;  %1066 = vmatprep.mubr.bf16.mxu0 (!%p15182_p3), %v12921_v8  ;;  %1109 = vmatprep.mubr.bf16.mxu1 (!%p15182_p3), %v12921_v8  ;;  %v801_v32 = vld [vmem:[#allocation7 + $0x30] sm:$0xff] (!%p15182_p3) }
 0x1f1   : > { %v10703_v3 = vcombine.high (!%p15182_p3), %v795_v0, %v799_v1  ;;  %v10702_v5 = vcombine.low (!%p15182_p3), %v795_v0, %v799_v1  ;;  %v803_v6 = vld [vmem:[#allocation7 + $0x40] sm:$0xff] (!%p15182_p3)  ;;  %v10705_v9 = vcombine.high (!%p15182_p3), %v796_v2, %v800_v4  ;;  %v10704_v10 = vcombine.low (!%p15182_p3), %v796_v2, %v800_v4  ;;  %v804_v12 = vld [vmem:[#allocation7 + $0x48] sm:$0xff] (!%p15182_p3)  ;;  %v798_v33 = vld [vmem:[#allocation7 + $0x18] sm:$0xff] (!%p15182_p3) }
 0x1f2   : > { %v807_v7 = vld [vmem:[#allocation7 + $0x60] sm:$0xff] (!%p15182_p3)  ;;  %v808_v13 = vld [vmem:[#allocation7 + $0x68] sm:$0xff] (!%p15182_p3)  ;;  %v802_v34 = vld [vmem:[#allocation7 + $0x38] sm:$0xff] (!%p15182_p3)  ;;  %v10707_v39 = vcombine.high (!%p15182_p3), %v797_v31, %v801_v32  ;;  %v10706_v46 = vcombine.low (!%p15182_p3), %v797_v31, %v801_v32  ;;  %v12922_v4 = vmov (!%p15182_p3), 0.0  }
 0x1f3   : > { %v10711_v11 = vcombine.high (!%p15182_p3), %v803_v6, %v807_v7  ;;  %v811_v14 = vld [vmem:[#allocation7 + $0x80] sm:$0xff] (!%p15182_p3)  ;;  %1034 = vmatprep.subr.bf16.mxu0 (!%p15182_p3), %v10703_v3  ;;  %v10713_v15 = vcombine.high (!%p15182_p3), %v804_v12, %v808_v13  ;;  %v812_v17 = vld [vmem:[#allocation7 + $0x88] sm:$0xff] (!%p15182_p3)  ;;  %1077 = vmatprep.subr.bf16.mxu1 (!%p15182_p3), %v10705_v9  ;;  %v10710_v19 = vcombine.low (!%p15182_p3), %v803_v6, %v807_v7  ;;  %v793_v36 = vld [vmem:[#allocation4] sm:$0xff] (!%p15182_p3) }
 0x1f4   : > { %v815_v16 = vld [vmem:[#allocation7 + $0xa0] sm:$0xff] (!%p15182_p3)  ;;  %v816_v18 = vld [vmem:[#allocation7 + $0xa8] sm:$0xff] (!%p15182_p3)  ;;  %1035 = vmatpush1.bf16.msra.mxu0 (!%p15182_p3), %v10702_v5  ;;  %1078 = vmatpush1.bf16.msra.mxu1 (!%p15182_p3), %v10704_v10  ;;  %v10712_v20 = vcombine.low (!%p15182_p3), %v804_v12, %v808_v13  ;;  %v794_v37 = vld [vmem:[#allocation4 + $0x8] sm:$0xff] (!%p15182_p3)  ;;  %v10709_v40 = vcombine.high (!%p15182_p3), %v798_v33, %v802_v34  ;;  %v10708_v47 = vcombine.low (!%p15182_p3), %v798_v33, %v802_v34  ;;  %v830_v5 = vlaneseq (!%p15182_p3) }
 0x1f5   : > { %1036 = vmatprep.subr.bf16.mxu0 (!%p15182_p3), %v10711_v11  ;;  %v10719_v21 = vcombine.high (!%p15182_p3), %v811_v14, %v815_v16  ;;  %1079 = vmatprep.subr.bf16.mxu1 (!%p15182_p3), %v10713_v15  ;;  %v10721_v22 = vcombine.high (!%p15182_p3), %v812_v17, %v816_v18  ;;  %v819_v23 = vld [vmem:[#allocation7 + $0xc0] sm:$0xff] (!%p15182_p3)  ;;  %v820_v25 = vld [vmem:[#allocation7 + $0xc8] sm:$0xff] (!%p15182_p3)  ;;  %v10718_v27 = vcombine.low (!%p15182_p3), %v811_v14, %v815_v16  ;;  %v805_v41 = vld [vmem:[#allocation7 + $0x50] sm:$0xff] (!%p15182_p3) }
 0x1f6   : > { %v823_v24 = vld [vmem:[#allocation7 + $0xe0] sm:$0xff] (!%p15182_p3)  ;;  %v824_v26 = vld [vmem:[#allocation7 + $0xe8] sm:$0xff] (!%p15182_p3)  ;;  %v10720_v28 = vcombine.low (!%p15182_p3), %v812_v17, %v816_v18  ;;  %v809_v42 = vld [vmem:[#allocation7 + $0x70] sm:$0xff] (!%p15182_p3)  ;;  %v827_v43 = vpack.c.bf16 (!%p15182_p3), %v794_v37, %v793_v36  ;;  %1238 = vst [vmem:[#allocation3] sm:$0xff] (!%p15182_p3), %v12922_v4  ;;  %v831_v6 = vshrl.u32 (!%p15182_p3), %v830_v5, 7 }
 0x1f7   : > { %v10727_v29 = vcombine.high %v819_v23, %v823_v24  ;;  %v10729_v30 = vcombine.high %v820_v25, %v824_v26  ;;  %v10726_v35 = vcombine.low %v819_v23, %v823_v24  ;;  %v10728_v38 = vcombine.low %v820_v25, %v824_v26  ;;  %v806_v44 = vld [vmem:[#allocation7 + $0x58] sm:$0xff]  ;;  %v813_v50 = vld [vmem:[#allocation7 + $0x90] sm:$0xff]  ;;  %1239 = vst [vmem:[#allocation3 + $0x8] sm:$0xff] %v12922_v4 }
 0x1f8   : > { %1037 = vmatpush1.bf16.msra.mxu0 %v10710_v19  ;;  %1080 = vmatpush1.bf16.msra.mxu1 %v10712_v20  ;;  %v810_v45 = vld [vmem:[#allocation7 + $0x78] sm:$0xff]  ;;  %v10715_v48 = vcombine.high %v805_v41, %v809_v42  ;;  %v817_v51 = vld [vmem:[#allocation7 + $0xb0] sm:$0xff]  ;;  %v10714_v54 = vcombine.low %v805_v41, %v809_v42  ;;  %1240 = vst [vmem:[#allocation3 + $0x10] sm:$0xff] %v12922_v4  ;;  %1241 = vst [vmem:[#allocation3 + $0x18] sm:$0xff] %v12922_v4  ;;  %v832_v7 = vsub.s32 0, %v831_v6 }
 0x1f9   : > { %1038 = vmatprep.subr.bf16.mxu0 %v10719_v21  ;;  %1081 = vmatprep.subr.bf16.mxu1 %v10721_v22  ;;  %v10717_v49 = vcombine.high %v806_v44, %v810_v45  ;;  %v814_v52 = vld [vmem:[#allocation7 + $0x98] sm:$0xff]  ;;  %v10716_v55 = vcombine.low %v806_v44, %v810_v45  ;;  %v10723_v56 = vcombine.high %v813_v50, %v817_v51  ;;  %v821_v58 = vld [vmem:[#allocation7 + $0xd0] sm:$0xff]  ;;  %v840_v9 = vsub.s32 2, %v831_v6 }
 0x1fa   : > { %v818_v53 = vld [vmem:[#allocation7 + $0xb8] sm:$0xff]  ;;  %v825_v59 = vld [vmem:[#allocation7 + $0xf0] sm:$0xff]  ;;  %v10722_v62 = vcombine.low %v813_v50, %v817_v51  ;;  %1242 = vst [vmem:[#allocation3 + $0x20] sm:$0xff] %v12922_v4  ;;  %1243 = vst [vmem:[#allocation3 + $0x28] sm:$0xff] %v12922_v4  ;;  %v836_v10 = vsub.s32 1, %v831_v6  ;;  %v844_v11 = vsub.s32 3, %v831_v6 }
 0x1fb   : > { %v10725_v57 = vcombine.high %v814_v52, %v818_v53  ;;  %v822_v60 = vld [vmem:[#allocation7 + $0xd8] sm:$0xff]  ;;  %v10724_v63 = vcombine.low %v814_v52, %v818_v53  ;;  %v10731_v0 = vcombine.high %v821_v58, %v825_v59  ;;  %v10730_v2 = vcombine.low %v821_v58, %v825_v59  ;;  %1244 = vst [vmem:[#allocation3 + $0x30] sm:$0xff] %v12922_v4 }
 0x1fc   : > { %1039 = vmatpush1.bf16.msra.mxu0 %v10718_v27  ;;  %1082 = vmatpush1.bf16.msra.mxu1 %v10720_v28  ;;  %v826_v61 = vld [vmem:[#allocation7 + $0xf8] sm:$0xff]  ;;  %1245 = vst [vmem:[#allocation3 + $0x38] sm:$0xff] %v12922_v4  ;;  %1246 = vst [vmem:[#allocation3 + $0x40] sm:$0xff] %v12922_v4  ;;  %v848_v44 = vsub.s32 4, %v831_v6  ;;  %v856_v45 = vsub.s32 6, %v831_v6 }
 0x1fd   : > { %1040 = vmatprep.subr.bf16.mxu0 %v10727_v29  ;;  %1083 = vmatprep.subr.bf16.mxu1 %v10729_v30  ;;  %v10733_v1 = vcombine.high %v822_v60, %v826_v61  ;;  %v10732_v3 = vcombine.low %v822_v60, %v826_v61  ;;  %1247 = vst [vmem:[#allocation3 + $0x48] sm:$0xff] %v12922_v4  ;;  %1248 = vst [vmem:[#allocation3 + $0x50] sm:$0xff] %v12922_v4 }
 0x1fe   : > { %1249 = vst [vmem:[#allocation3 + $0x58] sm:$0xff] %v12922_v4  ;;  %1250 = vst [vmem:[#allocation3 + $0x60] sm:$0xff] %v12922_v4 }
 0x1ff   : > { %1251 = vst [vmem:[#allocation3 + $0x68] sm:$0xff] %v12922_v4  ;;  %1252 = vst [vmem:[#allocation3 + $0x70] sm:$0xff] %v12922_v4 }
 0x200   : > { %1041 = vmatpush1.bf16.msra.mxu0 %v10726_v35  ;;  %1084 = vmatpush1.bf16.msra.mxu1 %v10728_v38  ;;  %1253 = vst [vmem:[#allocation3 + $0x78] sm:$0xff] %v12922_v4 }
 0x201   : > { %1120 = vmatprep.subr.bf16.mxu0 %v10707_v39  ;;  %1163 = vmatprep.subr.bf16.mxu1 %v10709_v40 }
 0x203   : > { %10734 = vmatmul.mubr.msk.bf16.vlgmr.msra.gmra.mrb[0].mxu0 %vm1030_vm0, %v827_v43  ;;  %10735 = vmatmul.mubr.msk.bf16.vlgmr.msra.gmra.mrb[0].mxu1 %vm1030_vm0, %v827_v43 }
 0x204   : > { %1121 = vmatpush1.bf16.msra.mxu0 %v10706_v46  ;;  %1164 = vmatpush1.bf16.msra.mxu1 %v10708_v47  ;;  %v852_v46 = vsub.s32 5, %v831_v6  ;;  %v860_v47 = vsub.s32 7, %v831_v6 }
 0x205   : > { %1122 = vmatprep.subr.bf16.mxu0 %v10715_v48  ;;  %1165 = vmatprep.subr.bf16.mxu1 %v10717_v49 }
 0x206   : > { %1152 = vmatprep.mubr.bf16.mxu0 %v12921_v8  ;;  %1195 = vmatprep.mubr.bf16.mxu1 %v12921_v8  ;;  %v828_v8 = vld [vmem:[#allocation9] sm:$0xff] }
 0x207   : > { %v833_v12 = vrot.slane %v828_v8, %v832_v7  ;;  %v841_v13 = vrot.slane %v828_v8, %v840_v9  ;;  %v837_v14 = vrot.slane %v828_v8, %v836_v10  ;;  %v845_v15 = vrot.slane %v828_v8, %v844_v11 }
 0x208   : > { %1123 = vmatpush1.bf16.msra.mxu0 %v10714_v54  ;;  %1166 = vmatpush1.bf16.msra.mxu1 %v10716_v55  ;;  %v849_v48 = vrot.slane %v828_v8, %v848_v44  ;;  %v857_v49 = vrot.slane %v828_v8, %v856_v45  ;;  %v853_v50 = vrot.slane %v828_v8, %v852_v46 }
 0x209   : > { %1124 = vmatprep.subr.bf16.mxu0 %v10723_v56  ;;  %1167 = vmatprep.subr.bf16.mxu1 %v10725_v57  ;;  %v861_v51 = vrot.slane %v828_v8, %v860_v47 }
 0x20c   : > { %1125 = vmatpush1.bf16.msra.mxu0 %v10722_v62  ;;  %1168 = vmatpush1.bf16.msra.mxu1 %v10724_v63 }
 0x20d   : > { %1126 = vmatprep.subr.bf16.mxu0 %v10731_v0  ;;  %1169 = vmatprep.subr.bf16.mxu1 %v10733_v1 }
 0x210   : > { %1127 = vmatpush1.bf16.msra.mxu0 %v10730_v2  ;;  %1170 = vmatpush1.bf16.msra.mxu1 %v10732_v3 }
 0x213   : > { %10736 = vmatmul.mubr.msk.bf16.vlgmr.msra.gmra.mrb[4].mxu0 %vm1030_vm0, %v827_v43  ;;  %10737 = vmatmul.mubr.msk.bf16.vlgmr.msra.gmra.mrb[4].mxu1 %vm1030_vm0, %v827_v43 }
 0x2d6   : > { %v1068_v16 = vpop.f32.mrb[0].mxu0  ;;  %v1111_v18 = vpop.f32.mrb[0].mxu1 }
 0x2d7   : > { %v1069_v17 = vadd.f32 %v1068_v16, %v833_v12  ;;  %v1070_v19 = vpop.f32.mrb[1].mxu0  ;;  %v1112_v20 = vadd.f32 %v1111_v18, %v841_v13  ;;  %v1113_v22 = vpop.f32.mrb[1].mxu1 }
 0x2d8   : > { %v1071_v21 = vadd.f32 %v1070_v19, %v837_v14  ;;  %v1072_v23 = vpop.f32.mrb[2].mxu0  ;;  %v1114_v25 = vadd.f32 %v1113_v22, %v845_v15  ;;  %v1115_v27 = vpop.f32.mrb[2].mxu1 }
 0x2d9   : > { %v1206_v24 = vmax.f32 %v1069_v17, 0.0  ;;  %v1073_v26 = vadd.f32 %v1072_v23, %v833_v12  ;;  %v1074_v28 = vpop.f32.mrb[3].mxu0  ;;  %v1208_v29 = vmax.f32 %v1112_v20, 0.0  ;;  %v1116_v30 = vadd.f32 %v1115_v27, %v841_v13  ;;  %v1117_v32 = vpop.f32.mrb[3].mxu1 }
 0x2da   : > { %v1075_v31 = vadd.f32 %v1074_v28, %v837_v14  ;;  %v1118_v34 = vadd.f32 %v1117_v32, %v845_v15  ;;  %v1207_v35 = vmax.f32 %v1071_v21, 0.0  ;;  %v1209_v38 = vmax.f32 %v1114_v25, 0.0 }
 0x2db   : > { %v1214_v33 = vmax.f32 %v1073_v26, 0.0  ;;  %v1216_v36 = vmax.f32 %v1116_v30, 0.0 }
 0x2dc   : > { %v1215_v37 = vmax.f32 %v1075_v31, 0.0  ;;  %v1217_v40 = vmax.f32 %v1118_v34, 0.0 }
 0x2dd   : > { %v1222_v39 = vpack.c.bf16 %v1214_v33, %v1206_v24  ;;  %v1224_v41 = vpack.c.bf16 %v1216_v36, %v1208_v29 }
 0x2de   : > { %v1223_v42 = vpack.c.bf16 %v1215_v37, %v1207_v35  ;;  %v1225_v43 = vpack.c.bf16 %v1217_v40, %v1209_v38 }
 0x2df   : > { %1230 = vst [vmem:[#allocation2] sm:$0xff] %v1222_v39  ;;  %1232 = vst [vmem:[#allocation2 + $0x10] sm:$0xff] %v1224_v41 }
 0x2e0   : > { %1231 = vst [vmem:[#allocation2 + $0x8] sm:$0xff] %v1223_v42  ;;  %1233 = vst [vmem:[#allocation2 + $0x18] sm:$0xff] %v1225_v43 }
 0x2e6   : > { %v1154_v52 = vpop.f32.mrb[4].mxu0  ;;  %v1197_v54 = vpop.f32.mrb[4].mxu1 }
 0x2e7   : > { %v1155_v53 = vadd.f32 %v1154_v52, %v849_v48  ;;  %v1156_v55 = vpop.f32.mrb[5].mxu0  ;;  %v1198_v56 = vadd.f32 %v1197_v54, %v857_v49  ;;  %v1199_v58 = vpop.f32.mrb[5].mxu1 }
 0x2e8   : > { %v1157_v57 = vadd.f32 %v1156_v55, %v853_v50  ;;  %v1158_v59 = vpop.f32.mrb[6].mxu0  ;;  %v1200_v60 = vadd.f32 %v1199_v58, %v861_v51  ;;  %v1201_v62 = vpop.f32.mrb[6].mxu1 }
 0x2e9   : > { %v1159_v61 = vadd.f32 %v1158_v59, %v849_v48  ;;  %v1160_v63 = vpop.f32.mrb[7].mxu0  ;;  %v1202_v0 = vadd.f32 %v1201_v62, %v857_v49  ;;  %v1203_v2 = vpop.f32.mrb[7].mxu1  ;;  %v1210_v3 = vmax.f32 %v1155_v53, 0.0  ;;  %v1212_v6 = vmax.f32 %v1198_v56, 0.0 }
 0x2ea   : > { %v1161_v1 = vadd.f32 %v1160_v63, %v853_v50  ;;  %v1204_v5 = vadd.f32 %v1203_v2, %v861_v51  ;;  %v1211_v7 = vmax.f32 %v1157_v57, 0.0  ;;  %v1213_v10 = vmax.f32 %v1200_v60, 0.0 }
 0x2eb   : > { %v1218_v4 = vmax.f32 %v1159_v61, 0.0  ;;  %v1220_v8 = vmax.f32 %v1202_v0, 0.0 }
 0x2ec   : > { %v1219_v9 = vmax.f32 %v1161_v1, 0.0  ;;  %v1221_v12 = vmax.f32 %v1204_v5, 0.0 }
 0x2ed   : > { %v1226_v11 = vpack.c.bf16 %v1218_v4, %v1210_v3  ;;  %v1228_v13 = vpack.c.bf16 %v1220_v8, %v1212_v6 }
 0x2ee   : > { %v1227_v14 = vpack.c.bf16 %v1219_v9, %v1211_v7  ;;  %v1229_v15 = vpack.c.bf16 %v1221_v12, %v1213_v10 }
 0x2ef   : > { %1234 = vst [vmem:[#allocation2 + $0x20] sm:$0xff] %v1226_v11  ;;  %1236 = vst [vmem:[#allocation2 + $0x30] sm:$0xff] %v1228_v13 }
 0x2f0   : > { %1235 = vst [vmem:[#allocation2 + $0x28] sm:$0xff] %v1227_v14  ;;  %1237 = vst [vmem:[#allocation2 + $0x38] sm:$0xff] %v1229_v15 }
 0x2f1 PF: > { %v1262_v16 = vld [vmem:[%s13470_s11] sm:$0xff]  ;;  %v1263_v18 = vld [vmem:[%s13470_s11 + $0x8] sm:$0xff]  ;;  %v1255_v5 = vld [vmem:[#allocation2 + $0x8] sm:$0xff]  ;;  %p11762_p6 = scmp.ne.s32.totalorder %s13029_s24, 4 }
 0x2f2   : > { %v1266_v17 = vld [vmem:[%s13470_s11 + $0x20] sm:$0xff]  ;;  %v1267_v20 = vld [vmem:[%s13470_s11 + $0x28] sm:$0xff]  ;;  %4408 = vmatprep.mubr.bf16.mxu0 %v1255_v5  ;;  %4580 = vmatprep.mubr.bf16.mxu1 %v1255_v5  ;;  %vm12924_vm1 = vmmov (!%p11762_p6), 0  }
 0x2f3   : > { %v10739_v19 = vcombine.high %v1262_v16, %v1266_v17  ;;  %v10738_v21 = vcombine.low %v1262_v16, %v1266_v17  ;;  %v1270_v22 = vld [vmem:[%s13470_s11 + $0x40] sm:$0xff]  ;;  %v10741_v24 = vcombine.high %v1263_v18, %v1267_v20  ;;  %v10740_v25 = vcombine.low %v1263_v18, %v1267_v20  ;;  %v1271_v27 = vld [vmem:[%s13470_s11 + $0x48] sm:$0xff] }
 0x2f4   : > { %v1274_v23 = vld [vmem:[%s13470_s11 + $0x60] sm:$0xff]  ;;  %v1275_v28 = vld [vmem:[%s13470_s11 + $0x68] sm:$0xff] }
 0x2f5   : > { %v10747_v26 = vcombine.high %v1270_v22, %v1274_v23  ;;  %v1278_v29 = vld [vmem:[%s13470_s11 + $0x80] sm:$0xff]  ;;  %4376 = vmatprep.subr.bf16.mxu0 %v10739_v19  ;;  %v10749_v30 = vcombine.high %v1271_v27, %v1275_v28  ;;  %v1279_v32 = vld [vmem:[%s13470_s11 + $0x88] sm:$0xff]  ;;  %4548 = vmatprep.subr.bf16.mxu1 %v10741_v24  ;;  %v10746_v34 = vcombine.low %v1270_v22, %v1274_v23 }
 0x2f6   : > { %v1282_v31 = vld [vmem:[%s13470_s11 + $0xa0] sm:$0xff]  ;;  %v1283_v33 = vld [vmem:[%s13470_s11 + $0xa8] sm:$0xff]  ;;  %4377 = vmatpush1.bf16.msra.mxu0 %v10738_v21  ;;  %4549 = vmatpush1.bf16.msra.mxu1 %v10740_v25  ;;  %v10748_v35 = vcombine.low %v1271_v27, %v1275_v28 }
 0x2f7   : > { %4378 = vmatprep.subr.bf16.mxu0 %v10747_v26  ;;  %v10755_v36 = vcombine.high %v1278_v29, %v1282_v31  ;;  %4550 = vmatprep.subr.bf16.mxu1 %v10749_v30  ;;  %v10757_v37 = vcombine.high %v1279_v32, %v1283_v33  ;;  %v1286_v38 = vld [vmem:[%s13470_s11 + $0xc0] sm:$0xff]  ;;  %v1287_v40 = vld [vmem:[%s13470_s11 + $0xc8] sm:$0xff]  ;;  %v10754_v42 = vcombine.low %v1278_v29, %v1282_v31 }
 0x2f8   : > { %v1290_v39 = vld [vmem:[%s13470_s11 + $0xe0] sm:$0xff]  ;;  %v1291_v41 = vld [vmem:[%s13470_s11 + $0xe8] sm:$0xff]  ;;  %v10756_v43 = vcombine.low %v1279_v32, %v1283_v33 }
 0x2f9   : > { %v10763_v44 = vcombine.high %v1286_v38, %v1290_v39  ;;  %v10765_v45 = vcombine.high %v1287_v40, %v1291_v41  ;;  %v1294_v46 = vld [vmem:[%s13470_s11 + $0x100] sm:$0xff]  ;;  %v1295_v48 = vld [vmem:[%s13470_s11 + $0x108] sm:$0xff]  ;;  %v10762_v50 = vcombine.low %v1286_v38, %v1290_v39  ;;  %v10764_v51 = vcombine.low %v1287_v40, %v1291_v41 }
 0x2fa   : > { %4379 = vmatpush1.bf16.msra.mxu0 %v10746_v34  ;;  %4551 = vmatpush1.bf16.msra.mxu1 %v10748_v35  ;;  %v1298_v47 = vld [vmem:[%s13470_s11 + $0x120] sm:$0xff]  ;;  %v1299_v49 = vld [vmem:[%s13470_s11 + $0x128] sm:$0xff] }
 0x2fb   : > { %4380 = vmatprep.subr.bf16.mxu0 %v10755_v36  ;;  %4552 = vmatprep.subr.bf16.mxu1 %v10757_v37  ;;  %v10771_v52 = vcombine.high %v1294_v46, %v1298_v47  ;;  %v10773_v53 = vcombine.high %v1295_v48, %v1299_v49  ;;  %v1302_v54 = vld [vmem:[%s13470_s11 + $0x140] sm:$0xff]  ;;  %v1303_v56 = vld [vmem:[%s13470_s11 + $0x148] sm:$0xff]  ;;  %v10770_v58 = vcombine.low %v1294_v46, %v1298_v47 }
 0x2fc   : > { %v1306_v55 = vld [vmem:[%s13470_s11 + $0x160] sm:$0xff]  ;;  %v1307_v57 = vld [vmem:[%s13470_s11 + $0x168] sm:$0xff]  ;;  %v10772_v59 = vcombine.low %v1295_v48, %v1299_v49 }
 0x2fd   : > { %v10779_v60 = vcombine.high %v1302_v54, %v1306_v55  ;;  %v10781_v61 = vcombine.high %v1303_v56, %v1307_v57  ;;  %v1310_v62 = vld [vmem:[%s13470_s11 + $0x180] sm:$0xff]  ;;  %v1311_v0 = vld [vmem:[%s13470_s11 + $0x188] sm:$0xff]  ;;  %v10778_v2 = vcombine.low %v1302_v54, %v1306_v55  ;;  %v10780_v3 = vcombine.low %v1303_v56, %v1307_v57 }
 0x2fe   : > { %4381 = vmatpush1.bf16.msra.mxu0 %v10754_v42  ;;  %4553 = vmatpush1.bf16.msra.mxu1 %v10756_v43  ;;  %v1314_v63 = vld [vmem:[%s13470_s11 + $0x1a0] sm:$0xff]  ;;  %v1315_v1 = vld [vmem:[%s13470_s11 + $0x1a8] sm:$0xff] }
 0x2ff   : > { %4382 = vmatprep.subr.bf16.mxu0 %v10763_v44  ;;  %4554 = vmatprep.subr.bf16.mxu1 %v10765_v45  ;;  %v10787_v4 = vcombine.high %v1310_v62, %v1314_v63  ;;  %v10789_v6 = vcombine.high %v1311_v0, %v1315_v1  ;;  %v1318_v7 = vld [vmem:[%s13470_s11 + $0x1c0] sm:$0xff]  ;;  %v1319_v9 = vld [vmem:[%s13470_s11 + $0x1c8] sm:$0xff]  ;;  %v10786_v11 = vcombine.low %v1310_v62, %v1314_v63 }
 0x300   : > { %v1322_v8 = vld [vmem:[%s13470_s11 + $0x1e0] sm:$0xff]  ;;  %v1323_v10 = vld [vmem:[%s13470_s11 + $0x1e8] sm:$0xff]  ;;  %v10788_v12 = vcombine.low %v1311_v0, %v1315_v1 }
 0x301   : > { %v10795_v13 = vcombine.high %v1318_v7, %v1322_v8  ;;  %v10797_v14 = vcombine.high %v1319_v9, %v1323_v10  ;;  %v1326_v15 = vld [vmem:[%s13470_s11 + $0x200] sm:$0xff]  ;;  %v1327_v17 = vld [vmem:[%s13470_s11 + $0x208] sm:$0xff]  ;;  %v10794_v19 = vcombine.low %v1318_v7, %v1322_v8  ;;  %v10796_v20 = vcombine.low %v1319_v9, %v1323_v10 }
 0x302   : > { %4383 = vmatpush1.bf16.msra.mxu0 %v10762_v50  ;;  %4555 = vmatpush1.bf16.msra.mxu1 %v10764_v51  ;;  %v1330_v16 = vld [vmem:[%s13470_s11 + $0x220] sm:$0xff]  ;;  %v1331_v18 = vld [vmem:[%s13470_s11 + $0x228] sm:$0xff] }
 0x303   : > { %4384 = vmatprep.subr.bf16.mxu0 %v10771_v52  ;;  %4556 = vmatprep.subr.bf16.mxu1 %v10773_v53  ;;  %v10803_v21 = vcombine.high %v1326_v15, %v1330_v16  ;;  %v10805_v22 = vcombine.high %v1327_v17, %v1331_v18  ;;  %v1334_v23 = vld [vmem:[%s13470_s11 + $0x240] sm:$0xff]  ;;  %v1335_v25 = vld [vmem:[%s13470_s11 + $0x248] sm:$0xff]  ;;  %v10802_v27 = vcombine.low %v1326_v15, %v1330_v16 }
 0x304   : > { %v1338_v24 = vld [vmem:[%s13470_s11 + $0x260] sm:$0xff]  ;;  %v1339_v26 = vld [vmem:[%s13470_s11 + $0x268] sm:$0xff]  ;;  %v10804_v28 = vcombine.low %v1327_v17, %v1331_v18 }
 0x305   : > { %v10811_v29 = vcombine.high %v1334_v23, %v1338_v24  ;;  %v10813_v30 = vcombine.high %v1335_v25, %v1339_v26  ;;  %v1342_v31 = vld [vmem:[%s13470_s11 + $0x280] sm:$0xff]  ;;  %v1343_v33 = vld [vmem:[%s13470_s11 + $0x288] sm:$0xff]  ;;  %v10810_v35 = vcombine.low %v1334_v23, %v1338_v24  ;;  %v10812_v36 = vcombine.low %v1335_v25, %v1339_v26 }
 0x306   : > { %4385 = vmatpush1.bf16.msra.mxu0 %v10770_v58  ;;  %4557 = vmatpush1.bf16.msra.mxu1 %v10772_v59  ;;  %v1346_v32 = vld [vmem:[%s13470_s11 + $0x2a0] sm:$0xff]  ;;  %v1347_v34 = vld [vmem:[%s13470_s11 + $0x2a8] sm:$0xff] }
 0x307   : > { %4386 = vmatprep.subr.bf16.mxu0 %v10779_v60  ;;  %4558 = vmatprep.subr.bf16.mxu1 %v10781_v61  ;;  %v10819_v37 = vcombine.high %v1342_v31, %v1346_v32  ;;  %v10821_v38 = vcombine.high %v1343_v33, %v1347_v34  ;;  %v1350_v39 = vld [vmem:[%s13470_s11 + $0x2c0] sm:$0xff]  ;;  %v1351_v41 = vld [vmem:[%s13470_s11 + $0x2c8] sm:$0xff]  ;;  %v10818_v43 = vcombine.low %v1342_v31, %v1346_v32 }
 0x308   : > { %v1354_v40 = vld [vmem:[%s13470_s11 + $0x2e0] sm:$0xff]  ;;  %v1355_v42 = vld [vmem:[%s13470_s11 + $0x2e8] sm:$0xff]  ;;  %v10820_v44 = vcombine.low %v1343_v33, %v1347_v34 }
 0x309   : > { %v10827_v45 = vcombine.high %v1350_v39, %v1354_v40  ;;  %v10829_v46 = vcombine.high %v1351_v41, %v1355_v42  ;;  %v1358_v47 = vld [vmem:[%s13470_s11 + $0x300] sm:$0xff]  ;;  %v1359_v49 = vld [vmem:[%s13470_s11 + $0x308] sm:$0xff]  ;;  %v10826_v51 = vcombine.low %v1350_v39, %v1354_v40  ;;  %v10828_v52 = vcombine.low %v1351_v41, %v1355_v42 }
 0x30a   : > { %4387 = vmatpush1.bf16.msra.mxu0 %v10778_v2  ;;  %4559 = vmatpush1.bf16.msra.mxu1 %v10780_v3  ;;  %v1362_v48 = vld [vmem:[%s13470_s11 + $0x320] sm:$0xff]  ;;  %v1363_v50 = vld [vmem:[%s13470_s11 + $0x328] sm:$0xff] }
 0x30b   : > { %4388 = vmatprep.subr.bf16.mxu0 %v10787_v4  ;;  %4560 = vmatprep.subr.bf16.mxu1 %v10789_v6  ;;  %v10835_v53 = vcombine.high %v1358_v47, %v1362_v48  ;;  %v10837_v54 = vcombine.high %v1359_v49, %v1363_v50  ;;  %v1366_v55 = vld [vmem:[%s13470_s11 + $0x340] sm:$0xff]  ;;  %v1367_v57 = vld [vmem:[%s13470_s11 + $0x348] sm:$0xff]  ;;  %v10834_v59 = vcombine.low %v1358_v47, %v1362_v48 }
 0x30c   : > { %v1370_v56 = vld [vmem:[%s13470_s11 + $0x360] sm:$0xff]  ;;  %v1371_v58 = vld [vmem:[%s13470_s11 + $0x368] sm:$0xff]  ;;  %v10836_v60 = vcombine.low %v1359_v49, %v1363_v50 }
 0x30d   : > { %v10843_v61 = vcombine.high %v1366_v55, %v1370_v56  ;;  %v10845_v62 = vcombine.high %v1367_v57, %v1371_v58  ;;  %v1374_v63 = vld [vmem:[%s13470_s11 + $0x380] sm:$0xff]  ;;  %v1375_v1 = vld [vmem:[%s13470_s11 + $0x388] sm:$0xff]  ;;  %v10842_v3 = vcombine.low %v1366_v55, %v1370_v56  ;;  %v10844_v4 = vcombine.low %v1367_v57, %v1371_v58 }
 0x30e   : > { %4389 = vmatpush1.bf16.msra.mxu0 %v10786_v11  ;;  %4561 = vmatpush1.bf16.msra.mxu1 %v10788_v12  ;;  %v1378_v0 = vld [vmem:[%s13470_s11 + $0x3a0] sm:$0xff]  ;;  %v1379_v2 = vld [vmem:[%s13470_s11 + $0x3a8] sm:$0xff] }
 0x30f   : > { %4390 = vmatprep.subr.bf16.mxu0 %v10795_v13  ;;  %4562 = vmatprep.subr.bf16.mxu1 %v10797_v14  ;;  %v10851_v5 = vcombine.high %v1374_v63, %v1378_v0  ;;  %v10853_v6 = vcombine.high %v1375_v1, %v1379_v2  ;;  %v1382_v7 = vld [vmem:[%s13470_s11 + $0x3c0] sm:$0xff]  ;;  %v1383_v9 = vld [vmem:[%s13470_s11 + $0x3c8] sm:$0xff]  ;;  %v10850_v11 = vcombine.low %v1374_v63, %v1378_v0 }
 0x310   : > { %v1386_v8 = vld [vmem:[%s13470_s11 + $0x3e0] sm:$0xff]  ;;  %v1387_v10 = vld [vmem:[%s13470_s11 + $0x3e8] sm:$0xff]  ;;  %v10852_v12 = vcombine.low %v1375_v1, %v1379_v2 }
 0x311   : > { %v10859_v13 = vcombine.high %v1382_v7, %v1386_v8  ;;  %v10861_v14 = vcombine.high %v1383_v9, %v1387_v10  ;;  %v1390_v15 = vld [vmem:[%s13470_s11 + $0x400] sm:$0xff]  ;;  %v1391_v17 = vld [vmem:[%s13470_s11 + $0x408] sm:$0xff] }
 0x312   : > { %4391 = vmatpush1.bf16.msra.mxu0 %v10794_v19  ;;  %4563 = vmatpush1.bf16.msra.mxu1 %v10796_v20  ;;  %v1394_v16 = vld [vmem:[%s13470_s11 + $0x420] sm:$0xff]  ;;  %v1395_v18 = vld [vmem:[%s13470_s11 + $0x428] sm:$0xff]  ;;  %v10858_v19 = vcombine.low %v1382_v7, %v1386_v8  ;;  %v10860_v20 = vcombine.low %v1383_v9, %v1387_v10 }
 0x313   : > { %4392 = vmatprep.subr.bf16.mxu0 %v10803_v21  ;;  %4564 = vmatprep.subr.bf16.mxu1 %v10805_v22  ;;  %v10867_v21 = vcombine.high %v1390_v15, %v1394_v16  ;;  %v10869_v22 = vcombine.high %v1391_v17, %v1395_v18  ;;  %v1398_v23 = vld [vmem:[%s13470_s11 + $0x440] sm:$0xff]  ;;  %v1399_v25 = vld [vmem:[%s13470_s11 + $0x448] sm:$0xff] }
 0x314   : > { %v1402_v24 = vld [vmem:[%s13470_s11 + $0x460] sm:$0xff]  ;;  %v1403_v26 = vld [vmem:[%s13470_s11 + $0x468] sm:$0xff] }
 0x315   : > { %v10877_v31 = vcombine.high %v1399_v25, %v1403_v26  ;;  %v1406_v32 = vld [vmem:[%s13470_s11 + $0x480] sm:$0xff]  ;;  %v1407_v34 = vld [vmem:[%s13470_s11 + $0x488] sm:$0xff] }
 0x316   : > { %4393 = vmatpush1.bf16.msra.mxu0 %v10802_v27  ;;  %4565 = vmatpush1.bf16.msra.mxu1 %v10804_v28  ;;  %v10866_v27 = vcombine.low %v1390_v15, %v1394_v16  ;;  %v1254_v28 = vld [vmem:[#allocation2] sm:$0xff]  ;;  %v1410_v33 = vld [vmem:[%s13470_s11 + $0x4a0] sm:$0xff] }
 0x317   : > { %4394 = vmatprep.subr.bf16.mxu0 %v10811_v29  ;;  %4566 = vmatprep.subr.bf16.mxu1 %v10813_v30  ;;  %v10868_v29 = vcombine.low %v1391_v17, %v1395_v18  ;;  %v10875_v30 = vcombine.high %v1398_v23, %v1402_v24  ;;  %v10883_v39 = vcombine.high %v1406_v32, %v1410_v33  ;;  %v1414_v41 = vld [vmem:[%s13470_s11 + $0x4c0] sm:$0xff] }
 0x318   : > { %v1418_v42 = vld [vmem:[%s13470_s11 + $0x4e0] sm:$0xff] }
 0x319   : > { %v10891_v47 = vcombine.high %v1414_v41, %v1418_v42  ;;  %v1422_v49 = vld [vmem:[%s13470_s11 + $0x500] sm:$0xff] }
 0x31a   : > { %4395 = vmatpush1.bf16.msra.mxu0 %v10810_v35  ;;  %4567 = vmatpush1.bf16.msra.mxu1 %v10812_v36  ;;  %v1411_v35 = vld [vmem:[%s13470_s11 + $0x4a8] sm:$0xff]  ;;  %v1257_v36 = vld [vmem:[#allocation2 + $0x18] sm:$0xff] }
 0x31b   : > { %4396 = vmatprep.subr.bf16.mxu0 %v10819_v37  ;;  %4568 = vmatprep.subr.bf16.mxu1 %v10821_v38  ;;  %v10874_v37 = vcombine.low %v1398_v23, %v1402_v24  ;;  %v10876_v38 = vcombine.low %v1399_v25, %v1403_v26  ;;  %v10885_v40 = vcombine.high %v1407_v34, %v1411_v35  ;;  %v1426_v50 = vld [vmem:[%s13470_s11 + $0x520] sm:$0xff] }
 0x31c   : > { %v10899_v55 = vcombine.high %v1422_v49, %v1426_v50  ;;  %v1430_v57 = vld [vmem:[%s13470_s11 + $0x540] sm:$0xff] }
 0x31d   : > { %v1434_v58 = vld [vmem:[%s13470_s11 + $0x560] sm:$0xff] }
 0x31e   : > { %4397 = vmatpush1.bf16.msra.mxu0 %v10818_v43  ;;  %4569 = vmatpush1.bf16.msra.mxu1 %v10820_v44  ;;  %v1415_v43 = vld [vmem:[%s13470_s11 + $0x4c8] sm:$0xff]  ;;  %v10907_v63 = vcombine.high %v1430_v57, %v1434_v58  ;;  %v1438_v1 = vld [vmem:[%s13470_s11 + $0x580] sm:$0xff] }
 0x31f   : > { %4398 = vmatprep.subr.bf16.mxu0 %v10827_v45  ;;  %4570 = vmatprep.subr.bf16.mxu1 %v10829_v46  ;;  %v1419_v44 = vld [vmem:[%s13470_s11 + $0x4e8] sm:$0xff]  ;;  %v10882_v45 = vcombine.low %v1406_v32, %v1410_v33  ;;  %v10884_v46 = vcombine.low %v1407_v34, %v1411_v35  ;;  %v1442_v2 = vld [vmem:[%s13470_s11 + $0x5a0] sm:$0xff] }
 0x320   : > { %v10893_v48 = vcombine.high %v1415_v43, %v1419_v44  ;;  %v10915_v7 = vcombine.high %v1438_v1, %v1442_v2  ;;  %v1446_v9 = vld [vmem:[%s13470_s11 + $0x5c0] sm:$0xff]  ;;  %v1471_v35 = vld [vmem:[%s13470_s11 + $0x688] sm:$0xff] }
 0x321   : > { %v1450_v10 = vld [vmem:[%s13470_s11 + $0x5e0] sm:$0xff] }
 0x322   : > { %4399 = vmatpush1.bf16.msra.mxu0 %v10826_v51  ;;  %4571 = vmatpush1.bf16.msra.mxu1 %v10828_v52  ;;  %v1423_v51 = vld [vmem:[%s13470_s11 + $0x508] sm:$0xff]  ;;  %v10923_v15 = vcombine.high %v1446_v9, %v1450_v10  ;;  %v1454_v17 = vld [vmem:[%s13470_s11 + $0x600] sm:$0xff] }
 0x323   : > { %4400 = vmatprep.subr.bf16.mxu0 %v10835_v53  ;;  %4572 = vmatprep.subr.bf16.mxu1 %v10837_v54  ;;  %v1427_v52 = vld [vmem:[%s13470_s11 + $0x528] sm:$0xff]  ;;  %v10890_v53 = vcombine.low %v1414_v41, %v1418_v42  ;;  %v10892_v54 = vcombine.low %v1415_v43, %v1419_v44  ;;  %v1458_v18 = vld [vmem:[%s13470_s11 + $0x620] sm:$0xff] }
 0x324   : > { %v10901_v56 = vcombine.high %v1423_v51, %v1427_v52  ;;  %v10931_v23 = vcombine.high %v1454_v17, %v1458_v18  ;;  %v1462_v25 = vld [vmem:[%s13470_s11 + $0x640] sm:$0xff]  ;;  %v1479_v43 = vld [vmem:[%s13470_s11 + $0x6c8] sm:$0xff] }
 0x325   : > { %v1466_v26 = vld [vmem:[%s13470_s11 + $0x660] sm:$0xff]  ;;  %v1483_v44 = vld [vmem:[%s13470_s11 + $0x6e8] sm:$0xff] }
 0x326   : > { %4401 = vmatpush1.bf16.msra.mxu0 %v10834_v59  ;;  %4573 = vmatpush1.bf16.msra.mxu1 %v10836_v60  ;;  %v1431_v59 = vld [vmem:[%s13470_s11 + $0x548] sm:$0xff]  ;;  %v1470_v33 = vld [vmem:[%s13470_s11 + $0x680] sm:$0xff] }
 0x327   : > { %4402 = vmatprep.subr.bf16.mxu0 %v10843_v61  ;;  %4574 = vmatprep.subr.bf16.mxu1 %v10845_v62  ;;  %v1435_v60 = vld [vmem:[%s13470_s11 + $0x568] sm:$0xff]  ;;  %v10898_v61 = vcombine.low %v1422_v49, %v1426_v50  ;;  %v10900_v62 = vcombine.low %v1423_v51, %v1427_v52  ;;  %v1474_v34 = vld [vmem:[%s13470_s11 + $0x6a0] sm:$0xff] }
 0x328   : > { %v10909_v0 = vcombine.high %v1431_v59, %v1435_v60  ;;  %v1478_v41 = vld [vmem:[%s13470_s11 + $0x6c0] sm:$0xff]  ;;  %v1487_v51 = vld [vmem:[%s13470_s11 + $0x708] sm:$0xff] }
 0x329   : > { %v1482_v42 = vld [vmem:[%s13470_s11 + $0x6e0] sm:$0xff]  ;;  %v1491_v52 = vld [vmem:[%s13470_s11 + $0x728] sm:$0xff] }
 0x32a   : > { %4403 = vmatpush1.bf16.msra.mxu0 %v10842_v3  ;;  %4575 = vmatpush1.bf16.msra.mxu1 %v10844_v4  ;;  %v1439_v3 = vld [vmem:[%s13470_s11 + $0x588] sm:$0xff]  ;;  %v1486_v49 = vld [vmem:[%s13470_s11 + $0x700] sm:$0xff] }
 0x32b   : > { %4404 = vmatprep.subr.bf16.mxu0 %v10851_v5  ;;  %4576 = vmatprep.subr.bf16.mxu1 %v10853_v6  ;;  %v1443_v4 = vld [vmem:[%s13470_s11 + $0x5a8] sm:$0xff]  ;;  %v10906_v5 = vcombine.low %v1430_v57, %v1434_v58  ;;  %v10908_v6 = vcombine.low %v1431_v59, %v1435_v60  ;;  %v1490_v50 = vld [vmem:[%s13470_s11 + $0x720] sm:$0xff] }
 0x32c   : > { %v10917_v8 = vcombine.high %v1439_v3, %v1443_v4  ;;  %v1494_v57 = vld [vmem:[%s13470_s11 + $0x740] sm:$0xff]  ;;  %v1495_v59 = vld [vmem:[%s13470_s11 + $0x748] sm:$0xff] }
 0x32d   : > { %v1498_v58 = vld [vmem:[%s13470_s11 + $0x760] sm:$0xff]  ;;  %v1499_v60 = vld [vmem:[%s13470_s11 + $0x768] sm:$0xff] }
 0x32e   : > { %4405 = vmatpush1.bf16.msra.mxu0 %v10850_v11  ;;  %4577 = vmatpush1.bf16.msra.mxu1 %v10852_v12  ;;  %v1447_v11 = vld [vmem:[%s13470_s11 + $0x5c8] sm:$0xff] }
 0x32f   : > { %4406 = vmatprep.subr.bf16.mxu0 %v10859_v13  ;;  %4578 = vmatprep.subr.bf16.mxu1 %v10861_v14  ;;  %v1451_v12 = vld [vmem:[%s13470_s11 + $0x5e8] sm:$0xff]  ;;  %v10914_v13 = vcombine.low %v1438_v1, %v1442_v2  ;;  %v10916_v14 = vcombine.low %v1439_v3, %v1443_v4  ;;  %v1502_v1 = vld [vmem:[%s13470_s11 + $0x780] sm:$0xff] }
 0x330   : > { %v10925_v16 = vcombine.high %v1447_v11, %v1451_v12  ;;  %v1506_v2 = vld [vmem:[%s13470_s11 + $0x7a0] sm:$0xff]  ;;  %v1503_v3 = vld [vmem:[%s13470_s11 + $0x788] sm:$0xff] }
 0x331   : > { %v1507_v4 = vld [vmem:[%s13470_s11 + $0x7a8] sm:$0xff] }
 0x332   : > { %4407 = vmatpush1.bf16.msra.mxu0 %v10858_v19  ;;  %4579 = vmatpush1.bf16.msra.mxu1 %v10860_v20  ;;  %v1455_v19 = vld [vmem:[%s13470_s11 + $0x608] sm:$0xff] }
 0x333   : > { %4419 = vmatprep.subr.bf16.mxu0 %v10867_v21  ;;  %4591 = vmatprep.subr.bf16.mxu1 %v10869_v22  ;;  %v1459_v20 = vld [vmem:[%s13470_s11 + $0x628] sm:$0xff]  ;;  %v10922_v21 = vcombine.low %v1446_v9, %v1450_v10  ;;  %v10924_v22 = vcombine.low %v1447_v11, %v1451_v12  ;;  %v1510_v9 = vld [vmem:[%s13470_s11 + $0x7c0] sm:$0xff] }
 0x334   : > { %v10933_v24 = vcombine.high %v1455_v19, %v1459_v20  ;;  %v1514_v10 = vld [vmem:[%s13470_s11 + $0x7e0] sm:$0xff]  ;;  %v1511_v11 = vld [vmem:[%s13470_s11 + $0x7c8] sm:$0xff] }
 0x335   : > { %4409 = vmatmul.mubr.bf16.vlgmr.msra.gmra.mrb[0].mxu0 %v1254_v28  ;;  %4581 = vmatmul.mubr.bf16.vlgmr.msra.gmra.mrb[0].mxu1 %v1254_v28  ;;  %v1467_v28 = vld [vmem:[%s13470_s11 + $0x668] sm:$0xff] }
 0x336   : > { %4420 = vmatpush1.bf16.msra.mxu0 %v10866_v27  ;;  %4592 = vmatpush1.bf16.msra.mxu1 %v10868_v29  ;;  %v1463_v27 = vld [vmem:[%s13470_s11 + $0x648] sm:$0xff]  ;;  %v10930_v29 = vcombine.low %v1454_v17, %v1458_v18  ;;  %v1518_v17 = vld [vmem:[%s13470_s11 + $0x800] sm:$0xff] }
 0x337   : > { %4421 = vmatprep.subr.bf16.mxu0 %v10875_v30  ;;  %4593 = vmatprep.subr.bf16.mxu1 %v10877_v31  ;;  %v10932_v30 = vcombine.low %v1455_v19, %v1459_v20  ;;  %v10939_v31 = vcombine.high %v1462_v25, %v1466_v26  ;;  %v10941_v32 = vcombine.high %v1463_v27, %v1467_v28  ;;  %v1515_v12 = vld [vmem:[%s13470_s11 + $0x7e8] sm:$0xff]  ;;  %v1522_v18 = vld [vmem:[%s13470_s11 + $0x820] sm:$0xff] }
 0x338   : > { %4451 = vmatprep.mubr.bf16.mxu0 %v1257_v36  ;;  %4623 = vmatprep.mubr.bf16.mxu1 %v1257_v36  ;;  %v1475_v36 = vld [vmem:[%s13470_s11 + $0x6a8] sm:$0xff] }
 0x339   : > { %v1519_v19 = vld [vmem:[%s13470_s11 + $0x808] sm:$0xff] }
 0x33a   : > { %4422 = vmatpush1.bf16.msra.mxu0 %v10874_v37  ;;  %4594 = vmatpush1.bf16.msra.mxu1 %v10876_v38  ;;  %v10938_v37 = vcombine.low %v1462_v25, %v1466_v26  ;;  %v10940_v38 = vcombine.low %v1463_v27, %v1467_v28  ;;  %v1523_v20 = vld [vmem:[%s13470_s11 + $0x828] sm:$0xff]  ;;  %v1526_v25 = vld [vmem:[%s13470_s11 + $0x840] sm:$0xff] }
 0x33b   : > { %4423 = vmatprep.subr.bf16.mxu0 %v10883_v39  ;;  %4595 = vmatprep.subr.bf16.mxu1 %v10885_v40  ;;  %v10947_v39 = vcombine.high %v1470_v33, %v1474_v34  ;;  %v10949_v40 = vcombine.high %v1471_v35, %v1475_v36  ;;  %v1530_v26 = vld [vmem:[%s13470_s11 + $0x860] sm:$0xff]  ;;  %v1527_v27 = vld [vmem:[%s13470_s11 + $0x848] sm:$0xff] }
 0x33c   : > { %v1531_v28 = vld [vmem:[%s13470_s11 + $0x868] sm:$0xff] }
 0x33e   : > { %4424 = vmatpush1.bf16.msra.mxu0 %v10882_v45  ;;  %4596 = vmatpush1.bf16.msra.mxu1 %v10884_v46  ;;  %v10946_v45 = vcombine.low %v1470_v33, %v1474_v34  ;;  %v10948_v46 = vcombine.low %v1471_v35, %v1475_v36  ;;  %v11005_v33 = vcombine.high %v1527_v27, %v1531_v28  ;;  %v1534_v34 = vld [vmem:[%s13470_s11 + $0x880] sm:$0xff]  ;;  %v1535_v36 = vld [vmem:[%s13470_s11 + $0x888] sm:$0xff] }
 0x33f   : > { %4425 = vmatprep.subr.bf16.mxu0 %v10891_v47  ;;  %4597 = vmatprep.subr.bf16.mxu1 %v10893_v48  ;;  %v10955_v47 = vcombine.high %v1478_v41, %v1482_v42  ;;  %v10957_v48 = vcombine.high %v1479_v43, %v1483_v44  ;;  %v1538_v35 = vld [vmem:[%s13470_s11 + $0x8a0] sm:$0xff] }
 0x342   : > { %4426 = vmatpush1.bf16.msra.mxu0 %v10890_v53  ;;  %4598 = vmatpush1.bf16.msra.mxu1 %v10892_v54  ;;  %v10954_v53 = vcombine.low %v1478_v41, %v1482_v42  ;;  %v10956_v54 = vcombine.low %v1479_v43, %v1483_v44  ;;  %v11011_v41 = vcombine.high %v1534_v34, %v1538_v35  ;;  %v1542_v43 = vld [vmem:[%s13470_s11 + $0x8c0] sm:$0xff] }
 0x343   : > { %4427 = vmatprep.subr.bf16.mxu0 %v10899_v55  ;;  %4599 = vmatprep.subr.bf16.mxu1 %v10901_v56  ;;  %v10963_v55 = vcombine.high %v1486_v49, %v1490_v50  ;;  %v10965_v56 = vcombine.high %v1487_v51, %v1491_v52  ;;  %v1546_v44 = vld [vmem:[%s13470_s11 + $0x8e0] sm:$0xff] }
 0x346   : > { %4428 = vmatpush1.bf16.msra.mxu0 %v10898_v61  ;;  %4600 = vmatpush1.bf16.msra.mxu1 %v10900_v62  ;;  %v10962_v61 = vcombine.low %v1486_v49, %v1490_v50  ;;  %v10964_v62 = vcombine.low %v1487_v51, %v1491_v52  ;;  %v11019_v49 = vcombine.high %v1542_v43, %v1546_v44  ;;  %v1550_v51 = vld [vmem:[%s13470_s11 + $0x900] sm:$0xff] }
 0x347   : > { %4429 = vmatprep.subr.bf16.mxu0 %v10907_v63  ;;  %4601 = vmatprep.subr.bf16.mxu1 %v10909_v0  ;;  %v10971_v63 = vcombine.high %v1494_v57, %v1498_v58  ;;  %v10973_v0 = vcombine.high %v1495_v59, %v1499_v60  ;;  %v1554_v52 = vld [vmem:[%s13470_s11 + $0x920] sm:$0xff] }
 0x34a   : > { %4430 = vmatpush1.bf16.msra.mxu0 %v10906_v5  ;;  %4602 = vmatpush1.bf16.msra.mxu1 %v10908_v6  ;;  %v10970_v5 = vcombine.low %v1494_v57, %v1498_v58  ;;  %v10972_v6 = vcombine.low %v1495_v59, %v1499_v60  ;;  %v11027_v57 = vcombine.high %v1550_v51, %v1554_v52  ;;  %v1558_v59 = vld [vmem:[%s13470_s11 + $0x940] sm:$0xff] }
 0x34b   : > { %4431 = vmatprep.subr.bf16.mxu0 %v10915_v7  ;;  %4603 = vmatprep.subr.bf16.mxu1 %v10917_v8  ;;  %v10979_v7 = vcombine.high %v1502_v1, %v1506_v2  ;;  %v10981_v8 = vcombine.high %v1503_v3, %v1507_v4  ;;  %v1562_v60 = vld [vmem:[%s13470_s11 + $0x960] sm:$0xff] }
 0x34e   : > { %4432 = vmatpush1.bf16.msra.mxu0 %v10914_v13  ;;  %4604 = vmatpush1.bf16.msra.mxu1 %v10916_v14  ;;  %v10978_v13 = vcombine.low %v1502_v1, %v1506_v2  ;;  %v10980_v14 = vcombine.low %v1503_v3, %v1507_v4  ;;  %v11035_v1 = vcombine.high %v1558_v59, %v1562_v60  ;;  %v1566_v3 = vld [vmem:[%s13470_s11 + $0x980] sm:$0xff] }
 0x34f   : > { %4433 = vmatprep.subr.bf16.mxu0 %v10923_v15  ;;  %4605 = vmatprep.subr.bf16.mxu1 %v10925_v16  ;;  %v10987_v15 = vcombine.high %v1510_v9, %v1514_v10  ;;  %v10989_v16 = vcombine.high %v1511_v11, %v1515_v12  ;;  %v1570_v4 = vld [vmem:[%s13470_s11 + $0x9a0] sm:$0xff] }
 0x352   : > { %4434 = vmatpush1.bf16.msra.mxu0 %v10922_v21  ;;  %4606 = vmatpush1.bf16.msra.mxu1 %v10924_v22  ;;  %v10986_v21 = vcombine.low %v1510_v9, %v1514_v10  ;;  %v10988_v22 = vcombine.low %v1511_v11, %v1515_v12  ;;  %v11043_v9 = vcombine.high %v1566_v3, %v1570_v4  ;;  %v1574_v11 = vld [vmem:[%s13470_s11 + $0x9c0] sm:$0xff] }
 0x353   : > { %4435 = vmatprep.subr.bf16.mxu0 %v10931_v23  ;;  %4607 = vmatprep.subr.bf16.mxu1 %v10933_v24  ;;  %v10995_v23 = vcombine.high %v1518_v17, %v1522_v18  ;;  %v10997_v24 = vcombine.high %v1519_v19, %v1523_v20  ;;  %v1578_v12 = vld [vmem:[%s13470_s11 + $0x9e0] sm:$0xff] }
 0x356   : > { %4436 = vmatpush1.bf16.msra.mxu0 %v10930_v29  ;;  %4608 = vmatpush1.bf16.msra.mxu1 %v10932_v30  ;;  %v10994_v29 = vcombine.low %v1518_v17, %v1522_v18  ;;  %v1256_v30 = vld [vmem:[#allocation2 + $0x10] sm:$0xff]  ;;  %v11051_v17 = vcombine.high %v1574_v11, %v1578_v12 }
 0x357   : > { %4437 = vmatprep.subr.bf16.mxu0 %v10939_v31  ;;  %4609 = vmatprep.subr.bf16.mxu1 %v10941_v32  ;;  %v10996_v31 = vcombine.low %v1519_v19, %v1523_v20  ;;  %v11003_v32 = vcombine.high %v1526_v25, %v1530_v26  ;;  %v1582_v19 = vld [vmem:[%s13470_s11 + $0xa00] sm:$0xff] }
 0x358   : > { %v1586_v20 = vld [vmem:[%s13470_s11 + $0xa20] sm:$0xff] }
 0x35a   : > { %4438 = vmatpush1.bf16.msra.mxu0 %v10938_v37  ;;  %4610 = vmatpush1.bf16.msra.mxu1 %v10940_v38  ;;  %v1539_v37 = vld [vmem:[%s13470_s11 + $0x8a8] sm:$0xff]  ;;  %v1259_v38 = vld [vmem:[#allocation2 + $0x28] sm:$0xff] }
 0x35b   : > { %4439 = vmatprep.subr.bf16.mxu0 %v10947_v39  ;;  %4611 = vmatprep.subr.bf16.mxu1 %v10949_v40  ;;  %v11002_v39 = vcombine.low %v1526_v25, %v1530_v26  ;;  %v11004_v40 = vcombine.low %v1527_v27, %v1531_v28  ;;  %v11013_v42 = vcombine.high %v1535_v36, %v1539_v37  ;;  %v1590_v27 = vld [vmem:[%s13470_s11 + $0xa40] sm:$0xff] }
 0x35c   : > { %v11059_v25 = vcombine.high %v1582_v19, %v1586_v20  ;;  %v1594_v28 = vld [vmem:[%s13470_s11 + $0xa60] sm:$0xff] }
 0x35e   : > { %4440 = vmatpush1.bf16.msra.mxu0 %v10946_v45  ;;  %4612 = vmatpush1.bf16.msra.mxu1 %v10948_v46  ;;  %v1543_v45 = vld [vmem:[%s13470_s11 + $0x8c8] sm:$0xff] }
 0x35f   : > { %4441 = vmatprep.subr.bf16.mxu0 %v10955_v47  ;;  %4613 = vmatprep.subr.bf16.mxu1 %v10957_v48  ;;  %v1547_v46 = vld [vmem:[%s13470_s11 + $0x8e8] sm:$0xff]  ;;  %v11010_v47 = vcombine.low %v1534_v34, %v1538_v35  ;;  %v11012_v48 = vcombine.low %v1535_v36, %v1539_v37  ;;  %v1598_v35 = vld [vmem:[%s13470_s11 + $0xa80] sm:$0xff] }
 0x360   : > { %v11021_v50 = vcombine.high %v1543_v45, %v1547_v46  ;;  %v1602_v36 = vld [vmem:[%s13470_s11 + $0xaa0] sm:$0xff]  ;;  %v1599_v37 = vld [vmem:[%s13470_s11 + $0xa88] sm:$0xff] }
 0x362   : > { %4442 = vmatpush1.bf16.msra.mxu0 %v10954_v53  ;;  %4614 = vmatpush1.bf16.msra.mxu1 %v10956_v54  ;;  %v1551_v53 = vld [vmem:[%s13470_s11 + $0x908] sm:$0xff] }
 0x363   : > { %4443 = vmatprep.subr.bf16.mxu0 %v10963_v55  ;;  %4615 = vmatprep.subr.bf16.mxu1 %v10965_v56  ;;  %v1555_v54 = vld [vmem:[%s13470_s11 + $0x928] sm:$0xff]  ;;  %v11018_v55 = vcombine.low %v1542_v43, %v1546_v44  ;;  %v11020_v56 = vcombine.low %v1543_v45, %v1547_v46  ;;  %v1606_v43 = vld [vmem:[%s13470_s11 + $0xac0] sm:$0xff] }
 0x364   : > { %v11029_v58 = vcombine.high %v1551_v53, %v1555_v54  ;;  %v1610_v44 = vld [vmem:[%s13470_s11 + $0xae0] sm:$0xff]  ;;  %v1607_v45 = vld [vmem:[%s13470_s11 + $0xac8] sm:$0xff] }
 0x365   : > { %v1611_v46 = vld [vmem:[%s13470_s11 + $0xae8] sm:$0xff] }
 0x366   : > { %4444 = vmatpush1.bf16.msra.mxu0 %v10962_v61  ;;  %4616 = vmatpush1.bf16.msra.mxu1 %v10964_v62  ;;  %v1559_v61 = vld [vmem:[%s13470_s11 + $0x948] sm:$0xff] }
 0x367   : > { %4445 = vmatprep.subr.bf16.mxu0 %v10971_v63  ;;  %4617 = vmatprep.subr.bf16.mxu1 %v10973_v0  ;;  %v1563_v62 = vld [vmem:[%s13470_s11 + $0x968] sm:$0xff]  ;;  %v11026_v63 = vcombine.low %v1550_v51, %v1554_v52  ;;  %v11028_v0 = vcombine.low %v1551_v53, %v1555_v54  ;;  %v1614_v51 = vld [vmem:[%s13470_s11 + $0xb00] sm:$0xff] }
 0x368   : > { %v11037_v2 = vcombine.high %v1559_v61, %v1563_v62  ;;  %v1618_v52 = vld [vmem:[%s13470_s11 + $0xb20] sm:$0xff]  ;;  %v1615_v53 = vld [vmem:[%s13470_s11 + $0xb08] sm:$0xff] }
 0x369   : > { %v1619_v54 = vld [vmem:[%s13470_s11 + $0xb28] sm:$0xff] }
 0x36a   : > { %4446 = vmatpush1.bf16.msra.mxu0 %v10970_v5  ;;  %4618 = vmatpush1.bf16.msra.mxu1 %v10972_v6  ;;  %v1567_v5 = vld [vmem:[%s13470_s11 + $0x988] sm:$0xff] }
 0x36b   : > { %4447 = vmatprep.subr.bf16.mxu0 %v10979_v7  ;;  %4619 = vmatprep.subr.bf16.mxu1 %v10981_v8  ;;  %v1571_v6 = vld [vmem:[%s13470_s11 + $0x9a8] sm:$0xff]  ;;  %v11034_v7 = vcombine.low %v1558_v59, %v1562_v60  ;;  %v11036_v8 = vcombine.low %v1559_v61, %v1563_v62  ;;  %v1622_v59 = vld [vmem:[%s13470_s11 + $0xb40] sm:$0xff] }
 0x36c   : > { %v11045_v10 = vcombine.high %v1567_v5, %v1571_v6  ;;  %v1626_v60 = vld [vmem:[%s13470_s11 + $0xb60] sm:$0xff]  ;;  %v1623_v61 = vld [vmem:[%s13470_s11 + $0xb48] sm:$0xff] }
 0x36d   : > { %v1627_v62 = vld [vmem:[%s13470_s11 + $0xb68] sm:$0xff] }
 0x36e   : > { %4448 = vmatpush1.bf16.msra.mxu0 %v10978_v13  ;;  %4620 = vmatpush1.bf16.msra.mxu1 %v10980_v14  ;;  %v1575_v13 = vld [vmem:[%s13470_s11 + $0x9c8] sm:$0xff] }
 0x36f   : > { %4449 = vmatprep.subr.bf16.mxu0 %v10987_v15  ;;  %4621 = vmatprep.subr.bf16.mxu1 %v10989_v16  ;;  %v1579_v14 = vld [vmem:[%s13470_s11 + $0x9e8] sm:$0xff]  ;;  %v11042_v15 = vcombine.low %v1566_v3, %v1570_v4  ;;  %v11044_v16 = vcombine.low %v1567_v5, %v1571_v6  ;;  %v1630_v3 = vld [vmem:[%s13470_s11 + $0xb80] sm:$0xff] }
 0x370   : > { %v11053_v18 = vcombine.high %v1575_v13, %v1579_v14  ;;  %v1634_v4 = vld [vmem:[%s13470_s11 + $0xba0] sm:$0xff]  ;;  %v1631_v5 = vld [vmem:[%s13470_s11 + $0xb88] sm:$0xff] }
 0x371   : > { %v1635_v6 = vld [vmem:[%s13470_s11 + $0xba8] sm:$0xff] }
 0x372   : > { %4450 = vmatpush1.bf16.msra.mxu0 %v10986_v21  ;;  %4622 = vmatpush1.bf16.msra.mxu1 %v10988_v22  ;;  %v1583_v21 = vld [vmem:[%s13470_s11 + $0xa08] sm:$0xff] }
 0x373   : > { %4462 = vmatprep.subr.bf16.mxu0 %v10995_v23  ;;  %4634 = vmatprep.subr.bf16.mxu1 %v10997_v24  ;;  %v1587_v22 = vld [vmem:[%s13470_s11 + $0xa28] sm:$0xff]  ;;  %v11050_v23 = vcombine.low %v1574_v11, %v1578_v12  ;;  %v11052_v24 = vcombine.low %v1575_v13, %v1579_v14  ;;  %v1638_v11 = vld [vmem:[%s13470_s11 + $0xbc0] sm:$0xff] }
 0x374   : > { %v11061_v26 = vcombine.high %v1583_v21, %v1587_v22  ;;  %v1642_v12 = vld [vmem:[%s13470_s11 + $0xbe0] sm:$0xff]  ;;  %v1639_v13 = vld [vmem:[%s13470_s11 + $0xbc8] sm:$0xff] }
 0x375   : > { %4452 = vmatmul.mubr.bf16.vlgmr.msra.gmra.mrb[0].mxu0 %v1256_v30  ;;  %4624 = vmatmul.mubr.bf16.vlgmr.msra.gmra.mrb[0].mxu1 %v1256_v30  ;;  %v1595_v30 = vld [vmem:[%s13470_s11 + $0xa68] sm:$0xff] }
 0x376   : > { %4463 = vmatpush1.bf16.msra.mxu0 %v10994_v29  ;;  %4635 = vmatpush1.bf16.msra.mxu1 %v10996_v31  ;;  %v1591_v29 = vld [vmem:[%s13470_s11 + $0xa48] sm:$0xff]  ;;  %v11058_v31 = vcombine.low %v1582_v19, %v1586_v20  ;;  %v1646_v19 = vld [vmem:[%s13470_s11 + $0xc00] sm:$0xff] }
 0x377   : > { %4464 = vmatprep.subr.bf16.mxu0 %v11003_v32  ;;  %4636 = vmatprep.subr.bf16.mxu1 %v11005_v33  ;;  %v11060_v32 = vcombine.low %v1583_v21, %v1587_v22  ;;  %v11067_v33 = vcombine.high %v1590_v27, %v1594_v28  ;;  %v11069_v34 = vcombine.high %v1591_v29, %v1595_v30  ;;  %v1643_v14 = vld [vmem:[%s13470_s11 + $0xbe8] sm:$0xff]  ;;  %v1650_v20 = vld [vmem:[%s13470_s11 + $0xc20] sm:$0xff] }
 0x378   : > { %4494 = vmatprep.mubr.bf16.mxu0 %v1259_v38  ;;  %4666 = vmatprep.mubr.bf16.mxu1 %v1259_v38  ;;  %v1603_v38 = vld [vmem:[%s13470_s11 + $0xaa8] sm:$0xff] }
 0x379   : > { %v1647_v21 = vld [vmem:[%s13470_s11 + $0xc08] sm:$0xff] }
 0x37a   : > { %4465 = vmatpush1.bf16.msra.mxu0 %v11002_v39  ;;  %4637 = vmatpush1.bf16.msra.mxu1 %v11004_v40  ;;  %v11066_v39 = vcombine.low %v1590_v27, %v1594_v28  ;;  %v11068_v40 = vcombine.low %v1591_v29, %v1595_v30  ;;  %v1651_v22 = vld [vmem:[%s13470_s11 + $0xc28] sm:$0xff]  ;;  %v1654_v27 = vld [vmem:[%s13470_s11 + $0xc40] sm:$0xff] }
 0x37b   : > { %4466 = vmatprep.subr.bf16.mxu0 %v11011_v41  ;;  %4638 = vmatprep.subr.bf16.mxu1 %v11013_v42  ;;  %v11075_v41 = vcombine.high %v1598_v35, %v1602_v36  ;;  %v11077_v42 = vcombine.high %v1599_v37, %v1603_v38  ;;  %v1658_v28 = vld [vmem:[%s13470_s11 + $0xc60] sm:$0xff]  ;;  %v1655_v29 = vld [vmem:[%s13470_s11 + $0xc48] sm:$0xff] }
 0x37c   : > { %v1659_v30 = vld [vmem:[%s13470_s11 + $0xc68] sm:$0xff] }
 0x37e   : > { %4467 = vmatpush1.bf16.msra.mxu0 %v11010_v47  ;;  %4639 = vmatpush1.bf16.msra.mxu1 %v11012_v48  ;;  %v11074_v47 = vcombine.low %v1598_v35, %v1602_v36  ;;  %v11076_v48 = vcombine.low %v1599_v37, %v1603_v38  ;;  %v11133_v35 = vcombine.high %v1655_v29, %v1659_v30  ;;  %v1662_v36 = vld [vmem:[%s13470_s11 + $0xc80] sm:$0xff]  ;;  %v1663_v38 = vld [vmem:[%s13470_s11 + $0xc88] sm:$0xff] }
 0x37f   : > { %4468 = vmatprep.subr.bf16.mxu0 %v11019_v49  ;;  %4640 = vmatprep.subr.bf16.mxu1 %v11021_v50  ;;  %v11083_v49 = vcombine.high %v1606_v43, %v1610_v44  ;;  %v11085_v50 = vcombine.high %v1607_v45, %v1611_v46  ;;  %v1666_v37 = vld [vmem:[%s13470_s11 + $0xca0] sm:$0xff] }
 0x382   : > { %4469 = vmatpush1.bf16.msra.mxu0 %v11018_v55  ;;  %4641 = vmatpush1.bf16.msra.mxu1 %v11020_v56  ;;  %v11082_v55 = vcombine.low %v1606_v43, %v1610_v44  ;;  %v11084_v56 = vcombine.low %v1607_v45, %v1611_v46  ;;  %v11139_v43 = vcombine.high %v1662_v36, %v1666_v37  ;;  %v1670_v45 = vld [vmem:[%s13470_s11 + $0xcc0] sm:$0xff] }
 0x383   : > { %4470 = vmatprep.subr.bf16.mxu0 %v11027_v57  ;;  %4642 = vmatprep.subr.bf16.mxu1 %v11029_v58  ;;  %v11091_v57 = vcombine.high %v1614_v51, %v1618_v52  ;;  %v11093_v58 = vcombine.high %v1615_v53, %v1619_v54  ;;  %v1674_v46 = vld [vmem:[%s13470_s11 + $0xce0] sm:$0xff] }
 0x386   : > { %4471 = vmatpush1.bf16.msra.mxu0 %v11026_v63  ;;  %4643 = vmatpush1.bf16.msra.mxu1 %v11028_v0  ;;  %v11090_v63 = vcombine.low %v1614_v51, %v1618_v52  ;;  %v11092_v0 = vcombine.low %v1615_v53, %v1619_v54  ;;  %v11147_v51 = vcombine.high %v1670_v45, %v1674_v46  ;;  %v1678_v53 = vld [vmem:[%s13470_s11 + $0xd00] sm:$0xff] }
 0x387   : > { %4472 = vmatprep.subr.bf16.mxu0 %v11035_v1  ;;  %4644 = vmatprep.subr.bf16.mxu1 %v11037_v2  ;;  %v11099_v1 = vcombine.high %v1622_v59, %v1626_v60  ;;  %v11101_v2 = vcombine.high %v1623_v61, %v1627_v62  ;;  %v1682_v54 = vld [vmem:[%s13470_s11 + $0xd20] sm:$0xff] }
 0x38a   : > { %4473 = vmatpush1.bf16.msra.mxu0 %v11034_v7  ;;  %4645 = vmatpush1.bf16.msra.mxu1 %v11036_v8  ;;  %v11098_v7 = vcombine.low %v1622_v59, %v1626_v60  ;;  %v11100_v8 = vcombine.low %v1623_v61, %v1627_v62  ;;  %v11155_v59 = vcombine.high %v1678_v53, %v1682_v54  ;;  %v1686_v61 = vld [vmem:[%s13470_s11 + $0xd40] sm:$0xff] }
 0x38b   : > { %4474 = vmatprep.subr.bf16.mxu0 %v11043_v9  ;;  %4646 = vmatprep.subr.bf16.mxu1 %v11045_v10  ;;  %v11107_v9 = vcombine.high %v1630_v3, %v1634_v4  ;;  %v11109_v10 = vcombine.high %v1631_v5, %v1635_v6  ;;  %v1690_v62 = vld [vmem:[%s13470_s11 + $0xd60] sm:$0xff] }
 0x38e   : > { %4475 = vmatpush1.bf16.msra.mxu0 %v11042_v15  ;;  %4647 = vmatpush1.bf16.msra.mxu1 %v11044_v16  ;;  %v11106_v15 = vcombine.low %v1630_v3, %v1634_v4  ;;  %v11108_v16 = vcombine.low %v1631_v5, %v1635_v6  ;;  %v11163_v3 = vcombine.high %v1686_v61, %v1690_v62  ;;  %v1694_v5 = vld [vmem:[%s13470_s11 + $0xd80] sm:$0xff] }
 0x38f   : > { %4476 = vmatprep.subr.bf16.mxu0 %v11051_v17  ;;  %4648 = vmatprep.subr.bf16.mxu1 %v11053_v18  ;;  %v11115_v17 = vcombine.high %v1638_v11, %v1642_v12  ;;  %v11117_v18 = vcombine.high %v1639_v13, %v1643_v14  ;;  %v1698_v6 = vld [vmem:[%s13470_s11 + $0xda0] sm:$0xff] }
 0x392   : > { %4477 = vmatpush1.bf16.msra.mxu0 %v11050_v23  ;;  %4649 = vmatpush1.bf16.msra.mxu1 %v11052_v24  ;;  %v11114_v23 = vcombine.low %v1638_v11, %v1642_v12  ;;  %v11116_v24 = vcombine.low %v1639_v13, %v1643_v14  ;;  %v11171_v11 = vcombine.high %v1694_v5, %v1698_v6  ;;  %v1702_v13 = vld [vmem:[%s13470_s11 + $0xdc0] sm:$0xff] }
 0x393   : > { %4478 = vmatprep.subr.bf16.mxu0 %v11059_v25  ;;  %4650 = vmatprep.subr.bf16.mxu1 %v11061_v26  ;;  %v11123_v25 = vcombine.high %v1646_v19, %v1650_v20  ;;  %v11125_v26 = vcombine.high %v1647_v21, %v1651_v22  ;;  %v1706_v14 = vld [vmem:[%s13470_s11 + $0xde0] sm:$0xff] }
 0x396   : > { %4479 = vmatpush1.bf16.msra.mxu0 %v11058_v31  ;;  %4651 = vmatpush1.bf16.msra.mxu1 %v11060_v32  ;;  %v11122_v31 = vcombine.low %v1646_v19, %v1650_v20  ;;  %v1258_v32 = vld [vmem:[#allocation2 + $0x20] sm:$0xff]  ;;  %v11179_v19 = vcombine.high %v1702_v13, %v1706_v14 }
 0x397   : > { %4480 = vmatprep.subr.bf16.mxu0 %v11067_v33  ;;  %4652 = vmatprep.subr.bf16.mxu1 %v11069_v34  ;;  %v11124_v33 = vcombine.low %v1647_v21, %v1651_v22  ;;  %v11131_v34 = vcombine.high %v1654_v27, %v1658_v28  ;;  %v1710_v21 = vld [vmem:[%s13470_s11 + $0xe00] sm:$0xff] }
 0x398   : > { %v1714_v22 = vld [vmem:[%s13470_s11 + $0xe20] sm:$0xff] }
 0x39a   : > { %4481 = vmatpush1.bf16.msra.mxu0 %v11066_v39  ;;  %4653 = vmatpush1.bf16.msra.mxu1 %v11068_v40  ;;  %v1667_v39 = vld [vmem:[%s13470_s11 + $0xca8] sm:$0xff]  ;;  %v1261_v40 = vld [vmem:[#allocation2 + $0x38] sm:$0xff] }
 0x39b   : > { %4482 = vmatprep.subr.bf16.mxu0 %v11075_v41  ;;  %4654 = vmatprep.subr.bf16.mxu1 %v11077_v42  ;;  %v11130_v41 = vcombine.low %v1654_v27, %v1658_v28  ;;  %v11132_v42 = vcombine.low %v1655_v29, %v1659_v30  ;;  %v11141_v44 = vcombine.high %v1663_v38, %v1667_v39  ;;  %v1718_v29 = vld [vmem:[%s13470_s11 + $0xe40] sm:$0xff] }
 0x39c   : > { %v11187_v27 = vcombine.high %v1710_v21, %v1714_v22  ;;  %v1722_v30 = vld [vmem:[%s13470_s11 + $0xe60] sm:$0xff] }
 0x39e   : > { %4483 = vmatpush1.bf16.msra.mxu0 %v11074_v47  ;;  %4655 = vmatpush1.bf16.msra.mxu1 %v11076_v48  ;;  %v1671_v47 = vld [vmem:[%s13470_s11 + $0xcc8] sm:$0xff] }
 0x39f   : > { %4484 = vmatprep.subr.bf16.mxu0 %v11083_v49  ;;  %4656 = vmatprep.subr.bf16.mxu1 %v11085_v50  ;;  %v1675_v48 = vld [vmem:[%s13470_s11 + $0xce8] sm:$0xff]  ;;  %v11138_v49 = vcombine.low %v1662_v36, %v1666_v37  ;;  %v11140_v50 = vcombine.low %v1663_v38, %v1667_v39  ;;  %v1726_v37 = vld [vmem:[%s13470_s11 + $0xe80] sm:$0xff] }
 0x3a0   : > { %v11149_v52 = vcombine.high %v1671_v47, %v1675_v48  ;;  %v1730_v38 = vld [vmem:[%s13470_s11 + $0xea0] sm:$0xff]  ;;  %v1727_v39 = vld [vmem:[%s13470_s11 + $0xe88] sm:$0xff] }
 0x3a2   : > { %4485 = vmatpush1.bf16.msra.mxu0 %v11082_v55  ;;  %4657 = vmatpush1.bf16.msra.mxu1 %v11084_v56  ;;  %v1679_v55 = vld [vmem:[%s13470_s11 + $0xd08] sm:$0xff] }
 0x3a3   : > { %4486 = vmatprep.subr.bf16.mxu0 %v11091_v57  ;;  %4658 = vmatprep.subr.bf16.mxu1 %v11093_v58  ;;  %v1683_v56 = vld [vmem:[%s13470_s11 + $0xd28] sm:$0xff]  ;;  %v11146_v57 = vcombine.low %v1670_v45, %v1674_v46  ;;  %v11148_v58 = vcombine.low %v1671_v47, %v1675_v48  ;;  %v1734_v45 = vld [vmem:[%s13470_s11 + $0xec0] sm:$0xff] }
 0x3a4   : > { %v11157_v60 = vcombine.high %v1679_v55, %v1683_v56  ;;  %v1738_v46 = vld [vmem:[%s13470_s11 + $0xee0] sm:$0xff]  ;;  %v1735_v47 = vld [vmem:[%s13470_s11 + $0xec8] sm:$0xff] }
 0x3a5   : > { %v1739_v48 = vld [vmem:[%s13470_s11 + $0xee8] sm:$0xff] }
 0x3a6   : > { %4487 = vmatpush1.bf16.msra.mxu0 %v11090_v63  ;;  %4659 = vmatpush1.bf16.msra.mxu1 %v11092_v0  ;;  %v1687_v63 = vld [vmem:[%s13470_s11 + $0xd48] sm:$0xff] }
 0x3a7   : > { %4488 = vmatprep.subr.bf16.mxu0 %v11099_v1  ;;  %4660 = vmatprep.subr.bf16.mxu1 %v11101_v2  ;;  %v1691_v0 = vld [vmem:[%s13470_s11 + $0xd68] sm:$0xff]  ;;  %v11154_v1 = vcombine.low %v1678_v53, %v1682_v54  ;;  %v11156_v2 = vcombine.low %v1679_v55, %v1683_v56  ;;  %v1742_v53 = vld [vmem:[%s13470_s11 + $0xf00] sm:$0xff] }
 0x3a8   : > { %v11165_v4 = vcombine.high %v1687_v63, %v1691_v0  ;;  %v1746_v54 = vld [vmem:[%s13470_s11 + $0xf20] sm:$0xff]  ;;  %v1743_v55 = vld [vmem:[%s13470_s11 + $0xf08] sm:$0xff] }
 0x3a9   : > { %v1747_v56 = vld [vmem:[%s13470_s11 + $0xf28] sm:$0xff] }
 0x3aa   : > { %4489 = vmatpush1.bf16.msra.mxu0 %v11098_v7  ;;  %4661 = vmatpush1.bf16.msra.mxu1 %v11100_v8  ;;  %v1695_v7 = vld [vmem:[%s13470_s11 + $0xd88] sm:$0xff] }
 0x3ab   : > { %4490 = vmatprep.subr.bf16.mxu0 %v11107_v9  ;;  %4662 = vmatprep.subr.bf16.mxu1 %v11109_v10  ;;  %v1699_v8 = vld [vmem:[%s13470_s11 + $0xda8] sm:$0xff]  ;;  %v11162_v9 = vcombine.low %v1686_v61, %v1690_v62  ;;  %v11164_v10 = vcombine.low %v1687_v63, %v1691_v0  ;;  %v1750_v61 = vld [vmem:[%s13470_s11 + $0xf40] sm:$0xff] }
 0x3ac   : > { %v11173_v12 = vcombine.high %v1695_v7, %v1699_v8  ;;  %v1754_v62 = vld [vmem:[%s13470_s11 + $0xf60] sm:$0xff]  ;;  %v1751_v63 = vld [vmem:[%s13470_s11 + $0xf48] sm:$0xff] }
 0x3ad   : > { %v1755_v0 = vld [vmem:[%s13470_s11 + $0xf68] sm:$0xff] }
 0x3ae   : > { %4491 = vmatpush1.bf16.msra.mxu0 %v11106_v15  ;;  %4663 = vmatpush1.bf16.msra.mxu1 %v11108_v16  ;;  %v1703_v15 = vld [vmem:[%s13470_s11 + $0xdc8] sm:$0xff] }
 0x3af   : > { %4492 = vmatprep.subr.bf16.mxu0 %v11115_v17  ;;  %4664 = vmatprep.subr.bf16.mxu1 %v11117_v18  ;;  %v1707_v16 = vld [vmem:[%s13470_s11 + $0xde8] sm:$0xff]  ;;  %v11170_v17 = vcombine.low %v1694_v5, %v1698_v6  ;;  %v11172_v18 = vcombine.low %v1695_v7, %v1699_v8  ;;  %v1758_v5 = vld [vmem:[%s13470_s11 + $0xf80] sm:$0xff] }
 0x3b0   : > { %v11181_v20 = vcombine.high %v1703_v15, %v1707_v16  ;;  %v1762_v6 = vld [vmem:[%s13470_s11 + $0xfa0] sm:$0xff]  ;;  %v1759_v7 = vld [vmem:[%s13470_s11 + $0xf88] sm:$0xff] }
 0x3b1   : > { %v1763_v8 = vld [vmem:[%s13470_s11 + $0xfa8] sm:$0xff] }
 0x3b2   : > { %4493 = vmatpush1.bf16.msra.mxu0 %v11114_v23  ;;  %4665 = vmatpush1.bf16.msra.mxu1 %v11116_v24  ;;  %v1711_v23 = vld [vmem:[%s13470_s11 + $0xe08] sm:$0xff] }
 0x3b3   : > { %4505 = vmatprep.subr.bf16.mxu0 %v11123_v25  ;;  %4677 = vmatprep.subr.bf16.mxu1 %v11125_v26  ;;  %v1715_v24 = vld [vmem:[%s13470_s11 + $0xe28] sm:$0xff]  ;;  %v11178_v25 = vcombine.low %v1702_v13, %v1706_v14  ;;  %v11180_v26 = vcombine.low %v1703_v15, %v1707_v16  ;;  %v1766_v13 = vld [vmem:[%s13470_s11 + $0xfc0] sm:$0xff] }
 0x3b4   : > { %v11189_v28 = vcombine.high %v1711_v23, %v1715_v24  ;;  %v1770_v14 = vld [vmem:[%s13470_s11 + $0xfe0] sm:$0xff]  ;;  %v1767_v15 = vld [vmem:[%s13470_s11 + $0xfc8] sm:$0xff] }
 0x3b5   : > { %4495 = vmatmul.mubr.bf16.vlgmr.msra.gmra.mrb[0].mxu0 %v1258_v32  ;;  %4667 = vmatmul.mubr.bf16.vlgmr.msra.gmra.mrb[0].mxu1 %v1258_v32  ;;  %v1723_v32 = vld [vmem:[%s13470_s11 + $0xe68] sm:$0xff] }
 0x3b6   : > { %4506 = vmatpush1.bf16.msra.mxu0 %v11122_v31  ;;  %4678 = vmatpush1.bf16.msra.mxu1 %v11124_v33  ;;  %v1719_v31 = vld [vmem:[%s13470_s11 + $0xe48] sm:$0xff]  ;;  %v11186_v33 = vcombine.low %v1710_v21, %v1714_v22  ;;  %v1264_v21 = vld [vmem:[%s13470_s11 + $0x10] sm:$0xff] }
 0x3b7   : > { %4507 = vmatprep.subr.bf16.mxu0 %v11131_v34  ;;  %4679 = vmatprep.subr.bf16.mxu1 %v11133_v35  ;;  %v11188_v34 = vcombine.low %v1711_v23, %v1715_v24  ;;  %v11195_v35 = vcombine.high %v1718_v29, %v1722_v30  ;;  %v11197_v36 = vcombine.high %v1719_v31, %v1723_v32  ;;  %v1771_v16 = vld [vmem:[%s13470_s11 + $0xfe8] sm:$0xff]  ;;  %v1268_v22 = vld [vmem:[%s13470_s11 + $0x30] sm:$0xff]  ;;  %v1265_v23 = vld [vmem:[%s13470_s11 + $0x18] sm:$0xff] }
 0x3b8   : > { %4537 = vmatprep.mubr.bf16.mxu0 %v1261_v40  ;;  %4709 = vmatprep.mubr.bf16.mxu1 %v1261_v40  ;;  %v1731_v40 = vld [vmem:[%s13470_s11 + $0xea8] sm:$0xff]  ;;  %v1269_v24 = vld [vmem:[%s13470_s11 + $0x38] sm:$0xff] }
 0x3ba   : > { %4508 = vmatpush1.bf16.msra.mxu0 %v11130_v41  ;;  %4680 = vmatpush1.bf16.msra.mxu1 %v11132_v42  ;;  %v11194_v41 = vcombine.low %v1718_v29, %v1722_v30  ;;  %v11196_v42 = vcombine.low %v1719_v31, %v1723_v32  ;;  %v1272_v29 = vld [vmem:[%s13470_s11 + $0x50] sm:$0xff]  ;;  %v1273_v31 = vld [vmem:[%s13470_s11 + $0x58] sm:$0xff] }
 0x3bb   : > { %4509 = vmatprep.subr.bf16.mxu0 %v11139_v43  ;;  %4681 = vmatprep.subr.bf16.mxu1 %v11141_v44  ;;  %v11203_v43 = vcombine.high %v1726_v37, %v1730_v38  ;;  %v11205_v44 = vcombine.high %v1727_v39, %v1731_v40  ;;  %v1276_v30 = vld [vmem:[%s13470_s11 + $0x70] sm:$0xff]  ;;  %v1277_v32 = vld [vmem:[%s13470_s11 + $0x78] sm:$0xff] }
 0x3be   : > { %4510 = vmatpush1.bf16.msra.mxu0 %v11138_v49  ;;  %4682 = vmatpush1.bf16.msra.mxu1 %v11140_v50  ;;  %v11202_v49 = vcombine.low %v1726_v37, %v1730_v38  ;;  %v11204_v50 = vcombine.low %v1727_v39, %v1731_v40  ;;  %v10753_v37 = vcombine.high %v1273_v31, %v1277_v32  ;;  %v1280_v38 = vld [vmem:[%s13470_s11 + $0x90] sm:$0xff]  ;;  %v1281_v40 = vld [vmem:[%s13470_s11 + $0x98] sm:$0xff] }
 0x3bf   : > { %4511 = vmatprep.subr.bf16.mxu0 %v11147_v51  ;;  %4683 = vmatprep.subr.bf16.mxu1 %v11149_v52  ;;  %v11211_v51 = vcombine.high %v1734_v45, %v1738_v46  ;;  %v11213_v52 = vcombine.high %v1735_v47, %v1739_v48  ;;  %v1284_v39 = vld [vmem:[%s13470_s11 + $0xb0] sm:$0xff] }
 0x3c2   : > { %4512 = vmatpush1.bf16.msra.mxu0 %v11146_v57  ;;  %4684 = vmatpush1.bf16.msra.mxu1 %v11148_v58  ;;  %v11210_v57 = vcombine.low %v1734_v45, %v1738_v46  ;;  %v11212_v58 = vcombine.low %v1735_v47, %v1739_v48  ;;  %v1288_v46 = vld [vmem:[%s13470_s11 + $0xd0] sm:$0xff] }
 0x3c3   : > { %4513 = vmatprep.subr.bf16.mxu0 %v11155_v59  ;;  %4685 = vmatprep.subr.bf16.mxu1 %v11157_v60  ;;  %v11219_v59 = vcombine.high %v1742_v53, %v1746_v54  ;;  %v11221_v60 = vcombine.high %v1743_v55, %v1747_v56  ;;  %v1292_v47 = vld [vmem:[%s13470_s11 + $0xf0] sm:$0xff] }
 0x3c4   : > { %v12272_v48 = vld [vmem:[#allocation2 + $0x8] sm:$0xff] }
 0x3c6   : > { %4514 = vmatpush1.bf16.msra.mxu0 %v11154_v1  ;;  %4686 = vmatpush1.bf16.msra.mxu1 %v11156_v2  ;;  %v11218_v1 = vcombine.low %v1742_v53, %v1746_v54  ;;  %v11220_v2 = vcombine.low %v1743_v55, %v1747_v56  ;;  %v10767_v53 = vcombine.high %v1288_v46, %v1292_v47  ;;  %v1296_v55 = vld [vmem:[%s13470_s11 + $0x110] sm:$0xff] }
 0x3c7   : > { %4515 = vmatprep.subr.bf16.mxu0 %v11163_v3  ;;  %4687 = vmatprep.subr.bf16.mxu1 %v11165_v4  ;;  %v11227_v3 = vcombine.high %v1750_v61, %v1754_v62  ;;  %v11229_v4 = vcombine.high %v1751_v63, %v1755_v0  ;;  %v1300_v56 = vld [vmem:[%s13470_s11 + $0x130] sm:$0xff] }
 0x3ca   : > { %4516 = vmatpush1.bf16.msra.mxu0 %v11162_v9  ;;  %4688 = vmatpush1.bf16.msra.mxu1 %v11164_v10  ;;  %v11226_v9 = vcombine.low %v1750_v61, %v1754_v62  ;;  %v11228_v10 = vcombine.low %v1751_v63, %v1755_v0  ;;  %v10775_v61 = vcombine.high %v1296_v55, %v1300_v56  ;;  %v1304_v63 = vld [vmem:[%s13470_s11 + $0x150] sm:$0xff] }
 0x3cb   : > { %4517 = vmatprep.subr.bf16.mxu0 %v11171_v11  ;;  %4689 = vmatprep.subr.bf16.mxu1 %v11173_v12  ;;  %v11235_v11 = vcombine.high %v1758_v5, %v1762_v6  ;;  %v11237_v12 = vcombine.high %v1759_v7, %v1763_v8  ;;  %v1308_v0 = vld [vmem:[%s13470_s11 + $0x170] sm:$0xff] }
 0x3ce   : > { %4518 = vmatpush1.bf16.msra.mxu0 %v11170_v17  ;;  %4690 = vmatpush1.bf16.msra.mxu1 %v11172_v18  ;;  %v11234_v17 = vcombine.low %v1758_v5, %v1762_v6  ;;  %v11236_v18 = vcombine.low %v1759_v7, %v1763_v8  ;;  %v10783_v5 = vcombine.high %v1304_v63, %v1308_v0  ;;  %v1312_v7 = vld [vmem:[%s13470_s11 + $0x190] sm:$0xff] }
 0x3cf   : > { %4519 = vmatprep.subr.bf16.mxu0 %v11179_v19  ;;  %4691 = vmatprep.subr.bf16.mxu1 %v11181_v20  ;;  %v11243_v19 = vcombine.high %v1766_v13, %v1770_v14  ;;  %v11245_v20 = vcombine.high %v1767_v15, %v1771_v16  ;;  %v1316_v8 = vld [vmem:[%s13470_s11 + $0x1b0] sm:$0xff] }
 0x3d2   : > { %4520 = vmatpush1.bf16.msra.mxu0 %v11178_v25  ;;  %4692 = vmatpush1.bf16.msra.mxu1 %v11180_v26  ;;  %v11242_v25 = vcombine.low %v1766_v13, %v1770_v14  ;;  %v11244_v26 = vcombine.low %v1767_v15, %v1771_v16  ;;  %v10791_v13 = vcombine.high %v1312_v7, %v1316_v8  ;;  %v1320_v15 = vld [vmem:[%s13470_s11 + $0x1d0] sm:$0xff] }
 0x3d3   : > { %4521 = vmatprep.subr.bf16.mxu0 %v11187_v27  ;;  %4693 = vmatprep.subr.bf16.mxu1 %v11189_v28  ;;  %v10743_v27 = vcombine.high %v1264_v21, %v1268_v22  ;;  %v10745_v28 = vcombine.high %v1265_v23, %v1269_v24  ;;  %v1324_v16 = vld [vmem:[%s13470_s11 + $0x1f0] sm:$0xff] }
 0x3d6   : > { %4522 = vmatpush1.bf16.msra.mxu0 %v11186_v33  ;;  %4694 = vmatpush1.bf16.msra.mxu1 %v11188_v34  ;;  %v1260_v33 = vld [vmem:[#allocation2 + $0x30] sm:$0xff]  ;;  %v10742_v34 = vcombine.low %v1264_v21, %v1268_v22  ;;  %v10799_v21 = vcombine.high %v1320_v15, %v1324_v16 }
 0x3d7   : > { %4523 = vmatprep.subr.bf16.mxu0 %v11195_v35  ;;  %4695 = vmatprep.subr.bf16.mxu1 %v11197_v36  ;;  %v10744_v35 = vcombine.low %v1265_v23, %v1269_v24  ;;  %v10751_v36 = vcombine.high %v1272_v29, %v1276_v30  ;;  %v1328_v23 = vld [vmem:[%s13470_s11 + $0x210] sm:$0xff] }
 0x3d8   : > { %v1332_v24 = vld [vmem:[%s13470_s11 + $0x230] sm:$0xff] }
 0x3da   : > { %4524 = vmatpush1.bf16.msra.mxu0 %v11194_v41  ;;  %4696 = vmatpush1.bf16.msra.mxu1 %v11196_v42  ;;  %v1285_v41 = vld [vmem:[%s13470_s11 + $0xb8] sm:$0xff]  ;;  %v10750_v42 = vcombine.low %v1272_v29, %v1276_v30  ;;  %v10807_v29 = vcombine.high %v1328_v23, %v1332_v24 }
 0x3db   : > { %4525 = vmatprep.subr.bf16.mxu0 %v11203_v43  ;;  %4697 = vmatprep.subr.bf16.mxu1 %v11205_v44  ;;  %v10752_v43 = vcombine.low %v1273_v31, %v1277_v32  ;;  %v10759_v44 = vcombine.high %v1280_v38, %v1284_v39  ;;  %v10761_v45 = vcombine.high %v1281_v40, %v1285_v41  ;;  %v1336_v31 = vld [vmem:[%s13470_s11 + $0x250] sm:$0xff] }
 0x3dc   : > { %v1340_v32 = vld [vmem:[%s13470_s11 + $0x270] sm:$0xff] }
 0x3de   : > { %4526 = vmatpush1.bf16.msra.mxu0 %v11202_v49  ;;  %4698 = vmatpush1.bf16.msra.mxu1 %v11204_v50  ;;  %v1289_v49 = vld [vmem:[%s13470_s11 + $0xd8] sm:$0xff] }
 0x3df   : > { %4527 = vmatprep.subr.bf16.mxu0 %v11211_v51  ;;  %4699 = vmatprep.subr.bf16.mxu1 %v11213_v52  ;;  %v1293_v50 = vld [vmem:[%s13470_s11 + $0xf8] sm:$0xff]  ;;  %v10758_v51 = vcombine.low %v1280_v38, %v1284_v39  ;;  %v10760_v52 = vcombine.low %v1281_v40, %v1285_v41  ;;  %v1344_v39 = vld [vmem:[%s13470_s11 + $0x290] sm:$0xff] }
 0x3e0   : > { %v10769_v54 = vcombine.high %v1289_v49, %v1293_v50  ;;  %v1348_v40 = vld [vmem:[%s13470_s11 + $0x2b0] sm:$0xff]  ;;  %v1345_v41 = vld [vmem:[%s13470_s11 + $0x298] sm:$0xff] }
 0x3e2   : > { %4528 = vmatpush1.bf16.msra.mxu0 %v11210_v57  ;;  %4700 = vmatpush1.bf16.msra.mxu1 %v11212_v58  ;;  %v1297_v57 = vld [vmem:[%s13470_s11 + $0x118] sm:$0xff] }
 0x3e3   : > { %4529 = vmatprep.subr.bf16.mxu0 %v11219_v59  ;;  %4701 = vmatprep.subr.bf16.mxu1 %v11221_v60  ;;  %v1301_v58 = vld [vmem:[%s13470_s11 + $0x138] sm:$0xff]  ;;  %v10766_v59 = vcombine.low %v1288_v46, %v1292_v47  ;;  %v10768_v60 = vcombine.low %v1289_v49, %v1293_v50  ;;  %v1352_v47 = vld [vmem:[%s13470_s11 + $0x2d0] sm:$0xff] }
 0x3e4   : > { %v10777_v62 = vcombine.high %v1297_v57, %v1301_v58  ;;  %v1353_v49 = vld [vmem:[%s13470_s11 + $0x2d8] sm:$0xff] }
 0x3e5   : > { %v1357_v50 = vld [vmem:[%s13470_s11 + $0x2f8] sm:$0xff] }
 0x3e6   : > { %4530 = vmatpush1.bf16.msra.mxu0 %v11218_v1  ;;  %4702 = vmatpush1.bf16.msra.mxu1 %v11220_v2  ;;  %v1305_v1 = vld [vmem:[%s13470_s11 + $0x158] sm:$0xff] }
 0x3e7   : > { %4531 = vmatprep.subr.bf16.mxu0 %v11227_v3  ;;  %4703 = vmatprep.subr.bf16.mxu1 %v11229_v4  ;;  %v1309_v2 = vld [vmem:[%s13470_s11 + $0x178] sm:$0xff]  ;;  %v10774_v3 = vcombine.low %v1296_v55, %v1300_v56  ;;  %v10776_v4 = vcombine.low %v1297_v57, %v1301_v58  ;;  %v1360_v55 = vld [vmem:[%s13470_s11 + $0x310] sm:$0xff] }
 0x3e8   : > { %v10785_v6 = vcombine.high %v1305_v1, %v1309_v2  ;;  %v1364_v56 = vld [vmem:[%s13470_s11 + $0x330] sm:$0xff]  ;;  %v1361_v57 = vld [vmem:[%s13470_s11 + $0x318] sm:$0xff] }
 0x3e9   : > { %v1365_v58 = vld [vmem:[%s13470_s11 + $0x338] sm:$0xff] }
 0x3ea   : > { %4532 = vmatpush1.bf16.msra.mxu0 %v11226_v9  ;;  %4704 = vmatpush1.bf16.msra.mxu1 %v11228_v10  ;;  %v1313_v9 = vld [vmem:[%s13470_s11 + $0x198] sm:$0xff] }
 0x3eb   : > { %4533 = vmatprep.subr.bf16.mxu0 %v11235_v11  ;;  %4705 = vmatprep.subr.bf16.mxu1 %v11237_v12  ;;  %v1317_v10 = vld [vmem:[%s13470_s11 + $0x1b8] sm:$0xff]  ;;  %v10782_v11 = vcombine.low %v1304_v63, %v1308_v0  ;;  %v10784_v12 = vcombine.low %v1305_v1, %v1309_v2  ;;  %v1368_v63 = vld [vmem:[%s13470_s11 + $0x350] sm:$0xff] }
 0x3ec   : > { %v10793_v14 = vcombine.high %v1313_v9, %v1317_v10  ;;  %v1372_v0 = vld [vmem:[%s13470_s11 + $0x370] sm:$0xff]  ;;  %v1369_v1 = vld [vmem:[%s13470_s11 + $0x358] sm:$0xff] }
 0x3ed   : > { %v1373_v2 = vld [vmem:[%s13470_s11 + $0x378] sm:$0xff] }
 0x3ee   : > { %4534 = vmatpush1.bf16.msra.mxu0 %v11234_v17  ;;  %4706 = vmatpush1.bf16.msra.mxu1 %v11236_v18  ;;  %v1321_v17 = vld [vmem:[%s13470_s11 + $0x1d8] sm:$0xff] }
 0x3ef   : > { %4535 = vmatprep.subr.bf16.mxu0 %v11243_v19  ;;  %4707 = vmatprep.subr.bf16.mxu1 %v11245_v20  ;;  %v1325_v18 = vld [vmem:[%s13470_s11 + $0x1f8] sm:$0xff]  ;;  %v10790_v19 = vcombine.low %v1312_v7, %v1316_v8  ;;  %v10792_v20 = vcombine.low %v1313_v9, %v1317_v10  ;;  %v1376_v7 = vld [vmem:[%s13470_s11 + $0x390] sm:$0xff] }
 0x3f0   : > { %v10801_v22 = vcombine.high %v1321_v17, %v1325_v18  ;;  %v1380_v8 = vld [vmem:[%s13470_s11 + $0x3b0] sm:$0xff]  ;;  %v1377_v9 = vld [vmem:[%s13470_s11 + $0x398] sm:$0xff] }
 0x3f1   : > { %v1381_v10 = vld [vmem:[%s13470_s11 + $0x3b8] sm:$0xff] }
 0x3f2   : > { %4536 = vmatpush1.bf16.msra.mxu0 %v11242_v25  ;;  %4708 = vmatpush1.bf16.msra.mxu1 %v11244_v26  ;;  %v1329_v25 = vld [vmem:[%s13470_s11 + $0x218] sm:$0xff] }
 0x3f3   : > { %4720 = vmatprep.subr.bf16.mxu0 %v10743_v27  ;;  %4892 = vmatprep.subr.bf16.mxu1 %v10745_v28  ;;  %v1333_v26 = vld [vmem:[%s13470_s11 + $0x238] sm:$0xff]  ;;  %v10798_v27 = vcombine.low %v1320_v15, %v1324_v16  ;;  %v10800_v28 = vcombine.low %v1321_v17, %v1325_v18  ;;  %v1384_v15 = vld [vmem:[%s13470_s11 + $0x3d0] sm:$0xff] }
 0x3f4   : > { %v10809_v30 = vcombine.high %v1329_v25, %v1333_v26  ;;  %v1388_v16 = vld [vmem:[%s13470_s11 + $0x3f0] sm:$0xff]  ;;  %v1385_v17 = vld [vmem:[%s13470_s11 + $0x3d8] sm:$0xff] }
 0x3f5   : > { %4538 = vmatmul.mubr.bf16.vlgmr.msra.gmra.mrb[0].mxu0 %v1260_v33  ;;  %4710 = vmatmul.mubr.bf16.vlgmr.msra.gmra.mrb[0].mxu1 %v1260_v33  ;;  %v1337_v33 = vld [vmem:[%s13470_s11 + $0x258] sm:$0xff] }
 0x3f6   : > { %4721 = vmatpush1.bf16.msra.mxu0 %v10742_v34  ;;  %4893 = vmatpush1.bf16.msra.mxu1 %v10744_v35  ;;  %v1341_v34 = vld [vmem:[%s13470_s11 + $0x278] sm:$0xff]  ;;  %v10806_v35 = vcombine.low %v1328_v23, %v1332_v24  ;;  %v1392_v23 = vld [vmem:[%s13470_s11 + $0x410] sm:$0xff] }
 0x3f7   : > { %4722 = vmatprep.subr.bf16.mxu0 %v10751_v36  ;;  %4894 = vmatprep.subr.bf16.mxu1 %v10753_v37  ;;  %v10808_v36 = vcombine.low %v1329_v25, %v1333_v26  ;;  %v10815_v37 = vcombine.high %v1336_v31, %v1340_v32  ;;  %v10817_v38 = vcombine.high %v1337_v33, %v1341_v34  ;;  %v1389_v18 = vld [vmem:[%s13470_s11 + $0x3f8] sm:$0xff]  ;;  %v1396_v24 = vld [vmem:[%s13470_s11 + $0x430] sm:$0xff] }
 0x3f8   : > { %4752 = vmatprep.mubr.bf16.mxu0 %v12272_v48  ;;  %4924 = vmatprep.mubr.bf16.mxu1 %v12272_v48  ;;  %v1356_v48 = vld [vmem:[%s13470_s11 + $0x2f0] sm:$0xff]  ;;  %v1393_v25 = vld [vmem:[%s13470_s11 + $0x418] sm:$0xff] }
 0x3f9   : > { %v1397_v26 = vld [vmem:[%s13470_s11 + $0x438] sm:$0xff] }
 0x3fa   : > { %4723 = vmatpush1.bf16.msra.mxu0 %v10750_v42  ;;  %4895 = vmatpush1.bf16.msra.mxu1 %v10752_v43  ;;  %v1349_v42 = vld [vmem:[%s13470_s11 + $0x2b8] sm:$0xff]  ;;  %v10814_v43 = vcombine.low %v1336_v31, %v1340_v32  ;;  %v1400_v31 = vld [vmem:[%s13470_s11 + $0x450] sm:$0xff] }
 0x3fb   : > { %4724 = vmatprep.subr.bf16.mxu0 %v10759_v44  ;;  %4896 = vmatprep.subr.bf16.mxu1 %v10761_v45  ;;  %v10816_v44 = vcombine.low %v1337_v33, %v1341_v34  ;;  %v10823_v45 = vcombine.high %v1344_v39, %v1348_v40  ;;  %v10825_v46 = vcombine.high %v1345_v41, %v1349_v42  ;;  %v1404_v32 = vld [vmem:[%s13470_s11 + $0x470] sm:$0xff]  ;;  %v1401_v33 = vld [vmem:[%s13470_s11 + $0x458] sm:$0xff] }
 0x3fc   : > { %v1405_v34 = vld [vmem:[%s13470_s11 + $0x478] sm:$0xff] }
 0x3fe   : > { %4725 = vmatpush1.bf16.msra.mxu0 %v10758_v51  ;;  %4897 = vmatpush1.bf16.msra.mxu1 %v10760_v52  ;;  %v10822_v51 = vcombine.low %v1344_v39, %v1348_v40  ;;  %v10824_v52 = vcombine.low %v1345_v41, %v1349_v42  ;;  %v1408_v39 = vld [vmem:[%s13470_s11 + $0x490] sm:$0xff]  ;;  %v12273_v41 = vld [vmem:[#allocation2] sm:$0xff]  ;;  %v1409_v42 = vld [vmem:[%s13470_s11 + $0x498] sm:$0xff] }
 0x3ff   : > { %4726 = vmatprep.subr.bf16.mxu0 %v10767_v53  ;;  %4898 = vmatprep.subr.bf16.mxu1 %v10769_v54  ;;  %v10831_v53 = vcombine.high %v1352_v47, %v1356_v48  ;;  %v10833_v54 = vcombine.high %v1353_v49, %v1357_v50  ;;  %v1412_v40 = vld [vmem:[%s13470_s11 + $0x4b0] sm:$0xff] }
 0x402   : > { %4727 = vmatpush1.bf16.msra.mxu0 %v10766_v59  ;;  %4899 = vmatpush1.bf16.msra.mxu1 %v10768_v60  ;;  %v10830_v59 = vcombine.low %v1352_v47, %v1356_v48  ;;  %v10832_v60 = vcombine.low %v1353_v49, %v1357_v50  ;;  %v1416_v48 = vld [vmem:[%s13470_s11 + $0x4d0] sm:$0xff]  ;;  %v12274_v50 = vld [vmem:[#allocation2 + $0x18] sm:$0xff] }
 0x403   : > { %4728 = vmatprep.subr.bf16.mxu0 %v10775_v61  ;;  %4900 = vmatprep.subr.bf16.mxu1 %v10777_v62  ;;  %v10839_v61 = vcombine.high %v1360_v55, %v1364_v56  ;;  %v10841_v62 = vcombine.high %v1361_v57, %v1365_v58  ;;  %v1420_v49 = vld [vmem:[%s13470_s11 + $0x4f0] sm:$0xff] }
 0x406   : > { %4729 = vmatpush1.bf16.msra.mxu0 %v10774_v3  ;;  %4901 = vmatpush1.bf16.msra.mxu1 %v10776_v4  ;;  %v10838_v3 = vcombine.low %v1360_v55, %v1364_v56  ;;  %v10840_v4 = vcombine.low %v1361_v57, %v1365_v58  ;;  %v10895_v55 = vcombine.high %v1416_v48, %v1420_v49  ;;  %v1424_v57 = vld [vmem:[%s13470_s11 + $0x510] sm:$0xff] }
 0x407   : > { %4730 = vmatprep.subr.bf16.mxu0 %v10783_v5  ;;  %4902 = vmatprep.subr.bf16.mxu1 %v10785_v6  ;;  %v10847_v5 = vcombine.high %v1368_v63, %v1372_v0  ;;  %v10849_v6 = vcombine.high %v1369_v1, %v1373_v2  ;;  %v1428_v58 = vld [vmem:[%s13470_s11 + $0x530] sm:$0xff] }
 0x40a   : > { %4731 = vmatpush1.bf16.msra.mxu0 %v10782_v11  ;;  %4903 = vmatpush1.bf16.msra.mxu1 %v10784_v12  ;;  %v10846_v11 = vcombine.low %v1368_v63, %v1372_v0  ;;  %v10848_v12 = vcombine.low %v1369_v1, %v1373_v2  ;;  %v10903_v63 = vcombine.high %v1424_v57, %v1428_v58  ;;  %v1432_v1 = vld [vmem:[%s13470_s11 + $0x550] sm:$0xff] }
 0x40b   : > { %4732 = vmatprep.subr.bf16.mxu0 %v10791_v13  ;;  %4904 = vmatprep.subr.bf16.mxu1 %v10793_v14  ;;  %v10855_v13 = vcombine.high %v1376_v7, %v1380_v8  ;;  %v10857_v14 = vcombine.high %v1377_v9, %v1381_v10  ;;  %v1436_v2 = vld [vmem:[%s13470_s11 + $0x570] sm:$0xff] }
 0x40e   : > { %4733 = vmatpush1.bf16.msra.mxu0 %v10790_v19  ;;  %4905 = vmatpush1.bf16.msra.mxu1 %v10792_v20  ;;  %v10854_v19 = vcombine.low %v1376_v7, %v1380_v8  ;;  %v10856_v20 = vcombine.low %v1377_v9, %v1381_v10  ;;  %v10911_v7 = vcombine.high %v1432_v1, %v1436_v2  ;;  %v1440_v9 = vld [vmem:[%s13470_s11 + $0x590] sm:$0xff] }
 0x40f   : > { %4734 = vmatprep.subr.bf16.mxu0 %v10799_v21  ;;  %4906 = vmatprep.subr.bf16.mxu1 %v10801_v22  ;;  %v10863_v21 = vcombine.high %v1384_v15, %v1388_v16  ;;  %v10865_v22 = vcombine.high %v1385_v17, %v1389_v18  ;;  %v1444_v10 = vld [vmem:[%s13470_s11 + $0x5b0] sm:$0xff] }
 0x412   : > { %4735 = vmatpush1.bf16.msra.mxu0 %v10798_v27  ;;  %4907 = vmatpush1.bf16.msra.mxu1 %v10800_v28  ;;  %v10862_v27 = vcombine.low %v1384_v15, %v1388_v16  ;;  %v10864_v28 = vcombine.low %v1385_v17, %v1389_v18  ;;  %v10919_v15 = vcombine.high %v1440_v9, %v1444_v10  ;;  %v1448_v17 = vld [vmem:[%s13470_s11 + $0x5d0] sm:$0xff] }
 0x413   : > { %4736 = vmatprep.subr.bf16.mxu0 %v10807_v29  ;;  %4908 = vmatprep.subr.bf16.mxu1 %v10809_v30  ;;  %v10871_v29 = vcombine.high %v1392_v23, %v1396_v24  ;;  %v10873_v30 = vcombine.high %v1393_v25, %v1397_v26  ;;  %v1452_v18 = vld [vmem:[%s13470_s11 + $0x5f0] sm:$0xff] }
 0x416   : > { %4737 = vmatpush1.bf16.msra.mxu0 %v10806_v35  ;;  %4909 = vmatpush1.bf16.msra.mxu1 %v10808_v36  ;;  %v10870_v35 = vcombine.low %v1392_v23, %v1396_v24  ;;  %v10872_v36 = vcombine.low %v1393_v25, %v1397_v26  ;;  %v10927_v23 = vcombine.high %v1448_v17, %v1452_v18  ;;  %v1456_v25 = vld [vmem:[%s13470_s11 + $0x610] sm:$0xff] }
 0x417   : > { %4738 = vmatprep.subr.bf16.mxu0 %v10815_v37  ;;  %4910 = vmatprep.subr.bf16.mxu1 %v10817_v38  ;;  %v10879_v37 = vcombine.high %v1400_v31, %v1404_v32  ;;  %v10881_v38 = vcombine.high %v1401_v33, %v1405_v34  ;;  %v1460_v26 = vld [vmem:[%s13470_s11 + $0x630] sm:$0xff] }
 0x41a   : > { %4739 = vmatpush1.bf16.msra.mxu0 %v10814_v43  ;;  %4911 = vmatpush1.bf16.msra.mxu1 %v10816_v44  ;;  %v1413_v43 = vld [vmem:[%s13470_s11 + $0x4b8] sm:$0xff]  ;;  %v10878_v44 = vcombine.low %v1400_v31, %v1404_v32  ;;  %v10935_v31 = vcombine.high %v1456_v25, %v1460_v26 }
 0x41b   : > { %4740 = vmatprep.subr.bf16.mxu0 %v10823_v45  ;;  %4912 = vmatprep.subr.bf16.mxu1 %v10825_v46  ;;  %v10880_v45 = vcombine.low %v1401_v33, %v1405_v34  ;;  %v10887_v46 = vcombine.high %v1408_v39, %v1412_v40  ;;  %v10889_v47 = vcombine.high %v1409_v42, %v1413_v43  ;;  %v1464_v33 = vld [vmem:[%s13470_s11 + $0x650] sm:$0xff] }
 0x41c   : > { %v1468_v34 = vld [vmem:[%s13470_s11 + $0x670] sm:$0xff] }
 0x41e   : > { %4741 = vmatpush1.bf16.msra.mxu0 %v10822_v51  ;;  %4913 = vmatpush1.bf16.msra.mxu1 %v10824_v52  ;;  %v1417_v51 = vld [vmem:[%s13470_s11 + $0x4d8] sm:$0xff] }
 0x41f   : > { %4742 = vmatprep.subr.bf16.mxu0 %v10831_v53  ;;  %4914 = vmatprep.subr.bf16.mxu1 %v10833_v54  ;;  %v1421_v52 = vld [vmem:[%s13470_s11 + $0x4f8] sm:$0xff]  ;;  %v10886_v53 = vcombine.low %v1408_v39, %v1412_v40  ;;  %v10888_v54 = vcombine.low %v1409_v42, %v1413_v43  ;;  %v10943_v39 = vcombine.high %v1464_v33, %v1468_v34  ;;  %v1476_v42 = vld [vmem:[%s13470_s11 + $0x6b0] sm:$0xff] }
 0x420   : > { %v10897_v56 = vcombine.high %v1417_v51, %v1421_v52  ;;  %v1473_v43 = vld [vmem:[%s13470_s11 + $0x698] sm:$0xff] }
 0x422   : > { %4743 = vmatpush1.bf16.msra.mxu0 %v10830_v59  ;;  %4915 = vmatpush1.bf16.msra.mxu1 %v10832_v60  ;;  %v1425_v59 = vld [vmem:[%s13470_s11 + $0x518] sm:$0xff] }
 0x423   : > { %4744 = vmatprep.subr.bf16.mxu0 %v10839_v61  ;;  %4916 = vmatprep.subr.bf16.mxu1 %v10841_v62  ;;  %v1429_v60 = vld [vmem:[%s13470_s11 + $0x538] sm:$0xff]  ;;  %v10894_v61 = vcombine.low %v1416_v48, %v1420_v49  ;;  %v10896_v62 = vcombine.low %v1417_v51, %v1421_v52  ;;  %v1480_v49 = vld [vmem:[%s13470_s11 + $0x6d0] sm:$0xff] }
 0x424   : > { %v10905_v0 = vcombine.high %v1425_v59, %v1429_v60  ;;  %v1481_v51 = vld [vmem:[%s13470_s11 + $0x6d8] sm:$0xff] }
 0x425   : > { %v1485_v52 = vld [vmem:[%s13470_s11 + $0x6f8] sm:$0xff] }
 0x426   : > { %4745 = vmatpush1.bf16.msra.mxu0 %v10838_v3  ;;  %4917 = vmatpush1.bf16.msra.mxu1 %v10840_v4  ;;  %v1433_v3 = vld [vmem:[%s13470_s11 + $0x558] sm:$0xff] }
 0x427   : > { %4746 = vmatprep.subr.bf16.mxu0 %v10847_v5  ;;  %4918 = vmatprep.subr.bf16.mxu1 %v10849_v6  ;;  %v1437_v4 = vld [vmem:[%s13470_s11 + $0x578] sm:$0xff]  ;;  %v10902_v5 = vcombine.low %v1424_v57, %v1428_v58  ;;  %v10904_v6 = vcombine.low %v1425_v59, %v1429_v60  ;;  %v1488_v57 = vld [vmem:[%s13470_s11 + $0x710] sm:$0xff] }
 0x428   : > { %v10913_v8 = vcombine.high %v1433_v3, %v1437_v4  ;;  %v1492_v58 = vld [vmem:[%s13470_s11 + $0x730] sm:$0xff]  ;;  %v1489_v59 = vld [vmem:[%s13470_s11 + $0x718] sm:$0xff] }
 0x429   : > { %v1493_v60 = vld [vmem:[%s13470_s11 + $0x738] sm:$0xff] }
 0x42a   : > { %4747 = vmatpush1.bf16.msra.mxu0 %v10846_v11  ;;  %4919 = vmatpush1.bf16.msra.mxu1 %v10848_v12  ;;  %v1441_v11 = vld [vmem:[%s13470_s11 + $0x598] sm:$0xff] }
 0x42b   : > { %4748 = vmatprep.subr.bf16.mxu0 %v10855_v13  ;;  %4920 = vmatprep.subr.bf16.mxu1 %v10857_v14  ;;  %v1445_v12 = vld [vmem:[%s13470_s11 + $0x5b8] sm:$0xff]  ;;  %v10910_v13 = vcombine.low %v1432_v1, %v1436_v2  ;;  %v10912_v14 = vcombine.low %v1433_v3, %v1437_v4  ;;  %v1496_v1 = vld [vmem:[%s13470_s11 + $0x750] sm:$0xff] }
 0x42c   : > { %v10921_v16 = vcombine.high %v1441_v11, %v1445_v12  ;;  %v1500_v2 = vld [vmem:[%s13470_s11 + $0x770] sm:$0xff]  ;;  %v1497_v3 = vld [vmem:[%s13470_s11 + $0x758] sm:$0xff] }
 0x42d   : > { %v1501_v4 = vld [vmem:[%s13470_s11 + $0x778] sm:$0xff] }
 0x42e   : > { %4749 = vmatpush1.bf16.msra.mxu0 %v10854_v19  ;;  %4921 = vmatpush1.bf16.msra.mxu1 %v10856_v20  ;;  %v1449_v19 = vld [vmem:[%s13470_s11 + $0x5d8] sm:$0xff] }
 0x42f   : > { %4750 = vmatprep.subr.bf16.mxu0 %v10863_v21  ;;  %4922 = vmatprep.subr.bf16.mxu1 %v10865_v22  ;;  %v1453_v20 = vld [vmem:[%s13470_s11 + $0x5f8] sm:$0xff]  ;;  %v10918_v21 = vcombine.low %v1440_v9, %v1444_v10  ;;  %v10920_v22 = vcombine.low %v1441_v11, %v1445_v12  ;;  %v1504_v9 = vld [vmem:[%s13470_s11 + $0x790] sm:$0xff] }
 0x430   : > { %v10929_v24 = vcombine.high %v1449_v19, %v1453_v20  ;;  %v1508_v10 = vld [vmem:[%s13470_s11 + $0x7b0] sm:$0xff]  ;;  %v1505_v11 = vld [vmem:[%s13470_s11 + $0x798] sm:$0xff] }
 0x431   : > { %v1509_v12 = vld [vmem:[%s13470_s11 + $0x7b8] sm:$0xff] }
 0x432   : > { %4751 = vmatpush1.bf16.msra.mxu0 %v10862_v27  ;;  %4923 = vmatpush1.bf16.msra.mxu1 %v10864_v28  ;;  %v1457_v27 = vld [vmem:[%s13470_s11 + $0x618] sm:$0xff] }
 0x433   : > { %4763 = vmatprep.subr.bf16.mxu0 %v10871_v29  ;;  %4935 = vmatprep.subr.bf16.mxu1 %v10873_v30  ;;  %v1461_v28 = vld [vmem:[%s13470_s11 + $0x638] sm:$0xff]  ;;  %v10926_v29 = vcombine.low %v1448_v17, %v1452_v18  ;;  %v10928_v30 = vcombine.low %v1449_v19, %v1453_v20  ;;  %v1512_v17 = vld [vmem:[%s13470_s11 + $0x7d0] sm:$0xff] }
 0x434   : > { %v10937_v32 = vcombine.high %v1457_v27, %v1461_v28  ;;  %v1516_v18 = vld [vmem:[%s13470_s11 + $0x7f0] sm:$0xff]  ;;  %v1513_v19 = vld [vmem:[%s13470_s11 + $0x7d8] sm:$0xff] }
 0x435   : > { %4753 = vmatmul.mubr.bf16.vlgmr.msra.gmra.mrb[4].mxu0 %v12273_v41  ;;  %4925 = vmatmul.mubr.bf16.vlgmr.msra.gmra.mrb[4].mxu1 %v12273_v41  ;;  %v1472_v41 = vld [vmem:[%s13470_s11 + $0x690] sm:$0xff]  ;;  %v1517_v20 = vld [vmem:[%s13470_s11 + $0x7f8] sm:$0xff] }
 0x436   : > { %4764 = vmatpush1.bf16.msra.mxu0 %v10870_v35  ;;  %4936 = vmatpush1.bf16.msra.mxu1 %v10872_v36  ;;  %v1465_v35 = vld [vmem:[%s13470_s11 + $0x658] sm:$0xff] }
 0x437   : > { %4765 = vmatprep.subr.bf16.mxu0 %v10879_v37  ;;  %4937 = vmatprep.subr.bf16.mxu1 %v10881_v38  ;;  %v1469_v36 = vld [vmem:[%s13470_s11 + $0x678] sm:$0xff]  ;;  %v10934_v37 = vcombine.low %v1456_v25, %v1460_v26  ;;  %v10936_v38 = vcombine.low %v1457_v27, %v1461_v28  ;;  %v1520_v25 = vld [vmem:[%s13470_s11 + $0x810] sm:$0xff] }
 0x438   : > { %4795 = vmatprep.mubr.bf16.mxu0 %v12274_v50  ;;  %4967 = vmatprep.mubr.bf16.mxu1 %v12274_v50  ;;  %v10945_v40 = vcombine.high %v1465_v35, %v1469_v36  ;;  %v1484_v50 = vld [vmem:[%s13470_s11 + $0x6f0] sm:$0xff]  ;;  %v1521_v27 = vld [vmem:[%s13470_s11 + $0x818] sm:$0xff] }
 0x439   : > { %v1524_v26 = vld [vmem:[%s13470_s11 + $0x830] sm:$0xff]  ;;  %v1525_v28 = vld [vmem:[%s13470_s11 + $0x838] sm:$0xff] }
 0x43a   : > { %4766 = vmatpush1.bf16.msra.mxu0 %v10878_v44  ;;  %4938 = vmatpush1.bf16.msra.mxu1 %v10880_v45  ;;  %v1477_v44 = vld [vmem:[%s13470_s11 + $0x6b8] sm:$0xff]  ;;  %v10942_v45 = vcombine.low %v1464_v33, %v1468_v34  ;;  %v1528_v33 = vld [vmem:[%s13470_s11 + $0x850] sm:$0xff] }
 0x43b   : > { %4767 = vmatprep.subr.bf16.mxu0 %v10887_v46  ;;  %4939 = vmatprep.subr.bf16.mxu1 %v10889_v47  ;;  %v10944_v46 = vcombine.low %v1465_v35, %v1469_v36  ;;  %v10951_v47 = vcombine.high %v1472_v41, %v1476_v42  ;;  %v10953_v48 = vcombine.high %v1473_v43, %v1477_v44  ;;  %v1532_v34 = vld [vmem:[%s13470_s11 + $0x870] sm:$0xff]  ;;  %v1529_v35 = vld [vmem:[%s13470_s11 + $0x858] sm:$0xff] }
 0x43c   : > { %v1533_v36 = vld [vmem:[%s13470_s11 + $0x878] sm:$0xff] }
 0x43e   : > { %4768 = vmatpush1.bf16.msra.mxu0 %v10886_v53  ;;  %4940 = vmatpush1.bf16.msra.mxu1 %v10888_v54  ;;  %v10950_v53 = vcombine.low %v1472_v41, %v1476_v42  ;;  %v10952_v54 = vcombine.low %v1473_v43, %v1477_v44  ;;  %v1536_v41 = vld [vmem:[%s13470_s11 + $0x890] sm:$0xff]  ;;  %v12275_v43 = vld [vmem:[#allocation2 + $0x10] sm:$0xff] }
 0x43f   : > { %4769 = vmatprep.subr.bf16.mxu0 %v10895_v55  ;;  %4941 = vmatprep.subr.bf16.mxu1 %v10897_v56  ;;  %v10959_v55 = vcombine.high %v1480_v49, %v1484_v50  ;;  %v10961_v56 = vcombine.high %v1481_v51, %v1485_v52  ;;  %v1540_v42 = vld [vmem:[%s13470_s11 + $0x8b0] sm:$0xff]  ;;  %v1537_v44 = vld [vmem:[%s13470_s11 + $0x898] sm:$0xff] }
 0x442   : > { %4770 = vmatpush1.bf16.msra.mxu0 %v10894_v61  ;;  %4942 = vmatpush1.bf16.msra.mxu1 %v10896_v62  ;;  %v10958_v61 = vcombine.low %v1480_v49, %v1484_v50  ;;  %v10960_v62 = vcombine.low %v1481_v51, %v1485_v52  ;;  %v1544_v50 = vld [vmem:[%s13470_s11 + $0x8d0] sm:$0xff] }
 0x443   : > { %4771 = vmatprep.subr.bf16.mxu0 %v10903_v63  ;;  %4943 = vmatprep.subr.bf16.mxu1 %v10905_v0  ;;  %v10967_v63 = vcombine.high %v1488_v57, %v1492_v58  ;;  %v10969_v0 = vcombine.high %v1489_v59, %v1493_v60  ;;  %v1548_v51 = vld [vmem:[%s13470_s11 + $0x8f0] sm:$0xff] }
 0x444   : > { %v12276_v52 = vld [vmem:[#allocation2 + $0x28] sm:$0xff] }
 0x446   : > { %4772 = vmatpush1.bf16.msra.mxu0 %v10902_v5  ;;  %4944 = vmatpush1.bf16.msra.mxu1 %v10904_v6  ;;  %v10966_v5 = vcombine.low %v1488_v57, %v1492_v58  ;;  %v10968_v6 = vcombine.low %v1489_v59, %v1493_v60  ;;  %v11023_v57 = vcombine.high %v1544_v50, %v1548_v51  ;;  %v1552_v59 = vld [vmem:[%s13470_s11 + $0x910] sm:$0xff] }
 0x447   : > { %4773 = vmatprep.subr.bf16.mxu0 %v10911_v7  ;;  %4945 = vmatprep.subr.bf16.mxu1 %v10913_v8  ;;  %v10975_v7 = vcombine.high %v1496_v1, %v1500_v2  ;;  %v10977_v8 = vcombine.high %v1497_v3, %v1501_v4  ;;  %v1556_v60 = vld [vmem:[%s13470_s11 + $0x930] sm:$0xff] }
 0x44a   : > { %4774 = vmatpush1.bf16.msra.mxu0 %v10910_v13  ;;  %4946 = vmatpush1.bf16.msra.mxu1 %v10912_v14  ;;  %v10974_v13 = vcombine.low %v1496_v1, %v1500_v2  ;;  %v10976_v14 = vcombine.low %v1497_v3, %v1501_v4  ;;  %v11031_v1 = vcombine.high %v1552_v59, %v1556_v60  ;;  %v1560_v3 = vld [vmem:[%s13470_s11 + $0x950] sm:$0xff] }
 0x44b   : > { %4775 = vmatprep.subr.bf16.mxu0 %v10919_v15  ;;  %4947 = vmatprep.subr.bf16.mxu1 %v10921_v16  ;;  %v10983_v15 = vcombine.high %v1504_v9, %v1508_v10  ;;  %v10985_v16 = vcombine.high %v1505_v11, %v1509_v12  ;;  %v1564_v4 = vld [vmem:[%s13470_s11 + $0x970] sm:$0xff] }
 0x44e   : > { %4776 = vmatpush1.bf16.msra.mxu0 %v10918_v21  ;;  %4948 = vmatpush1.bf16.msra.mxu1 %v10920_v22  ;;  %v10982_v21 = vcombine.low %v1504_v9, %v1508_v10  ;;  %v10984_v22 = vcombine.low %v1505_v11, %v1509_v12  ;;  %v11039_v9 = vcombine.high %v1560_v3, %v1564_v4  ;;  %v1568_v11 = vld [vmem:[%s13470_s11 + $0x990] sm:$0xff] }
 0x44f   : > { %4777 = vmatprep.subr.bf16.mxu0 %v10927_v23  ;;  %4949 = vmatprep.subr.bf16.mxu1 %v10929_v24  ;;  %v10991_v23 = vcombine.high %v1512_v17, %v1516_v18  ;;  %v10993_v24 = vcombine.high %v1513_v19, %v1517_v20  ;;  %v1572_v12 = vld [vmem:[%s13470_s11 + $0x9b0] sm:$0xff] }
 0x452   : > { %4778 = vmatpush1.bf16.msra.mxu0 %v10926_v29  ;;  %4950 = vmatpush1.bf16.msra.mxu1 %v10928_v30  ;;  %v10990_v29 = vcombine.low %v1512_v17, %v1516_v18  ;;  %v10992_v30 = vcombine.low %v1513_v19, %v1517_v20  ;;  %v11047_v17 = vcombine.high %v1568_v11, %v1572_v12  ;;  %v1576_v19 = vld [vmem:[%s13470_s11 + $0x9d0] sm:$0xff] }
 0x453   : > { %4779 = vmatprep.subr.bf16.mxu0 %v10935_v31  ;;  %4951 = vmatprep.subr.bf16.mxu1 %v10937_v32  ;;  %v10999_v31 = vcombine.high %v1520_v25, %v1524_v26  ;;  %v11001_v32 = vcombine.high %v1521_v27, %v1525_v28  ;;  %v1580_v20 = vld [vmem:[%s13470_s11 + $0x9f0] sm:$0xff] }
 0x456   : > { %4780 = vmatpush1.bf16.msra.mxu0 %v10934_v37  ;;  %4952 = vmatpush1.bf16.msra.mxu1 %v10936_v38  ;;  %v10998_v37 = vcombine.low %v1520_v25, %v1524_v26  ;;  %v11000_v38 = vcombine.low %v1521_v27, %v1525_v28  ;;  %v11055_v25 = vcombine.high %v1576_v19, %v1580_v20  ;;  %v1584_v27 = vld [vmem:[%s13470_s11 + $0xa10] sm:$0xff] }
 0x457   : > { %4781 = vmatprep.subr.bf16.mxu0 %v10943_v39  ;;  %4953 = vmatprep.subr.bf16.mxu1 %v10945_v40  ;;  %v11007_v39 = vcombine.high %v1528_v33, %v1532_v34  ;;  %v11009_v40 = vcombine.high %v1529_v35, %v1533_v36  ;;  %v1588_v28 = vld [vmem:[%s13470_s11 + $0xa30] sm:$0xff] }
 0x45a   : > { %4782 = vmatpush1.bf16.msra.mxu0 %v10942_v45  ;;  %4954 = vmatpush1.bf16.msra.mxu1 %v10944_v46  ;;  %v1541_v45 = vld [vmem:[%s13470_s11 + $0x8b8] sm:$0xff]  ;;  %v11006_v46 = vcombine.low %v1528_v33, %v1532_v34  ;;  %v11063_v33 = vcombine.high %v1584_v27, %v1588_v28 }
 0x45b   : > { %4783 = vmatprep.subr.bf16.mxu0 %v10951_v47  ;;  %4955 = vmatprep.subr.bf16.mxu1 %v10953_v48  ;;  %v11008_v47 = vcombine.low %v1529_v35, %v1533_v36  ;;  %v11015_v48 = vcombine.high %v1536_v41, %v1540_v42  ;;  %v11017_v49 = vcombine.high %v1537_v44, %v1541_v45  ;;  %v1592_v35 = vld [vmem:[%s13470_s11 + $0xa50] sm:$0xff] }
 0x45c   : > { %v1596_v36 = vld [vmem:[%s13470_s11 + $0xa70] sm:$0xff] }
 0x45e   : > { %4784 = vmatpush1.bf16.msra.mxu0 %v10950_v53  ;;  %4956 = vmatpush1.bf16.msra.mxu1 %v10952_v54  ;;  %v1545_v53 = vld [vmem:[%s13470_s11 + $0x8d8] sm:$0xff] }
 0x45f   : > { %4785 = vmatprep.subr.bf16.mxu0 %v10959_v55  ;;  %4957 = vmatprep.subr.bf16.mxu1 %v10961_v56  ;;  %v1549_v54 = vld [vmem:[%s13470_s11 + $0x8f8] sm:$0xff]  ;;  %v11014_v55 = vcombine.low %v1536_v41, %v1540_v42  ;;  %v11016_v56 = vcombine.low %v1537_v44, %v1541_v45  ;;  %v11071_v41 = vcombine.high %v1592_v35, %v1596_v36  ;;  %v1604_v44 = vld [vmem:[%s13470_s11 + $0xab0] sm:$0xff] }
 0x460   : > { %v11025_v58 = vcombine.high %v1545_v53, %v1549_v54  ;;  %v1601_v45 = vld [vmem:[%s13470_s11 + $0xa98] sm:$0xff] }
 0x462   : > { %4786 = vmatpush1.bf16.msra.mxu0 %v10958_v61  ;;  %4958 = vmatpush1.bf16.msra.mxu1 %v10960_v62  ;;  %v1553_v61 = vld [vmem:[%s13470_s11 + $0x918] sm:$0xff] }
 0x463   : > { %4787 = vmatprep.subr.bf16.mxu0 %v10967_v63  ;;  %4959 = vmatprep.subr.bf16.mxu1 %v10969_v0  ;;  %v1557_v62 = vld [vmem:[%s13470_s11 + $0x938] sm:$0xff]  ;;  %v11022_v63 = vcombine.low %v1544_v50, %v1548_v51  ;;  %v11024_v0 = vcombine.low %v1545_v53, %v1549_v54  ;;  %v1608_v51 = vld [vmem:[%s13470_s11 + $0xad0] sm:$0xff] }
 0x464   : > { %v11033_v2 = vcombine.high %v1553_v61, %v1557_v62  ;;  %v1609_v53 = vld [vmem:[%s13470_s11 + $0xad8] sm:$0xff] }
 0x465   : > { %v1613_v54 = vld [vmem:[%s13470_s11 + $0xaf8] sm:$0xff] }
 0x466   : > { %4788 = vmatpush1.bf16.msra.mxu0 %v10966_v5  ;;  %4960 = vmatpush1.bf16.msra.mxu1 %v10968_v6  ;;  %v1561_v5 = vld [vmem:[%s13470_s11 + $0x958] sm:$0xff] }
 0x467   : > { %4789 = vmatprep.subr.bf16.mxu0 %v10975_v7  ;;  %4961 = vmatprep.subr.bf16.mxu1 %v10977_v8  ;;  %v1565_v6 = vld [vmem:[%s13470_s11 + $0x978] sm:$0xff]  ;;  %v11030_v7 = vcombine.low %v1552_v59, %v1556_v60  ;;  %v11032_v8 = vcombine.low %v1553_v61, %v1557_v62  ;;  %v1616_v59 = vld [vmem:[%s13470_s11 + $0xb10] sm:$0xff] }
 0x468   : > { %v11041_v10 = vcombine.high %v1561_v5, %v1565_v6  ;;  %v1620_v60 = vld [vmem:[%s13470_s11 + $0xb30] sm:$0xff]  ;;  %v1617_v61 = vld [vmem:[%s13470_s11 + $0xb18] sm:$0xff] }
 0x469   : > { %v1621_v62 = vld [vmem:[%s13470_s11 + $0xb38] sm:$0xff] }
 0x46a   : > { %4790 = vmatpush1.bf16.msra.mxu0 %v10974_v13  ;;  %4962 = vmatpush1.bf16.msra.mxu1 %v10976_v14  ;;  %v1569_v13 = vld [vmem:[%s13470_s11 + $0x998] sm:$0xff] }
 0x46b   : > { %4791 = vmatprep.subr.bf16.mxu0 %v10983_v15  ;;  %4963 = vmatprep.subr.bf16.mxu1 %v10985_v16  ;;  %v1573_v14 = vld [vmem:[%s13470_s11 + $0x9b8] sm:$0xff]  ;;  %v11038_v15 = vcombine.low %v1560_v3, %v1564_v4  ;;  %v11040_v16 = vcombine.low %v1561_v5, %v1565_v6  ;;  %v1624_v3 = vld [vmem:[%s13470_s11 + $0xb50] sm:$0xff] }
 0x46c   : > { %v11049_v18 = vcombine.high %v1569_v13, %v1573_v14  ;;  %v1628_v4 = vld [vmem:[%s13470_s11 + $0xb70] sm:$0xff]  ;;  %v1625_v5 = vld [vmem:[%s13470_s11 + $0xb58] sm:$0xff] }
 0x46d   : > { %v1629_v6 = vld [vmem:[%s13470_s11 + $0xb78] sm:$0xff] }
 0x46e   : > { %4792 = vmatpush1.bf16.msra.mxu0 %v10982_v21  ;;  %4964 = vmatpush1.bf16.msra.mxu1 %v10984_v22  ;;  %v1577_v21 = vld [vmem:[%s13470_s11 + $0x9d8] sm:$0xff] }
 0x46f   : > { %4793 = vmatprep.subr.bf16.mxu0 %v10991_v23  ;;  %4965 = vmatprep.subr.bf16.mxu1 %v10993_v24  ;;  %v1581_v22 = vld [vmem:[%s13470_s11 + $0x9f8] sm:$0xff]  ;;  %v11046_v23 = vcombine.low %v1568_v11, %v1572_v12  ;;  %v11048_v24 = vcombine.low %v1569_v13, %v1573_v14  ;;  %v1632_v11 = vld [vmem:[%s13470_s11 + $0xb90] sm:$0xff] }
 0x470   : > { %v11057_v26 = vcombine.high %v1577_v21, %v1581_v22  ;;  %v1636_v12 = vld [vmem:[%s13470_s11 + $0xbb0] sm:$0xff]  ;;  %v1633_v13 = vld [vmem:[%s13470_s11 + $0xb98] sm:$0xff] }
 0x471   : > { %v1637_v14 = vld [vmem:[%s13470_s11 + $0xbb8] sm:$0xff] }
 0x472   : > { %4794 = vmatpush1.bf16.msra.mxu0 %v10990_v29  ;;  %4966 = vmatpush1.bf16.msra.mxu1 %v10992_v30  ;;  %v1585_v29 = vld [vmem:[%s13470_s11 + $0xa18] sm:$0xff] }
 0x473   : > { %4806 = vmatprep.subr.bf16.mxu0 %v10999_v31  ;;  %4978 = vmatprep.subr.bf16.mxu1 %v11001_v32  ;;  %v1589_v30 = vld [vmem:[%s13470_s11 + $0xa38] sm:$0xff]  ;;  %v11054_v31 = vcombine.low %v1576_v19, %v1580_v20  ;;  %v11056_v32 = vcombine.low %v1577_v21, %v1581_v22  ;;  %v1640_v19 = vld [vmem:[%s13470_s11 + $0xbd0] sm:$0xff] }
 0x474   : > { %v11065_v34 = vcombine.high %v1585_v29, %v1589_v30  ;;  %v1644_v20 = vld [vmem:[%s13470_s11 + $0xbf0] sm:$0xff]  ;;  %v1641_v21 = vld [vmem:[%s13470_s11 + $0xbd8] sm:$0xff] }
 0x475   : > { %4796 = vmatmul.mubr.bf16.vlgmr.msra.gmra.mrb[4].mxu0 %v12275_v43  ;;  %4968 = vmatmul.mubr.bf16.vlgmr.msra.gmra.mrb[4].mxu1 %v12275_v43  ;;  %v1600_v43 = vld [vmem:[%s13470_s11 + $0xa90] sm:$0xff]  ;;  %v1645_v22 = vld [vmem:[%s13470_s11 + $0xbf8] sm:$0xff] }
 0x476   : > { %4807 = vmatpush1.bf16.msra.mxu0 %v10998_v37  ;;  %4979 = vmatpush1.bf16.msra.mxu1 %v11000_v38  ;;  %v1593_v37 = vld [vmem:[%s13470_s11 + $0xa58] sm:$0xff] }
 0x477   : > { %4808 = vmatprep.subr.bf16.mxu0 %v11007_v39  ;;  %4980 = vmatprep.subr.bf16.mxu1 %v11009_v40  ;;  %v1597_v38 = vld [vmem:[%s13470_s11 + $0xa78] sm:$0xff]  ;;  %v11062_v39 = vcombine.low %v1584_v27, %v1588_v28  ;;  %v11064_v40 = vcombine.low %v1585_v29, %v1589_v30  ;;  %v1648_v27 = vld [vmem:[%s13470_s11 + $0xc10] sm:$0xff] }
 0x478   : > { %4838 = vmatprep.mubr.bf16.mxu0 %v12276_v52  ;;  %5010 = vmatprep.mubr.bf16.mxu1 %v12276_v52  ;;  %v11073_v42 = vcombine.high %v1593_v37, %v1597_v38  ;;  %v1612_v52 = vld [vmem:[%s13470_s11 + $0xaf0] sm:$0xff]  ;;  %v1649_v29 = vld [vmem:[%s13470_s11 + $0xc18] sm:$0xff] }
 0x479   : > { %v1652_v28 = vld [vmem:[%s13470_s11 + $0xc30] sm:$0xff]  ;;  %v1653_v30 = vld [vmem:[%s13470_s11 + $0xc38] sm:$0xff] }
 0x47a   : > { %4809 = vmatpush1.bf16.msra.mxu0 %v11006_v46  ;;  %4981 = vmatpush1.bf16.msra.mxu1 %v11008_v47  ;;  %v1605_v46 = vld [vmem:[%s13470_s11 + $0xab8] sm:$0xff]  ;;  %v11070_v47 = vcombine.low %v1592_v35, %v1596_v36  ;;  %v1656_v35 = vld [vmem:[%s13470_s11 + $0xc50] sm:$0xff] }
 0x47b   : > { %4810 = vmatprep.subr.bf16.mxu0 %v11015_v48  ;;  %4982 = vmatprep.subr.bf16.mxu1 %v11017_v49  ;;  %v11072_v48 = vcombine.low %v1593_v37, %v1597_v38  ;;  %v11079_v49 = vcombine.high %v1600_v43, %v1604_v44  ;;  %v11081_v50 = vcombine.high %v1601_v45, %v1605_v46  ;;  %v1660_v36 = vld [vmem:[%s13470_s11 + $0xc70] sm:$0xff]  ;;  %v1657_v37 = vld [vmem:[%s13470_s11 + $0xc58] sm:$0xff] }
 0x47c   : > { %v1661_v38 = vld [vmem:[%s13470_s11 + $0xc78] sm:$0xff] }
 0x47e   : > { %4811 = vmatpush1.bf16.msra.mxu0 %v11014_v55  ;;  %4983 = vmatpush1.bf16.msra.mxu1 %v11016_v56  ;;  %v11078_v55 = vcombine.low %v1600_v43, %v1604_v44  ;;  %v11080_v56 = vcombine.low %v1601_v45, %v1605_v46  ;;  %v1664_v43 = vld [vmem:[%s13470_s11 + $0xc90] sm:$0xff]  ;;  %v12277_v45 = vld [vmem:[#allocation2 + $0x20] sm:$0xff]  ;;  %v1665_v46 = vld [vmem:[%s13470_s11 + $0xc98] sm:$0xff] }
 0x47f   : > { %4812 = vmatprep.subr.bf16.mxu0 %v11023_v57  ;;  %4984 = vmatprep.subr.bf16.mxu1 %v11025_v58  ;;  %v11087_v57 = vcombine.high %v1608_v51, %v1612_v52  ;;  %v11089_v58 = vcombine.high %v1609_v53, %v1613_v54  ;;  %v1668_v44 = vld [vmem:[%s13470_s11 + $0xcb0] sm:$0xff] }
 0x482   : > { %4813 = vmatpush1.bf16.msra.mxu0 %v11022_v63  ;;  %4985 = vmatpush1.bf16.msra.mxu1 %v11024_v0  ;;  %v11086_v63 = vcombine.low %v1608_v51, %v1612_v52  ;;  %v11088_v0 = vcombine.low %v1609_v53, %v1613_v54  ;;  %v1672_v52 = vld [vmem:[%s13470_s11 + $0xcd0] sm:$0xff]  ;;  %v12278_v54 = vld [vmem:[#allocation2 + $0x38] sm:$0xff] }
 0x483   : > { %4814 = vmatprep.subr.bf16.mxu0 %v11031_v1  ;;  %4986 = vmatprep.subr.bf16.mxu1 %v11033_v2  ;;  %v11095_v1 = vcombine.high %v1616_v59, %v1620_v60  ;;  %v11097_v2 = vcombine.high %v1617_v61, %v1621_v62  ;;  %v1676_v53 = vld [vmem:[%s13470_s11 + $0xcf0] sm:$0xff] }
 0x486   : > { %4815 = vmatpush1.bf16.msra.mxu0 %v11030_v7  ;;  %4987 = vmatpush1.bf16.msra.mxu1 %v11032_v8  ;;  %v11094_v7 = vcombine.low %v1616_v59, %v1620_v60  ;;  %v11096_v8 = vcombine.low %v1617_v61, %v1621_v62  ;;  %v11151_v60 = vcombine.high %v1672_v52, %v1676_v53  ;;  %v1680_v62 = vld [vmem:[%s13470_s11 + $0xd10] sm:$0xff] }
 0x487   : > { %4816 = vmatprep.subr.bf16.mxu0 %v11039_v9  ;;  %4988 = vmatprep.subr.bf16.mxu1 %v11041_v10  ;;  %v11103_v9 = vcombine.high %v1624_v3, %v1628_v4  ;;  %v11105_v10 = vcombine.high %v1625_v5, %v1629_v6 }
 0x48a   : > { %4817 = vmatpush1.bf16.msra.mxu0 %v11038_v15  ;;  %4989 = vmatpush1.bf16.msra.mxu1 %v11040_v16  ;;  %v11102_v15 = vcombine.low %v1624_v3, %v1628_v4  ;;  %v11104_v16 = vcombine.low %v1625_v5, %v1629_v6  ;;  %v11150_v3 = vcombine.low %v1672_v52, %v1676_v53 }
 0x48b   : > { %4818 = vmatprep.subr.bf16.mxu0 %v11047_v17  ;;  %4990 = vmatprep.subr.bf16.mxu1 %v11049_v18  ;;  %v11111_v17 = vcombine.high %v1632_v11, %v1636_v12  ;;  %v11113_v18 = vcombine.high %v1633_v13, %v1637_v14 }
 0x48e   : > { %4819 = vmatpush1.bf16.msra.mxu0 %v11046_v23  ;;  %4991 = vmatpush1.bf16.msra.mxu1 %v11048_v24  ;;  %v11110_v23 = vcombine.low %v1632_v11, %v1636_v12  ;;  %v11112_v24 = vcombine.low %v1633_v13, %v1637_v14  ;;  %v1693_v11 = vld [vmem:[%s13470_s11 + $0xd78] sm:$0xff]  ;;  %v1774_v13 = vld [vmem:[%s666_s6] sm:$0xff] }
 0x48f   : > { %4820 = vmatprep.subr.bf16.mxu0 %v11055_v25  ;;  %4992 = vmatprep.subr.bf16.mxu1 %v11057_v26  ;;  %v11119_v25 = vcombine.high %v1640_v19, %v1644_v20  ;;  %v11121_v26 = vcombine.high %v1641_v21, %v1645_v22 }
 0x492   : > { %4821 = vmatpush1.bf16.msra.mxu0 %v11054_v31  ;;  %4993 = vmatpush1.bf16.msra.mxu1 %v11056_v32  ;;  %v11118_v31 = vcombine.low %v1640_v19, %v1644_v20  ;;  %v11120_v32 = vcombine.low %v1641_v21, %v1645_v22  ;;  %v1696_v20 = vld [vmem:[%s13470_s11 + $0xd90] sm:$0xff] }
 0x493   : > { %4822 = vmatprep.subr.bf16.mxu0 %v11063_v33  ;;  %4994 = vmatprep.subr.bf16.mxu1 %v11065_v34  ;;  %v11127_v33 = vcombine.high %v1648_v27, %v1652_v28  ;;  %v11129_v34 = vcombine.high %v1649_v29, %v1653_v30  ;;  %v1700_v21 = vld [vmem:[%s13470_s11 + $0xdb0] sm:$0xff] }
 0x496   : > { %4823 = vmatpush1.bf16.msra.mxu0 %v11062_v39  ;;  %4995 = vmatpush1.bf16.msra.mxu1 %v11064_v40  ;;  %v11126_v39 = vcombine.low %v1648_v27, %v1652_v28  ;;  %v11128_v40 = vcombine.low %v1649_v29, %v1653_v30  ;;  %v11175_v30 = vcombine.high %v1696_v20, %v1700_v21 }
 0x497   : > { %4824 = vmatprep.subr.bf16.mxu0 %v11071_v41  ;;  %4996 = vmatprep.subr.bf16.mxu1 %v11073_v42  ;;  %v11135_v41 = vcombine.high %v1656_v35, %v1660_v36  ;;  %v11137_v42 = vcombine.high %v1657_v37, %v1661_v38 }
 0x49a   : > { %4825 = vmatpush1.bf16.msra.mxu0 %v11070_v47  ;;  %4997 = vmatpush1.bf16.msra.mxu1 %v11072_v48  ;;  %v1669_v47 = vld [vmem:[%s13470_s11 + $0xcb8] sm:$0xff]  ;;  %v11134_v48 = vcombine.low %v1656_v35, %v1660_v36 }
 0x49b   : > { %4826 = vmatprep.subr.bf16.mxu0 %v11079_v49  ;;  %4998 = vmatprep.subr.bf16.mxu1 %v11081_v50  ;;  %v11136_v49 = vcombine.low %v1657_v37, %v1661_v38  ;;  %v11143_v50 = vcombine.high %v1664_v43, %v1668_v44  ;;  %v11145_v51 = vcombine.high %v1665_v46, %v1669_v47  ;;  %v1705_v38 = vld [vmem:[%s13470_s11 + $0xdd8] sm:$0xff] }
 0x49c   : > { %v11144_v59 = vcombine.low %v1665_v46, %v1669_v47 }
 0x49e   : > { %4827 = vmatpush1.bf16.msra.mxu0 %v11078_v55  ;;  %4999 = vmatpush1.bf16.msra.mxu1 %v11080_v56  ;;  %v1673_v55 = vld [vmem:[%s13470_s11 + $0xcd8] sm:$0xff] }
 0x49f   : > { %4828 = vmatprep.subr.bf16.mxu0 %v11087_v57  ;;  %5000 = vmatprep.subr.bf16.mxu1 %v11089_v58  ;;  %v1677_v56 = vld [vmem:[%s13470_s11 + $0xcf8] sm:$0xff]  ;;  %v1776_v57 = vlaneseq  ;;  %v11142_v58 = vcombine.low %v1664_v43, %v1668_v44  ;;  %v11174_v44 = vcombine.low %v1696_v20, %v1700_v21 }
 0x4a0   : > { %v11153_v61 = vcombine.high %v1673_v55, %v1677_v56  ;;  %v11152_v4 = vcombine.low %v1673_v55, %v1677_v56  ;;  %v1712_v56 = vld [vmem:[%s13470_s11 + $0xe10] sm:$0xff]  ;;  %v1721_v20 = vld [vmem:[%s13470_s11 + $0xe58] sm:$0xff] }
 0x4a1   : > { %v1725_v21 = vld [vmem:[%s13470_s11 + $0xe78] sm:$0xff] }
 0x4a2   : > { %4829 = vmatpush1.bf16.msra.mxu0 %v11086_v63  ;;  %5001 = vmatpush1.bf16.msra.mxu1 %v11088_v0  ;;  %v1684_v63 = vld [vmem:[%s13470_s11 + $0xd30] sm:$0xff]  ;;  %v1681_v0 = vld [vmem:[%s13470_s11 + $0xd18] sm:$0xff] }
 0x4a3   : > { %4830 = vmatprep.subr.bf16.mxu0 %v11095_v1  ;;  %5002 = vmatprep.subr.bf16.mxu1 %v11097_v2  ;;  %v1685_v1 = vld [vmem:[%s13470_s11 + $0xd38] sm:$0xff]  ;;  %v13985_v2 = vshrl.u32 %v1776_v57, 7  ;;  %v11159_v5 = vcombine.high %v1680_v62, %v1684_v63  ;;  %v11158_v12 = vcombine.low %v1680_v62, %v1684_v63  ;;  %v1716_v57 = vld [vmem:[%s13470_s11 + $0xe30] sm:$0xff] }
 0x4a4   : > { %v11161_v6 = vcombine.high %v1681_v0, %v1685_v1  ;;  %v1713_v62 = vld [vmem:[%s13470_s11 + $0xe18] sm:$0xff] }
 0x4a5   : > { %v13997_v14 = vsub.s32 2, %v13985_v2  ;;  %v1717_v63 = vld [vmem:[%s13470_s11 + $0xe38] sm:$0xff] }
 0x4a6   : > { %4831 = vmatpush1.bf16.msra.mxu0 %v11094_v7  ;;  %5003 = vmatpush1.bf16.msra.mxu1 %v11096_v8  ;;  %v1688_v7 = vld [vmem:[%s13470_s11 + $0xd50] sm:$0xff] }
 0x4a7   : > { %4832 = vmatprep.subr.bf16.mxu0 %v11103_v9  ;;  %5004 = vmatprep.subr.bf16.mxu1 %v11105_v10  ;;  %v1692_v8 = vld [vmem:[%s13470_s11 + $0xd70] sm:$0xff]  ;;  %v13990_v9 = vsub.s32 0, %v13985_v2  ;;  %v1689_v10 = vld [vmem:[%s13470_s11 + $0xd58] sm:$0xff] }
 0x4a8   : > { %v11169_v19 = vcombine.high %v1689_v10, %v1693_v11  ;;  %v11166_v27 = vcombine.low %v1688_v7, %v1692_v8  ;;  %v11168_v29 = vcombine.low %v1689_v10, %v1693_v11 }
 0x4a9   : > { %v1779_v22 = vrot.slane %v1774_v13, %v13990_v9 }
 0x4aa   : > { %4833 = vmatpush1.bf16.msra.mxu0 %v11102_v15  ;;  %5005 = vmatpush1.bf16.msra.mxu1 %v11104_v16  ;;  %v14000_v15 = vsub.s32 1, %v13985_v2  ;;  %v11160_v16 = vcombine.low %v1681_v0, %v1685_v1 }
 0x4ab   : > { %4834 = vmatprep.subr.bf16.mxu0 %v11111_v17  ;;  %5006 = vmatprep.subr.bf16.mxu1 %v11113_v18  ;;  %v14003_v17 = vsub.s32 3, %v13985_v2  ;;  %v11167_v18 = vcombine.high %v1688_v7, %v1692_v8  ;;  %v11191_v8 = vcombine.high %v1712_v56, %v1716_v57 }
 0x4ad   : > { %v1791_v28 = vrot.slane %v1774_v13, %v14003_v17 }
 0x4ae   : > { %4835 = vmatpush1.bf16.msra.mxu0 %v11110_v23  ;;  %5007 = vmatpush1.bf16.msra.mxu1 %v11112_v24  ;;  %v1697_v23 = vld [vmem:[%s13470_s11 + $0xd98] sm:$0xff] }
 0x4af   : > { %4836 = vmatprep.subr.bf16.mxu0 %v11119_v25  ;;  %5008 = vmatprep.subr.bf16.mxu1 %v11121_v26  ;;  %v1701_v24 = vld [vmem:[%s13470_s11 + $0xdb8] sm:$0xff]  ;;  %v1787_v25 = vrot.slane %v1774_v13, %v13997_v14  ;;  %v1783_v26 = vrot.slane %v1774_v13, %v14000_v15  ;;  %v1720_v13 = vld [vmem:[%s13470_s11 + $0xe50] sm:$0xff] }
 0x4b2   : > { %4837 = vmatpush1.bf16.msra.mxu0 %v11118_v31  ;;  %5009 = vmatpush1.bf16.msra.mxu1 %v11120_v32  ;;  %v11177_v32 = vcombine.high %v1697_v23, %v1701_v24 }
 0x4b3   : > { %4849 = vmatprep.subr.bf16.mxu0 %v11127_v33  ;;  %5021 = vmatprep.subr.bf16.mxu1 %v11129_v34  ;;  %v1704_v33 = vld [vmem:[%s13470_s11 + $0xdd0] sm:$0xff] }
 0x4b4   : > { %v1708_v34 = vld [vmem:[%s13470_s11 + $0xdf0] sm:$0xff] }
 0x4b5   : > { %4839 = vmatmul.mubr.bf16.vlgmr.msra.gmra.mrb[4].mxu0 %v12277_v45  ;;  %5011 = vmatmul.mubr.bf16.vlgmr.msra.gmra.mrb[4].mxu1 %v12277_v45  ;;  %v11176_v45 = vcombine.low %v1697_v23, %v1701_v24  ;;  %v11190_v24 = vcombine.low %v1712_v56, %v1716_v57  ;;  %v1740_v56 = vld [vmem:[%s13470_s11 + $0xef0] sm:$0xff] }
 0x4b6   : > { %4850 = vmatpush1.bf16.msra.mxu0 %v11126_v39  ;;  %5022 = vmatpush1.bf16.msra.mxu1 %v11128_v40  ;;  %v1709_v39 = vld [vmem:[%s13470_s11 + $0xdf8] sm:$0xff] }
 0x4b7   : > { %4851 = vmatprep.subr.bf16.mxu0 %v11135_v41  ;;  %5023 = vmatprep.subr.bf16.mxu1 %v11137_v42  ;;  %v11185_v55 = vcombine.high %v1705_v38, %v1709_v39 }
 0x4b8   : > { %4881 = vmatprep.mubr.bf16.mxu0 %v12278_v54  ;;  %5053 = vmatprep.mubr.bf16.mxu1 %v12278_v54  ;;  %v11182_v54 = vcombine.low %v1704_v33, %v1708_v34 }
 0x4ba   : > { %4852 = vmatpush1.bf16.msra.mxu0 %v11134_v48  ;;  %5024 = vmatpush1.bf16.msra.mxu1 %v11136_v49 }
 0x4bb   : > { %4853 = vmatprep.subr.bf16.mxu0 %v11143_v50  ;;  %5025 = vmatprep.subr.bf16.mxu1 %v11145_v51  ;;  %v11183_v50 = vcombine.high %v1704_v33, %v1708_v34  ;;  %v1732_v33 = vld [vmem:[%s13470_s11 + $0xeb0] sm:$0xff] }
 0x4be   : > { %4854 = vmatpush1.bf16.msra.mxu0 %v11142_v58  ;;  %5026 = vmatpush1.bf16.msra.mxu1 %v11144_v59 }
 0x4bf   : > { %4855 = vmatprep.subr.bf16.mxu0 %v11151_v60  ;;  %5027 = vmatprep.subr.bf16.mxu1 %v11153_v61  ;;  %v11184_v61 = vcombine.low %v1705_v38, %v1709_v39  ;;  %v1733_v38 = vld [vmem:[%s13470_s11 + $0xeb8] sm:$0xff] }
 0x4c2   : > { %4856 = vmatpush1.bf16.msra.mxu0 %v11150_v3  ;;  %5028 = vmatpush1.bf16.msra.mxu1 %v11152_v4 }
 0x4c3   : > { %4857 = vmatprep.subr.bf16.mxu0 %v11159_v5  ;;  %5029 = vmatprep.subr.bf16.mxu1 %v11161_v6 }
 0x4c6   : > { %4858 = vmatpush1.bf16.msra.mxu0 %v11158_v12  ;;  %5030 = vmatpush1.bf16.msra.mxu1 %v11160_v16  ;;  %v11193_v12 = vcombine.high %v1713_v62, %v1717_v63  ;;  %v1724_v16 = vld [vmem:[%s13470_s11 + $0xe70] sm:$0xff] }
 0x4c7   : > { %4859 = vmatprep.subr.bf16.mxu0 %v11167_v18  ;;  %5031 = vmatprep.subr.bf16.mxu1 %v11169_v19 }
 0x4c8   : > { %v4539_v31 = vpop.f32.mrb[0].mxu0  ;;  %v4711_v36 = vpop.f32.mrb[0].mxu1 }
 0x4c9   : > { %v14015_v35 = vadd.f32 %v4539_v31, %v1779_v22  ;;  %v4541_v37 = vpop.f32.mrb[1].mxu0  ;;  %v14019_v40 = vadd.f32 %v4711_v36, %v1787_v25  ;;  %v4713_v42 = vpop.f32.mrb[1].mxu1  ;;  %v11201_v31 = vcombine.high %v1721_v20, %v1725_v21 }
 0x4ca   : > { %v14021_v41 = vadd.f32 %v4541_v37, %v1783_v26  ;;  %v4543_v43 = vpop.f32.mrb[2].mxu0  ;;  %4860 = vmatpush1.bf16.msra.mxu0 %v11166_v27  ;;  %v14023_v46 = vadd.f32 %v4713_v42, %v1791_v28  ;;  %v4715_v48 = vpop.f32.mrb[2].mxu1  ;;  %5032 = vmatpush1.bf16.msra.mxu1 %v11168_v29  ;;  %v11192_v27 = vcombine.low %v1713_v62, %v1717_v63  ;;  %v1729_v37 = vld [vmem:[%s13470_s11 + $0xe98] sm:$0xff] }
 0x4cb   : > { %v14025_v47 = vadd.f32 %v4543_v43, %v1779_v22  ;;  %v4545_v49 = vpop.f32.mrb[3].mxu0  ;;  %4861 = vmatprep.subr.bf16.mxu0 %v11175_v30  ;;  %v14027_v51 = vadd.f32 %v4715_v48, %v1787_v25  ;;  %v4717_v53 = vpop.f32.mrb[3].mxu1  ;;  %5033 = vmatprep.subr.bf16.mxu1 %v11177_v32  ;;  %v5064_v58 = vmax.f32 %v14015_v35, 0.0  ;;  %v5066_v0 = vmax.f32 %v14019_v40, 0.0  ;;  %v1728_v32 = vld [vmem:[%s13470_s11 + $0xe90] sm:$0xff]  ;;  %v1737_v62 = vld [vmem:[%s13470_s11 + $0xed8] sm:$0xff] }
 0x4cc   : > { %v14029_v52 = vadd.f32 %v4545_v49, %v1783_v26  ;;  %v14035_v60 = vadd.f32 %v4717_v53, %v1791_v28  ;;  %v5065_v1 = vmax.f32 %v14021_v41, 0.0  ;;  %v5067_v5 = vmax.f32 %v14023_v46, 0.0  ;;  %v1741_v63 = vld [vmem:[%s13470_s11 + $0xef8] sm:$0xff] }
 0x4cd   : > { %v5072_v59 = vmax.f32 %v14025_v47, 0.0  ;;  %v5074_v3 = vmax.f32 %v14027_v51, 0.0  ;;  %v11199_v28 = vcombine.high %v1720_v13, %v1724_v16  ;;  %v11198_v43 = vcombine.low %v1720_v13, %v1724_v16  ;;  %v14077_v13 = vld [vmem:[%s13470_s11 + $0xf30] sm:$0xff] }
 0x4ce   : > { %v5073_v4 = vmax.f32 %v14029_v52, 0.0  ;;  %4862 = vmatpush1.bf16.msra.mxu0 %v11174_v44  ;;  %v5075_v7 = vmax.f32 %v14035_v60, 0.0  ;;  %5034 = vmatpush1.bf16.msra.mxu1 %v11176_v45  ;;  %v11200_v48 = vcombine.low %v1721_v20, %v1725_v21  ;;  %v11207_v49 = vcombine.high %v1728_v32, %v1732_v33  ;;  %v1745_v21 = vld [vmem:[%s13470_s11 + $0xf18] sm:$0xff] }
 0x4cf   : > { %v5082_v6 = vadd.f32 %v5072_v59, %v5064_v58  ;;  %4863 = vmatprep.subr.bf16.mxu0 %v11183_v50  ;;  %v5096_v10 = vadd.f32 %v5074_v3, %v5066_v0  ;;  %5035 = vmatprep.subr.bf16.mxu1 %v11185_v55  ;;  %v1736_v55 = vld [vmem:[%s13470_s11 + $0xed0] sm:$0xff]  ;;  %v1757_v52 = vld [vmem:[%s13470_s11 + $0xf78] sm:$0xff] }
 0x4d0   : > { %v5089_v11 = vadd.f32 %v5073_v4, %v5065_v1  ;;  %v5103_v19 = vadd.f32 %v5075_v7, %v5067_v5  ;;  %v11215_v20 = vcombine.high %v1736_v55, %v1740_v56 }
 0x4d1   : > { %v5083_v18 = vrot.slane %v5082_v6, 4  ;;  %v5097_v22 = vrot.slane %v5096_v10, 4 }
 0x4d2   : > { %v5090_v23 = vrot.slane %v5089_v11, 4  ;;  %4864 = vmatpush1.bf16.msra.mxu0 %v11182_v54  ;;  %v5104_v26 = vrot.slane %v5103_v19, 4  ;;  %5036 = vmatpush1.bf16.msra.mxu1 %v11184_v61  ;;  %v11209_v54 = vcombine.high %v1729_v37, %v1733_v38 }
 0x4d3   : > { %v5084_v25 = vadd.f32 %v5083_v18, %v5082_v6  ;;  %4865 = vmatprep.subr.bf16.mxu0 %v11191_v8  ;;  %v5098_v29 = vadd.f32 %v5097_v22, %v5096_v10  ;;  %5037 = vmatprep.subr.bf16.mxu1 %v11193_v12  ;;  %v11206_v10 = vcombine.low %v1728_v32, %v1732_v33  ;;  %v14074_v12 = vld [vmem:[%s13470_s11 + $0xf10] sm:$0xff]  ;;  %v1749_v22 = vld [vmem:[%s13470_s11 + $0xf38] sm:$0xff] }
 0x4d4   : > { %v5091_v30 = vadd.f32 %v5090_v23, %v5089_v11  ;;  %v5105_v36 = vadd.f32 %v5104_v26, %v5103_v19  ;;  %v11208_v11 = vcombine.low %v1729_v37, %v1733_v38  ;;  %v11214_v19 = vcombine.low %v1736_v55, %v1740_v56  ;;  %v1761_v56 = vld [vmem:[%s13470_s11 + $0xf98] sm:$0xff] }
 0x4d5   : > { %v5085_v34 = vrot.slane %v5084_v25, 2  ;;  %v5099_v39 = vrot.slane %v5098_v29, 2  ;;  %v11217_v26 = vcombine.high %v1737_v62, %v1741_v63  ;;  %v11223_v32 = vcombine.high %v14074_v12, %v14077_v13 }
 0x4d6   : > { %v5092_v42 = vrot.slane %v5091_v30, 2  ;;  %4866 = vmatpush1.bf16.msra.mxu0 %v11190_v24  ;;  %v5106_v45 = vrot.slane %v5105_v36, 2  ;;  %5038 = vmatpush1.bf16.msra.mxu1 %v11192_v27  ;;  %v14082_v27 = vld [vmem:[%s13470_s11 + $0xf50] sm:$0xff]  ;;  %v11225_v37 = vcombine.high %v1745_v21, %v1749_v22 }
 0x4d7   : > { %v5086_v44 = vadd.f32 %v5085_v34, %v5084_v25  ;;  %4867 = vmatprep.subr.bf16.mxu0 %v11199_v28  ;;  %v5100_v50 = vadd.f32 %v5099_v39, %v5098_v29  ;;  %5039 = vmatprep.subr.bf16.mxu1 %v11201_v31  ;;  %v11216_v25 = vcombine.low %v1737_v62, %v1741_v63  ;;  %v14085_v28 = vld [vmem:[%s13470_s11 + $0xf70] sm:$0xff] }
 0x4d8   : > { %v5093_v53 = vadd.f32 %v5092_v42, %v5091_v30  ;;  %v5107_v61 = vadd.f32 %v5106_v45, %v5105_v36  ;;  %v11222_v31 = vcombine.low %v14074_v12, %v14077_v13  ;;  %v11224_v36 = vcombine.low %v1745_v21, %v1749_v22  ;;  %v1769_v22 = vld [vmem:[%s13470_s11 + $0xfd8] sm:$0xff] }
 0x4d9   : > { %v5087_v57 = vrot.slane %v5086_v44, 1  ;;  %v5101_v6 = vrot.slane %v5100_v50, 1  ;;  %v11230_v63 = vcombine.low %v14082_v27, %v14085_v28 }
 0x4da   : > { %v5094_v8 = vrot.slane %v5093_v53, 1  ;;  %4868 = vmatpush1.bf16.msra.mxu0 %v11198_v43  ;;  %v5108_v18 = vrot.slane %v5107_v61, 1  ;;  %5040 = vmatpush1.bf16.msra.mxu1 %v11200_v48  ;;  %v11231_v43 = vcombine.high %v14082_v27, %v14085_v28 }
 0x4db   : > { %v5088_v16 = vadd.f32 %v5087_v57, %v5086_v44  ;;  %4869 = vmatprep.subr.bf16.mxu0 %v11207_v49  ;;  %v5102_v23 = vadd.f32 %v5101_v6, %v5100_v50  ;;  %5041 = vmatprep.subr.bf16.mxu1 %v11209_v54  ;;  %v1760_v50 = vld [vmem:[%s13470_s11 + $0xf90] sm:$0xff]  ;;  %v1765_v57 = vld [vmem:[%s13470_s11 + $0xfb8] sm:$0xff] }
 0x4dc   : > { %v5095_v24 = vadd.f32 %v5094_v8, %v5093_v53  ;;  %v5109_v30 = vadd.f32 %v5108_v18, %v5107_v61  ;;  %v1764_v53 = vld [vmem:[%s13470_s11 + $0xfb0] sm:$0xff] }
 0x4dd   : > { %v5138_v29 = vmul.f32 0.0625, %v5088_v16  ;;  %v5140_v33 = vmul.f32 0.0625, %v5102_v23  ;;  %v11241_v16 = vcombine.high %v1761_v56, %v1765_v57  ;;  %v1768_v18 = vld [vmem:[%s13470_s11 + $0xfd0] sm:$0xff]  ;;  %v1773_v23 = vld [vmem:[%s13470_s11 + $0xff8] sm:$0xff] }
 0x4de   : > { %v5139_v34 = vmul.f32 0.0625, %v5095_v24  ;;  %4870 = vmatpush1.bf16.msra.mxu0 %v11206_v10  ;;  %v5141_v42 = vmul.f32 0.0625, %v5109_v30  ;;  %5042 = vmatpush1.bf16.msra.mxu1 %v11208_v11  ;;  %v11239_v11 = vcombine.high %v1760_v50, %v1764_v53 }
 0x4df   : > { %v14093_v38 = vsub.f32 %v5064_v58, %v5138_v29  ;;  %v14097_v39 = vsub.f32 %v5072_v59, %v5138_v29  ;;  %4871 = vmatprep.subr.bf16.mxu0 %v11215_v20  ;;  %v14103_v44 = vsub.f32 %v5066_v0, %v5140_v33  ;;  %v14107_v35 = vsub.f32 %v5074_v3, %v5140_v33  ;;  %v1753_v0 = vld [vmem:[%s13470_s11 + $0xf58] sm:$0xff] }
 0x4e0   : > { %v14111_v47 = vsub.f32 %v5065_v1, %v5139_v34  ;;  %v14115_v58 = vsub.f32 %v5073_v4, %v5139_v34  ;;  %5043 = vmatprep.subr.bf16.mxu1 %v11217_v26  ;;  %v14123_v51 = vsub.f32 %v5067_v5, %v5141_v42  ;;  %v14127_v41 = vsub.f32 %v5075_v7, %v5141_v42  ;;  %v5404_v34 = vld [vmem:[%s13485_s18] sm:$0xff] }
 0x4e1   : > { %v5162_v59 = vmul.f32 %v14093_v38, %v14093_v38  ;;  %v5170_v40 = vmul.f32 %v14097_v39, %v14097_v39  ;;  %v5164_v1 = vmul.f32 %v14103_v44, %v14103_v44  ;;  %v5172_v3 = vmul.f32 %v14107_v35, %v14107_v35 }
 0x4e2   : > { %v5163_v4 = vmul.f32 %v14111_v47, %v14111_v47  ;;  %v5171_v46 = vmul.f32 %v14115_v58, %v14115_v58  ;;  %4872 = vmatpush1.bf16.msra.mxu0 %v11214_v19  ;;  %v5165_v5 = vmul.f32 %v14123_v51, %v14123_v51  ;;  %v5173_v7 = vmul.f32 %v14127_v41, %v14127_v41  ;;  %v1772_v19 = vld [vmem:[%s13470_s11 + $0xff0] sm:$0xff] }
 0x4e3   : > { %v5178_v60 = vadd.f32 %v5170_v40, %v5162_v59  ;;  %5044 = vmatpush1.bf16.msra.mxu1 %v11216_v25  ;;  %4873 = vmatprep.subr.bf16.mxu0 %v11223_v32  ;;  %v5192_v45 = vadd.f32 %v5172_v3, %v5164_v1  ;;  %v11233_v49 = vcombine.high %v1753_v0, %v1757_v52  ;;  %v5409_v59 = vld [vmem:[%s13485_s18 + $0x28] sm:$0xff] }
 0x4e4   : > { %v5185_v48 = vadd.f32 %v5171_v46, %v5163_v4  ;;  %5045 = vmatprep.subr.bf16.mxu1 %v11225_v37  ;;  %v5199_v55 = vadd.f32 %v5173_v7, %v5165_v5  ;;  %v11232_v10 = vcombine.low %v1753_v0, %v1757_v52  ;;  %v11238_v26 = vcombine.low %v1760_v50, %v1764_v53  ;;  %v5413_v53 = vld [vmem:[%s13485_s18 + $0x48] sm:$0xff] }
 0x4e5   : > { %v5179_v54 = vrot.slane %v5178_v60, 4  ;;  %v5193_v61 = vrot.slane %v5192_v45, 4  ;;  %v11240_v29 = vcombine.low %v1761_v56, %v1765_v57  ;;  %v11247_v30 = vcombine.high %v1768_v18, %v1772_v19 }
 0x4e6   : > { %v5186_v62 = vrot.slane %v5185_v48, 4  ;;  %4874 = vmatpush1.bf16.msra.mxu0 %v11222_v31  ;;  %v5200_v8 = vrot.slane %v5199_v55, 4  ;;  %v11249_v33 = vcombine.high %v1769_v22, %v1773_v23  ;;  %v11246_v52 = vcombine.low %v1768_v18, %v1772_v19  ;;  %v12279_v18 = vld [vmem:[#allocation2 + $0x30] sm:$0xff] }
 0x4e7   : > { %v5180_v6 = vadd.f32 %v5179_v54, %v5178_v60  ;;  %5046 = vmatpush1.bf16.msra.mxu1 %v11224_v36  ;;  %4875 = vmatprep.subr.bf16.mxu0 %v11231_v43  ;;  %v5194_v12 = vadd.f32 %v5193_v61, %v5192_v45  ;;  %v5408_v36 = vld [vmem:[%s13485_s18 + $0x20] sm:$0xff]  ;;  %v5405_v43 = vld [vmem:[%s13485_s18 + $0x8] sm:$0xff]  ;;  %v11248_v4 = vcombine.low %v1769_v22, %v1773_v23 }
 0x4e8   : > { %v5187_v13 = vadd.f32 %v5186_v62, %v5185_v48  ;;  %5047 = vmatprep.subr.bf16.mxu1 %v11233_v49  ;;  %v5201_v21 = vadd.f32 %v5200_v8, %v5199_v55  ;;  %v11251_v46 = vcombine.high %v5404_v34, %v5408_v36  ;;  %v11253_v7 = vcombine.high %v5405_v43, %v5409_v59  ;;  %v5412_v45 = vld [vmem:[%s13485_s18 + $0x40] sm:$0xff]  ;;  %v5417_v54 = vld [vmem:[%s13485_s18 + $0x68] sm:$0xff] }
 0x4e9   : > { %v5181_v20 = vrot.slane %v5180_v6, 2  ;;  %v5195_v24 = vrot.slane %v5194_v12, 2  ;;  %v5416_v48 = vld [vmem:[%s13485_s18 + $0x60] sm:$0xff]  ;;  %v11250_v57 = vcombine.low %v5404_v34, %v5408_v36  ;;  %v5421_v19 = vld [vmem:[%s13485_s18 + $0x88] sm:$0xff]  ;;  %v11260_v22 = vcombine.low %v5413_v53, %v5417_v54 }
 0x4ea   : > { %v5188_v25 = vrot.slane %v5187_v13, 2  ;;  %4876 = vmatpush1.bf16.msra.mxu0 %v11230_v63  ;;  %v5202_v28 = vrot.slane %v5201_v21, 2  ;;  %v11252_v63 = vcombine.low %v5405_v43, %v5409_v59  ;;  %v14174_v34 = vld [vmem:[%s13485_s18 + $0x100] sm:$0xff]  ;;  %v5437_v59 = vld [vmem:[%s13485_s18 + $0x108] sm:$0xff] }
 0x4eb   : > { %v5182_v27 = vadd.f32 %v5181_v20, %v5180_v6  ;;  %5048 = vmatpush1.bf16.msra.mxu1 %v11232_v10  ;;  %4877 = vmatprep.subr.bf16.mxu0 %v11239_v11  ;;  %v5196_v31 = vadd.f32 %v5195_v24, %v5194_v12  ;;  %v11259_v6 = vcombine.high %v5412_v45, %v5416_v48  ;;  %v5420_v12 = vld [vmem:[%s13485_s18 + $0x80] sm:$0xff]  ;;  %v5425_v20 = vld [vmem:[%s13485_s18 + $0xa8] sm:$0xff] }
 0x4ec   : > { %v5189_v32 = vadd.f32 %v5188_v25, %v5187_v13  ;;  %5049 = vmatprep.subr.bf16.mxu1 %v11241_v16  ;;  %v5203_v42 = vadd.f32 %v5202_v28, %v5201_v21  ;;  %v11261_v11 = vcombine.high %v5413_v53, %v5417_v54  ;;  %v5424_v13 = vld [vmem:[%s13485_s18 + $0xa0] sm:$0xff]  ;;  %v11258_v21 = vcombine.low %v5412_v45, %v5416_v48  ;;  %v5429_v28 = vld [vmem:[%s13485_s18 + $0xc8] sm:$0xff] }
 0x4ed   : > { %v5183_v37 = vrot.slane %v5182_v27, 1  ;;  %v5197_v40 = vrot.slane %v5196_v31, 1  ;;  %v11267_v23 = vcombine.high %v5420_v12, %v5424_v13  ;;  %v11269_v24 = vcombine.high %v5421_v19, %v5425_v20  ;;  %v5428_v25 = vld [vmem:[%s13485_s18 + $0xc0] sm:$0xff]  ;;  %v14194_v48 = vld [vmem:[%s13485_s18 + $0x148] sm:$0xff] }
 0x4ee   : > { %v5190_v0 = vrot.slane %v5189_v32, 1  ;;  %4878 = vmatpush1.bf16.msra.mxu0 %v11238_v26  ;;  %v5204_v3 = vrot.slane %v5203_v42, 1  ;;  %v5432_v26 = vld [vmem:[%s13485_s18 + $0xe0] sm:$0xff] }
 0x4ef   : > { %v5184_v1 = vadd.f32 %v5183_v37, %v5182_v27  ;;  %5050 = vmatpush1.bf16.msra.mxu1 %v11240_v29  ;;  %4879 = vmatprep.subr.bf16.mxu0 %v11247_v30  ;;  %v5198_v60 = vadd.f32 %v5197_v40, %v5196_v31  ;;  %v5080_v27 = vld [vmem:[%s675_s19] sm:$0xff]  ;;  %v5081_v30 = vld [vmem:[%s684_s20] sm:$0xff]  ;;  %v11266_v31 = vcombine.low %v5420_v12, %v5424_v13 }
 0x4f0   : > { %v5191_v5 = vadd.f32 %v5190_v0, %v5189_v32  ;;  %5051 = vmatprep.subr.bf16.mxu1 %v11249_v33  ;;  %v5205_v50 = vadd.f32 %v5204_v3, %v5203_v42  ;;  %v5433_v29 = vld [vmem:[%s13485_s18 + $0xe8] sm:$0xff]  ;;  %v11268_v32 = vcombine.low %v5421_v19, %v5425_v20  ;;  %v11275_v33 = vcombine.high %v5428_v25, %v5432_v26  ;;  %v5440_v43 = vld [vmem:[%s13485_s18 + $0x120] sm:$0xff] }
 0x4f1   : > { %v5234_v49 = vmul.f32 0.0625, %v5184_v1  ;;  %v5236_v55 = vmul.f32 0.0625, %v5198_v60  ;;  %v5278_v36 = vrot.slane %v5080_v27, %v13990_v9  ;;  %v5286_v37 = vrot.slane %v5080_v27, %v13997_v14  ;;  %v5441_v40 = vld [vmem:[%s13485_s18 + $0x128] sm:$0xff] }
 0x4f2   : > { %v5235_v56 = vmul.f32 0.0625, %v5191_v5  ;;  %4880 = vmatpush1.bf16.msra.mxu0 %v11246_v52  ;;  %v5237_v62 = vmul.f32 0.0625, %v5205_v50  ;;  %v11277_v42 = vcombine.high %v5429_v28, %v5433_v29  ;;  %v5335_v0 = vrot.slane %v5081_v30, %v13990_v9 }
 0x4f3   : > { %v5242_v61 = vadd.f32 1e-05, %v5234_v49  ;;  %5052 = vmatpush1.bf16.msra.mxu1 %v11248_v4  ;;  %8484 = vmatprep.subr.bf16.mxu0 %v11251_v46  ;;  %v5244_v8 = vadd.f32 1e-05, %v5236_v55  ;;  %v5282_v52 = vrot.slane %v5080_v27, %v14000_v15  ;;  %v11274_v1 = vcombine.low %v5428_v25, %v5432_v26  ;;  %v14184_v4 = vld [vmem:[%s13485_s18 + $0x140] sm:$0xff]  ;;  %v14197_v49 = vld [vmem:[%s13485_s18 + $0x168] sm:$0xff] }
 0x4f4   : > { %v5243_v10 = vadd.f32 1e-05, %v5235_v56  ;;  %8656 = vmatprep.subr.bf16.mxu1 %v11253_v7  ;;  %v5245_v16 = vadd.f32 1e-05, %v5237_v62  ;;  %v11276_v3 = vcombine.low %v5429_v28, %v5433_v29  ;;  %v14187_v46 = vld [vmem:[%s13485_s18 + $0x160] sm:$0xff]  ;;  %v5343_v60 = vrot.slane %v5081_v30, %v13997_v14  ;;  %v5457_v28 = vld [vmem:[%s13485_s18 + $0x1a8] sm:$0xff] }
 0x4f5   : > { %12256 = vrsqrt.f32 %v5242_v61  ;;  %4882 = vmatmul.mubr.bf16.vlgmr.msra.gmra.mrb[4].mxu0 %v12279_v18  ;;  %v5339_v5 = vrot.slane %v5081_v30, %v14000_v15  ;;  %v5290_v7 = vrot.slane %v5080_v27, %v14003_v17  ;;  %v5347_v45 = vrot.slane %v5081_v30, %v14003_v17  ;;  %v5456_v26 = vld [vmem:[%s13485_s18 + $0x1a0] sm:$0xff]  ;;  %v5453_v27 = vld [vmem:[%s13485_s18 + $0x188] sm:$0xff] }
 0x4f6   : > { %12258 = vrsqrt.f32 %v5244_v8  ;;  %5054 = vmatmul.mubr.bf16.vlgmr.msra.gmra.mrb[4].mxu1 %v12279_v18  ;;  %8485 = vmatpush1.bf16.msra.mxu0 %v11250_v57  ;;  %v11282_v53 = vcombine.low %v14174_v34, %v5440_v43  ;;  %v11283_v54 = vcombine.high %v14174_v34, %v5440_v43  ;;  %v11284_v55 = vcombine.low %v5437_v59, %v5441_v40  ;;  %v5460_v43 = vld [vmem:[%s13485_s18 + $0x1c0] sm:$0xff] }
 0x4f7   : > { %12260 = vrsqrt.f32 %v5243_v10  ;;  %8657 = vmatpush1.bf16.msra.mxu1 %v11252_v63  ;;  %8486 = vmatprep.subr.bf16.mxu0 %v11259_v6  ;;  %v11285_v62 = vcombine.high %v5437_v59, %v5441_v40  ;;  %v11290_v63 = vcombine.low %v14184_v4, %v14187_v46  ;;  %v11293_v12 = vcombine.high %v14194_v48, %v14197_v49  ;;  %v5464_v40 = vld [vmem:[%s13485_s18 + $0x1e0] sm:$0xff] }
 0x4f8   : > { %12262 = vrsqrt.f32 %v5245_v16  ;;  %8658 = vmatprep.subr.bf16.mxu1 %v11261_v11  ;;  %v11291_v11 = vcombine.high %v14184_v4, %v14187_v46  ;;  %v11300_v4 = vcombine.low %v5453_v27, %v5457_v28  ;;  %v11307_v46 = vcombine.high %v5460_v43, %v5464_v40 }
 0x4fa   : > { %8487 = vmatpush1.bf16.msra.mxu0 %v11258_v21 }
 0x4fb   : > { %8659 = vmatpush1.bf16.msra.mxu1 %v11260_v22  ;;  %8488 = vmatprep.subr.bf16.mxu0 %v11267_v23 }
 0x4fc   : > { %8660 = vmatprep.subr.bf16.mxu1 %v11269_v24  ;;  %v5452_v24 = vld [vmem:[%s13485_s18 + $0x180] sm:$0xff] }
 0x4fe   : > { %8489 = vmatpush1.bf16.msra.mxu0 %v11266_v31 }
 0x4ff   : > { %v12257_v50 = vpop.eup %12256  ;;  %8661 = vmatpush1.bf16.msra.mxu1 %v11268_v32  ;;  %8490 = vmatprep.subr.bf16.mxu0 %v11275_v33 }
 0x500   : > { %v12259_v56 = vpop.eup %12258  ;;  %v5258_v57 = vmul.f32 %v12257_v50, %v14093_v38  ;;  %v5266_v61 = vmul.f32 %v12257_v50, %v14097_v39  ;;  %8662 = vmatprep.subr.bf16.mxu1 %v11277_v42  ;;  %v11301_v42 = vcombine.high %v5453_v27, %v5457_v28 }
 0x501   : > { %v12261_v6 = vpop.eup %12260  ;;  %v5260_v8 = vmul.f32 %v12259_v56, %v14103_v44  ;;  %v5268_v10 = vmul.f32 %v12259_v56, %v14107_v35  ;;  %v5480_v56 = vld [vmem:[%s13485_s18 + $0x260] sm:$0xff] }
 0x502   : > { %v12263_v13 = vpop.eup %12262  ;;  %v5315_v38 = vmul.f32 %v5278_v36, %v5258_v57  ;;  %v5323_v39 = vmul.f32 %v5278_v36, %v5266_v61  ;;  %v5259_v16 = vmul.f32 %v12261_v6, %v14111_v47  ;;  %v5267_v18 = vmul.f32 %v12261_v6, %v14115_v58  ;;  %8491 = vmatpush1.bf16.msra.mxu0 %v11274_v1  ;;  %v5477_v57 = vld [vmem:[%s13485_s18 + $0x248] sm:$0xff] }
 0x503   : > { %v5317_v44 = vmul.f32 %v5286_v37, %v5260_v8  ;;  %v5325_v35 = vmul.f32 %v5286_v37, %v5268_v10  ;;  %v5261_v19 = vmul.f32 %v12263_v13, %v14123_v51  ;;  %v5269_v20 = vmul.f32 %v12263_v13, %v14127_v41  ;;  %8663 = vmatpush1.bf16.msra.mxu1 %v11276_v3  ;;  %v5481_v61 = vld [vmem:[%s13485_s18 + $0x268] sm:$0xff]  ;;  %v5484_v10 = vld [vmem:[%s13485_s18 + $0x280] sm:$0xff] }
 0x504   : > { %v5380_v21 = vadd.f32 %v5335_v0, %v5323_v39  ;;  %v5316_v22 = vmul.f32 %v5282_v52, %v5259_v16  ;;  %v5324_v23 = vmul.f32 %v5282_v52, %v5267_v18  ;;  %8492 = vmatprep.subr.bf16.mxu0 %v11283_v54  ;;  %8664 = vmatprep.subr.bf16.mxu1 %v11285_v62  ;;  %v5465_v52 = vld [vmem:[%s13485_s18 + $0x1e8] sm:$0xff] }
 0x505   : > { %v5382_v47 = vadd.f32 %v5343_v60, %v5325_v35  ;;  %v5318_v25 = vmul.f32 %v5290_v7, %v5261_v19  ;;  %v5326_v58 = vmul.f32 %v5290_v7, %v5269_v20  ;;  %v5372_v29 = vadd.f32 %v5335_v0, %v5315_v38  ;;  %v5461_v0 = vld [vmem:[%s13485_s18 + $0x1c8] sm:$0xff]  ;;  %v5472_v7 = vld [vmem:[%s13485_s18 + $0x220] sm:$0xff] }
 0x506   : > { %v5381_v30 = vadd.f32 %v5339_v5, %v5324_v23  ;;  %8493 = vmatpush1.bf16.msra.mxu0 %v11282_v53  ;;  %v5373_v51 = vadd.f32 %v5339_v5, %v5316_v22  ;;  %v11292_v41 = vcombine.low %v14194_v48, %v14197_v49  ;;  %v5374_v31 = vadd.f32 %v5343_v60, %v5317_v44  ;;  %v5468_v5 = vld [vmem:[%s13485_s18 + $0x200] sm:$0xff]  ;;  %v5473_v48 = vld [vmem:[%s13485_s18 + $0x228] sm:$0xff] }
 0x507   : > { %v5383_v32 = vadd.f32 %v5347_v45, %v5326_v58  ;;  %8665 = vmatpush1.bf16.msra.mxu1 %v11284_v55  ;;  %8494 = vmatprep.subr.bf16.mxu0 %v11291_v11  ;;  %v14221_v33 = vpack.c.bf16 %v5380_v21, %v5372_v29  ;;  %v5375_v34 = vadd.f32 %v5347_v45, %v5318_v25  ;;  %v5469_v45 = vld [vmem:[%s13485_s18 + $0x208] sm:$0xff]  ;;  %v5476_v55 = vld [vmem:[%s13485_s18 + $0x240] sm:$0xff] }
 0x508   : > { %v14223_v36 = vpack.c.bf16 %v5381_v30, %v5373_v51  ;;  %8666 = vmatprep.subr.bf16.mxu1 %v11293_v12  ;;  %v11299_v37 = vcombine.high %v5452_v24, %v5456_v26  ;;  %v14226_v59 = vpack.c.bf16 %v5382_v47, %v5374_v31  ;;  %v11298_v3 = vcombine.low %v5452_v24, %v5456_v26  ;;  %v5488_v11 = vld [vmem:[%s13485_s18 + $0x2a0] sm:$0xff]  ;;  %v5485_v12 = vld [vmem:[%s13485_s18 + $0x288] sm:$0xff] }
 0x509   : > { %v14231_v1 = vpack.c.bf16 %v5383_v32, %v5375_v34  ;;  %v11309_v60 = vcombine.high %v5461_v0, %v5465_v52  ;;  %v11306_v49 = vcombine.low %v5460_v43, %v5464_v40  ;;  %v11308_v50 = vcombine.low %v5461_v0, %v5465_v52  ;;  %v5489_v13 = vld [vmem:[%s13485_s18 + $0x2a8] sm:$0xff]  ;;  %v5492_v44 = vld [vmem:[%s13485_s18 + $0x2c0] sm:$0xff] }
 0x50a   : > { %8516 = vmatprep.mubr.bf16.mxu0 %v14223_v36  ;;  %8688 = vmatprep.mubr.bf16.mxu1 %v14223_v36  ;;  %v11315_v53 = vcombine.high %v5468_v5, %v5472_v7  ;;  %v11317_v54 = vcombine.high %v5469_v45, %v5473_v48  ;;  %v11314_v62 = vcombine.low %v5468_v5, %v5472_v7  ;;  %v5496_v35 = vld [vmem:[%s13485_s18 + $0x2e0] sm:$0xff]  ;;  %v5493_v19 = vld [vmem:[%s13485_s18 + $0x2c8] sm:$0xff] }
 0x50b   : > { %8495 = vmatpush1.bf16.msra.mxu0 %v11290_v63  ;;  %8667 = vmatpush1.bf16.msra.mxu1 %v11292_v41  ;;  %v11316_v63 = vcombine.low %v5469_v45, %v5473_v48  ;;  %v11323_v6 = vcombine.high %v5476_v55, %v5480_v56  ;;  %v11325_v8 = vcombine.high %v5477_v57, %v5481_v61  ;;  %v5497_v20 = vld [vmem:[%s13485_s18 + $0x2e8] sm:$0xff]  ;;  %v5500_v47 = vld [vmem:[%s13485_s18 + $0x300] sm:$0xff] }
 0x50c   : > { %8496 = vmatprep.subr.bf16.mxu0 %v11299_v37  ;;  %8668 = vmatprep.subr.bf16.mxu1 %v11301_v42  ;;  %v11322_v38 = vcombine.low %v5476_v55, %v5480_v56  ;;  %v11324_v39 = vcombine.low %v5477_v57, %v5481_v61  ;;  %v11331_v16 = vcombine.high %v5484_v10, %v5488_v11  ;;  %v5504_v25 = vld [vmem:[%s13485_s18 + $0x320] sm:$0xff]  ;;  %v5501_v58 = vld [vmem:[%s13485_s18 + $0x308] sm:$0xff] }
 0x50d   : > { %v11333_v18 = vcombine.high %v5485_v12, %v5489_v13  ;;  %v11330_v21 = vcombine.low %v5484_v10, %v5488_v11  ;;  %v11332_v22 = vcombine.low %v5485_v12, %v5489_v13  ;;  %v11339_v23 = vcombine.high %v5492_v44, %v5496_v35  ;;  %v5505_v26 = vld [vmem:[%s13485_s18 + $0x328] sm:$0xff]  ;;  %v5508_v51 = vld [vmem:[%s13485_s18 + $0x340] sm:$0xff] }
 0x50e   : > { %v11341_v24 = vcombine.high %v5493_v19, %v5497_v20  ;;  %v11338_v27 = vcombine.low %v5492_v44, %v5496_v35  ;;  %v11340_v28 = vcombine.low %v5493_v19, %v5497_v20  ;;  %v11347_v29 = vcombine.high %v5500_v47, %v5504_v25  ;;  %v5512_v41 = vld [vmem:[%s13485_s18 + $0x360] sm:$0xff]  ;;  %v5509_v31 = vld [vmem:[%s13485_s18 + $0x348] sm:$0xff] }
 0x50f   : > { %8497 = vmatpush1.bf16.msra.mxu0 %v11298_v3  ;;  %8669 = vmatpush1.bf16.msra.mxu1 %v11300_v4  ;;  %v11349_v30 = vcombine.high %v5501_v58, %v5505_v26  ;;  %v5513_v32 = vld [vmem:[%s13485_s18 + $0x368] sm:$0xff]  ;;  %v11346_v34 = vcombine.low %v5500_v47, %v5504_v25  ;;  %v11348_v37 = vcombine.low %v5501_v58, %v5505_v26  ;;  %v5516_v40 = vld [vmem:[%s13485_s18 + $0x380] sm:$0xff] }
 0x510   : > { %8498 = vmatprep.subr.bf16.mxu0 %v11307_v46  ;;  %8670 = vmatprep.subr.bf16.mxu1 %v11309_v60  ;;  %v11355_v42 = vcombine.high %v5508_v51, %v5512_v41  ;;  %v11357_v43 = vcombine.high %v5509_v31, %v5513_v32  ;;  %v5520_v0 = vld [vmem:[%s13485_s18 + $0x3a0] sm:$0xff]  ;;  %v5517_v52 = vld [vmem:[%s13485_s18 + $0x388] sm:$0xff]  ;;  %v11354_v4 = vcombine.low %v5508_v51, %v5512_v41 }
 0x511   : > { %v5521_v3 = vld [vmem:[%s13485_s18 + $0x3a8] sm:$0xff]  ;;  %v11356_v46 = vcombine.low %v5509_v31, %v5513_v32  ;;  %v11363_v60 = vcombine.high %v5516_v40, %v5520_v0  ;;  %v5524_v7 = vld [vmem:[%s13485_s18 + $0x3c0] sm:$0xff] }
 0x512   : > { %v11365_v5 = vcombine.high %v5517_v52, %v5521_v3  ;;  %v5528_v45 = vld [vmem:[%s13485_s18 + $0x3e0] sm:$0xff]  ;;  %v5525_v48 = vld [vmem:[%s13485_s18 + $0x3c8] sm:$0xff] }
 0x513   : > { %8499 = vmatpush1.bf16.msra.mxu0 %v11306_v49  ;;  %8671 = vmatpush1.bf16.msra.mxu1 %v11308_v50  ;;  %v5529_v49 = vld [vmem:[%s13485_s18 + $0x3e8] sm:$0xff]  ;;  %v11362_v50 = vcombine.low %v5516_v40, %v5520_v0  ;;  %v5532_v56 = vld [vmem:[%s13485_s18 + $0x400] sm:$0xff] }
 0x514   : > { %8500 = vmatprep.subr.bf16.mxu0 %v11315_v53  ;;  %8672 = vmatprep.subr.bf16.mxu1 %v11317_v54  ;;  %v11364_v53 = vcombine.low %v5517_v52, %v5521_v3  ;;  %v11371_v54 = vcombine.high %v5524_v7, %v5528_v45  ;;  %v11373_v55 = vcombine.high %v5525_v48, %v5529_v49  ;;  %v5536_v57 = vld [vmem:[%s13485_s18 + $0x420] sm:$0xff]  ;;  %v5533_v61 = vld [vmem:[%s13485_s18 + $0x408] sm:$0xff] }
 0x515   : > { %v5540_v11 = vld [vmem:[%s13485_s18 + $0x440] sm:$0xff]  ;;  %v5541_v13 = vld [vmem:[%s13485_s18 + $0x448] sm:$0xff] }
 0x516   : > { %v5544_v12 = vld [vmem:[%s13485_s18 + $0x460] sm:$0xff]  ;;  %v5549_v20 = vld [vmem:[%s13485_s18 + $0x488] sm:$0xff] }
 0x517   : > { %8501 = vmatpush1.bf16.msra.mxu0 %v11314_v62  ;;  %8673 = vmatpush1.bf16.msra.mxu1 %v11316_v63  ;;  %v5537_v62 = vld [vmem:[%s13485_s18 + $0x428] sm:$0xff]  ;;  %v11370_v63 = vcombine.low %v5524_v7, %v5528_v45  ;;  %v5548_v35 = vld [vmem:[%s13485_s18 + $0x480] sm:$0xff] }
 0x518   : > { %8502 = vmatprep.subr.bf16.mxu0 %v11323_v6  ;;  %8674 = vmatprep.subr.bf16.mxu1 %v11325_v8  ;;  %v11372_v6 = vcombine.low %v5525_v48, %v5529_v49  ;;  %v11379_v8 = vcombine.high %v5532_v56, %v5536_v57  ;;  %v11381_v10 = vcombine.high %v5533_v61, %v5537_v62  ;;  %v5552_v19 = vld [vmem:[%s13485_s18 + $0x4a0] sm:$0xff]  ;;  %v5557_v26 = vld [vmem:[%s13485_s18 + $0x4c8] sm:$0xff] }
 0x519   : > { %v5556_v25 = vld [vmem:[%s13485_s18 + $0x4c0] sm:$0xff]  ;;  %v5565_v32 = vld [vmem:[%s13485_s18 + $0x508] sm:$0xff] }
 0x51a   : > { %v5560_v58 = vld [vmem:[%s13485_s18 + $0x4e0] sm:$0xff]  ;;  %v5573_v3 = vld [vmem:[%s13485_s18 + $0x548] sm:$0xff] }
 0x51b   : > { %8503 = vmatpush1.bf16.msra.mxu0 %v11322_v38  ;;  %8675 = vmatpush1.bf16.msra.mxu1 %v11324_v39  ;;  %v5545_v38 = vld [vmem:[%s13485_s18 + $0x468] sm:$0xff]  ;;  %v11378_v39 = vcombine.low %v5532_v56, %v5536_v57  ;;  %v5564_v41 = vld [vmem:[%s13485_s18 + $0x500] sm:$0xff] }
 0x51c   : > { %8504 = vmatprep.subr.bf16.mxu0 %v11331_v16  ;;  %8676 = vmatprep.subr.bf16.mxu1 %v11333_v18  ;;  %v11380_v16 = vcombine.low %v5533_v61, %v5537_v62  ;;  %v11387_v18 = vcombine.high %v5540_v11, %v5544_v12  ;;  %v11389_v44 = vcombine.high %v5541_v13, %v5545_v38  ;;  %v5568_v31 = vld [vmem:[%s13485_s18 + $0x520] sm:$0xff]  ;;  %v5581_v49 = vld [vmem:[%s13485_s18 + $0x588] sm:$0xff] }
 0x51d   : > { %v5572_v0 = vld [vmem:[%s13485_s18 + $0x540] sm:$0xff]  ;;  %v5589_v62 = vld [vmem:[%s13485_s18 + $0x5c8] sm:$0xff] }
 0x51e   : > { %v5576_v52 = vld [vmem:[%s13485_s18 + $0x560] sm:$0xff] }
 0x51f   : > { %8505 = vmatpush1.bf16.msra.mxu0 %v11330_v21  ;;  %8677 = vmatpush1.bf16.msra.mxu1 %v11332_v22  ;;  %v5553_v21 = vld [vmem:[%s13485_s18 + $0x4a8] sm:$0xff]  ;;  %v11386_v22 = vcombine.low %v5540_v11, %v5544_v12  ;;  %v5580_v45 = vld [vmem:[%s13485_s18 + $0x580] sm:$0xff] }
 0x520   : > { %8506 = vmatprep.subr.bf16.mxu0 %v11339_v23  ;;  %8678 = vmatprep.subr.bf16.mxu1 %v11341_v24  ;;  %v11388_v23 = vcombine.low %v5541_v13, %v5545_v38  ;;  %v11395_v24 = vcombine.high %v5548_v35, %v5552_v19  ;;  %v11397_v47 = vcombine.high %v5549_v20, %v5553_v21  ;;  %v5584_v48 = vld [vmem:[%s13485_s18 + $0x5a0] sm:$0xff]  ;;  %v5597_v38 = vld [vmem:[%s13485_s18 + $0x608] sm:$0xff] }
 0x521   : > { %v5588_v57 = vld [vmem:[%s13485_s18 + $0x5c0] sm:$0xff] }
 0x522   : > { %v5592_v61 = vld [vmem:[%s13485_s18 + $0x5e0] sm:$0xff] }
 0x523   : > { %8507 = vmatpush1.bf16.msra.mxu0 %v11338_v27  ;;  %8679 = vmatpush1.bf16.msra.mxu1 %v11340_v28  ;;  %v5561_v27 = vld [vmem:[%s13485_s18 + $0x4e8] sm:$0xff]  ;;  %v11394_v28 = vcombine.low %v5548_v35, %v5552_v19  ;;  %v5596_v12 = vld [vmem:[%s13485_s18 + $0x600] sm:$0xff] }
 0x524   : > { %8508 = vmatprep.subr.bf16.mxu0 %v11347_v29  ;;  %8680 = vmatprep.subr.bf16.mxu1 %v11349_v30  ;;  %v11396_v29 = vcombine.low %v5549_v20, %v5553_v21  ;;  %v11403_v30 = vcombine.high %v5556_v25, %v5560_v58  ;;  %v11405_v51 = vcombine.high %v5557_v26, %v5561_v27  ;;  %v5600_v13 = vld [vmem:[%s13485_s18 + $0x620] sm:$0xff]  ;;  %v5605_v21 = vld [vmem:[%s13485_s18 + $0x648] sm:$0xff] }
 0x525   : > { %v5604_v19 = vld [vmem:[%s13485_s18 + $0x640] sm:$0xff] }
 0x526   : > { %v5608_v20 = vld [vmem:[%s13485_s18 + $0x660] sm:$0xff] }
 0x527   : > { %8509 = vmatpush1.bf16.msra.mxu0 %v11346_v34  ;;  %8681 = vmatpush1.bf16.msra.mxu1 %v11348_v37  ;;  %v5569_v34 = vld [vmem:[%s13485_s18 + $0x528] sm:$0xff]  ;;  %v11402_v37 = vcombine.low %v5556_v25, %v5560_v58  ;;  %v5612_v58 = vld [vmem:[%s13485_s18 + $0x680] sm:$0xff] }
 0x528   : > { %8510 = vmatprep.subr.bf16.mxu0 %v11355_v42  ;;  %8682 = vmatprep.subr.bf16.mxu1 %v11357_v43  ;;  %v11404_v42 = vcombine.low %v5557_v26, %v5561_v27  ;;  %v11411_v43 = vcombine.high %v5564_v41, %v5568_v31  ;;  %v11413_v40 = vcombine.high %v5565_v32, %v5569_v34  ;;  %v5616_v26 = vld [vmem:[%s13485_s18 + $0x6a0] sm:$0xff]  ;;  %v5613_v27 = vld [vmem:[%s13485_s18 + $0x688] sm:$0xff] }
 0x52b   : > { %8511 = vmatpush1.bf16.msra.mxu0 %v11354_v4  ;;  %8683 = vmatpush1.bf16.msra.mxu1 %v11356_v46  ;;  %v5577_v4 = vld [vmem:[%s13485_s18 + $0x568] sm:$0xff]  ;;  %v11410_v46 = vcombine.low %v5564_v41, %v5568_v31  ;;  %v5620_v31 = vld [vmem:[%s13485_s18 + $0x6c0] sm:$0xff] }
 0x52c   : > { %8512 = vmatprep.subr.bf16.mxu0 %v11363_v60  ;;  %8684 = vmatprep.subr.bf16.mxu1 %v11365_v5  ;;  %v11412_v60 = vcombine.low %v5565_v32, %v5569_v34  ;;  %v11419_v5 = vcombine.high %v5572_v0, %v5576_v52  ;;  %v11421_v7 = vcombine.high %v5573_v3, %v5577_v4  ;;  %v5624_v32 = vld [vmem:[%s13485_s18 + $0x6e0] sm:$0xff]  ;;  %v5621_v34 = vld [vmem:[%s13485_s18 + $0x6c8] sm:$0xff] }
 0x52f   : > { %8513 = vmatpush1.bf16.msra.mxu0 %v11362_v50  ;;  %8685 = vmatpush1.bf16.msra.mxu1 %v11364_v53  ;;  %v5585_v50 = vld [vmem:[%s13485_s18 + $0x5a8] sm:$0xff]  ;;  %v11418_v53 = vcombine.low %v5572_v0, %v5576_v52  ;;  %v5628_v52 = vld [vmem:[%s13485_s18 + $0x700] sm:$0xff] }
 0x530   : > { %8514 = vmatprep.subr.bf16.mxu0 %v11371_v54  ;;  %8686 = vmatprep.subr.bf16.mxu1 %v11373_v55  ;;  %v11420_v54 = vcombine.low %v5573_v3, %v5577_v4  ;;  %v11427_v55 = vcombine.high %v5580_v45, %v5584_v48  ;;  %v11429_v56 = vcombine.high %v5581_v49, %v5585_v50  ;;  %v5632_v3 = vld [vmem:[%s13485_s18 + $0x720] sm:$0xff]  ;;  %v5629_v4 = vld [vmem:[%s13485_s18 + $0x708] sm:$0xff] }
 0x533   : > { %8515 = vmatpush1.bf16.msra.mxu0 %v11370_v63  ;;  %8687 = vmatpush1.bf16.msra.mxu1 %v11372_v6  ;;  %v5593_v63 = vld [vmem:[%s13485_s18 + $0x5e8] sm:$0xff]  ;;  %v11426_v6 = vcombine.low %v5580_v45, %v5584_v48  ;;  %v5636_v48 = vld [vmem:[%s13485_s18 + $0x740] sm:$0xff] }
 0x534   : > { %8527 = vmatprep.subr.bf16.mxu0 %v11379_v8  ;;  %8699 = vmatprep.subr.bf16.mxu1 %v11381_v10  ;;  %v11428_v8 = vcombine.low %v5581_v49, %v5585_v50  ;;  %v11435_v10 = vcombine.high %v5588_v57, %v5592_v61  ;;  %v11437_v11 = vcombine.high %v5589_v62, %v5593_v63  ;;  %v5640_v49 = vld [vmem:[%s13485_s18 + $0x760] sm:$0xff]  ;;  %v5637_v50 = vld [vmem:[%s13485_s18 + $0x748] sm:$0xff] }
 0x536   : > { %8517 = vmatmul.mubr.bf16.vlgmr.msra.gmra.mrb[8].mxu0 %v14221_v33  ;;  %8689 = vmatmul.mubr.bf16.vlgmr.msra.gmra.mrb[8].mxu1 %v14221_v33 }
 0x537   : > { %8528 = vmatpush1.bf16.msra.mxu0 %v11378_v39  ;;  %8559 = vmatprep.mubr.bf16.mxu0 %v14231_v1  ;;  %v5601_v39 = vld [vmem:[%s13485_s18 + $0x628] sm:$0xff] }
 0x538   : > { %8700 = vmatpush1.bf16.msra.mxu1 %v11380_v16  ;;  %8731 = vmatprep.mubr.bf16.mxu1 %v14231_v1  ;;  %v11434_v16 = vcombine.low %v5588_v57, %v5592_v61  ;;  %v11445_v35 = vcombine.high %v5597_v38, %v5601_v39  ;;  %v5644_v61 = vld [vmem:[%s13485_s18 + $0x780] sm:$0xff] }
 0x539   : > { %8529 = vmatprep.subr.bf16.mxu0 %v11387_v18  ;;  %8701 = vmatprep.subr.bf16.mxu1 %v11389_v44  ;;  %v11436_v18 = vcombine.low %v5589_v62, %v5593_v63  ;;  %v11443_v44 = vcombine.high %v5596_v12, %v5600_v13  ;;  %v5648_v62 = vld [vmem:[%s13485_s18 + $0x7a0] sm:$0xff]  ;;  %v5645_v63 = vld [vmem:[%s13485_s18 + $0x788] sm:$0xff] }
 0x53b   : > { %8530 = vmatpush1.bf16.msra.mxu0 %v11386_v22  ;;  %v5609_v22 = vld [vmem:[%s13485_s18 + $0x668] sm:$0xff] }
 0x53c   : > { %8702 = vmatpush1.bf16.msra.mxu1 %v11388_v23  ;;  %8531 = vmatprep.subr.bf16.mxu0 %v11395_v24  ;;  %v11442_v23 = vcombine.low %v5596_v12, %v5600_v13  ;;  %v11444_v24 = vcombine.low %v5597_v38, %v5601_v39  ;;  %v11453_v25 = vcombine.high %v5605_v21, %v5609_v22  ;;  %v5652_v13 = vld [vmem:[%s13485_s18 + $0x7c0] sm:$0xff]  ;;  %v5653_v39 = vld [vmem:[%s13485_s18 + $0x7c8] sm:$0xff] }
 0x53d   : > { %8703 = vmatprep.subr.bf16.mxu1 %v11397_v47  ;;  %v11451_v47 = vcombine.high %v5604_v19, %v5608_v20  ;;  %v5656_v38 = vld [vmem:[%s13485_s18 + $0x7e0] sm:$0xff] }
 0x53f   : > { %8532 = vmatpush1.bf16.msra.mxu0 %v11394_v28  ;;  %v5617_v28 = vld [vmem:[%s13485_s18 + $0x6a8] sm:$0xff] }
 0x540   : > { %8704 = vmatpush1.bf16.msra.mxu1 %v11396_v29  ;;  %8533 = vmatprep.subr.bf16.mxu0 %v11403_v30  ;;  %v11450_v29 = vcombine.low %v5604_v19, %v5608_v20  ;;  %v11452_v30 = vcombine.low %v5605_v21, %v5609_v22  ;;  %v11461_v41 = vcombine.high %v5613_v27, %v5617_v28  ;;  %v5660_v20 = vld [vmem:[%s13485_s18 + $0x800] sm:$0xff]  ;;  %v5661_v22 = vld [vmem:[%s13485_s18 + $0x808] sm:$0xff] }
 0x541   : > { %8705 = vmatprep.subr.bf16.mxu1 %v11405_v51  ;;  %v11459_v51 = vcombine.high %v5612_v58, %v5616_v26  ;;  %v5664_v21 = vld [vmem:[%s13485_s18 + $0x820] sm:$0xff] }
 0x543   : > { %8534 = vmatpush1.bf16.msra.mxu0 %v11402_v37  ;;  %v5625_v37 = vld [vmem:[%s13485_s18 + $0x6e8] sm:$0xff] }
 0x544   : > { %8706 = vmatpush1.bf16.msra.mxu1 %v11404_v42  ;;  %8535 = vmatprep.subr.bf16.mxu0 %v11411_v43  ;;  %v11458_v42 = vcombine.low %v5612_v58, %v5616_v26  ;;  %v11460_v43 = vcombine.low %v5613_v27, %v5617_v28  ;;  %v11469_v0 = vcombine.high %v5621_v34, %v5625_v37  ;;  %v5668_v26 = vld [vmem:[%s13485_s18 + $0x840] sm:$0xff]  ;;  %v5669_v28 = vld [vmem:[%s13485_s18 + $0x848] sm:$0xff] }
 0x545   : > { %8707 = vmatprep.subr.bf16.mxu1 %v11413_v40  ;;  %v11467_v40 = vcombine.high %v5620_v31, %v5624_v32  ;;  %v5672_v27 = vld [vmem:[%s13485_s18 + $0x860] sm:$0xff] }
 0x547   : > { %8536 = vmatpush1.bf16.msra.mxu0 %v11410_v46  ;;  %v5633_v46 = vld [vmem:[%s13485_s18 + $0x728] sm:$0xff] }
 0x548   : > { %8708 = vmatpush1.bf16.msra.mxu1 %v11412_v60  ;;  %8537 = vmatprep.subr.bf16.mxu0 %v11419_v5  ;;  %v11466_v60 = vcombine.low %v5620_v31, %v5624_v32  ;;  %v11468_v5 = vcombine.low %v5621_v34, %v5625_v37  ;;  %v11477_v45 = vcombine.high %v5629_v4, %v5633_v46  ;;  %v5676_v32 = vld [vmem:[%s13485_s18 + $0x880] sm:$0xff]  ;;  %v5677_v37 = vld [vmem:[%s13485_s18 + $0x888] sm:$0xff] }
 0x549   : > { %8709 = vmatprep.subr.bf16.mxu1 %v11421_v7  ;;  %v11475_v7 = vcombine.high %v5628_v52, %v5632_v3  ;;  %v5680_v34 = vld [vmem:[%s13485_s18 + $0x8a0] sm:$0xff] }
 0x54b   : > { %8538 = vmatpush1.bf16.msra.mxu0 %v11418_v53  ;;  %v5641_v53 = vld [vmem:[%s13485_s18 + $0x768] sm:$0xff] }
 0x54c   : > { %8710 = vmatpush1.bf16.msra.mxu1 %v11420_v54  ;;  %8539 = vmatprep.subr.bf16.mxu0 %v11427_v55  ;;  %v11474_v54 = vcombine.low %v5628_v52, %v5632_v3  ;;  %v11476_v55 = vcombine.low %v5629_v4, %v5633_v46  ;;  %v11485_v57 = vcombine.high %v5637_v50, %v5641_v53  ;;  %v5684_v3 = vld [vmem:[%s13485_s18 + $0x8c0] sm:$0xff]  ;;  %v5685_v46 = vld [vmem:[%s13485_s18 + $0x8c8] sm:$0xff] }
 0x54d   : > { %8711 = vmatprep.subr.bf16.mxu1 %v11429_v56  ;;  %v11483_v56 = vcombine.high %v5636_v48, %v5640_v49  ;;  %v5688_v4 = vld [vmem:[%s13485_s18 + $0x8e0] sm:$0xff] }
 0x54f   : > { %8540 = vmatpush1.bf16.msra.mxu0 %v11426_v6  ;;  %v5649_v6 = vld [vmem:[%s13485_s18 + $0x7a8] sm:$0xff] }
 0x550   : > { %8712 = vmatpush1.bf16.msra.mxu1 %v11428_v8  ;;  %8541 = vmatprep.subr.bf16.mxu0 %v11435_v10  ;;  %v11482_v8 = vcombine.low %v5636_v48, %v5640_v49  ;;  %v11484_v10 = vcombine.low %v5637_v50, %v5641_v53  ;;  %v11493_v12 = vcombine.high %v5645_v63, %v5649_v6  ;;  %v5692_v49 = vld [vmem:[%s13485_s18 + $0x900] sm:$0xff]  ;;  %v5693_v53 = vld [vmem:[%s13485_s18 + $0x908] sm:$0xff] }
 0x551   : > { %8713 = vmatprep.subr.bf16.mxu1 %v11437_v11  ;;  %v11491_v11 = vcombine.high %v5644_v61, %v5648_v62  ;;  %v5696_v50 = vld [vmem:[%s13485_s18 + $0x920] sm:$0xff] }
 0x553   : > { %8542 = vmatpush1.bf16.msra.mxu0 %v11434_v16  ;;  %v5657_v16 = vld [vmem:[%s13485_s18 + $0x7e8] sm:$0xff] }
 0x554   : > { %8714 = vmatpush1.bf16.msra.mxu1 %v11436_v18  ;;  %8543 = vmatprep.subr.bf16.mxu0 %v11443_v44  ;;  %v11490_v18 = vcombine.low %v5644_v61, %v5648_v62  ;;  %v11492_v44 = vcombine.low %v5645_v63, %v5649_v6  ;;  %v11501_v19 = vcombine.high %v5653_v39, %v5657_v16  ;;  %v5700_v62 = vld [vmem:[%s13485_s18 + $0x940] sm:$0xff]  ;;  %v5701_v6 = vld [vmem:[%s13485_s18 + $0x948] sm:$0xff] }
 0x555   : > { %8715 = vmatprep.subr.bf16.mxu1 %v11445_v35  ;;  %v11499_v35 = vcombine.high %v5652_v13, %v5656_v38  ;;  %v5704_v63 = vld [vmem:[%s13485_s18 + $0x960] sm:$0xff] }
 0x557   : > { %8544 = vmatpush1.bf16.msra.mxu0 %v11442_v23  ;;  %v5665_v23 = vld [vmem:[%s13485_s18 + $0x828] sm:$0xff] }
 0x558   : > { %8716 = vmatpush1.bf16.msra.mxu1 %v11444_v24  ;;  %8545 = vmatprep.subr.bf16.mxu0 %v11451_v47  ;;  %v11498_v24 = vcombine.low %v5652_v13, %v5656_v38  ;;  %v11500_v47 = vcombine.low %v5653_v39, %v5657_v16  ;;  %v11509_v58 = vcombine.high %v5661_v22, %v5665_v23  ;;  %v5708_v38 = vld [vmem:[%s13485_s18 + $0x980] sm:$0xff]  ;;  %v5709_v16 = vld [vmem:[%s13485_s18 + $0x988] sm:$0xff] }
 0x559   : > { %8717 = vmatprep.subr.bf16.mxu1 %v11453_v25  ;;  %v11507_v25 = vcombine.high %v5660_v20, %v5664_v21  ;;  %v5712_v39 = vld [vmem:[%s13485_s18 + $0x9a0] sm:$0xff] }
 0x55b   : > { %8546 = vmatpush1.bf16.msra.mxu0 %v11450_v29  ;;  %v5673_v29 = vld [vmem:[%s13485_s18 + $0x868] sm:$0xff] }
 0x55c   : > { %8718 = vmatpush1.bf16.msra.mxu1 %v11452_v30  ;;  %8547 = vmatprep.subr.bf16.mxu0 %v11459_v51  ;;  %v11506_v30 = vcombine.low %v5660_v20, %v5664_v21  ;;  %v11508_v51 = vcombine.low %v5661_v22, %v5665_v23  ;;  %v11517_v31 = vcombine.high %v5669_v28, %v5673_v29  ;;  %v14366_v20 = vld [vmem:[%s13485_s18 + $0xc00] sm:$0xff]  ;;  %v14372_v22 = vld [vmem:[%s13485_s18 + $0xc08] sm:$0xff] }
 0x55d   : > { %8719 = vmatprep.subr.bf16.mxu1 %v11461_v41  ;;  %v11515_v41 = vcombine.high %v5668_v26, %v5672_v27  ;;  %v14369_v21 = vld [vmem:[%s13485_s18 + $0xc20] sm:$0xff] }
 0x55f   : > { %8548 = vmatpush1.bf16.msra.mxu0 %v11458_v42  ;;  %v5681_v42 = vld [vmem:[%s13485_s18 + $0x8a8] sm:$0xff] }
 0x560   : > { %8720 = vmatpush1.bf16.msra.mxu1 %v11460_v43  ;;  %8549 = vmatprep.subr.bf16.mxu0 %v11467_v40  ;;  %v11514_v43 = vcombine.low %v5668_v26, %v5672_v27  ;;  %v11516_v40 = vcombine.low %v5669_v28, %v5673_v29  ;;  %v11525_v52 = vcombine.high %v5677_v37, %v5681_v42  ;;  %v5721_v26 = vld [vmem:[%s13485_s18 + $0x9e8] sm:$0xff] }
 0x561   : > { %8721 = vmatprep.subr.bf16.mxu1 %v11469_v0  ;;  %v11523_v0 = vcombine.high %v5676_v32, %v5680_v34  ;;  %v11634_v27 = vcombine.low %v14366_v20, %v14369_v21  ;;  %v11554_v29 = vcombine.low %v5708_v38, %v5712_v39 }
 0x563   : > { %8550 = vmatpush1.bf16.msra.mxu0 %v11466_v60  ;;  %v5689_v60 = vld [vmem:[%s13485_s18 + $0x8e8] sm:$0xff] }
 0x564   : > { %8722 = vmatpush1.bf16.msra.mxu1 %v11468_v5  ;;  %8551 = vmatprep.subr.bf16.mxu0 %v11475_v7  ;;  %v11522_v5 = vcombine.low %v5676_v32, %v5680_v34  ;;  %v11524_v7 = vcombine.low %v5677_v37, %v5681_v42  ;;  %v11533_v48 = vcombine.high %v5685_v46, %v5689_v60  ;;  %v5728_v32 = vld [vmem:[%s13485_s18 + $0xa20] sm:$0xff]  ;;  %v5725_v34 = vld [vmem:[%s13485_s18 + $0xa08] sm:$0xff] }
 0x565   : > { %8723 = vmatprep.subr.bf16.mxu1 %v11477_v45  ;;  %v11531_v45 = vcombine.high %v5684_v3, %v5688_v4  ;;  %v5729_v37 = vld [vmem:[%s13485_s18 + $0xa28] sm:$0xff] }
 0x567   : > { %8552 = vmatpush1.bf16.msra.mxu0 %v11474_v54  ;;  %v5697_v54 = vld [vmem:[%s13485_s18 + $0x928] sm:$0xff] }
 0x568   : > { %8724 = vmatpush1.bf16.msra.mxu1 %v11476_v55  ;;  %8553 = vmatprep.subr.bf16.mxu0 %v11483_v56  ;;  %v11530_v55 = vcombine.low %v5684_v3, %v5688_v4  ;;  %v11532_v56 = vcombine.low %v5685_v46, %v5689_v60  ;;  %v11541_v61 = vcombine.high %v5693_v53, %v5697_v54  ;;  %v5736_v3 = vld [vmem:[%s13485_s18 + $0xa60] sm:$0xff]  ;;  %v5733_v4 = vld [vmem:[%s13485_s18 + $0xa48] sm:$0xff] }
 0x569   : > { %8725 = vmatprep.subr.bf16.mxu1 %v11485_v57  ;;  %v11539_v57 = vcombine.high %v5692_v49, %v5696_v50  ;;  %v5737_v46 = vld [vmem:[%s13485_s18 + $0xa68] sm:$0xff] }
 0x56b   : > { %8554 = vmatpush1.bf16.msra.mxu0 %v11482_v8  ;;  %v5705_v8 = vld [vmem:[%s13485_s18 + $0x968] sm:$0xff] }
 0x56c   : > { %8726 = vmatpush1.bf16.msra.mxu1 %v11484_v10  ;;  %8555 = vmatprep.subr.bf16.mxu0 %v11491_v11  ;;  %v11538_v10 = vcombine.low %v5692_v49, %v5696_v50  ;;  %v11540_v11 = vcombine.low %v5693_v53, %v5697_v54  ;;  %v11549_v13 = vcombine.high %v5701_v6, %v5705_v8  ;;  %v5744_v49 = vld [vmem:[%s13485_s18 + $0xaa0] sm:$0xff]  ;;  %v5741_v50 = vld [vmem:[%s13485_s18 + $0xa88] sm:$0xff] }
 0x56d   : > { %8727 = vmatprep.subr.bf16.mxu1 %v11493_v12  ;;  %v11547_v12 = vcombine.high %v5700_v62, %v5704_v63  ;;  %v5745_v53 = vld [vmem:[%s13485_s18 + $0xaa8] sm:$0xff] }
 0x56f   : > { %8556 = vmatpush1.bf16.msra.mxu0 %v11490_v18  ;;  %v5713_v18 = vld [vmem:[%s13485_s18 + $0x9a8] sm:$0xff] }
 0x570   : > { %8728 = vmatpush1.bf16.msra.mxu1 %v11492_v44  ;;  %8557 = vmatprep.subr.bf16.mxu0 %v11499_v35  ;;  %v11546_v44 = vcombine.low %v5700_v62, %v5704_v63  ;;  %v11548_v35 = vcombine.low %v5701_v6, %v5705_v8  ;;  %v11557_v23 = vcombine.high %v5709_v16, %v5713_v18  ;;  %v5752_v62 = vld [vmem:[%s13485_s18 + $0xae0] sm:$0xff]  ;;  %v5749_v63 = vld [vmem:[%s13485_s18 + $0xac8] sm:$0xff] }
 0x571   : > { %8729 = vmatprep.subr.bf16.mxu1 %v11501_v19  ;;  %v11555_v19 = vcombine.high %v5708_v38, %v5712_v39  ;;  %v5753_v6 = vld [vmem:[%s13485_s18 + $0xae8] sm:$0xff]  ;;  %v5760_v38 = vld [vmem:[%s13485_s18 + $0xb20] sm:$0xff] }
 0x572   : > { %v5757_v39 = vld [vmem:[%s13485_s18 + $0xb08] sm:$0xff] }
 0x573   : > { %8558 = vmatpush1.bf16.msra.mxu0 %v11498_v24  ;;  %v5716_v24 = vld [vmem:[%s13485_s18 + $0x9c0] sm:$0xff] }
 0x574   : > { %8730 = vmatpush1.bf16.msra.mxu1 %v11500_v47  ;;  %8570 = vmatprep.subr.bf16.mxu0 %v11507_v25  ;;  %v5720_v47 = vld [vmem:[%s13485_s18 + $0x9e0] sm:$0xff]  ;;  %v14377_v25 = vld [vmem:[%s13485_s18 + $0xc28] sm:$0xff] }
 0x575   : > { %8742 = vmatprep.subr.bf16.mxu1 %v11509_v58  ;;  %v5717_v58 = vld [vmem:[%s13485_s18 + $0x9c8] sm:$0xff]  ;;  %v11636_v28 = vcombine.low %v14372_v22, %v14377_v25  ;;  %v11562_v42 = vcombine.low %v5716_v24, %v5720_v47 }
 0x576   : > { %8560 = vmatmul.mubr.bf16.vlgmr.msra.gmra.mrb[8].mxu0 %v14226_v59 }
 0x577   : > { %8732 = vmatmul.mubr.bf16.vlgmr.msra.gmra.mrb[8].mxu1 %v14226_v59  ;;  %8571 = vmatpush1.bf16.msra.mxu0 %v11506_v30  ;;  %v11556_v30 = vcombine.low %v5709_v16, %v5713_v18  ;;  %v5761_v16 = vld [vmem:[%s13485_s18 + $0xb28] sm:$0xff] }
 0x578   : > { %8743 = vmatpush1.bf16.msra.mxu1 %v11508_v51  ;;  %8572 = vmatprep.subr.bf16.mxu0 %v11515_v41  ;;  %v11563_v51 = vcombine.high %v5716_v24, %v5720_v47  ;;  %v11565_v41 = vcombine.high %v5717_v58, %v5721_v26  ;;  %v5768_v24 = vld [vmem:[%s13485_s18 + $0xb60] sm:$0xff]  ;;  %v5765_v47 = vld [vmem:[%s13485_s18 + $0xb48] sm:$0xff] }
 0x579   : > { %8744 = vmatprep.subr.bf16.mxu1 %v11517_v31  ;;  %v5724_v31 = vld [vmem:[%s13485_s18 + $0xa00] sm:$0xff] }
 0x57a   : > { %v11570_v60 = vcombine.low %v5724_v31, %v5728_v32 }
 0x57b   : > { %8573 = vmatpush1.bf16.msra.mxu0 %v11514_v43  ;;  %v11564_v43 = vcombine.low %v5717_v58, %v5721_v26  ;;  %v5769_v58 = vld [vmem:[%s13485_s18 + $0xb68] sm:$0xff] }
 0x57c   : > { %8745 = vmatpush1.bf16.msra.mxu1 %v11516_v40  ;;  %8574 = vmatprep.subr.bf16.mxu0 %v11523_v0  ;;  %v11571_v40 = vcombine.high %v5724_v31, %v5728_v32  ;;  %v11573_v0 = vcombine.high %v5725_v34, %v5729_v37  ;;  %v5776_v31 = vld [vmem:[%s13485_s18 + $0xba0] sm:$0xff]  ;;  %v5773_v32 = vld [vmem:[%s13485_s18 + $0xb88] sm:$0xff] }
 0x57d   : > { %8746 = vmatprep.subr.bf16.mxu1 %v11525_v52  ;;  %v5732_v52 = vld [vmem:[%s13485_s18 + $0xa40] sm:$0xff] }
 0x57e   : > { %v11578_v54 = vcombine.low %v5732_v52, %v5736_v3 }
 0x57f   : > { %8575 = vmatpush1.bf16.msra.mxu0 %v11522_v5  ;;  %v11572_v5 = vcombine.low %v5725_v34, %v5729_v37  ;;  %v5777_v34 = vld [vmem:[%s13485_s18 + $0xba8] sm:$0xff] }
 0x580   : > { %8747 = vmatpush1.bf16.msra.mxu1 %v11524_v7  ;;  %8576 = vmatprep.subr.bf16.mxu0 %v11531_v45  ;;  %v11579_v7 = vcombine.high %v5732_v52, %v5736_v3  ;;  %v11581_v45 = vcombine.high %v5733_v4, %v5737_v46  ;;  %v5784_v52 = vld [vmem:[%s13485_s18 + $0xbe0] sm:$0xff]  ;;  %v5781_v3 = vld [vmem:[%s13485_s18 + $0xbc8] sm:$0xff] }
 0x581   : > { %8748 = vmatprep.subr.bf16.mxu1 %v11533_v48  ;;  %v5740_v48 = vld [vmem:[%s13485_s18 + $0xa80] sm:$0xff] }
 0x582   : > { %v11586_v8 = vcombine.low %v5740_v48, %v5744_v49 }
 0x583   : > { %8577 = vmatpush1.bf16.msra.mxu0 %v11530_v55  ;;  %v11580_v55 = vcombine.low %v5733_v4, %v5737_v46  ;;  %v5785_v4 = vld [vmem:[%s13485_s18 + $0xbe8] sm:$0xff] }
 0x584   : > { %8749 = vmatpush1.bf16.msra.mxu1 %v11532_v56  ;;  %8578 = vmatprep.subr.bf16.mxu0 %v11539_v57  ;;  %v11587_v56 = vcombine.high %v5740_v48, %v5744_v49  ;;  %v11589_v57 = vcombine.high %v5741_v50, %v5745_v53  ;;  %v11628_v48 = vcombine.low %v5781_v3, %v5785_v4 }
 0x585   : > { %8750 = vmatprep.subr.bf16.mxu1 %v11541_v61  ;;  %v5748_v61 = vld [vmem:[%s13485_s18 + $0xac0] sm:$0xff]  ;;  %v11635_v49 = vcombine.high %v14366_v20, %v14369_v21  ;;  %v5813_v21 = vld [vmem:[%s13485_s18 + $0xcc8] sm:$0xff] }
 0x586   : > { %v11594_v18 = vcombine.low %v5748_v61, %v5752_v62  ;;  %v5816_v20 = vld [vmem:[%s13485_s18 + $0xce0] sm:$0xff] }
 0x587   : > { %8579 = vmatpush1.bf16.msra.mxu0 %v11538_v10  ;;  %v11588_v10 = vcombine.low %v5741_v50, %v5745_v53  ;;  %v11637_v50 = vcombine.high %v14372_v22, %v14377_v25  ;;  %v14422_v53 = vsub.s32 4, %v13985_v2 }
 0x588   : > { %8751 = vmatpush1.bf16.msra.mxu1 %v11540_v11  ;;  %8580 = vmatprep.subr.bf16.mxu0 %v11547_v12  ;;  %v11595_v11 = vcombine.high %v5748_v61, %v5752_v62  ;;  %v11597_v12 = vcombine.high %v5749_v63, %v5753_v6 }
 0x589   : > { %8752 = vmatprep.subr.bf16.mxu1 %v11549_v13  ;;  %v5756_v13 = vld [vmem:[%s13485_s18 + $0xb00] sm:$0xff] }
 0x58a   : > { %v11602_v26 = vcombine.low %v5756_v13, %v5760_v38 }
 0x58b   : > { %8581 = vmatpush1.bf16.msra.mxu0 %v11546_v44  ;;  %v11596_v44 = vcombine.low %v5749_v63, %v5753_v6 }
 0x58c   : > { %8753 = vmatpush1.bf16.msra.mxu1 %v11548_v35  ;;  %8582 = vmatprep.subr.bf16.mxu0 %v11555_v19  ;;  %v11603_v35 = vcombine.high %v5756_v13, %v5760_v38  ;;  %v11605_v19 = vcombine.high %v5757_v39, %v5761_v16 }
 0x58d   : > { %8754 = vmatprep.subr.bf16.mxu1 %v11557_v23  ;;  %v5764_v23 = vld [vmem:[%s13485_s18 + $0xb40] sm:$0xff] }
 0x58e   : > { %v11610_v37 = vcombine.low %v5764_v23, %v5768_v24 }
 0x58f   : > { %8583 = vmatpush1.bf16.msra.mxu0 %v11554_v29  ;;  %v11604_v29 = vcombine.low %v5757_v39, %v5761_v16 }
 0x590   : > { %8755 = vmatpush1.bf16.msra.mxu1 %v11556_v30  ;;  %8584 = vmatprep.subr.bf16.mxu0 %v11563_v51  ;;  %v11611_v30 = vcombine.high %v5764_v23, %v5768_v24  ;;  %v11613_v51 = vcombine.high %v5765_v47, %v5769_v58 }
 0x591   : > { %8756 = vmatprep.subr.bf16.mxu1 %v11565_v41  ;;  %v5772_v41 = vld [vmem:[%s13485_s18 + $0xb80] sm:$0xff] }
 0x592   : > { %v11618_v46 = vcombine.low %v5772_v41, %v5776_v31 }
 0x593   : > { %8585 = vmatpush1.bf16.msra.mxu0 %v11562_v42  ;;  %v11612_v42 = vcombine.low %v5765_v47, %v5769_v58 }
 0x594   : > { %8757 = vmatpush1.bf16.msra.mxu1 %v11564_v43  ;;  %8586 = vmatprep.subr.bf16.mxu0 %v11571_v40  ;;  %v11619_v43 = vcombine.high %v5772_v41, %v5776_v31  ;;  %v11621_v40 = vcombine.high %v5773_v32, %v5777_v34 }
 0x595   : > { %8758 = vmatprep.subr.bf16.mxu1 %v11573_v0  ;;  %v5780_v0 = vld [vmem:[%s13485_s18 + $0xbc0] sm:$0xff] }
 0x597   : > { %8587 = vmatpush1.bf16.msra.mxu0 %v11570_v60  ;;  %v11620_v60 = vcombine.low %v5773_v32, %v5777_v34 }
 0x598   : > { %8759 = vmatpush1.bf16.msra.mxu1 %v11572_v5  ;;  %8588 = vmatprep.subr.bf16.mxu0 %v11579_v7  ;;  %v11627_v5 = vcombine.high %v5780_v0, %v5784_v52  ;;  %v11629_v7 = vcombine.high %v5781_v3, %v5785_v4 }
 0x599   : > { %8760 = vmatprep.subr.bf16.mxu1 %v11581_v45  ;;  %v11626_v45 = vcombine.low %v5780_v0, %v5784_v52 }
 0x59b   : > { %8589 = vmatpush1.bf16.msra.mxu0 %v11578_v54  ;;  %v14425_v54 = vsub.s32 6, %v13985_v2 }
 0x59c   : > { %8761 = vmatpush1.bf16.msra.mxu1 %v11580_v55  ;;  %8590 = vmatprep.subr.bf16.mxu0 %v11587_v56  ;;  %v14428_v55 = vsub.s32 5, %v13985_v2  ;;  %v14431_v56 = vsub.s32 7, %v13985_v2 }
 0x59d   : > { %8762 = vmatprep.subr.bf16.mxu1 %v11589_v57  ;;  %v12280_v57 = vld [vmem:[%s666_s6] sm:$0xff] }
 0x59e   : > { %v1795_v61 = vrot.slane %v12280_v57, %v14422_v53  ;;  %v1803_v62 = vrot.slane %v12280_v57, %v14425_v54  ;;  %v1799_v63 = vrot.slane %v12280_v57, %v14428_v55  ;;  %v1807_v6 = vrot.slane %v12280_v57, %v14431_v56 }
 0x59f   : > { %8591 = vmatpush1.bf16.msra.mxu0 %v11586_v8 }
 0x5a0   : > { %8763 = vmatpush1.bf16.msra.mxu1 %v11588_v10  ;;  %8592 = vmatprep.subr.bf16.mxu0 %v11595_v11 }
 0x5a1   : > { %8764 = vmatprep.subr.bf16.mxu1 %v11597_v12 }
 0x5a3   : > { %8593 = vmatpush1.bf16.msra.mxu0 %v11594_v18 }
 0x5a4   : > { %8765 = vmatpush1.bf16.msra.mxu1 %v11596_v44  ;;  %8594 = vmatprep.subr.bf16.mxu0 %v11603_v35 }
 0x5a5   : > { %8766 = vmatprep.subr.bf16.mxu1 %v11605_v19 }
 0x5a7   : > { %8595 = vmatpush1.bf16.msra.mxu0 %v11602_v26 }
 0x5a8   : > { %8767 = vmatpush1.bf16.msra.mxu1 %v11604_v29  ;;  %8596 = vmatprep.subr.bf16.mxu0 %v11611_v30 }
 0x5a9   : > { %8768 = vmatprep.subr.bf16.mxu1 %v11613_v51 }
 0x5ab   : > { %8597 = vmatpush1.bf16.msra.mxu0 %v11610_v37 }
 0x5ac   : > { %8769 = vmatpush1.bf16.msra.mxu1 %v11612_v42  ;;  %8598 = vmatprep.subr.bf16.mxu0 %v11619_v43 }
 0x5ad   : > { %8770 = vmatprep.subr.bf16.mxu1 %v11621_v40 }
 0x5af   : > { %8599 = vmatpush1.bf16.msra.mxu0 %v11618_v46 }
 0x5b0   : > { %8771 = vmatpush1.bf16.msra.mxu1 %v11620_v60  ;;  %8600 = vmatprep.subr.bf16.mxu0 %v11627_v5 }
 0x5b1   : > { %8772 = vmatprep.subr.bf16.mxu1 %v11629_v7 }
 0x5b3   : > { %8601 = vmatpush1.bf16.msra.mxu0 %v11626_v45 }
 0x5b4   : > { %8773 = vmatpush1.bf16.msra.mxu1 %v11628_v48  ;;  %8613 = vmatprep.subr.bf16.mxu0 %v11635_v49 }
 0x5b5   : > { %8785 = vmatprep.subr.bf16.mxu1 %v11637_v50 }
 0x5c8   : > { %v4883_v8 = vpop.f32.mrb[4].mxu0 }
 0x5c9   : > { %v11972_v10 = vadd.f32 %v4883_v8, %v1795_v61  ;;  %v5055_v11 = vpop.f32.mrb[4].mxu1  ;;  %v4885_v12 = vpop.f32.mrb[5].mxu0 }
 0x5ca   : > { %v11976_v13 = vadd.f32 %v5055_v11, %v1803_v62  ;;  %v11973_v38 = vadd.f32 %v4885_v12, %v1799_v63  ;;  %v5057_v39 = vpop.f32.mrb[5].mxu1  ;;  %v4887_v16 = vpop.f32.mrb[6].mxu0 }
 0x5cb   : > { %v11977_v2 = vadd.f32 %v5057_v39, %v1807_v6  ;;  %v11974_v18 = vadd.f32 %v4887_v16, %v1795_v61  ;;  %v5059_v44 = vpop.f32.mrb[6].mxu1  ;;  %v4889_v35 = vpop.f32.mrb[7].mxu0  ;;  %v5068_v47 = vmax.f32 %v11972_v10, 0.0 }
 0x5cc   : > { %v11978_v19 = vadd.f32 %v5059_v44, %v1803_v62  ;;  %v11975_v23 = vadd.f32 %v4889_v35, %v1799_v63  ;;  %v5061_v24 = vpop.f32.mrb[7].mxu1  ;;  %v5070_v29 = vmax.f32 %v11976_v13, 0.0  ;;  %v5069_v30 = vmax.f32 %v11973_v38, 0.0 }
 0x5cd   : > { %v5076_v58 = vmax.f32 %v11974_v18, 0.0  ;;  %v11979_v26 = vadd.f32 %v5061_v24, %v1807_v6  ;;  %v5071_v31 = vmax.f32 %v11977_v2, 0.0 }
 0x5ce   : > { %v5078_v51 = vmax.f32 %v11978_v19, 0.0  ;;  %v5077_v41 = vmax.f32 %v11975_v23, 0.0 }
 0x5cf   : > { %v5110_v32 = vadd.f32 %v5076_v58, %v5068_v47  ;;  %v5079_v34 = vmax.f32 %v11979_v26, 0.0 }
 0x5d0   : > { %v5124_v37 = vadd.f32 %v5078_v51, %v5070_v29  ;;  %v5117_v42 = vadd.f32 %v5077_v41, %v5069_v30 }
 0x5d1   : > { %v5111_v43 = vrot.slane %v5110_v32, 4  ;;  %v5131_v40 = vadd.f32 %v5079_v34, %v5071_v31 }
 0x5d2   : > { %v5125_v0 = vrot.slane %v5124_v37, 4  ;;  %v5118_v52 = vrot.slane %v5117_v42, 4 }
 0x5d3   : > { %v5112_v3 = vadd.f32 %v5111_v43, %v5110_v32  ;;  %v5132_v4 = vrot.slane %v5131_v40, 4 }
 0x5d4   : > { %v5126_v46 = vadd.f32 %v5125_v0, %v5124_v37  ;;  %v5119_v60 = vadd.f32 %v5118_v52, %v5117_v42 }
 0x5d5   : > { %v5113_v5 = vrot.slane %v5112_v3, 2  ;;  %v5133_v7 = vadd.f32 %v5132_v4, %v5131_v40 }
 0x5d6   : > { %v5127_v45 = vrot.slane %v5126_v46, 2  ;;  %v5120_v48 = vrot.slane %v5119_v60, 2 }
 0x5d7   : > { %v5114_v49 = vadd.f32 %v5113_v5, %v5112_v3  ;;  %v5134_v50 = vrot.slane %v5133_v7, 2 }
 0x5d8   : > { %v5128_v57 = vadd.f32 %v5127_v45, %v5126_v46  ;;  %v5121_v61 = vadd.f32 %v5120_v48, %v5119_v60 }
 0x5d9   : > { %v5115_v62 = vrot.slane %v5114_v49, 1  ;;  %v5135_v63 = vadd.f32 %v5134_v50, %v5133_v7 }
 0x5da   : > { %v5129_v6 = vrot.slane %v5128_v57, 1  ;;  %v5122_v8 = vrot.slane %v5121_v61, 1 }
 0x5db   : > { %v5116_v10 = vadd.f32 %v5115_v62, %v5114_v49  ;;  %v5136_v11 = vrot.slane %v5135_v63, 1 }
 0x5dc   : > { %v5130_v12 = vadd.f32 %v5129_v6, %v5128_v57  ;;  %v5123_v13 = vadd.f32 %v5122_v8, %v5121_v61 }
 0x5dd   : > { %v5142_v38 = vmul.f32 0.0625, %v5116_v10  ;;  %v5137_v39 = vadd.f32 %v5136_v11, %v5135_v63 }
 0x5de   : > { %v5144_v16 = vmul.f32 0.0625, %v5130_v12  ;;  %v5143_v2 = vmul.f32 0.0625, %v5123_v13 }
 0x5df   : > { %v14439_v18 = vsub.f32 %v5068_v47, %v5142_v38  ;;  %v14441_v44 = vsub.f32 %v5076_v58, %v5142_v38  ;;  %v5145_v35 = vmul.f32 0.0625, %v5137_v39 }
 0x5e0   : > { %v14443_v19 = vsub.f32 %v5070_v29, %v5144_v16  ;;  %v14445_v23 = vsub.f32 %v5078_v51, %v5144_v16  ;;  %v14447_v24 = vsub.f32 %v5069_v30, %v5143_v2  ;;  %v14449_v26 = vsub.f32 %v5077_v41, %v5143_v2 }
 0x5e1   : > { %v5166_v32 = vmul.f32 %v14439_v18, %v14439_v18  ;;  %v5174_v37 = vmul.f32 %v14441_v44, %v14441_v44  ;;  %v14455_v42 = vsub.f32 %v5071_v31, %v5145_v35  ;;  %v14457_v47 = vsub.f32 %v5079_v34, %v5145_v35 }
 0x5e2   : > { %v5168_v58 = vmul.f32 %v14443_v19, %v14443_v19  ;;  %v5176_v29 = vmul.f32 %v14445_v23, %v14445_v23  ;;  %v5167_v30 = vmul.f32 %v14447_v24, %v14447_v24  ;;  %v5175_v51 = vmul.f32 %v14449_v26, %v14449_v26 }
 0x5e3   : > { %v5206_v41 = vadd.f32 %v5174_v37, %v5166_v32  ;;  %v5169_v43 = vmul.f32 %v14455_v42, %v14455_v42  ;;  %v5177_v31 = vmul.f32 %v14457_v47, %v14457_v47 }
 0x5e4   : > { %v5220_v34 = vadd.f32 %v5176_v29, %v5168_v58  ;;  %v5213_v40 = vadd.f32 %v5175_v51, %v5167_v30 }
 0x5e5   : > { %v5207_v0 = vrot.slane %v5206_v41, 4  ;;  %v5227_v52 = vadd.f32 %v5177_v31, %v5169_v43 }
 0x5e6   : > { %v5221_v3 = vrot.slane %v5220_v34, 4  ;;  %v5214_v4 = vrot.slane %v5213_v40, 4 }
 0x5e7   : > { %v5208_v46 = vadd.f32 %v5207_v0, %v5206_v41  ;;  %v5228_v60 = vrot.slane %v5227_v52, 4  ;;  %v12281_v41 = vld [vmem:[%s675_s19] sm:$0xff] }
 0x5e8   : > { %v5222_v5 = vadd.f32 %v5221_v3, %v5220_v34  ;;  %v5215_v7 = vadd.f32 %v5214_v4, %v5213_v40  ;;  %v5294_v43 = vrot.slane %v12281_v41, %v14422_v53  ;;  %v12282_v34 = vld [vmem:[%s684_s20] sm:$0xff]  ;;  %v5302_v0 = vrot.slane %v12281_v41, %v14425_v54 }
 0x5e9   : > { %v5209_v45 = vrot.slane %v5208_v46, 2  ;;  %v5229_v48 = vadd.f32 %v5228_v60, %v5227_v52  ;;  %v5351_v40 = vrot.slane %v12282_v34, %v14422_v53  ;;  %v5298_v52 = vrot.slane %v12281_v41, %v14428_v55 }
 0x5ea   : > { %v5223_v49 = vrot.slane %v5222_v5, 2  ;;  %v5216_v50 = vrot.slane %v5215_v7, 2  ;;  %v5359_v60 = vrot.slane %v12282_v34, %v14425_v54 }
 0x5eb   : > { %v5210_v57 = vadd.f32 %v5209_v45, %v5208_v46  ;;  %v5230_v61 = vrot.slane %v5229_v48, 2 }
 0x5ec   : > { %v5224_v62 = vadd.f32 %v5223_v49, %v5222_v5  ;;  %v5217_v63 = vadd.f32 %v5216_v50, %v5215_v7  ;;  %v5306_v5 = vrot.slane %v12281_v41, %v14431_v56  ;;  %v5355_v49 = vrot.slane %v12282_v34, %v14428_v55  ;;  %v5804_v41 = vld [vmem:[%s13485_s18 + $0xc80] sm:$0xff] }
 0x5ed   : > { %v5211_v6 = vrot.slane %v5210_v57, 1  ;;  %v5231_v8 = vadd.f32 %v5230_v61, %v5229_v48  ;;  %v5363_v50 = vrot.slane %v12282_v34, %v14431_v56  ;;  %v5808_v34 = vld [vmem:[%s13485_s18 + $0xca0] sm:$0xff] }
 0x5ee   : > { %v5225_v10 = vrot.slane %v5224_v62, 1  ;;  %v5218_v11 = vrot.slane %v5217_v63, 1  ;;  %v11650_v22 = vcombine.low %v5804_v41, %v5808_v34 }
 0x5ef   : > { %v5212_v12 = vadd.f32 %v5211_v6, %v5210_v57  ;;  %v5232_v13 = vrot.slane %v5231_v8, 1 }
 0x5f0   : > { %v5226_v38 = vadd.f32 %v5225_v10, %v5224_v62  ;;  %v5219_v39 = vadd.f32 %v5218_v11, %v5217_v63 }
 0x5f1   : > { %v5238_v16 = vmul.f32 0.0625, %v5212_v12  ;;  %v5233_v2 = vadd.f32 %v5232_v13, %v5231_v8 }
 0x5f2   : > { %v5240_v35 = vmul.f32 0.0625, %v5226_v38  ;;  %v5239_v32 = vmul.f32 0.0625, %v5219_v39 }
 0x5f3   : > { %v5246_v37 = vadd.f32 1e-05, %v5238_v16  ;;  %v5241_v58 = vmul.f32 0.0625, %v5233_v2 }
 0x5f4   : > { %v5248_v29 = vadd.f32 1e-05, %v5240_v35  ;;  %v5247_v30 = vadd.f32 1e-05, %v5239_v32  ;;  %v5800_v32 = vld [vmem:[%s13485_s18 + $0xc60] sm:$0xff] }
 0x5f5   : > { %12264 = vrsqrt.f32 %v5246_v37  ;;  %v5249_v51 = vadd.f32 1e-05, %v5241_v58  ;;  %v5797_v37 = vld [vmem:[%s13485_s18 + $0xc48] sm:$0xff] }
 0x5f6   : > { %12266 = vrsqrt.f32 %v5248_v29  ;;  %v5801_v58 = vld [vmem:[%s13485_s18 + $0xc68] sm:$0xff] }
 0x5f7   : > { %12268 = vrsqrt.f32 %v5247_v30 }
 0x5f8   : > { %12270 = vrsqrt.f32 %v5249_v51 }
 0x5ff   : > { %v12265_v31 = vpop.eup %12264 }
 0x600   : > { %v12267_v3 = vpop.eup %12266  ;;  %v5262_v4 = vmul.f32 %v12265_v31, %v14439_v18  ;;  %v5270_v46 = vmul.f32 %v12265_v31, %v14441_v44  ;;  %v11645_v31 = vcombine.high %v5797_v37, %v5801_v58 }
 0x601   : > { %v12269_v7 = vpop.eup %12268  ;;  %v5264_v45 = vmul.f32 %v12267_v3, %v14443_v19  ;;  %v5272_v48 = vmul.f32 %v12267_v3, %v14445_v23  ;;  %v11644_v3 = vcombine.low %v5797_v37, %v5801_v58 }
 0x602   : > { %v12271_v57 = vpop.eup %12270  ;;  %v5319_v61 = vmul.f32 %v5294_v43, %v5262_v4  ;;  %v5327_v62 = vmul.f32 %v5294_v43, %v5270_v46  ;;  %v5263_v18 = vmul.f32 %v12269_v7, %v14447_v24  ;;  %v5271_v44 = vmul.f32 %v12269_v7, %v14449_v26  ;;  %v5820_v7 = vld [vmem:[%s13485_s18 + $0xd00] sm:$0xff] }
 0x603   : > { %v5321_v63 = vmul.f32 %v5302_v0, %v5264_v45  ;;  %v5329_v6 = vmul.f32 %v5302_v0, %v5272_v48  ;;  %v5265_v8 = vmul.f32 %v12271_v57, %v14455_v42  ;;  %v5273_v19 = vmul.f32 %v12271_v57, %v14457_v47  ;;  %v5796_v42 = vld [vmem:[%s13485_s18 + $0xc40] sm:$0xff]  ;;  %v5809_v0 = vld [vmem:[%s13485_s18 + $0xca8] sm:$0xff] }
 0x604   : > { %v5384_v23 = vadd.f32 %v5351_v40, %v5327_v62  ;;  %v5320_v10 = vmul.f32 %v5298_v52, %v5263_v18  ;;  %v5328_v11 = vmul.f32 %v5298_v52, %v5271_v44  ;;  %v5376_v12 = vadd.f32 %v5351_v40, %v5319_v61  ;;  %v5805_v40 = vld [vmem:[%s13485_s18 + $0xc88] sm:$0xff]  ;;  %v5824_v45 = vld [vmem:[%s13485_s18 + $0xd20] sm:$0xff] }
 0x605   : > { %v5386_v13 = vadd.f32 %v5359_v60, %v5329_v6  ;;  %v5322_v38 = vmul.f32 %v5306_v5, %v5265_v8  ;;  %v5330_v24 = vmul.f32 %v5306_v5, %v5273_v19  ;;  %v5378_v39 = vadd.f32 %v5359_v60, %v5321_v63  ;;  %v5812_v60 = vld [vmem:[%s13485_s18 + $0xcc0] sm:$0xff]  ;;  %v5821_v48 = vld [vmem:[%s13485_s18 + $0xd08] sm:$0xff] }
 0x606   : > { %v5385_v26 = vadd.f32 %v5355_v49, %v5328_v11  ;;  %v5377_v16 = vadd.f32 %v5355_v49, %v5320_v10  ;;  %v14491_v2 = vpack.c.bf16 %v5384_v23, %v5376_v12  ;;  %v11643_v43 = vcombine.high %v5796_v42, %v5800_v32  ;;  %v5825_v49 = vld [vmem:[%s13485_s18 + $0xd28] sm:$0xff]  ;;  %v5828_v18 = vld [vmem:[%s13485_s18 + $0xd40] sm:$0xff] }
 0x607   : > { %v5387_v47 = vadd.f32 %v5363_v50, %v5330_v24  ;;  %v5379_v35 = vadd.f32 %v5363_v50, %v5322_v38  ;;  %v14497_v29 = vpack.c.bf16 %v5386_v13, %v5378_v39  ;;  %v11642_v52 = vcombine.low %v5796_v42, %v5800_v32  ;;  %v5832_v44 = vld [vmem:[%s13485_s18 + $0xd60] sm:$0xff]  ;;  %v5829_v63 = vld [vmem:[%s13485_s18 + $0xd48] sm:$0xff] }
 0x608   : > { %v14499_v30 = vpack.c.bf16 %v5385_v26, %v5377_v16  ;;  %v11651_v4 = vcombine.high %v5804_v41, %v5808_v34  ;;  %v11653_v46 = vcombine.high %v5805_v40, %v5809_v0  ;;  %v11652_v25 = vcombine.low %v5805_v40, %v5809_v0  ;;  %v5833_v6 = vld [vmem:[%s13485_s18 + $0xd68] sm:$0xff]  ;;  %v5836_v11 = vld [vmem:[%s13485_s18 + $0xd80] sm:$0xff] }
 0x609   : > { %v14501_v51 = vpack.c.bf16 %v5387_v47, %v5379_v35  ;;  %v11658_v50 = vcombine.low %v5812_v60, %v5816_v20  ;;  %v11667_v61 = vcombine.high %v5820_v7, %v5824_v45  ;;  %v11669_v62 = vcombine.high %v5821_v48, %v5825_v49  ;;  %v5840_v12 = vld [vmem:[%s13485_s18 + $0xda0] sm:$0xff]  ;;  %v5837_v13 = vld [vmem:[%s13485_s18 + $0xd88] sm:$0xff] }
 0x60a   : > { %8602 = vmatprep.mubr.bf16.mxu0 %v14499_v30  ;;  %8774 = vmatprep.mubr.bf16.mxu1 %v14499_v30  ;;  %v11666_v8 = vcombine.low %v5820_v7, %v5824_v45  ;;  %v11668_v19 = vcombine.low %v5821_v48, %v5825_v49  ;;  %v11675_v23 = vcombine.high %v5828_v18, %v5832_v44  ;;  %v5841_v38 = vld [vmem:[%s13485_s18 + $0xda8] sm:$0xff]  ;;  %v5844_v42 = vld [vmem:[%s13485_s18 + $0xdc0] sm:$0xff] }
 0x60b   : > { %8603 = vmatmul.mubr.bf16.vlgmr.msra.gmra.mrb[8].mxu0 %v14491_v2  ;;  %8775 = vmatmul.mubr.bf16.vlgmr.msra.gmra.mrb[8].mxu1 %v14491_v2  ;;  %v11677_v10 = vcombine.high %v5829_v63, %v5833_v6  ;;  %v11674_v24 = vcombine.low %v5828_v18, %v5832_v44  ;;  %v11676_v39 = vcombine.low %v5829_v63, %v5833_v6  ;;  %v5848_v47 = vld [vmem:[%s13485_s18 + $0xde0] sm:$0xff]  ;;  %v5845_v35 = vld [vmem:[%s13485_s18 + $0xdc8] sm:$0xff] }
 0x60c   : > { %8614 = vmatpush1.bf16.msra.mxu0 %v11634_v27  ;;  %8786 = vmatpush1.bf16.msra.mxu1 %v11636_v28  ;;  %v5817_v27 = vld [vmem:[%s13485_s18 + $0xce8] sm:$0xff]  ;;  %v11659_v28 = vcombine.high %v5812_v60, %v5816_v20  ;;  %v11683_v26 = vcombine.high %v5836_v11, %v5840_v12  ;;  %v11685_v16 = vcombine.high %v5837_v13, %v5841_v38  ;;  %v5856_v34 = vld [vmem:[%s13485_s18 + $0xe20] sm:$0xff] }
 0x60d   : > { %8645 = vmatprep.mubr.bf16.mxu0 %v14501_v51  ;;  %8817 = vmatprep.mubr.bf16.mxu1 %v14501_v51  ;;  %v11661_v5 = vcombine.high %v5813_v21, %v5817_v27  ;;  %v11660_v57 = vcombine.low %v5813_v21, %v5817_v27  ;;  %v5849_v32 = vld [vmem:[%s13485_s18 + $0xde8] sm:$0xff]  ;;  %v11682_v37 = vcombine.low %v5836_v11, %v5840_v12  ;;  %v5860_v60 = vld [vmem:[%s13485_s18 + $0xe40] sm:$0xff] }
 0x60e   : > { %8615 = vmatprep.subr.bf16.mxu0 %v11643_v43  ;;  %8787 = vmatprep.subr.bf16.mxu1 %v11645_v31  ;;  %v11684_v58 = vcombine.low %v5837_v13, %v5841_v38  ;;  %v11691_v41 = vcombine.high %v5844_v42, %v5848_v47  ;;  %v11693_v43 = vcombine.high %v5845_v35, %v5849_v32  ;;  %v5852_v31 = vld [vmem:[%s13485_s18 + $0xe00] sm:$0xff]  ;;  %v5853_v40 = vld [vmem:[%s13485_s18 + $0xe08] sm:$0xff] }
 0x60f   : > { %v5857_v0 = vld [vmem:[%s13485_s18 + $0xe28] sm:$0xff]  ;;  %v5864_v20 = vld [vmem:[%s13485_s18 + $0xe60] sm:$0xff] }
 0x610   : > { %8616 = vmatpush1.bf16.msra.mxu0 %v11642_v52  ;;  %8788 = vmatpush1.bf16.msra.mxu1 %v11644_v3  ;;  %v11690_v52 = vcombine.low %v5844_v42, %v5848_v47  ;;  %v11692_v3 = vcombine.low %v5845_v35, %v5849_v32  ;;  %v5861_v21 = vld [vmem:[%s13485_s18 + $0xe48] sm:$0xff]  ;;  %v5868_v7 = vld [vmem:[%s13485_s18 + $0xe80] sm:$0xff] }
 0x611   : > { %8617 = vmatprep.subr.bf16.mxu0 %v11651_v4  ;;  %8789 = vmatprep.subr.bf16.mxu1 %v11653_v46  ;;  %v11699_v4 = vcombine.high %v5852_v31, %v5856_v34  ;;  %v11701_v46 = vcombine.high %v5853_v40, %v5857_v0  ;;  %v5865_v27 = vld [vmem:[%s13485_s18 + $0xe68] sm:$0xff]  ;;  %v5872_v45 = vld [vmem:[%s13485_s18 + $0xea0] sm:$0xff] }
 0x612   : > { %v5869_v48 = vld [vmem:[%s13485_s18 + $0xe88] sm:$0xff]  ;;  %v5876_v18 = vld [vmem:[%s13485_s18 + $0xec0] sm:$0xff] }
 0x613   : > { %v5873_v49 = vld [vmem:[%s13485_s18 + $0xea8] sm:$0xff]  ;;  %v5880_v44 = vld [vmem:[%s13485_s18 + $0xee0] sm:$0xff] }
 0x614   : > { %8618 = vmatpush1.bf16.msra.mxu0 %v11650_v22  ;;  %8790 = vmatpush1.bf16.msra.mxu1 %v11652_v25  ;;  %v11698_v22 = vcombine.low %v5852_v31, %v5856_v34  ;;  %v11700_v25 = vcombine.low %v5853_v40, %v5857_v0  ;;  %v5877_v63 = vld [vmem:[%s13485_s18 + $0xec8] sm:$0xff]  ;;  %v5884_v11 = vld [vmem:[%s13485_s18 + $0xf00] sm:$0xff] }
 0x615   : > { %8619 = vmatprep.subr.bf16.mxu0 %v11659_v28  ;;  %8791 = vmatprep.subr.bf16.mxu1 %v11661_v5  ;;  %v11707_v28 = vcombine.high %v5860_v60, %v5864_v20  ;;  %v11709_v5 = vcombine.high %v5861_v21, %v5865_v27  ;;  %v5881_v6 = vld [vmem:[%s13485_s18 + $0xee8] sm:$0xff]  ;;  %v5888_v12 = vld [vmem:[%s13485_s18 + $0xf20] sm:$0xff] }
 0x616   : > { %v5885_v13 = vld [vmem:[%s13485_s18 + $0xf08] sm:$0xff]  ;;  %v5892_v42 = vld [vmem:[%s13485_s18 + $0xf40] sm:$0xff] }
 0x617   : > { %v5889_v38 = vld [vmem:[%s13485_s18 + $0xf28] sm:$0xff]  ;;  %v5896_v47 = vld [vmem:[%s13485_s18 + $0xf60] sm:$0xff] }
 0x618   : > { %8620 = vmatpush1.bf16.msra.mxu0 %v11658_v50  ;;  %8792 = vmatpush1.bf16.msra.mxu1 %v11660_v57  ;;  %v11706_v50 = vcombine.low %v5860_v60, %v5864_v20  ;;  %v11708_v57 = vcombine.low %v5861_v21, %v5865_v27  ;;  %v5893_v35 = vld [vmem:[%s13485_s18 + $0xf48] sm:$0xff]  ;;  %v5900_v31 = vld [vmem:[%s13485_s18 + $0xf80] sm:$0xff] }
 0x619   : > { %8621 = vmatprep.subr.bf16.mxu0 %v11667_v61  ;;  %8793 = vmatprep.subr.bf16.mxu1 %v11669_v62  ;;  %v11715_v61 = vcombine.high %v5868_v7, %v5872_v45  ;;  %v11717_v62 = vcombine.high %v5869_v48, %v5873_v49  ;;  %v5897_v32 = vld [vmem:[%s13485_s18 + $0xf68] sm:$0xff]  ;;  %v5904_v34 = vld [vmem:[%s13485_s18 + $0xfa0] sm:$0xff] }
 0x61a   : > { %v5901_v40 = vld [vmem:[%s13485_s18 + $0xf88] sm:$0xff]  ;;  %v5908_v60 = vld [vmem:[%s13485_s18 + $0xfc0] sm:$0xff] }
 0x61b   : > { %v5905_v0 = vld [vmem:[%s13485_s18 + $0xfa8] sm:$0xff]  ;;  %v5912_v20 = vld [vmem:[%s13485_s18 + $0xfe0] sm:$0xff] }
 0x61c   : > { %8622 = vmatpush1.bf16.msra.mxu0 %v11666_v8  ;;  %8794 = vmatpush1.bf16.msra.mxu1 %v11668_v19  ;;  %v11714_v8 = vcombine.low %v5868_v7, %v5872_v45  ;;  %v11716_v19 = vcombine.low %v5869_v48, %v5873_v49  ;;  %v5909_v21 = vld [vmem:[%s13485_s18 + $0xfc8] sm:$0xff]  ;;  %v5406_v7 = vld [vmem:[%s13485_s18 + $0x10] sm:$0xff]  ;;  %v5407_v48 = vld [vmem:[%s13485_s18 + $0x18] sm:$0xff] }
 0x61d   : > { %8623 = vmatprep.subr.bf16.mxu0 %v11675_v23  ;;  %8795 = vmatprep.subr.bf16.mxu1 %v11677_v10  ;;  %v11723_v23 = vcombine.high %v5876_v18, %v5880_v44  ;;  %v11725_v10 = vcombine.high %v5877_v63, %v5881_v6  ;;  %v5913_v27 = vld [vmem:[%s13485_s18 + $0xfe8] sm:$0xff]  ;;  %v5410_v45 = vld [vmem:[%s13485_s18 + $0x30] sm:$0xff]  ;;  %v5411_v49 = vld [vmem:[%s13485_s18 + $0x38] sm:$0xff] }
 0x620   : > { %8624 = vmatpush1.bf16.msra.mxu0 %v11674_v24  ;;  %8796 = vmatpush1.bf16.msra.mxu1 %v11676_v39  ;;  %v11722_v24 = vcombine.low %v5876_v18, %v5880_v44  ;;  %v11724_v39 = vcombine.low %v5877_v63, %v5881_v6  ;;  %v5414_v18 = vld [vmem:[%s13485_s18 + $0x50] sm:$0xff]  ;;  %v5415_v63 = vld [vmem:[%s13485_s18 + $0x58] sm:$0xff] }
 0x621   : > { %8625 = vmatprep.subr.bf16.mxu0 %v11683_v26  ;;  %8797 = vmatprep.subr.bf16.mxu1 %v11685_v16  ;;  %v11731_v26 = vcombine.high %v5884_v11, %v5888_v12  ;;  %v11733_v16 = vcombine.high %v5885_v13, %v5889_v38  ;;  %v5418_v44 = vld [vmem:[%s13485_s18 + $0x70] sm:$0xff]  ;;  %v5419_v6 = vld [vmem:[%s13485_s18 + $0x78] sm:$0xff] }
 0x624   : > { %8626 = vmatpush1.bf16.msra.mxu0 %v11682_v37  ;;  %8798 = vmatpush1.bf16.msra.mxu1 %v11684_v58  ;;  %v11730_v37 = vcombine.low %v5884_v11, %v5888_v12  ;;  %v11732_v58 = vcombine.low %v5885_v13, %v5889_v38  ;;  %v5422_v11 = vld [vmem:[%s13485_s18 + $0x90] sm:$0xff]  ;;  %v5423_v13 = vld [vmem:[%s13485_s18 + $0x98] sm:$0xff] }
 0x625   : > { %8627 = vmatprep.subr.bf16.mxu0 %v11691_v41  ;;  %8799 = vmatprep.subr.bf16.mxu1 %v11693_v43  ;;  %v11739_v41 = vcombine.high %v5892_v42, %v5896_v47  ;;  %v11741_v43 = vcombine.high %v5893_v35, %v5897_v32  ;;  %v5426_v12 = vld [vmem:[%s13485_s18 + $0xb0] sm:$0xff]  ;;  %v5427_v38 = vld [vmem:[%s13485_s18 + $0xb8] sm:$0xff] }
 0x628   : > { %8628 = vmatpush1.bf16.msra.mxu0 %v11690_v52  ;;  %8800 = vmatpush1.bf16.msra.mxu1 %v11692_v3  ;;  %v11738_v52 = vcombine.low %v5892_v42, %v5896_v47  ;;  %v11740_v3 = vcombine.low %v5893_v35, %v5897_v32  ;;  %v5430_v42 = vld [vmem:[%s13485_s18 + $0xd0] sm:$0xff]  ;;  %v5431_v35 = vld [vmem:[%s13485_s18 + $0xd8] sm:$0xff] }
 0x629   : > { %8629 = vmatprep.subr.bf16.mxu0 %v11699_v4  ;;  %8801 = vmatprep.subr.bf16.mxu1 %v11701_v46  ;;  %v11747_v4 = vcombine.high %v5900_v31, %v5904_v34  ;;  %v11749_v46 = vcombine.high %v5901_v40, %v5905_v0  ;;  %v5434_v47 = vld [vmem:[%s13485_s18 + $0xf0] sm:$0xff]  ;;  %v5435_v32 = vld [vmem:[%s13485_s18 + $0xf8] sm:$0xff] }
 0x62c   : > { %8630 = vmatpush1.bf16.msra.mxu0 %v11698_v22  ;;  %8802 = vmatpush1.bf16.msra.mxu1 %v11700_v25  ;;  %v11746_v22 = vcombine.low %v5900_v31, %v5904_v34  ;;  %v11748_v25 = vcombine.low %v5901_v40, %v5905_v0  ;;  %v5442_v31 = vld [vmem:[%s13485_s18 + $0x130] sm:$0xff]  ;;  %v5439_v34 = vld [vmem:[%s13485_s18 + $0x118] sm:$0xff]  ;;  %v11278_v0 = vcombine.low %v5430_v42, %v5434_v47 }
 0x62d   : > { %8631 = vmatprep.subr.bf16.mxu0 %v11707_v28  ;;  %8803 = vmatprep.subr.bf16.mxu1 %v11709_v5  ;;  %v11755_v28 = vcombine.high %v5908_v60, %v5912_v20  ;;  %v11757_v5 = vcombine.high %v5909_v21, %v5913_v27  ;;  %v5443_v40 = vld [vmem:[%s13485_s18 + $0x138] sm:$0xff] }
 0x630   : > { %8632 = vmatpush1.bf16.msra.mxu0 %v11706_v50  ;;  %8804 = vmatpush1.bf16.msra.mxu1 %v11708_v57  ;;  %v11754_v50 = vcombine.low %v5908_v60, %v5912_v20  ;;  %v11756_v57 = vcombine.low %v5909_v21, %v5913_v27  ;;  %v5450_v60 = vld [vmem:[%s13485_s18 + $0x170] sm:$0xff]  ;;  %v5447_v20 = vld [vmem:[%s13485_s18 + $0x158] sm:$0xff] }
 0x631   : > { %8633 = vmatprep.subr.bf16.mxu0 %v11715_v61  ;;  %8805 = vmatprep.subr.bf16.mxu1 %v11717_v62  ;;  %v11255_v61 = vcombine.high %v5406_v7, %v5410_v45  ;;  %v11257_v62 = vcombine.high %v5407_v48, %v5411_v49  ;;  %v5451_v21 = vld [vmem:[%s13485_s18 + $0x178] sm:$0xff] }
 0x634   : > { %8634 = vmatpush1.bf16.msra.mxu0 %v11714_v8  ;;  %8806 = vmatpush1.bf16.msra.mxu1 %v11716_v19  ;;  %v11254_v8 = vcombine.low %v5406_v7, %v5410_v45  ;;  %v11256_v19 = vcombine.low %v5407_v48, %v5411_v49  ;;  %v5458_v7 = vld [vmem:[%s13485_s18 + $0x1b0] sm:$0xff]  ;;  %v5455_v45 = vld [vmem:[%s13485_s18 + $0x198] sm:$0xff] }
 0x635   : > { %8635 = vmatprep.subr.bf16.mxu0 %v11723_v23  ;;  %8807 = vmatprep.subr.bf16.mxu1 %v11725_v10  ;;  %v11263_v23 = vcombine.high %v5414_v18, %v5418_v44  ;;  %v11265_v10 = vcombine.high %v5415_v63, %v5419_v6  ;;  %v5459_v48 = vld [vmem:[%s13485_s18 + $0x1b8] sm:$0xff] }
 0x638   : > { %8636 = vmatpush1.bf16.msra.mxu0 %v11722_v24  ;;  %8808 = vmatpush1.bf16.msra.mxu1 %v11724_v39  ;;  %v11262_v24 = vcombine.low %v5414_v18, %v5418_v44  ;;  %v11264_v39 = vcombine.low %v5415_v63, %v5419_v6  ;;  %v5466_v18 = vld [vmem:[%s13485_s18 + $0x1f0] sm:$0xff]  ;;  %v5463_v44 = vld [vmem:[%s13485_s18 + $0x1d8] sm:$0xff] }
 0x639   : > { %8637 = vmatprep.subr.bf16.mxu0 %v11731_v26  ;;  %8809 = vmatprep.subr.bf16.mxu1 %v11733_v16  ;;  %v11271_v26 = vcombine.high %v5422_v11, %v5426_v12  ;;  %v11273_v16 = vcombine.high %v5423_v13, %v5427_v38  ;;  %v5467_v63 = vld [vmem:[%s13485_s18 + $0x1f8] sm:$0xff] }
 0x63c   : > { %8638 = vmatpush1.bf16.msra.mxu0 %v11730_v37  ;;  %8810 = vmatpush1.bf16.msra.mxu1 %v11732_v58  ;;  %v11270_v37 = vcombine.low %v5422_v11, %v5426_v12  ;;  %v11272_v58 = vcombine.low %v5423_v13, %v5427_v38  ;;  %v5474_v11 = vld [vmem:[%s13485_s18 + $0x230] sm:$0xff]  ;;  %v5471_v12 = vld [vmem:[%s13485_s18 + $0x218] sm:$0xff] }
 0x63d   : > { %8639 = vmatprep.subr.bf16.mxu0 %v11739_v41  ;;  %8811 = vmatprep.subr.bf16.mxu1 %v11741_v43  ;;  %v11281_v41 = vcombine.high %v5431_v35, %v5435_v32  ;;  %v5438_v43 = vld [vmem:[%s13485_s18 + $0x110] sm:$0xff]  ;;  %v5475_v13 = vld [vmem:[%s13485_s18 + $0x238] sm:$0xff] }
 0x63e   : > { %v11286_v27 = vcombine.low %v5438_v43, %v5442_v31 }
 0x640   : > { %8640 = vmatpush1.bf16.msra.mxu0 %v11738_v52  ;;  %8812 = vmatpush1.bf16.msra.mxu1 %v11740_v3  ;;  %v11280_v52 = vcombine.low %v5431_v35, %v5435_v32  ;;  %v11287_v3 = vcombine.high %v5438_v43, %v5442_v31  ;;  %v5483_v35 = vld [vmem:[%s13485_s18 + $0x278] sm:$0xff]  ;;  %v5490_v43 = vld [vmem:[%s13485_s18 + $0x2b0] sm:$0xff] }
 0x641   : > { %8641 = vmatprep.subr.bf16.mxu0 %v11747_v4  ;;  %8813 = vmatprep.subr.bf16.mxu1 %v11749_v46  ;;  %v11289_v4 = vcombine.high %v5439_v34, %v5443_v40  ;;  %v5446_v46 = vld [vmem:[%s13485_s18 + $0x150] sm:$0xff]  ;;  %v5487_v31 = vld [vmem:[%s13485_s18 + $0x298] sm:$0xff] }
 0x642   : > { %v11294_v49 = vcombine.low %v5446_v46, %v5450_v60 }
 0x644   : > { %8642 = vmatpush1.bf16.msra.mxu0 %v11746_v22  ;;  %8814 = vmatpush1.bf16.msra.mxu1 %v11748_v25  ;;  %v11288_v22 = vcombine.low %v5439_v34, %v5443_v40  ;;  %v11295_v25 = vcombine.high %v5446_v46, %v5450_v60  ;;  %v5491_v34 = vld [vmem:[%s13485_s18 + $0x2b8] sm:$0xff]  ;;  %v5498_v46 = vld [vmem:[%s13485_s18 + $0x2f0] sm:$0xff] }
 0x645   : > { %8643 = vmatprep.subr.bf16.mxu0 %v11755_v28  ;;  %8815 = vmatprep.subr.bf16.mxu1 %v11757_v5  ;;  %v11297_v28 = vcombine.high %v5447_v20, %v5451_v21  ;;  %v5454_v5 = vld [vmem:[%s13485_s18 + $0x190] sm:$0xff]  ;;  %v5495_v60 = vld [vmem:[%s13485_s18 + $0x2d8] sm:$0xff] }
 0x646   : > { %v11302_v6 = vcombine.low %v5454_v5, %v5458_v7 }
 0x648   : > { %8644 = vmatpush1.bf16.msra.mxu0 %v11754_v50  ;;  %8816 = vmatpush1.bf16.msra.mxu1 %v11756_v57  ;;  %v11296_v50 = vcombine.low %v5447_v20, %v5451_v21  ;;  %v11303_v57 = vcombine.high %v5454_v5, %v5458_v7  ;;  %v5499_v20 = vld [vmem:[%s13485_s18 + $0x2f8] sm:$0xff]  ;;  %v5506_v5 = vld [vmem:[%s13485_s18 + $0x330] sm:$0xff] }
 0x649   : > { %8828 = vmatprep.subr.bf16.mxu0 %v11255_v61  ;;  %9000 = vmatprep.subr.bf16.mxu1 %v11257_v62  ;;  %v11305_v61 = vcombine.high %v5455_v45, %v5459_v48  ;;  %v5462_v62 = vld [vmem:[%s13485_s18 + $0x1d0] sm:$0xff]  ;;  %v5503_v7 = vld [vmem:[%s13485_s18 + $0x318] sm:$0xff] }
 0x64a   : > { %v11310_v38 = vcombine.low %v5462_v62, %v5466_v18 }
 0x64b   : > { %8646 = vmatmul.mubr.bf16.vlgmr.msra.gmra.mrb[8].mxu0 %v14497_v29  ;;  %8818 = vmatmul.mubr.bf16.vlgmr.msra.gmra.mrb[8].mxu1 %v14497_v29 }
 0x64c   : > { %8829 = vmatpush1.bf16.msra.mxu0 %v11254_v8  ;;  %8860 = vmatprep.mubr.bf16.mxu0 %v14223_v36  ;;  %v11304_v8 = vcombine.low %v5455_v45, %v5459_v48  ;;  %v5507_v45 = vld [vmem:[%s13485_s18 + $0x338] sm:$0xff] }
 0x64d   : > { %9001 = vmatpush1.bf16.msra.mxu1 %v11256_v19  ;;  %9032 = vmatprep.mubr.bf16.mxu1 %v14223_v36  ;;  %v11279_v36 = vcombine.high %v5430_v42, %v5434_v47  ;;  %v11311_v19 = vcombine.high %v5462_v62, %v5466_v18  ;;  %v5482_v42 = vld [vmem:[%s13485_s18 + $0x270] sm:$0xff]  ;;  %v5479_v47 = vld [vmem:[%s13485_s18 + $0x258] sm:$0xff] }
 0x64e   : > { %8830 = vmatprep.subr.bf16.mxu0 %v11263_v23  ;;  %9002 = vmatprep.subr.bf16.mxu1 %v11265_v10  ;;  %v11313_v23 = vcombine.high %v5463_v44, %v5467_v63  ;;  %v5470_v10 = vld [vmem:[%s13485_s18 + $0x210] sm:$0xff]  ;;  %v5511_v18 = vld [vmem:[%s13485_s18 + $0x358] sm:$0xff] }
 0x64f   : > { %v11318_v32 = vcombine.low %v5470_v10, %v5474_v11  ;;  %v5514_v62 = vld [vmem:[%s13485_s18 + $0x370] sm:$0xff] }
 0x650   : > { %8831 = vmatpush1.bf16.msra.mxu0 %v11262_v24  ;;  %v11312_v24 = vcombine.low %v5463_v44, %v5467_v63  ;;  %v5515_v44 = vld [vmem:[%s13485_s18 + $0x378] sm:$0xff] }
 0x651   : > { %9003 = vmatpush1.bf16.msra.mxu1 %v11264_v39  ;;  %8832 = vmatprep.subr.bf16.mxu0 %v11271_v26  ;;  %v11319_v39 = vcombine.high %v5470_v10, %v5474_v11  ;;  %v11321_v26 = vcombine.high %v5471_v12, %v5475_v13  ;;  %v5522_v10 = vld [vmem:[%s13485_s18 + $0x3b0] sm:$0xff]  ;;  %v5519_v11 = vld [vmem:[%s13485_s18 + $0x398] sm:$0xff] }
 0x652   : > { %9004 = vmatprep.subr.bf16.mxu1 %v11273_v16  ;;  %v5478_v16 = vld [vmem:[%s13485_s18 + $0x250] sm:$0xff] }
 0x653   : > { %v11326_v40 = vcombine.low %v5478_v16, %v5482_v42 }
 0x654   : > { %8833 = vmatpush1.bf16.msra.mxu0 %v11270_v37  ;;  %v11320_v37 = vcombine.low %v5471_v12, %v5475_v13  ;;  %v5523_v12 = vld [vmem:[%s13485_s18 + $0x3b8] sm:$0xff] }
 0x655   : > { %9005 = vmatpush1.bf16.msra.mxu1 %v11272_v58  ;;  %8834 = vmatprep.subr.bf16.mxu0 %v11279_v36  ;;  %v11327_v58 = vcombine.high %v5478_v16, %v5482_v42  ;;  %v11329_v36 = vcombine.high %v5479_v47, %v5483_v35  ;;  %v5530_v16 = vld [vmem:[%s13485_s18 + $0x3f0] sm:$0xff]  ;;  %v5527_v42 = vld [vmem:[%s13485_s18 + $0x3d8] sm:$0xff] }
 0x656   : > { %9006 = vmatprep.subr.bf16.mxu1 %v11281_v41  ;;  %v5486_v41 = vld [vmem:[%s13485_s18 + $0x290] sm:$0xff] }
 0x657   : > { %v11334_v21 = vcombine.low %v5486_v41, %v5490_v43 }
 0x658   : > { %8835 = vmatpush1.bf16.msra.mxu0 %v11278_v0  ;;  %v11328_v0 = vcombine.low %v5479_v47, %v5483_v35  ;;  %v5531_v47 = vld [vmem:[%s13485_s18 + $0x3f8] sm:$0xff] }
 0x659   : > { %9007 = vmatpush1.bf16.msra.mxu1 %v11280_v52  ;;  %8836 = vmatprep.subr.bf16.mxu0 %v11287_v3  ;;  %v11335_v52 = vcombine.high %v5486_v41, %v5490_v43  ;;  %v11337_v3 = vcombine.high %v5487_v31, %v5491_v34  ;;  %v5538_v41 = vld [vmem:[%s13485_s18 + $0x430] sm:$0xff]  ;;  %v5535_v43 = vld [vmem:[%s13485_s18 + $0x418] sm:$0xff] }
 0x65a   : > { %9008 = vmatprep.subr.bf16.mxu1 %v11289_v4  ;;  %v5494_v4 = vld [vmem:[%s13485_s18 + $0x2d0] sm:$0xff] }
 0x65b   : > { %v11342_v48 = vcombine.low %v5494_v4, %v5498_v46 }
 0x65c   : > { %8837 = vmatpush1.bf16.msra.mxu0 %v11286_v27  ;;  %v11336_v27 = vcombine.low %v5487_v31, %v5491_v34  ;;  %v5539_v31 = vld [vmem:[%s13485_s18 + $0x438] sm:$0xff] }
 0x65d   : > { %9009 = vmatpush1.bf16.msra.mxu1 %v11288_v22  ;;  %8838 = vmatprep.subr.bf16.mxu0 %v11295_v25  ;;  %v11343_v22 = vcombine.high %v5494_v4, %v5498_v46  ;;  %v11345_v25 = vcombine.high %v5495_v60, %v5499_v20  ;;  %v5546_v4 = vld [vmem:[%s13485_s18 + $0x470] sm:$0xff] }
 0x65e   : > { %9010 = vmatprep.subr.bf16.mxu1 %v11297_v28  ;;  %v5502_v28 = vld [vmem:[%s13485_s18 + $0x310] sm:$0xff] }
 0x65f   : > { %v11350_v63 = vcombine.low %v5502_v28, %v5506_v5 }
 0x660   : > { %8839 = vmatpush1.bf16.msra.mxu0 %v11294_v49  ;;  %v11344_v49 = vcombine.low %v5495_v60, %v5499_v20  ;;  %v5543_v60 = vld [vmem:[%s13485_s18 + $0x458] sm:$0xff] }
 0x661   : > { %9011 = vmatpush1.bf16.msra.mxu1 %v11296_v50  ;;  %8840 = vmatprep.subr.bf16.mxu0 %v11303_v57  ;;  %v11351_v50 = vcombine.high %v5502_v28, %v5506_v5  ;;  %v11353_v57 = vcombine.high %v5503_v7, %v5507_v45  ;;  %v5547_v20 = vld [vmem:[%s13485_s18 + $0x478] sm:$0xff] }
 0x662   : > { %9012 = vmatprep.subr.bf16.mxu1 %v11305_v61  ;;  %v5510_v61 = vld [vmem:[%s13485_s18 + $0x350] sm:$0xff]  ;;  %v11393_v28 = vcombine.high %v5543_v60, %v5547_v20  ;;  %v5551_v5 = vld [vmem:[%s13485_s18 + $0x498] sm:$0xff] }
 0x663   : > { %v11358_v13 = vcombine.low %v5510_v61, %v5514_v62 }
 0x664   : > { %8841 = vmatpush1.bf16.msra.mxu0 %v11302_v6  ;;  %v11352_v6 = vcombine.low %v5503_v7, %v5507_v45  ;;  %v5555_v7 = vld [vmem:[%s13485_s18 + $0x4b8] sm:$0xff] }
 0x665   : > { %9013 = vmatpush1.bf16.msra.mxu1 %v11304_v8  ;;  %8842 = vmatprep.subr.bf16.mxu0 %v11311_v19  ;;  %v11359_v8 = vcombine.high %v5510_v61, %v5514_v62  ;;  %v11361_v19 = vcombine.high %v5511_v18, %v5515_v44  ;;  %v5562_v61 = vld [vmem:[%s13485_s18 + $0x4f0] sm:$0xff]  ;;  %v5559_v62 = vld [vmem:[%s13485_s18 + $0x4d8] sm:$0xff] }
 0x666   : > { %9014 = vmatprep.subr.bf16.mxu1 %v11313_v23  ;;  %v5518_v23 = vld [vmem:[%s13485_s18 + $0x390] sm:$0xff] }
 0x667   : > { %v11366_v35 = vcombine.low %v5518_v23, %v5522_v10 }
 0x668   : > { %8843 = vmatpush1.bf16.msra.mxu0 %v11310_v38  ;;  %v11360_v38 = vcombine.low %v5511_v18, %v5515_v44  ;;  %v11400_v44 = vcombine.low %v5551_v5, %v5555_v7 }
 0x669   : > { %9015 = vmatpush1.bf16.msra.mxu1 %v11312_v24  ;;  %8844 = vmatprep.subr.bf16.mxu0 %v11319_v39  ;;  %v11367_v24 = vcombine.high %v5518_v23, %v5522_v10  ;;  %v11369_v39 = vcombine.high %v5519_v11, %v5523_v12  ;;  %v5571_v23 = vld [vmem:[%s13485_s18 + $0x538] sm:$0xff] }
 0x66a   : > { %9016 = vmatprep.subr.bf16.mxu1 %v11321_v26  ;;  %v5526_v26 = vld [vmem:[%s13485_s18 + $0x3d0] sm:$0xff] }
 0x66b   : > { %v11374_v34 = vcombine.low %v5526_v26, %v5530_v16 }
 0x66c   : > { %8845 = vmatpush1.bf16.msra.mxu0 %v11318_v32  ;;  %v11368_v32 = vcombine.low %v5519_v11, %v5523_v12 }
 0x66d   : > { %9017 = vmatpush1.bf16.msra.mxu1 %v11320_v37  ;;  %8846 = vmatprep.subr.bf16.mxu0 %v11327_v58  ;;  %v11375_v37 = vcombine.high %v5526_v26, %v5530_v16  ;;  %v11377_v58 = vcombine.high %v5527_v42, %v5531_v47  ;;  %v5579_v26 = vld [vmem:[%s13485_s18 + $0x578] sm:$0xff] }
 0x66e   : > { %9018 = vmatprep.subr.bf16.mxu1 %v11329_v36  ;;  %v5534_v36 = vld [vmem:[%s13485_s18 + $0x410] sm:$0xff] }
 0x66f   : > { %v11382_v46 = vcombine.low %v5534_v36, %v5538_v41 }
 0x670   : > { %8847 = vmatpush1.bf16.msra.mxu0 %v11326_v40  ;;  %v11376_v40 = vcombine.low %v5527_v42, %v5531_v47 }
 0x671   : > { %9019 = vmatpush1.bf16.msra.mxu1 %v11328_v0  ;;  %8848 = vmatprep.subr.bf16.mxu0 %v11335_v52  ;;  %v11383_v0 = vcombine.high %v5534_v36, %v5538_v41  ;;  %v11385_v52 = vcombine.high %v5535_v43, %v5539_v31  ;;  %v5587_v36 = vld [vmem:[%s13485_s18 + $0x5b8] sm:$0xff] }
 0x672   : > { %9020 = vmatprep.subr.bf16.mxu1 %v11337_v3  ;;  %v5542_v3 = vld [vmem:[%s13485_s18 + $0x450] sm:$0xff] }
 0x673   : > { %v11390_v45 = vcombine.low %v5542_v3, %v5546_v4 }
 0x674   : > { %8849 = vmatpush1.bf16.msra.mxu0 %v11334_v21  ;;  %v11384_v21 = vcombine.low %v5535_v43, %v5539_v31 }
 0x675   : > { %9021 = vmatpush1.bf16.msra.mxu1 %v11336_v27  ;;  %8850 = vmatprep.subr.bf16.mxu0 %v11343_v22  ;;  %v11391_v27 = vcombine.high %v5542_v3, %v5546_v4  ;;  %v5550_v22 = vld [vmem:[%s13485_s18 + $0x490] sm:$0xff]  ;;  %v5595_v3 = vld [vmem:[%s13485_s18 + $0x5f8] sm:$0xff] }
 0x676   : > { %9022 = vmatprep.subr.bf16.mxu1 %v11345_v25  ;;  %v5554_v25 = vld [vmem:[%s13485_s18 + $0x4b0] sm:$0xff] }
 0x677   : > { %v11398_v18 = vcombine.low %v5550_v22, %v5554_v25 }
 0x678   : > { %8851 = vmatpush1.bf16.msra.mxu0 %v11342_v48  ;;  %v11392_v48 = vcombine.low %v5543_v60, %v5547_v20 }
 0x679   : > { %9023 = vmatpush1.bf16.msra.mxu1 %v11344_v49  ;;  %8852 = vmatprep.subr.bf16.mxu0 %v11351_v50  ;;  %v11399_v49 = vcombine.high %v5550_v22, %v5554_v25  ;;  %v11401_v50 = vcombine.high %v5551_v5, %v5555_v7  ;;  %v5599_v22 = vld [vmem:[%s13485_s18 + $0x618] sm:$0xff] }
 0x67a   : > { %9024 = vmatprep.subr.bf16.mxu1 %v11353_v57  ;;  %v5558_v57 = vld [vmem:[%s13485_s18 + $0x4d0] sm:$0xff]  ;;  %v5603_v25 = vld [vmem:[%s13485_s18 + $0x638] sm:$0xff] }
 0x67b   : > { %v11406_v10 = vcombine.low %v5558_v57, %v5562_v61 }
 0x67c   : > { %8853 = vmatpush1.bf16.msra.mxu0 %v11350_v63  ;;  %v11407_v63 = vcombine.high %v5558_v57, %v5562_v61  ;;  %v5611_v57 = vld [vmem:[%s13485_s18 + $0x678] sm:$0xff] }
 0x67d   : > { %9025 = vmatpush1.bf16.msra.mxu1 %v11352_v6  ;;  %8854 = vmatprep.subr.bf16.mxu0 %v11359_v8  ;;  %v5566_v6 = vld [vmem:[%s13485_s18 + $0x510] sm:$0xff] }
 0x67e   : > { %9026 = vmatprep.subr.bf16.mxu1 %v11361_v19  ;;  %v5570_v8 = vld [vmem:[%s13485_s18 + $0x530] sm:$0xff]  ;;  %v5567_v19 = vld [vmem:[%s13485_s18 + $0x518] sm:$0xff] }
 0x67f   : > { %v11415_v12 = vcombine.high %v5566_v6, %v5570_v8  ;;  %v11414_v16 = vcombine.low %v5566_v6, %v5570_v8  ;;  %v11416_v42 = vcombine.low %v5567_v19, %v5571_v23  ;;  %v5619_v6 = vld [vmem:[%s13485_s18 + $0x6b8] sm:$0xff] }
 0x680   : > { %8855 = vmatpush1.bf16.msra.mxu0 %v11358_v13  ;;  %v11417_v13 = vcombine.high %v5567_v19, %v5571_v23 }
 0x681   : > { %9027 = vmatpush1.bf16.msra.mxu1 %v11360_v38  ;;  %8856 = vmatprep.subr.bf16.mxu0 %v11367_v24  ;;  %v5574_v38 = vld [vmem:[%s13485_s18 + $0x550] sm:$0xff] }
 0x682   : > { %9028 = vmatprep.subr.bf16.mxu1 %v11369_v39  ;;  %v5578_v24 = vld [vmem:[%s13485_s18 + $0x570] sm:$0xff]  ;;  %v5575_v39 = vld [vmem:[%s13485_s18 + $0x558] sm:$0xff] }
 0x683   : > { %v11423_v47 = vcombine.high %v5574_v38, %v5578_v24  ;;  %v11422_v41 = vcombine.low %v5574_v38, %v5578_v24  ;;  %v11424_v43 = vcombine.low %v5575_v39, %v5579_v26  ;;  %v5627_v38 = vld [vmem:[%s13485_s18 + $0x6f8] sm:$0xff] }
 0x684   : > { %8857 = vmatpush1.bf16.msra.mxu0 %v11366_v35  ;;  %v11425_v35 = vcombine.high %v5575_v39, %v5579_v26 }
 0x685   : > { %9029 = vmatpush1.bf16.msra.mxu1 %v11368_v32  ;;  %8858 = vmatprep.subr.bf16.mxu0 %v11375_v37  ;;  %v5582_v32 = vld [vmem:[%s13485_s18 + $0x590] sm:$0xff] }
 0x686   : > { %9030 = vmatprep.subr.bf16.mxu1 %v11377_v58  ;;  %v5586_v37 = vld [vmem:[%s13485_s18 + $0x5b0] sm:$0xff]  ;;  %v5583_v58 = vld [vmem:[%s13485_s18 + $0x598] sm:$0xff] }
 0x687   : > { %v11431_v31 = vcombine.high %v5582_v32, %v5586_v37  ;;  %v11430_v4 = vcombine.low %v5582_v32, %v5586_v37  ;;  %v5635_v32 = vld [vmem:[%s13485_s18 + $0x738] sm:$0xff] }
 0x688   : > { %8859 = vmatpush1.bf16.msra.mxu0 %v11374_v34  ;;  %v11433_v34 = vcombine.high %v5583_v58, %v5587_v36 }
 0x689   : > { %9031 = vmatpush1.bf16.msra.mxu1 %v11376_v40  ;;  %8871 = vmatprep.subr.bf16.mxu0 %v11383_v0  ;;  %v5590_v40 = vld [vmem:[%s13485_s18 + $0x5d0] sm:$0xff] }
 0x68a   : > { %9043 = vmatprep.subr.bf16.mxu1 %v11385_v52  ;;  %v5594_v0 = vld [vmem:[%s13485_s18 + $0x5f0] sm:$0xff]  ;;  %v5591_v52 = vld [vmem:[%s13485_s18 + $0x5d8] sm:$0xff] }
 0x68b   : > { %8861 = vmatmul.mubr.bf16.vlgmr.msra.gmra.mrb[12].mxu0 %v14221_v33  ;;  %v11439_v60 = vcombine.high %v5590_v40, %v5594_v0  ;;  %v11441_v20 = vcombine.high %v5591_v52, %v5595_v3  ;;  %v11440_v5 = vcombine.low %v5591_v52, %v5595_v3 }
 0x68c   : > { %9033 = vmatmul.mubr.bf16.vlgmr.msra.gmra.mrb[12].mxu1 %v14221_v33  ;;  %8872 = vmatpush1.bf16.msra.mxu0 %v11382_v46  ;;  %v5563_v33 = vld [vmem:[%s13485_s18 + $0x4f8] sm:$0xff]  ;;  %v11432_v46 = vcombine.low %v5583_v58, %v5587_v36 }
 0x68d   : > { %8903 = vmatprep.mubr.bf16.mxu0 %v14231_v1  ;;  %9044 = vmatpush1.bf16.msra.mxu1 %v11384_v21  ;;  %v11408_v11 = vcombine.low %v5559_v62, %v5563_v33  ;;  %v5598_v21 = vld [vmem:[%s13485_s18 + $0x610] sm:$0xff] }
 0x68e   : > { %9075 = vmatprep.mubr.bf16.mxu1 %v14231_v1  ;;  %8873 = vmatprep.subr.bf16.mxu0 %v11391_v27  ;;  %v11409_v1 = vcombine.high %v5559_v62, %v5563_v33  ;;  %v5602_v27 = vld [vmem:[%s13485_s18 + $0x630] sm:$0xff]  ;;  %v11448_v62 = vcombine.low %v5599_v22, %v5603_v25 }
 0x68f   : > { %9045 = vmatprep.subr.bf16.mxu1 %v11393_v28  ;;  %v11438_v28 = vcombine.low %v5590_v40, %v5594_v0  ;;  %v11447_v7 = vcombine.high %v5598_v21, %v5602_v27  ;;  %v11446_v61 = vcombine.low %v5598_v21, %v5602_v27  ;;  %v5643_v40 = vld [vmem:[%s13485_s18 + $0x778] sm:$0xff] }
 0x690   : > { %8874 = vmatpush1.bf16.msra.mxu0 %v11390_v45  ;;  %v11449_v45 = vcombine.high %v5599_v22, %v5603_v25  ;;  %v5651_v21 = vld [vmem:[%s13485_s18 + $0x7b8] sm:$0xff] }
 0x691   : > { %9046 = vmatpush1.bf16.msra.mxu1 %v11392_v48  ;;  %8875 = vmatprep.subr.bf16.mxu0 %v11399_v49  ;;  %v5606_v48 = vld [vmem:[%s13485_s18 + $0x650] sm:$0xff] }
 0x692   : > { %9047 = vmatprep.subr.bf16.mxu1 %v11401_v50  ;;  %v5610_v49 = vld [vmem:[%s13485_s18 + $0x670] sm:$0xff]  ;;  %v5607_v50 = vld [vmem:[%s13485_s18 + $0x658] sm:$0xff] }
 0x693   : > { %v11455_v33 = vcombine.high %v5606_v48, %v5610_v49  ;;  %v11454_v8 = vcombine.low %v5606_v48, %v5610_v49  ;;  %v11456_v19 = vcombine.low %v5607_v50, %v5611_v57  ;;  %v5659_v48 = vld [vmem:[%s13485_s18 + $0x7f8] sm:$0xff] }
 0x694   : > { %8876 = vmatpush1.bf16.msra.mxu0 %v11398_v18  ;;  %v11457_v18 = vcombine.high %v5607_v50, %v5611_v57 }
 0x695   : > { %9048 = vmatpush1.bf16.msra.mxu1 %v11400_v44  ;;  %8877 = vmatprep.subr.bf16.mxu0 %v11407_v63  ;;  %v5614_v44 = vld [vmem:[%s13485_s18 + $0x690] sm:$0xff] }
 0x696   : > { %9049 = vmatprep.subr.bf16.mxu1 %v11409_v1  ;;  %v5618_v63 = vld [vmem:[%s13485_s18 + $0x6b0] sm:$0xff]  ;;  %v5615_v1 = vld [vmem:[%s13485_s18 + $0x698] sm:$0xff] }
 0x697   : > { %v11463_v23 = vcombine.high %v5614_v44, %v5618_v63  ;;  %v11462_v24 = vcombine.low %v5614_v44, %v5618_v63  ;;  %v11464_v39 = vcombine.low %v5615_v1, %v5619_v6  ;;  %v5667_v44 = vld [vmem:[%s13485_s18 + $0x838] sm:$0xff] }
 0x698   : > { %8878 = vmatpush1.bf16.msra.mxu0 %v11406_v10  ;;  %v11465_v10 = vcombine.high %v5615_v1, %v5619_v6 }
 0x699   : > { %9050 = vmatpush1.bf16.msra.mxu1 %v11408_v11  ;;  %8879 = vmatprep.subr.bf16.mxu0 %v11415_v12  ;;  %v5622_v11 = vld [vmem:[%s13485_s18 + $0x6d0] sm:$0xff] }
 0x69a   : > { %9051 = vmatprep.subr.bf16.mxu1 %v11417_v13  ;;  %v5626_v12 = vld [vmem:[%s13485_s18 + $0x6f0] sm:$0xff]  ;;  %v5623_v13 = vld [vmem:[%s13485_s18 + $0x6d8] sm:$0xff] }
 0x69b   : > { %v11471_v26 = vcombine.high %v5622_v11, %v5626_v12  ;;  %v11470_v37 = vcombine.low %v5622_v11, %v5626_v12  ;;  %v11472_v58 = vcombine.low %v5623_v13, %v5627_v38  ;;  %v5671_v11 = vld [vmem:[%s13485_s18 + $0x858] sm:$0xff] }
 0x69c   : > { %8880 = vmatpush1.bf16.msra.mxu0 %v11414_v16  ;;  %v11473_v16 = vcombine.high %v5623_v13, %v5627_v38  ;;  %v5675_v12 = vld [vmem:[%s13485_s18 + $0x878] sm:$0xff] }
 0x69d   : > { %9052 = vmatpush1.bf16.msra.mxu1 %v11416_v42  ;;  %8881 = vmatprep.subr.bf16.mxu0 %v11423_v47  ;;  %v5630_v42 = vld [vmem:[%s13485_s18 + $0x710] sm:$0xff] }
 0x69e   : > { %9053 = vmatprep.subr.bf16.mxu1 %v11425_v35  ;;  %v5634_v47 = vld [vmem:[%s13485_s18 + $0x730] sm:$0xff]  ;;  %v5631_v35 = vld [vmem:[%s13485_s18 + $0x718] sm:$0xff] }
 0x69f   : > { %v11479_v36 = vcombine.high %v5630_v42, %v5634_v47  ;;  %v11478_v0 = vcombine.low %v5630_v42, %v5634_v47  ;;  %v11480_v52 = vcombine.low %v5631_v35, %v5635_v32  ;;  %v5683_v42 = vld [vmem:[%s13485_s18 + $0x8b8] sm:$0xff] }
 0x6a0   : > { %8882 = vmatpush1.bf16.msra.mxu0 %v11422_v41  ;;  %v11481_v41 = vcombine.high %v5631_v35, %v5635_v32  ;;  %v11520_v35 = vcombine.low %v5671_v11, %v5675_v12 }
 0x6a1   : > { %9054 = vmatpush1.bf16.msra.mxu1 %v11424_v43  ;;  %8883 = vmatprep.subr.bf16.mxu0 %v11431_v31  ;;  %v5638_v43 = vld [vmem:[%s13485_s18 + $0x750] sm:$0xff] }
 0x6a2   : > { %9055 = vmatprep.subr.bf16.mxu1 %v11433_v34  ;;  %v5642_v31 = vld [vmem:[%s13485_s18 + $0x770] sm:$0xff]  ;;  %v5639_v34 = vld [vmem:[%s13485_s18 + $0x758] sm:$0xff] }
 0x6a3   : > { %v11487_v3 = vcombine.high %v5638_v43, %v5642_v31  ;;  %v11486_v27 = vcombine.low %v5638_v43, %v5642_v31  ;;  %v11488_v22 = vcombine.low %v5639_v34, %v5643_v40 }
 0x6a4   : > { %8884 = vmatpush1.bf16.msra.mxu0 %v11430_v4  ;;  %v11489_v4 = vcombine.high %v5639_v34, %v5643_v40  ;;  %v5694_v40 = vld [vmem:[%s13485_s18 + $0x910] sm:$0xff] }
 0x6a5   : > { %9056 = vmatpush1.bf16.msra.mxu1 %v11432_v46  ;;  %8885 = vmatprep.subr.bf16.mxu0 %v11439_v60  ;;  %v5646_v46 = vld [vmem:[%s13485_s18 + $0x790] sm:$0xff] }
 0x6a6   : > { %9057 = vmatprep.subr.bf16.mxu1 %v11441_v20  ;;  %v5650_v60 = vld [vmem:[%s13485_s18 + $0x7b0] sm:$0xff]  ;;  %v5647_v20 = vld [vmem:[%s13485_s18 + $0x798] sm:$0xff] }
 0x6a7   : > { %v11495_v25 = vcombine.high %v5646_v46, %v5650_v60  ;;  %v11494_v49 = vcombine.low %v5646_v46, %v5650_v60  ;;  %v11496_v50 = vcombine.low %v5647_v20, %v5651_v21 }
 0x6a8   : > { %8886 = vmatpush1.bf16.msra.mxu0 %v11438_v28  ;;  %v11497_v28 = vcombine.high %v5647_v20, %v5651_v21  ;;  %v5702_v21 = vld [vmem:[%s13485_s18 + $0x950] sm:$0xff] }
 0x6a9   : > { %9058 = vmatpush1.bf16.msra.mxu1 %v11440_v5  ;;  %8887 = vmatprep.subr.bf16.mxu0 %v11447_v7  ;;  %v5654_v5 = vld [vmem:[%s13485_s18 + $0x7d0] sm:$0xff] }
 0x6aa   : > { %9059 = vmatprep.subr.bf16.mxu1 %v11449_v45  ;;  %v5658_v7 = vld [vmem:[%s13485_s18 + $0x7f0] sm:$0xff]  ;;  %v5655_v45 = vld [vmem:[%s13485_s18 + $0x7d8] sm:$0xff] }
 0x6ab   : > { %v11503_v57 = vcombine.high %v5654_v5, %v5658_v7  ;;  %v11502_v63 = vcombine.low %v5654_v5, %v5658_v7  ;;  %v11504_v1 = vcombine.low %v5655_v45, %v5659_v48 }
 0x6ac   : > { %8888 = vmatpush1.bf16.msra.mxu0 %v11446_v61  ;;  %v11505_v61 = vcombine.high %v5655_v45, %v5659_v48  ;;  %v5710_v48 = vld [vmem:[%s13485_s18 + $0x990] sm:$0xff] }
 0x6ad   : > { %9060 = vmatpush1.bf16.msra.mxu1 %v11448_v62  ;;  %8889 = vmatprep.subr.bf16.mxu0 %v11455_v33  ;;  %v5662_v62 = vld [vmem:[%s13485_s18 + $0x810] sm:$0xff] }
 0x6ae   : > { %9061 = vmatprep.subr.bf16.mxu1 %v11457_v18  ;;  %v5666_v33 = vld [vmem:[%s13485_s18 + $0x830] sm:$0xff]  ;;  %v5663_v18 = vld [vmem:[%s13485_s18 + $0x818] sm:$0xff] }
 0x6af   : > { %v11511_v6 = vcombine.high %v5662_v62, %v5666_v33  ;;  %v11512_v13 = vcombine.low %v5663_v18, %v5667_v44 }
 0x6b0   : > { %8890 = vmatpush1.bf16.msra.mxu0 %v11454_v8  ;;  %v11513_v8 = vcombine.high %v5663_v18, %v5667_v44  ;;  %v5718_v44 = vld [vmem:[%s13485_s18 + $0x9d0] sm:$0xff] }
 0x6b1   : > { %9062 = vmatpush1.bf16.msra.mxu1 %v11456_v19  ;;  %8891 = vmatprep.subr.bf16.mxu0 %v11463_v23  ;;  %v5670_v19 = vld [vmem:[%s13485_s18 + $0x850] sm:$0xff] }
 0x6b2   : > { %9063 = vmatprep.subr.bf16.mxu1 %v11465_v10  ;;  %v5674_v23 = vld [vmem:[%s13485_s18 + $0x870] sm:$0xff]  ;;  %v11510_v10 = vcombine.low %v5662_v62, %v5666_v33 }
 0x6b3   : > { %v11519_v38 = vcombine.high %v5670_v19, %v5674_v23  ;;  %v11518_v47 = vcombine.low %v5670_v19, %v5674_v23 }
 0x6b4   : > { %8892 = vmatpush1.bf16.msra.mxu0 %v11462_v24  ;;  %v5678_v24 = vld [vmem:[%s13485_s18 + $0x890] sm:$0xff] }
 0x6b5   : > { %9064 = vmatpush1.bf16.msra.mxu1 %v11464_v39  ;;  %8893 = vmatprep.subr.bf16.mxu0 %v11471_v26  ;;  %v5682_v39 = vld [vmem:[%s13485_s18 + $0x8b0] sm:$0xff]  ;;  %v11521_v26 = vcombine.high %v5671_v11, %v5675_v12 }
 0x6b6   : > { %9065 = vmatprep.subr.bf16.mxu1 %v11473_v16  ;;  %v5679_v16 = vld [vmem:[%s13485_s18 + $0x898] sm:$0xff]  ;;  %v11527_v32 = vcombine.high %v5678_v24, %v5682_v39  ;;  %v11526_v43 = vcombine.low %v5678_v24, %v5682_v39  ;;  %v5726_v11 = vld [vmem:[%s13485_s18 + $0xa10] sm:$0xff] }
 0x6b7   : > { %v11528_v31 = vcombine.low %v5679_v16, %v5683_v42  ;;  %v5730_v12 = vld [vmem:[%s13485_s18 + $0xa30] sm:$0xff] }
 0x6b8   : > { %8894 = vmatpush1.bf16.msra.mxu0 %v11470_v37  ;;  %v11529_v37 = vcombine.high %v5679_v16, %v5683_v42  ;;  %v5734_v42 = vld [vmem:[%s13485_s18 + $0xa50] sm:$0xff] }
 0x6b9   : > { %9066 = vmatpush1.bf16.msra.mxu1 %v11472_v58  ;;  %8895 = vmatprep.subr.bf16.mxu0 %v11479_v36  ;;  %v5686_v58 = vld [vmem:[%s13485_s18 + $0x8d0] sm:$0xff] }
 0x6ba   : > { %9067 = vmatprep.subr.bf16.mxu1 %v11481_v41  ;;  %v5690_v36 = vld [vmem:[%s13485_s18 + $0x8f0] sm:$0xff]  ;;  %v5687_v41 = vld [vmem:[%s13485_s18 + $0x8d8] sm:$0xff] }
 0x6bb   : > { %v11535_v34 = vcombine.high %v5686_v58, %v5690_v36 }
 0x6bc   : > { %8896 = vmatpush1.bf16.msra.mxu0 %v11478_v0  ;;  %v5698_v0 = vld [vmem:[%s13485_s18 + $0x930] sm:$0xff] }
 0x6bd   : > { %9068 = vmatpush1.bf16.msra.mxu1 %v11480_v52  ;;  %8897 = vmatprep.subr.bf16.mxu0 %v11487_v3  ;;  %v5695_v52 = vld [vmem:[%s13485_s18 + $0x918] sm:$0xff]  ;;  %v11543_v60 = vcombine.high %v5694_v40, %v5698_v0 }
 0x6be   : > { %9069 = vmatprep.subr.bf16.mxu1 %v11489_v4  ;;  %v5699_v3 = vld [vmem:[%s13485_s18 + $0x938] sm:$0xff]  ;;  %v11534_v4 = vcombine.low %v5686_v58, %v5690_v36 }
 0x6bf   : > { %v11545_v20 = vcombine.high %v5695_v52, %v5699_v3  ;;  %v11544_v5 = vcombine.low %v5695_v52, %v5699_v3  ;;  %v5750_v3 = vld [vmem:[%s13485_s18 + $0xad0] sm:$0xff] }
 0x6c0   : > { %8898 = vmatpush1.bf16.msra.mxu0 %v11486_v27  ;;  %v5706_v27 = vld [vmem:[%s13485_s18 + $0x970] sm:$0xff] }
 0x6c1   : > { %9070 = vmatpush1.bf16.msra.mxu1 %v11488_v22  ;;  %8899 = vmatprep.subr.bf16.mxu0 %v11495_v25  ;;  %v5703_v22 = vld [vmem:[%s13485_s18 + $0x958] sm:$0xff]  ;;  %v11551_v7 = vcombine.high %v5702_v21, %v5706_v27 }
 0x6c2   : > { %9071 = vmatprep.subr.bf16.mxu1 %v11497_v28  ;;  %v5707_v25 = vld [vmem:[%s13485_s18 + $0x978] sm:$0xff]  ;;  %v11542_v28 = vcombine.low %v5694_v40, %v5698_v0 }
 0x6c3   : > { %v11553_v45 = vcombine.high %v5703_v22, %v5707_v25  ;;  %v11552_v62 = vcombine.low %v5703_v22, %v5707_v25  ;;  %v5758_v25 = vld [vmem:[%s13485_s18 + $0xb10] sm:$0xff] }
 0x6c4   : > { %8900 = vmatpush1.bf16.msra.mxu0 %v11494_v49  ;;  %v5714_v49 = vld [vmem:[%s13485_s18 + $0x9b0] sm:$0xff] }
 0x6c5   : > { %9072 = vmatpush1.bf16.msra.mxu1 %v11496_v50  ;;  %8901 = vmatprep.subr.bf16.mxu0 %v11503_v57  ;;  %v5711_v50 = vld [vmem:[%s13485_s18 + $0x998] sm:$0xff]  ;;  %v11559_v33 = vcombine.high %v5710_v48, %v5714_v49 }
 0x6c6   : > { %9073 = vmatprep.subr.bf16.mxu1 %v11505_v61  ;;  %v5715_v57 = vld [vmem:[%s13485_s18 + $0x9b8] sm:$0xff]  ;;  %v11550_v61 = vcombine.low %v5702_v21, %v5706_v27 }
 0x6c7   : > { %v11561_v18 = vcombine.high %v5711_v50, %v5715_v57  ;;  %v11560_v19 = vcombine.low %v5711_v50, %v5715_v57  ;;  %v5766_v57 = vld [vmem:[%s13485_s18 + $0xb50] sm:$0xff] }
 0x6c8   : > { %8902 = vmatpush1.bf16.msra.mxu0 %v11502_v63  ;;  %v5722_v63 = vld [vmem:[%s13485_s18 + $0x9f0] sm:$0xff] }
 0x6c9   : > { %9074 = vmatpush1.bf16.msra.mxu1 %v11504_v1  ;;  %8914 = vmatprep.subr.bf16.mxu0 %v11511_v6  ;;  %v5719_v1 = vld [vmem:[%s13485_s18 + $0x9d8] sm:$0xff]  ;;  %v11567_v23 = vcombine.high %v5718_v44, %v5722_v63  ;;  %v11566_v24 = vcombine.low %v5718_v44, %v5722_v63 }
 0x6ca   : > { %9086 = vmatprep.subr.bf16.mxu1 %v11513_v8  ;;  %v5723_v6 = vld [vmem:[%s13485_s18 + $0x9f8] sm:$0xff]  ;;  %v11558_v8 = vcombine.low %v5710_v48, %v5714_v49 }
 0x6cb   : > { %8904 = vmatmul.mubr.bf16.vlgmr.msra.gmra.mrb[12].mxu0 %v14226_v59  ;;  %v11568_v39 = vcombine.low %v5719_v1, %v5723_v6 }
 0x6cc   : > { %9076 = vmatmul.mubr.bf16.vlgmr.msra.gmra.mrb[12].mxu1 %v14226_v59  ;;  %8915 = vmatpush1.bf16.msra.mxu0 %v11510_v10  ;;  %v5691_v59 = vld [vmem:[%s13485_s18 + $0x8f8] sm:$0xff]  ;;  %v11569_v10 = vcombine.high %v5719_v1, %v5723_v6  ;;  %v5774_v6 = vld [vmem:[%s13485_s18 + $0xb90] sm:$0xff] }
 0x6cd   : > { %8946 = vmatprep.mubr.bf16.mxu0 %v14499_v30  ;;  %9087 = vmatpush1.bf16.msra.mxu1 %v11512_v13  ;;  %v11536_v46 = vcombine.low %v5687_v41, %v5691_v59  ;;  %v5727_v13 = vld [vmem:[%s13485_s18 + $0xa18] sm:$0xff] }
 0x6ce   : > { %9118 = vmatprep.mubr.bf16.mxu1 %v14499_v30  ;;  %8916 = vmatprep.subr.bf16.mxu0 %v11519_v38  ;;  %v11537_v30 = vcombine.high %v5687_v41, %v5691_v59  ;;  %v5731_v38 = vld [vmem:[%s13485_s18 + $0xa38] sm:$0xff]  ;;  %v5742_v59 = vld [vmem:[%s13485_s18 + $0xa90] sm:$0xff] }
 0x6cf   : > { %9088 = vmatprep.subr.bf16.mxu1 %v11521_v26  ;;  %v11575_v26 = vcombine.high %v5726_v11, %v5730_v12  ;;  %v11577_v16 = vcombine.high %v5727_v13, %v5731_v38  ;;  %v11576_v58 = vcombine.low %v5727_v13, %v5731_v38  ;;  %v5782_v38 = vld [vmem:[%s13485_s18 + $0xbd0] sm:$0xff] }
 0x6d0   : > { %8917 = vmatpush1.bf16.msra.mxu0 %v11518_v47  ;;  %v5738_v47 = vld [vmem:[%s13485_s18 + $0xa70] sm:$0xff] }
 0x6d1   : > { %9089 = vmatpush1.bf16.msra.mxu1 %v11520_v35  ;;  %8918 = vmatprep.subr.bf16.mxu0 %v11527_v32  ;;  %v5735_v35 = vld [vmem:[%s13485_s18 + $0xa58] sm:$0xff]  ;;  %v11583_v36 = vcombine.high %v5734_v42, %v5738_v47 }
 0x6d2   : > { %9090 = vmatprep.subr.bf16.mxu1 %v11529_v37  ;;  %v5739_v32 = vld [vmem:[%s13485_s18 + $0xa78] sm:$0xff]  ;;  %v11574_v37 = vcombine.low %v5726_v11, %v5730_v12 }
 0x6d3   : > { %v11585_v41 = vcombine.high %v5735_v35, %v5739_v32  ;;  %v11584_v40 = vcombine.low %v5735_v35, %v5739_v32  ;;  %v5790_v32 = vld [vmem:[%s13485_s18 + $0xc10] sm:$0xff] }
 0x6d4   : > { %8919 = vmatpush1.bf16.msra.mxu0 %v11526_v43  ;;  %v5746_v43 = vld [vmem:[%s13485_s18 + $0xab0] sm:$0xff] }
 0x6d5   : > { %9091 = vmatpush1.bf16.msra.mxu1 %v11528_v31  ;;  %8920 = vmatprep.subr.bf16.mxu0 %v11535_v34  ;;  %v5743_v31 = vld [vmem:[%s13485_s18 + $0xa98] sm:$0xff]  ;;  %v11591_v0 = vcombine.high %v5742_v59, %v5746_v43 }
 0x6d6   : > { %9092 = vmatprep.subr.bf16.mxu1 %v11537_v30  ;;  %v5747_v34 = vld [vmem:[%s13485_s18 + $0xab8] sm:$0xff]  ;;  %v11582_v30 = vcombine.low %v5734_v42, %v5738_v47 }
 0x6d7   : > { %v11593_v52 = vcombine.high %v5743_v31, %v5747_v34  ;;  %v11592_v21 = vcombine.low %v5743_v31, %v5747_v34  ;;  %v5798_v34 = vld [vmem:[%s13485_s18 + $0xc50] sm:$0xff] }
 0x6d8   : > { %8921 = vmatpush1.bf16.msra.mxu0 %v11534_v4  ;;  %v5754_v4 = vld [vmem:[%s13485_s18 + $0xaf0] sm:$0xff] }
 0x6d9   : > { %9093 = vmatpush1.bf16.msra.mxu1 %v11536_v46  ;;  %8922 = vmatprep.subr.bf16.mxu0 %v11543_v60  ;;  %v5751_v46 = vld [vmem:[%s13485_s18 + $0xad8] sm:$0xff]  ;;  %v11599_v27 = vcombine.high %v5750_v3, %v5754_v4 }
 0x6da   : > { %9094 = vmatprep.subr.bf16.mxu1 %v11545_v20  ;;  %v5755_v60 = vld [vmem:[%s13485_s18 + $0xaf8] sm:$0xff]  ;;  %v11590_v20 = vcombine.low %v5742_v59, %v5746_v43 }
 0x6db   : > { %v11601_v22 = vcombine.high %v5751_v46, %v5755_v60  ;;  %v11600_v48 = vcombine.low %v5751_v46, %v5755_v60  ;;  %v5806_v46 = vld [vmem:[%s13485_s18 + $0xc90] sm:$0xff] }
 0x6dc   : > { %8923 = vmatpush1.bf16.msra.mxu0 %v11542_v28  ;;  %v5762_v28 = vld [vmem:[%s13485_s18 + $0xb30] sm:$0xff] }
 0x6dd   : > { %9095 = vmatpush1.bf16.msra.mxu1 %v11544_v5  ;;  %8924 = vmatprep.subr.bf16.mxu0 %v11551_v7  ;;  %v5759_v5 = vld [vmem:[%s13485_s18 + $0xb18] sm:$0xff]  ;;  %v11607_v49 = vcombine.high %v5758_v25, %v5762_v28  ;;  %v5810_v60 = vld [vmem:[%s13485_s18 + $0xcb0] sm:$0xff] }
 0x6de   : > { %9096 = vmatprep.subr.bf16.mxu1 %v11553_v45  ;;  %v5763_v7 = vld [vmem:[%s13485_s18 + $0xb38] sm:$0xff]  ;;  %v11598_v45 = vcombine.low %v5750_v3, %v5754_v4 }
 0x6df   : > { %v11609_v50 = vcombine.high %v5759_v5, %v5763_v7  ;;  %v11608_v44 = vcombine.low %v5759_v5, %v5763_v7  ;;  %v5814_v7 = vld [vmem:[%s13485_s18 + $0xcd0] sm:$0xff] }
 0x6e0   : > { %8925 = vmatpush1.bf16.msra.mxu0 %v11550_v61  ;;  %v5770_v61 = vld [vmem:[%s13485_s18 + $0xb70] sm:$0xff] }
 0x6e1   : > { %9097 = vmatpush1.bf16.msra.mxu1 %v11552_v62  ;;  %8926 = vmatprep.subr.bf16.mxu0 %v11559_v33  ;;  %v5767_v62 = vld [vmem:[%s13485_s18 + $0xb58] sm:$0xff]  ;;  %v11615_v63 = vcombine.high %v5766_v57, %v5770_v61 }
 0x6e2   : > { %9098 = vmatprep.subr.bf16.mxu1 %v11561_v18  ;;  %v5771_v33 = vld [vmem:[%s13485_s18 + $0xb78] sm:$0xff]  ;;  %v11606_v18 = vcombine.low %v5758_v25, %v5762_v28  ;;  %v11655_v28 = vcombine.high %v5806_v46, %v5810_v60 }
 0x6e3   : > { %v11617_v1 = vcombine.high %v5767_v62, %v5771_v33  ;;  %v11616_v11 = vcombine.low %v5767_v62, %v5771_v33  ;;  %v5826_v62 = vld [vmem:[%s13485_s18 + $0xd30] sm:$0xff]  ;;  %v5823_v33 = vld [vmem:[%s13485_s18 + $0xd18] sm:$0xff] }
 0x6e4   : > { %8927 = vmatpush1.bf16.msra.mxu0 %v11558_v8  ;;  %v5778_v8 = vld [vmem:[%s13485_s18 + $0xbb0] sm:$0xff] }
 0x6e5   : > { %9099 = vmatpush1.bf16.msra.mxu1 %v11560_v19  ;;  %8928 = vmatprep.subr.bf16.mxu0 %v11567_v23  ;;  %v5775_v19 = vld [vmem:[%s13485_s18 + $0xb98] sm:$0xff]  ;;  %v11623_v12 = vcombine.high %v5774_v6, %v5778_v8 }
 0x6e6   : > { %9100 = vmatprep.subr.bf16.mxu1 %v11569_v10  ;;  %v5779_v23 = vld [vmem:[%s13485_s18 + $0xbb8] sm:$0xff]  ;;  %v11614_v10 = vcombine.low %v5766_v57, %v5770_v61  ;;  %v5822_v61 = vld [vmem:[%s13485_s18 + $0xd10] sm:$0xff] }
 0x6e7   : > { %v11625_v13 = vcombine.high %v5775_v19, %v5779_v23  ;;  %v11624_v42 = vcombine.low %v5775_v19, %v5779_v23  ;;  %v5834_v19 = vld [vmem:[%s13485_s18 + $0xd70] sm:$0xff]  ;;  %v5831_v23 = vld [vmem:[%s13485_s18 + $0xd58] sm:$0xff] }
 0x6e8   : > { %8929 = vmatpush1.bf16.msra.mxu0 %v11566_v24  ;;  %v5786_v24 = vld [vmem:[%s13485_s18 + $0xbf0] sm:$0xff] }
 0x6e9   : > { %9101 = vmatpush1.bf16.msra.mxu1 %v11568_v39  ;;  %8930 = vmatprep.subr.bf16.mxu0 %v11575_v26  ;;  %v5783_v39 = vld [vmem:[%s13485_s18 + $0xbd8] sm:$0xff]  ;;  %v11631_v47 = vcombine.high %v5782_v38, %v5786_v24 }
 0x6ea   : > { %9102 = vmatprep.subr.bf16.mxu1 %v11577_v16  ;;  %v5787_v26 = vld [vmem:[%s13485_s18 + $0xbf8] sm:$0xff]  ;;  %v11622_v16 = vcombine.low %v5774_v6, %v5778_v8  ;;  %v5830_v8 = vld [vmem:[%s13485_s18 + $0xd50] sm:$0xff] }
 0x6eb   : > { %v11633_v35 = vcombine.high %v5783_v39, %v5787_v26  ;;  %v11632_v59 = vcombine.low %v5783_v39, %v5787_v26  ;;  %v5842_v39 = vld [vmem:[%s13485_s18 + $0xdb0] sm:$0xff]  ;;  %v5839_v26 = vld [vmem:[%s13485_s18 + $0xd98] sm:$0xff] }
 0x6ec   : > { %8931 = vmatpush1.bf16.msra.mxu0 %v11574_v37  ;;  %v5794_v37 = vld [vmem:[%s13485_s18 + $0xc30] sm:$0xff] }
 0x6ed   : > { %9103 = vmatpush1.bf16.msra.mxu1 %v11576_v58  ;;  %8932 = vmatprep.subr.bf16.mxu0 %v11583_v36  ;;  %v5791_v58 = vld [vmem:[%s13485_s18 + $0xc18] sm:$0xff]  ;;  %v11639_v43 = vcombine.high %v5790_v32, %v5794_v37 }
 0x6ee   : > { %9104 = vmatprep.subr.bf16.mxu1 %v11585_v41  ;;  %v5795_v36 = vld [vmem:[%s13485_s18 + $0xc38] sm:$0xff]  ;;  %v11630_v41 = vcombine.low %v5782_v38, %v5786_v24  ;;  %v5838_v24 = vld [vmem:[%s13485_s18 + $0xd90] sm:$0xff] }
 0x6ef   : > { %v11641_v31 = vcombine.high %v5791_v58, %v5795_v36  ;;  %v11640_v3 = vcombine.low %v5791_v58, %v5795_v36  ;;  %v5396_v36 = vld [vmem:[#allocation3 + $0x40] sm:$0xff] }
 0x6f0   : > { %8933 = vmatpush1.bf16.msra.mxu0 %v11582_v30  ;;  %v5802_v30 = vld [vmem:[%s13485_s18 + $0xc70] sm:$0xff] }
 0x6f1   : > { %9105 = vmatpush1.bf16.msra.mxu1 %v11584_v40  ;;  %8934 = vmatprep.subr.bf16.mxu0 %v11591_v0  ;;  %v11638_v40 = vcombine.low %v5790_v32, %v5794_v37  ;;  %v5799_v0 = vld [vmem:[%s13485_s18 + $0xc58] sm:$0xff]  ;;  %v11647_v4 = vcombine.high %v5798_v34, %v5802_v30  ;;  %v11678_v32 = vcombine.low %v5830_v8, %v5834_v19  ;;  %v5391_v37 = vld [vmem:[#allocation3 + $0x18] sm:$0xff] }
 0x6f2   : > { %9106 = vmatprep.subr.bf16.mxu1 %v11593_v52  ;;  %v5803_v52 = vld [vmem:[%s13485_s18 + $0xc78] sm:$0xff] }
 0x6f3   : > { %v11648_v25 = vcombine.low %v5799_v0, %v5803_v52 }
 0x6f4   : > { %8935 = vmatpush1.bf16.msra.mxu0 %v11590_v20  ;;  %v11649_v20 = vcombine.high %v5799_v0, %v5803_v52  ;;  %v5850_v0 = vld [vmem:[%s13485_s18 + $0xdf0] sm:$0xff] }
 0x6f5   : > { %9107 = vmatpush1.bf16.msra.mxu1 %v11592_v21  ;;  %8936 = vmatprep.subr.bf16.mxu0 %v11599_v27  ;;  %v5807_v21 = vld [vmem:[%s13485_s18 + $0xc98] sm:$0xff] }
 0x6f6   : > { %9108 = vmatprep.subr.bf16.mxu1 %v11601_v22  ;;  %v5811_v27 = vld [vmem:[%s13485_s18 + $0xcb8] sm:$0xff]  ;;  %v11646_v22 = vcombine.low %v5798_v34, %v5802_v30  ;;  %v5397_v34 = vld [vmem:[#allocation3 + $0x48] sm:$0xff] }
 0x6f7   : > { %v11657_v5 = vcombine.high %v5807_v21, %v5811_v27 }
 0x6f8   : > { %8937 = vmatpush1.bf16.msra.mxu0 %v11598_v45  ;;  %v5818_v45 = vld [vmem:[%s13485_s18 + $0xcf0] sm:$0xff] }
 0x6f9   : > { %9109 = vmatpush1.bf16.msra.mxu1 %v11600_v48  ;;  %8938 = vmatprep.subr.bf16.mxu0 %v11607_v49  ;;  %v5815_v48 = vld [vmem:[%s13485_s18 + $0xcd8] sm:$0xff]  ;;  %v11654_v49 = vcombine.low %v5806_v46, %v5810_v60  ;;  %v11663_v57 = vcombine.high %v5814_v7, %v5818_v45  ;;  %v5399_v60 = vld [vmem:[#allocation3 + $0x58] sm:$0xff] }
 0x6fa   : > { %9110 = vmatprep.subr.bf16.mxu1 %v11609_v50  ;;  %v11656_v50 = vcombine.low %v5807_v21, %v5811_v27  ;;  %v5851_v21 = vld [vmem:[%s13485_s18 + $0xdf8] sm:$0xff] }
 0x6fc   : > { %8939 = vmatpush1.bf16.msra.mxu0 %v11606_v18  ;;  %v5827_v18 = vld [vmem:[%s13485_s18 + $0xd38] sm:$0xff] }
 0x6fd   : > { %9111 = vmatpush1.bf16.msra.mxu1 %v11608_v44  ;;  %8940 = vmatprep.subr.bf16.mxu0 %v11615_v63  ;;  %v11662_v44 = vcombine.low %v5814_v7, %v5818_v45  ;;  %v11673_v6 = vcombine.high %v5823_v33, %v5827_v18 }
 0x6fe   : > { %9112 = vmatprep.subr.bf16.mxu1 %v11617_v1  ;;  %v11671_v1 = vcombine.high %v5822_v61, %v5826_v62 }
 0x700   : > { %8941 = vmatpush1.bf16.msra.mxu0 %v11614_v10  ;;  %v5835_v10 = vld [vmem:[%s13485_s18 + $0xd78] sm:$0xff] }
 0x701   : > { %9113 = vmatpush1.bf16.msra.mxu1 %v11616_v11  ;;  %8942 = vmatprep.subr.bf16.mxu0 %v11623_v12  ;;  %v11670_v11 = vcombine.low %v5822_v61, %v5826_v62  ;;  %v11672_v12 = vcombine.low %v5823_v33, %v5827_v18  ;;  %v11681_v38 = vcombine.high %v5831_v23, %v5835_v10  ;;  %v5854_v62 = vld [vmem:[%s13485_s18 + $0xe10] sm:$0xff]  ;;  %v5855_v18 = vld [vmem:[%s13485_s18 + $0xe18] sm:$0xff] }
 0x702   : > { %9114 = vmatprep.subr.bf16.mxu1 %v11625_v13  ;;  %v11679_v13 = vcombine.high %v5830_v8, %v5834_v19  ;;  %v11680_v58 = vcombine.low %v5831_v23, %v5835_v10  ;;  %v5858_v33 = vld [vmem:[%s13485_s18 + $0xe30] sm:$0xff]  ;;  %v5863_v10 = vld [vmem:[%s13485_s18 + $0xe58] sm:$0xff] }
 0x703   : > { %v5862_v19 = vld [vmem:[%s13485_s18 + $0xe50] sm:$0xff] }
 0x704   : > { %8943 = vmatpush1.bf16.msra.mxu0 %v11622_v16  ;;  %v5843_v16 = vld [vmem:[%s13485_s18 + $0xdb8] sm:$0xff]  ;;  %v5866_v23 = vld [vmem:[%s13485_s18 + $0xe70] sm:$0xff] }
 0x705   : > { %9115 = vmatpush1.bf16.msra.mxu1 %v11624_v42  ;;  %8944 = vmatprep.subr.bf16.mxu0 %v11631_v47  ;;  %v5388_v42 = vld [vmem:[#allocation3] sm:$0xff]  ;;  %v5390_v47 = vld [vmem:[#allocation3 + $0x10] sm:$0xff]  ;;  %v11689_v30 = vcombine.high %v5839_v26, %v5843_v16  ;;  %v11688_v7 = vcombine.low %v5839_v26, %v5843_v16  ;;  %v5874_v26 = vld [vmem:[%s13485_s18 + $0xeb0] sm:$0xff] }
 0x706   : > { %9116 = vmatprep.subr.bf16.mxu1 %v11633_v35  ;;  %v5389_v35 = vld [vmem:[#allocation3 + $0x8] sm:$0xff]  ;;  %v5871_v16 = vld [vmem:[%s13485_s18 + $0xe98] sm:$0xff] }
 0x708   : > { %8945 = vmatpush1.bf16.msra.mxu0 %v11630_v41  ;;  %v5398_v41 = vld [vmem:[#allocation3 + $0x50] sm:$0xff] }
 0x709   : > { %9117 = vmatpush1.bf16.msra.mxu1 %v11632_v59  ;;  %8957 = vmatprep.subr.bf16.mxu0 %v11639_v43  ;;  %v11687_v59 = vcombine.high %v5838_v24, %v5842_v39 }
 0x70a   : > { %9129 = vmatprep.subr.bf16.mxu1 %v11641_v31 }
 0x70b   : > { %8947 = vmatmul.mubr.bf16.vlgmr.msra.gmra.mrb[12].mxu0 %v14491_v2 }
 0x70c   : > { %9119 = vmatmul.mubr.bf16.vlgmr.msra.gmra.mrb[12].mxu1 %v14491_v2  ;;  %8958 = vmatpush1.bf16.msra.mxu0 %v11638_v40  ;;  %v5819_v2 = vld [vmem:[%s13485_s18 + $0xcf8] sm:$0xff]  ;;  %v5846_v40 = vld [vmem:[%s13485_s18 + $0xdd0] sm:$0xff] }
 0x70d   : > { %8989 = vmatprep.mubr.bf16.mxu0 %v14501_v51  ;;  %9130 = vmatpush1.bf16.msra.mxu1 %v11640_v3  ;;  %v11664_v63 = vcombine.low %v5815_v48, %v5819_v2 }
 0x70e   : > { %9161 = vmatprep.mubr.bf16.mxu1 %v14501_v51  ;;  %8959 = vmatprep.subr.bf16.mxu0 %v11647_v4  ;;  %v11665_v51 = vcombine.high %v5815_v48, %v5819_v2 }
 0x70f   : > { %9131 = vmatprep.subr.bf16.mxu1 %v11649_v20  ;;  %v5847_v20 = vld [vmem:[%s13485_s18 + $0xdd8] sm:$0xff] }
 0x710   : > { %8960 = vmatpush1.bf16.msra.mxu0 %v11646_v22  ;;  %v11697_v61 = vcombine.high %v5847_v20, %v5851_v21 }
 0x711   : > { %9132 = vmatpush1.bf16.msra.mxu1 %v11648_v25  ;;  %8961 = vmatprep.subr.bf16.mxu0 %v11655_v28 }
 0x712   : > { %9133 = vmatprep.subr.bf16.mxu1 %v11657_v5  ;;  %v11686_v5 = vcombine.low %v5838_v24, %v5842_v39  ;;  %v5870_v39 = vld [vmem:[%s13485_s18 + $0xe90] sm:$0xff] }
 0x714   : > { %8962 = vmatpush1.bf16.msra.mxu0 %v11654_v49 }
 0x715   : > { %9134 = vmatpush1.bf16.msra.mxu1 %v11656_v50  ;;  %8963 = vmatprep.subr.bf16.mxu0 %v11663_v57  ;;  %v11695_v50 = vcombine.high %v5846_v40, %v5850_v0 }
 0x716   : > { %9135 = vmatprep.subr.bf16.mxu1 %v11665_v51 }
 0x718   : > { %8964 = vmatpush1.bf16.msra.mxu0 %v11662_v44  ;;  %v5859_v44 = vld [vmem:[%s13485_s18 + $0xe38] sm:$0xff] }
 0x719   : > { %9136 = vmatpush1.bf16.msra.mxu1 %v11664_v63  ;;  %8965 = vmatprep.subr.bf16.mxu0 %v11671_v1  ;;  %v11694_v63 = vcombine.low %v5846_v40, %v5850_v0  ;;  %v11696_v1 = vcombine.low %v5847_v20, %v5851_v21  ;;  %v11705_v8 = vcombine.high %v5855_v18, %v5859_v44  ;;  %v5886_v40 = vld [vmem:[%s13485_s18 + $0xf10] sm:$0xff] }
 0x71a   : > { %9137 = vmatprep.subr.bf16.mxu1 %v11673_v6  ;;  %v11703_v6 = vcombine.high %v5854_v62, %v5858_v33  ;;  %v5890_v0 = vld [vmem:[%s13485_s18 + $0xf30] sm:$0xff] }
 0x71b   : > { %v5894_v21 = vld [vmem:[%s13485_s18 + $0xf50] sm:$0xff] }
 0x71c   : > { %8966 = vmatpush1.bf16.msra.mxu0 %v11670_v11  ;;  %v5867_v11 = vld [vmem:[%s13485_s18 + $0xe78] sm:$0xff] }
 0x71d   : > { %9138 = vmatpush1.bf16.msra.mxu1 %v11672_v12  ;;  %8967 = vmatprep.subr.bf16.mxu0 %v11679_v13  ;;  %v11702_v12 = vcombine.low %v5854_v62, %v5858_v33  ;;  %v11704_v13 = vcombine.low %v5855_v18, %v5859_v44  ;;  %v11713_v24 = vcombine.high %v5863_v10, %v5867_v11  ;;  %v5910_v33 = vld [vmem:[%s13485_s18 + $0xfd0] sm:$0xff]  ;;  %v5911_v44 = vld [vmem:[%s13485_s18 + $0xfd8] sm:$0xff] }
 0x71e   : > { %v8647_v43 = vpop.f32.mrb[8].mxu0  ;;  %v8819_v31 = vpop.f32.mrb[8].mxu1  ;;  %9139 = vmatprep.subr.bf16.mxu1 %v11681_v38  ;;  %v11711_v38 = vcombine.high %v5862_v19, %v5866_v23  ;;  %v5914_v18 = vld [vmem:[%s13485_s18 + $0xff0] sm:$0xff] }
 0x71f   : > { %v9172_v52 = vadd.f32 %v8647_v43, %v5388_v42  ;;  %v9174_v3 = vadd.f32 %v8819_v31, %v5390_v47  ;;  %v8649_v4 = vpop.f32.mrb[9].mxu0  ;;  %v8821_v46 = vpop.f32.mrb[9].mxu1  ;;  %v5875_v42 = vld [vmem:[%s13485_s18 + $0xeb8] sm:$0xff]  ;;  %v11710_v47 = vcombine.low %v5862_v19, %v5866_v23  ;;  %v11718_v43 = vcombine.low %v5870_v39, %v5874_v26 }
 0x720   : > { %v9173_v27 = vadd.f32 %v8649_v4, %v5389_v35  ;;  %v9175_v22 = vadd.f32 %v8821_v46, %v5391_v37  ;;  %v8651_v25 = vpop.f32.mrb[10].mxu0  ;;  %v8823_v28 = vpop.f32.mrb[10].mxu1  ;;  %8968 = vmatpush1.bf16.msra.mxu0 %v11678_v32  ;;  %v11712_v35 = vcombine.low %v5863_v10, %v5867_v11  ;;  %v11719_v32 = vcombine.high %v5870_v39, %v5874_v26  ;;  %v5392_v11 = vld [vmem:[#allocation3 + $0x20] sm:$0xff] }
 0x721   : > { %9188 = vst [vmem:[#allocation3] sm:$0xff] %v9172_v52  ;;  %9190 = vst [vmem:[#allocation3 + $0x10] sm:$0xff] %v9174_v3  ;;  %v9180_v45 = vadd.f32 %v8651_v25, %v5396_v36  ;;  %v9182_v48 = vadd.f32 %v8823_v28, %v5398_v41  ;;  %9140 = vmatpush1.bf16.msra.mxu1 %v11680_v58  ;;  %v8653_v2 = vpop.f32.mrb[11].mxu0  ;;  %v8825_v49 = vpop.f32.mrb[11].mxu1  ;;  %8969 = vmatprep.subr.bf16.mxu0 %v11687_v59  ;;  %v5878_v58 = vld [vmem:[%s13485_s18 + $0xed0] sm:$0xff]  ;;  %v5879_v41 = vld [vmem:[%s13485_s18 + $0xed8] sm:$0xff] }
 0x722   : > { %9189 = vst [vmem:[#allocation3 + $0x8] sm:$0xff] %v9173_v27  ;;  %9191 = vst [vmem:[#allocation3 + $0x18] sm:$0xff] %v9175_v22  ;;  %v9181_v57 = vadd.f32 %v8653_v2, %v5397_v34  ;;  %v9183_v51 = vadd.f32 %v8825_v49, %v5399_v60  ;;  %9141 = vmatprep.subr.bf16.mxu1 %v11689_v30  ;;  %v11721_v37 = vcombine.high %v5871_v16, %v5875_v42  ;;  %v5882_v36 = vld [vmem:[%s13485_s18 + $0xef0] sm:$0xff]  ;;  %v5883_v59 = vld [vmem:[%s13485_s18 + $0xef8] sm:$0xff] }
 0x723   : > { %9196 = vst [vmem:[#allocation3 + $0x40] sm:$0xff] %v9180_v45  ;;  %9198 = vst [vmem:[#allocation3 + $0x50] sm:$0xff] %v9182_v48  ;;  %v11720_v31 = vcombine.low %v5871_v16, %v5875_v42  ;;  %v11727_v34 = vcombine.high %v5878_v58, %v5882_v36  ;;  %v11729_v30 = vcombine.high %v5879_v41, %v5883_v59  ;;  %v5887_v52 = vld [vmem:[%s13485_s18 + $0xf18] sm:$0xff]  ;;  %v5898_v27 = vld [vmem:[%s13485_s18 + $0xf70] sm:$0xff] }
 0x724   : > { %9197 = vst [vmem:[#allocation3 + $0x48] sm:$0xff] %v9181_v57  ;;  %9199 = vst [vmem:[#allocation3 + $0x58] sm:$0xff] %v9183_v51  ;;  %8970 = vmatpush1.bf16.msra.mxu0 %v11686_v5  ;;  %v5891_v3 = vld [vmem:[%s13485_s18 + $0xf38] sm:$0xff]  ;;  %v11726_v4 = vcombine.low %v5878_v58, %v5882_v36  ;;  %v11728_v46 = vcombine.low %v5879_v41, %v5883_v59  ;;  %v11735_v60 = vcombine.high %v5886_v40, %v5890_v0  ;;  %v5902_v48 = vld [vmem:[%s13485_s18 + $0xf90] sm:$0xff] }
 0x725   : > { %9142 = vmatpush1.bf16.msra.mxu1 %v11688_v7  ;;  %8971 = vmatprep.subr.bf16.mxu0 %v11695_v50  ;;  %v11737_v20 = vcombine.high %v5887_v52, %v5891_v3  ;;  %v5895_v22 = vld [vmem:[%s13485_s18 + $0xf58] sm:$0xff]  ;;  %v11734_v28 = vcombine.low %v5886_v40, %v5890_v0  ;;  %v11736_v5 = vcombine.low %v5887_v52, %v5891_v3  ;;  %v5906_v2 = vld [vmem:[%s13485_s18 + $0xfb0] sm:$0xff] }
 0x726   : > { %9143 = vmatprep.subr.bf16.mxu1 %v11697_v61  ;;  %v5899_v25 = vld [vmem:[%s13485_s18 + $0xf78] sm:$0xff]  ;;  %v11743_v7 = vcombine.high %v5894_v21, %v5898_v27  ;;  %v11742_v57 = vcombine.low %v5894_v21, %v5898_v27  ;;  %v11751_v61 = vcombine.high %v5902_v48, %v5906_v2  ;;  %v11758_v23 = vcombine.low %v5910_v33, %v5914_v18  ;;  %v5403_v41 = vld [vmem:[#allocation3 + $0x78] sm:$0xff]  ;;  %v12289_v21 = vld [vmem:[#allocation22 + $0x8] sm:$0xff] (!%p11762_p6)  }
 0x727   : > { %v11745_v45 = vcombine.high %v5895_v22, %v5899_v25  ;;  %v5903_v49 = vld [vmem:[%s13485_s18 + $0xf98] sm:$0xff]  ;;  %v11744_v51 = vcombine.low %v5895_v22, %v5899_v25  ;;  %v12290_v27 = vld [vmem:[#allocation22 + $0x88] sm:$0xff] (!%p11762_p6)   ;;  %v12291_v22 = vld [vmem:[#allocation22 + $0x50] sm:$0xff] (!%p11762_p6)  }
 0x728   : > { %8972 = vmatpush1.bf16.msra.mxu0 %v11694_v63  ;;  %v5907_v50 = vld [vmem:[%s13485_s18 + $0xfb8] sm:$0xff]  ;;  %v12292_v25 = vld [vmem:[#allocation22 + $0xd0] sm:$0xff] (!%p11762_p6)  }
 0x729   : > { %9144 = vmatpush1.bf16.msra.mxu1 %v11696_v1  ;;  %8973 = vmatprep.subr.bf16.mxu0 %v11703_v6  ;;  %v11753_v62 = vcombine.high %v5903_v49, %v5907_v50  ;;  %v5915_v63 = vld [vmem:[%s13485_s18 + $0xff8] sm:$0xff]  ;;  %v11750_v1 = vcombine.low %v5902_v48, %v5906_v2  ;;  %v11752_v6 = vcombine.low %v5903_v49, %v5907_v50  ;;  %v12297_v48 = vld [vmem:[#allocation22 + $0x18] sm:$0xff] (!%p11762_p6)  }
 0x72a   : > { %9145 = vmatprep.subr.bf16.mxu1 %v11705_v8  ;;  %v11759_v8 = vcombine.high %v5910_v33, %v5914_v18  ;;  %v11761_v19 = vcombine.high %v5911_v44, %v5915_v63  ;;  %v11760_v10 = vcombine.low %v5911_v44, %v5915_v63  ;;  %v5400_v39 = vld [vmem:[#allocation3 + $0x60] sm:$0xff]  ;;  %v12298_v2 = vld [vmem:[#allocation22 + $0x98] sm:$0xff] (!%p11762_p6)   ;;  %v12305_v33 = vld [vmem:[#allocation22 + $0x28] sm:$0xff] (!%p11762_p6)  }
 0x72b   : > { %v12283_v52 = vld [vmem:[#allocation22 + $0x40] sm:$0xff] (!%p11762_p6)   ;;  %v12306_v18 = vld [vmem:[#allocation22 + $0xa8] sm:$0xff] (!%p11762_p6)   ;;  %v12307_v44 = vld [vmem:[#allocation22 + $0x70] sm:$0xff] (!%p11762_p6)  }
 0x72c   : > { %8974 = vmatpush1.bf16.msra.mxu0 %v11702_v12  ;;  %v5394_v12 = vld [vmem:[#allocation3 + $0x30] sm:$0xff]  ;;  %v12284_v3 = vld [vmem:[#allocation22 + $0xc0] sm:$0xff] (!%p11762_p6)  }
 0x72d   : > { %9146 = vmatpush1.bf16.msra.mxu1 %v11704_v13  ;;  %8975 = vmatprep.subr.bf16.mxu0 %v11711_v38  ;;  %v5393_v13 = vld [vmem:[#allocation3 + $0x28] sm:$0xff]  ;;  %v12299_v49 = vld [vmem:[#allocation22 + $0x60] sm:$0xff] (!%p11762_p6)   ;;  %v12308_v63 = vld [vmem:[#allocation22 + $0xf0] sm:$0xff] (!%p11762_p6)  }
 0x72e   : > { %9147 = vmatprep.subr.bf16.mxu1 %v11713_v24  ;;  %v5395_v24 = vld [vmem:[#allocation3 + $0x38] sm:$0xff]  ;;  %v12300_v50 = vld [vmem:[#allocation22 + $0xe0] sm:$0xff] (!%p11762_p6)  }
 0x730   : > { %8976 = vmatpush1.bf16.msra.mxu0 %v11710_v47  ;;  %v5402_v47 = vld [vmem:[#allocation3 + $0x70] sm:$0xff] }
 0x731   : > { %9148 = vmatpush1.bf16.msra.mxu1 %v11712_v35  ;;  %8977 = vmatprep.subr.bf16.mxu0 %v11719_v32  ;;  %v5401_v35 = vld [vmem:[#allocation3 + $0x68] sm:$0xff] }
 0x732   : > { %9149 = vmatprep.subr.bf16.mxu1 %v11721_v37 }
 0x734   : > { %8978 = vmatpush1.bf16.msra.mxu0 %v11718_v43 }
 0x735   : > { %9150 = vmatpush1.bf16.msra.mxu1 %v11720_v31  ;;  %8979 = vmatprep.subr.bf16.mxu0 %v11727_v34 }
 0x736   : > { %9151 = vmatprep.subr.bf16.mxu1 %v11729_v30 }
 0x738   : > { %8980 = vmatpush1.bf16.msra.mxu0 %v11726_v4  ;;  %v12285_v4 = vld [vmem:[#allocation22] sm:$0xff] (!%p11762_p6)  }
 0x739   : > { %9152 = vmatpush1.bf16.msra.mxu1 %v11728_v46  ;;  %8981 = vmatprep.subr.bf16.mxu0 %v11735_v60  ;;  %v12286_v46 = vld [vmem:[#allocation22 + $0x80] sm:$0xff] (!%p11762_p6)   ;;  %v12287_v60 = vld [vmem:[#allocation22 + $0x48] sm:$0xff] (!%p11762_p6)  }
 0x73a   : > { %9153 = vmatprep.subr.bf16.mxu1 %v11737_v20  ;;  %v12288_v20 = vld [vmem:[#allocation22 + $0xc8] sm:$0xff] (!%p11762_p6)  }
 0x73c   : > { %8982 = vmatpush1.bf16.msra.mxu0 %v11734_v28  ;;  %v12293_v28 = vld [vmem:[#allocation22 + $0x10] sm:$0xff] (!%p11762_p6)  }
 0x73d   : > { %9154 = vmatpush1.bf16.msra.mxu1 %v11736_v5  ;;  %8983 = vmatprep.subr.bf16.mxu0 %v11743_v7  ;;  %v12294_v5 = vld [vmem:[#allocation22 + $0x90] sm:$0xff] (!%p11762_p6)   ;;  %v12295_v7 = vld [vmem:[#allocation22 + $0x58] sm:$0xff] (!%p11762_p6)  }
 0x73e   : > { %9155 = vmatprep.subr.bf16.mxu1 %v11745_v45  ;;  %v12296_v45 = vld [vmem:[#allocation22 + $0xd8] sm:$0xff] (!%p11762_p6)  }
 0x740   : > { %8984 = vmatpush1.bf16.msra.mxu0 %v11742_v57  ;;  %v12301_v57 = vld [vmem:[#allocation22 + $0x20] sm:$0xff] (!%p11762_p6)  }
 0x741   : > { %9156 = vmatpush1.bf16.msra.mxu1 %v11744_v51  ;;  %8985 = vmatprep.subr.bf16.mxu0 %v11751_v61  ;;  %v12302_v51 = vld [vmem:[#allocation22 + $0xa0] sm:$0xff] (!%p11762_p6)   ;;  %v12303_v61 = vld [vmem:[#allocation22 + $0x68] sm:$0xff] (!%p11762_p6)  }
 0x742   : > { %9157 = vmatprep.subr.bf16.mxu1 %v11753_v62  ;;  %v12304_v62 = vld [vmem:[#allocation22 + $0xe8] sm:$0xff] (!%p11762_p6)  }
 0x744   : > { %8986 = vmatpush1.bf16.msra.mxu0 %v11750_v1  ;;  %v12309_v1 = vld [vmem:[#allocation22 + $0x30] sm:$0xff] (!%p11762_p6)  }
 0x745   : > { %9158 = vmatpush1.bf16.msra.mxu1 %v11752_v6  ;;  %8987 = vmatprep.subr.bf16.mxu0 %v11759_v8  ;;  %v12310_v6 = vld [vmem:[#allocation22 + $0xb0] sm:$0xff] (!%p11762_p6)   ;;  %v12311_v8 = vld [vmem:[#allocation22 + $0x78] sm:$0xff] (!%p11762_p6)  }
 0x746   : > { %9159 = vmatprep.subr.bf16.mxu1 %v11761_v19  ;;  %v12312_v19 = vld [vmem:[#allocation22 + $0xf8] sm:$0xff] (!%p11762_p6)  }
 0x748   : > { %8988 = vmatpush1.bf16.msra.mxu0 %v11758_v23  ;;  %v12313_v23 = vld [vmem:[#allocation22 + $0x38] sm:$0xff] (!%p11762_p6)  }
 0x749   : > { %9160 = vmatpush1.bf16.msra.mxu1 %v11760_v10  ;;  %11847 = vmatprep.subr.bf16.mxu0 (!%p11762_p6), %v12283_v52  ;;  %v12314_v10 = vld [vmem:[#allocation22 + $0xb8] sm:$0xff] (!%p11762_p6)  }
 0x74a   : > { %11869 = vmatprep.subr.bf16.mxu1 (!%p11762_p6), %v12284_v3 }
 0x74b   : > { %8990 = vmatmul.mubr.bf16.vlgmr.msra.gmra.mrb[12].mxu0 %v14497_v29 }
 0x74c   : > { %9162 = vmatmul.mubr.bf16.vlgmr.msra.gmra.mrb[12].mxu1 %v14497_v29  ;;  %11848 = vmatpush3.bf16.msra.mxu0 (!%p11762_p6), %v12285_v4 }
 0x74d   : > { %11870 = vmatpush3.bf16.msra.mxu1 (!%p11762_p6), %v12286_v46  ;;  %11849 = vmatprep.subr.bf16.mxu0 (!%p11762_p6), %v12287_v60 }
 0x74e   : > { %11871 = vmatprep.subr.bf16.mxu1 (!%p11762_p6), %v12288_v20 }
 0x750   : > { %11850 = vmatpush3.bf16.msra.mxu0 (!%p11762_p6), %v12289_v21 }
 0x751   : > { %11872 = vmatpush3.bf16.msra.mxu1 (!%p11762_p6), %v12290_v27  ;;  %11851 = vmatprep.subr.bf16.mxu0 (!%p11762_p6), %v12291_v22 }
 0x752   : > { %11873 = vmatprep.subr.bf16.mxu1 (!%p11762_p6), %v12292_v25 }
 0x754   : > { %11852 = vmatpush3.bf16.msra.mxu0 (!%p11762_p6), %v12293_v28 }
 0x755   : > { %11874 = vmatpush3.bf16.msra.mxu1 (!%p11762_p6), %v12294_v5  ;;  %11853 = vmatprep.subr.bf16.mxu0 (!%p11762_p6), %v12295_v7 }
 0x756   : > { %11875 = vmatprep.subr.bf16.mxu1 (!%p11762_p6), %v12296_v45 }
 0x758   : > { %11854 = vmatpush3.bf16.msra.mxu0 (!%p11762_p6), %v12297_v48 }
 0x759   : > { %11876 = vmatpush3.bf16.msra.mxu1 (!%p11762_p6), %v12298_v2  ;;  %11855 = vmatprep.subr.bf16.mxu0 (!%p11762_p6), %v12299_v49 }
 0x75a   : > { %11877 = vmatprep.subr.bf16.mxu1 (!%p11762_p6), %v12300_v50 }
 0x75c   : > { %11856 = vmatpush3.bf16.msra.mxu0 (!%p11762_p6), %v12301_v57 }
 0x75d   : > { %11878 = vmatpush3.bf16.msra.mxu1 (!%p11762_p6), %v12302_v51  ;;  %11857 = vmatprep.subr.bf16.mxu0 (!%p11762_p6), %v12303_v61 }
 0x75e   : > { %11879 = vmatprep.subr.bf16.mxu1 (!%p11762_p6), %v12304_v62 }
 0x760   : > { %11858 = vmatpush3.bf16.msra.mxu0 (!%p11762_p6), %v12305_v33 }
 0x761   : > { %11880 = vmatpush3.bf16.msra.mxu1 (!%p11762_p6), %v12306_v18  ;;  %11859 = vmatprep.subr.bf16.mxu0 (!%p11762_p6), %v12307_v44 }
 0x762   : > { %11881 = vmatprep.subr.bf16.mxu1 (!%p11762_p6), %v12308_v63 }
 0x764   : > { %11860 = vmatpush3.bf16.msra.mxu0 (!%p11762_p6), %v12309_v1 }
 0x765   : > { %11882 = vmatpush3.bf16.msra.mxu1 (!%p11762_p6), %v12310_v6  ;;  %11861 = vmatprep.subr.bf16.mxu0 (!%p11762_p6), %v12311_v8 }
 0x766   : > { %11883 = vmatprep.subr.bf16.mxu1 (!%p11762_p6), %v12312_v19 }
 0x768   : > { %11862 = vmatpush3.bf16.msra.mxu0 (!%p11762_p6), %v12313_v23 }
 0x769   : > { %11884 = vmatpush3.bf16.msra.mxu1 (!%p11762_p6), %v12314_v10 }
 0x81e   : > { %v8991_v38 = vpop.f32.mrb[12].mxu0 }
 0x81f   : > { %v9176_v26 = vadd.f32 %v8991_v38, %v5392_v11  ;;  %v9163_v16 = vpop.f32.mrb[12].mxu1  ;;  %v8993_v42 = vpop.f32.mrb[13].mxu0  ;;  %9207 = sbr.rel (%p11762_p6) target bundleno = 2635 (0xa4b), region = 148  ;;  %v9209_v11 = vld [vmem:[#allocation3 + $0x8] sm:$0xff] (!%p11762_p6) }
 0x820   : > { %v9178_v32 = vadd.f32 %v9163_v16, %v5394_v12  ;;  %v9177_v37 = vadd.f32 %v8993_v42, %v5393_v13  ;;  %v9165_v58 = vpop.f32.mrb[13].mxu1  ;;  %v8995_v36 = vpop.f32.mrb[14].mxu0  ;;  %v9217_v12 = vld [vmem:[#allocation3 + $0x48] sm:$0xff] (!%p11762_p6) }
 0x821   : > { %9192 = vst [vmem:[#allocation3 + $0x20] sm:$0xff] %v9176_v26  ;;  %v9179_v59 = vadd.f32 %v9165_v58, %v5395_v24  ;;  %v9184_v43 = vadd.f32 %v8995_v36, %v5400_v39  ;;  %v9167_v29 = vpop.f32.mrb[14].mxu1  ;;  %v8997_v31 = vpop.f32.mrb[15].mxu0  ;;  %v14846_v13 = vld [vmem:[#allocation18] sm:$0xff] (!%p11762_p6)  ;;  %v9211_v24 = vld [vmem:[#allocation3 + $0x18] sm:$0xff] (!%p11762_p6)  ;;  %v12315_v58 = vld [vmem:[#allocation22 + $0x140] sm:$0xff] (!%p11762_p6)  }
 0x822   : > { %9194 = vst [vmem:[#allocation3 + $0x30] sm:$0xff] %v9178_v32  ;;  %9193 = vst [vmem:[#allocation3 + $0x28] sm:$0xff] %v9177_v37  ;;  %v9186_v34 = vadd.f32 %v9167_v29, %v5402_v47  ;;  %v9185_v30 = vadd.f32 %v8997_v31, %v5401_v35  ;;  %v9169_v40 = vpop.f32.mrb[15].mxu1  ;;  %v9233_v38 = vrot.slane (!%p11762_p6), %v14846_v13, %v14000_v15  ;;  %v9219_v26 = vld [vmem:[#allocation3 + $0x58] sm:$0xff] (!%p11762_p6)  ;;  %v12316_v36 = vld [vmem:[#allocation22 + $0x1c0] sm:$0xff] (!%p11762_p6)   ;;  %11891 = vmatprep.subr.bf16.mxu0 (!%p11762_p6), %v12315_v58 }
 0x823   : > { %9195 = vst [vmem:[#allocation3 + $0x38] sm:$0xff] %v9179_v59  ;;  %9200 = vst [vmem:[#allocation3 + $0x60] sm:$0xff] %v9184_v43  ;;  %v9187_v0 = vadd.f32 %v9169_v40, %v5403_v41  ;;  %v9241_v39 = vrot.slane (!%p11762_p6), %v14846_v13, %v14003_v17  ;;  %v9229_v16 = vrot.slane (!%p11762_p6), %v14846_v13, %v13990_v9  ;;  %v9208_v41 = vld [vmem:[#allocation3] sm:$0xff] (!%p11762_p6)  ;;  %v9218_v40 = vld [vmem:[#allocation3 + $0x50] sm:$0xff] (!%p11762_p6)  ;;  %11913 = vmatprep.subr.bf16.mxu1 (!%p11762_p6), %v12316_v36 }
 0x824   : > { %9202 = vst [vmem:[#allocation3 + $0x70] sm:$0xff] %v9186_v34  ;;  %9201 = vst [vmem:[#allocation3 + $0x68] sm:$0xff] %v9185_v30  ;;  %v9237_v42 = vrot.slane (!%p11762_p6), %v14846_v13, %v13997_v14  ;;  %v9267_v47 = vadd.f32 (!%p11762_p6), %v9233_v38, %v9209_v11  ;;  %v9275_v35 = vadd.f32 (!%p11762_p6), %v9233_v38, %v9217_v12  ;;  %v9216_v59 = vld [vmem:[#allocation3 + $0x40] sm:$0xff] (!%p11762_p6)  ;;  %v9210_v30 = vld [vmem:[#allocation3 + $0x10] sm:$0xff] (!%p11762_p6) }
 0x825   : > { %9203 = vst [vmem:[#allocation3 + $0x78] sm:$0xff] %v9187_v0  ;;  %v9269_v32 = vadd.f32 (!%p11762_p6), %v9241_v39, %v9211_v24  ;;  %v9277_v37 = vadd.f32 (!%p11762_p6), %v9241_v39, %v9219_v26  ;;  %v9266_v0 = vadd.f32 (!%p11762_p6), %v9229_v16, %v9208_v41  ;;  %v9274_v52 = vadd.f32 (!%p11762_p6), %v9229_v16, %v9216_v59 }
 0x826   : > { %v9283_v43 = vmax.f32 %v9267_v47, 0.0  ;;  %v9291_v29 = vmax.f32 %v9275_v35, 0.0  ;;  %v9268_v3 = vadd.f32 %v9237_v42, %v9210_v30  ;;  %v9276_v4 = vadd.f32 %v9237_v42, %v9218_v40 }
 0x827   : > { %v9285_v31 = vmax.f32 %v9269_v32, 0.0  ;;  %v9293_v34 = vmax.f32 %v9277_v37, 0.0  ;;  %v9282_v20 = vmax.f32 %v9266_v0, 0.0  ;;  %v9290_v21 = vmax.f32 %v9274_v52, 0.0 }
 0x828   : > { %v9307_v46 = vadd.f32 %v9291_v29, %v9283_v43  ;;  %v9284_v27 = vmax.f32 %v9268_v3, 0.0  ;;  %v9292_v22 = vmax.f32 %v9276_v4, 0.0 }
 0x829   : > { %v9321_v60 = vadd.f32 %v9293_v34, %v9285_v31  ;;  %v9300_v5 = vadd.f32 %v9290_v21, %v9282_v20 }
 0x82a   : > { %v9308_v25 = vrot.slane %v9307_v46, 4  ;;  %v9314_v7 = vadd.f32 %v9292_v22, %v9284_v27 }
 0x82b   : > { %v9322_v28 = vrot.slane %v9321_v60, 4  ;;  %v9301_v2 = vrot.slane %v9300_v5, 4 }
 0x82c   : > { %v9309_v45 = vadd.f32 %v9308_v25, %v9307_v46  ;;  %v9315_v49 = vrot.slane %v9314_v7, 4 }
 0x82d   : > { %v9323_v48 = vadd.f32 %v9322_v28, %v9321_v60  ;;  %v9302_v51 = vadd.f32 %v9301_v2, %v9300_v5 }
 0x82e   : > { %v9310_v50 = vrot.slane %v9309_v45, 2  ;;  %v9316_v61 = vadd.f32 %v9315_v49, %v9314_v7  ;;  %v9249_v49 = vrot.slane %v14846_v13, %v14428_v55 }
 0x82f   : > { %v9324_v57 = vrot.slane %v9323_v48, 2  ;;  %v9303_v18 = vrot.slane %v9302_v51, 2 }
 0x830   : > { %v9311_v62 = vadd.f32 %v9310_v50, %v9309_v45  ;;  %v9317_v44 = vrot.slane %v9316_v61, 2 }
 0x831   : > { %v9325_v33 = vadd.f32 %v9324_v57, %v9323_v48  ;;  %v9304_v6 = vadd.f32 %v9303_v18, %v9302_v51  ;;  %v9257_v51 = vrot.slane %v14846_v13, %v14431_v56 }
 0x832   : > { %v9312_v63 = vrot.slane %v9311_v62, 1  ;;  %v9318_v8 = vadd.f32 %v9317_v44, %v9316_v61  ;;  %v9213_v44 = vld [vmem:[#allocation3 + $0x28] sm:$0xff] }
 0x833   : > { %v9326_v1 = vrot.slane %v9325_v33, 1  ;;  %v9305_v10 = vrot.slane %v9304_v6, 1 }
 0x834   : > { %v9313_v19 = vadd.f32 %v9312_v63, %v9311_v62  ;;  %v9319_v11 = vrot.slane %v9318_v8, 1  ;;  %v9221_v63 = vld [vmem:[#allocation3 + $0x68] sm:$0xff] }
 0x835   : > { %v9327_v23 = vadd.f32 %v9326_v1, %v9325_v33  ;;  %v9306_v24 = vadd.f32 %v9305_v10, %v9304_v6  ;;  %v9245_v1 = vrot.slane %v14846_v13, %v14422_v53  ;;  %v9253_v6 = vrot.slane %v14846_v13, %v14425_v54 }
 0x836   : > { %v9357_v12 = vmul.f32 0.0625, %v9313_v19  ;;  %v9320_v39 = vadd.f32 %v9319_v11, %v9318_v8  ;;  %v14898_v10 = vadd.f32 %v9249_v49, %v9221_v63  ;;  %v9215_v11 = vld [vmem:[#allocation3 + $0x38] sm:$0xff] }
 0x837   : > { %v9359_v38 = vmul.f32 0.0625, %v9327_v23  ;;  %v9356_v35 = vmul.f32 0.0625, %v9306_v24  ;;  %v14896_v23 = vadd.f32 %v9249_v49, %v9213_v44  ;;  %v14923_v49 = vld [vmem:[#allocation19] sm:$0xff] }
 0x838   : > { %v14856_v26 = vsub.f32 %v9283_v43, %v9357_v12  ;;  %v14858_v16 = vsub.f32 %v9291_v29, %v9357_v12  ;;  %v9358_v32 = vmul.f32 0.0625, %v9320_v39  ;;  %v9223_v12 = vld [vmem:[#allocation3 + $0x78] sm:$0xff]  ;;  %v14900_v39 = vadd.f32 %v9257_v51, %v9215_v11 }
 0x839   : > { %v14860_v42 = vsub.f32 %v9285_v31, %v9359_v38  ;;  %v14862_v47 = vsub.f32 %v9293_v34, %v9359_v38  ;;  %v14872_v59 = vsub.f32 %v9282_v20, %v9356_v35  ;;  %v14874_v43 = vsub.f32 %v9290_v21, %v9356_v35 }
 0x83a   : > { %v9381_v37 = vmul.f32 %v14856_v26, %v14856_v26  ;;  %v9389_v58 = vmul.f32 %v14858_v16, %v14858_v16  ;;  %v14876_v29 = vsub.f32 %v9284_v27, %v9358_v32  ;;  %v14878_v31 = vsub.f32 %v9292_v22, %v9358_v32  ;;  %v9212_v32 = vld [vmem:[#allocation3 + $0x20] sm:$0xff] }
 0x83b   : > { %v9383_v36 = vmul.f32 %v14860_v42, %v14860_v42  ;;  %v9391_v41 = vmul.f32 %v14862_v47, %v14862_v47  ;;  %v9380_v40 = vmul.f32 %v14872_v59, %v14872_v59  ;;  %v9388_v0 = vmul.f32 %v14874_v43, %v14874_v43 }
 0x83c   : > { %v9403_v34 = vadd.f32 %v9389_v58, %v9381_v37  ;;  %v9382_v52 = vmul.f32 %v14876_v29, %v14876_v29  ;;  %v9390_v3 = vmul.f32 %v14878_v31, %v14878_v31  ;;  %v14902_v35 = vadd.f32 %v9257_v51, %v9223_v12  ;;  %v9220_v37 = vld [vmem:[#allocation3 + $0x60] sm:$0xff]  ;;  %v9214_v58 = vld [vmem:[#allocation3 + $0x30] sm:$0xff] }
 0x83d   : > { %v9417_v30 = vadd.f32 %v9391_v41, %v9383_v36  ;;  %v9396_v60 = vadd.f32 %v9388_v0, %v9380_v40  ;;  %v9287_v13 = vmax.f32 %v14896_v23, 0.0  ;;  %v9289_v0 = vmax.f32 %v14900_v39, 0.0 }
 0x83e   : > { %v9404_v4 = vrot.slane %v9403_v34, 4  ;;  %v9410_v20 = vadd.f32 %v9390_v3, %v9382_v52  ;;  %v9297_v52 = vmax.f32 %v14902_v35, 0.0  ;;  %v9222_v3 = vld [vmem:[#allocation3 + $0x70] sm:$0xff]  ;;  %v9500_v11 = vrot.slane %v14923_v49, %v14000_v15  ;;  %v12322_v35 = vld [vmem:[#allocation22 + $0x188] sm:$0xff]  }
 0x83f   : > { %v9418_v46 = vrot.slane %v9417_v30, 4  ;;  %v9397_v22 = vrot.slane %v9396_v60, 4 }
 0x840   : > { %v9405_v21 = vadd.f32 %v9404_v4, %v9403_v34  ;;  %v9411_v25 = vrot.slane %v9410_v20, 4  ;;  %v9295_v34 = vmax.f32 %v14898_v10, 0.0 }
 0x841   : > { %v9419_v27 = vadd.f32 %v9418_v46, %v9417_v30  ;;  %v9398_v7 = vadd.f32 %v9397_v22, %v9396_v60  ;;  %v9349_v22 = vadd.f32 %v9297_v52, %v9289_v0 }
 0x842   : > { %v9406_v28 = vrot.slane %v9405_v21, 2  ;;  %v9412_v45 = vadd.f32 %v9411_v25, %v9410_v20  ;;  %v9335_v60 = vadd.f32 %v9295_v34, %v9287_v13  ;;  %v14912_v20 = vadd.f32 %v9245_v1, %v9212_v32 }
 0x843   : > { %v9420_v5 = vrot.slane %v9419_v27, 2  ;;  %v9399_v50 = vrot.slane %v9398_v7, 2  ;;  %v14918_v25 = vadd.f32 %v9245_v1, %v9220_v37 }
 0x844   : > { %v9407_v48 = vadd.f32 %v9406_v28, %v9405_v21  ;;  %v9413_v57 = vrot.slane %v9412_v45, 2  ;;  %v9336_v28 = vrot.slane %v9335_v60, 4 }
 0x845   : > { %v9421_v2 = vadd.f32 %v9420_v5, %v9419_v27  ;;  %v9400_v33 = vadd.f32 %v9399_v50, %v9398_v7  ;;  %v9286_v5 = vmax.f32 %v14912_v20, 0.0  ;;  %v14921_v7 = vadd.f32 %v9253_v6, %v9214_v58  ;;  %v14925_v50 = vld [vmem:[#allocation21] sm:$0xff] }
 0x846   : > { %v9408_v61 = vrot.slane %v9407_v48, 1  ;;  %v9414_v18 = vadd.f32 %v9413_v57, %v9412_v45  ;;  %v9337_v57 = vadd.f32 %v9336_v28, %v9335_v60  ;;  %v9294_v51 = vmax.f32 %v14918_v25, 0.0 }
 0x847   : > { %v9422_v62 = vrot.slane %v9421_v2, 1  ;;  %v9401_v38 = vrot.slane %v9400_v33, 1  ;;  %v9557_v12 = vrot.slane %v14925_v50, %v14000_v15  ;;  %v9504_v15 = vrot.slane %v14923_v49, %v13997_v14 }
 0x848   : > { %v9409_v8 = vadd.f32 %v9408_v61, %v9407_v48  ;;  %v9415_v24 = vrot.slane %v9414_v18, 1  ;;  %v14928_v61 = vadd.f32 %v9253_v6, %v9222_v3  ;;  %v9328_v44 = vadd.f32 %v9294_v51, %v9286_v5 }
 0x849   : > { %v9423_v19 = vadd.f32 %v9422_v62, %v9421_v2  ;;  %v9402_v30 = vadd.f32 %v9401_v38, %v9400_v33  ;;  %v9350_v2 = vrot.slane %v9349_v22, 4  ;;  %v9288_v62 = vmax.f32 %v14921_v7, 0.0  ;;  %v12330_v7 = vld [vmem:[#allocation22 + $0x198] sm:$0xff]  }
 0x84a   : > { %v9453_v36 = vmul.f32 0.0625, %v9409_v8  ;;  %v9416_v40 = vadd.f32 %v9415_v24, %v9414_v18  ;;  %v9338_v18 = vrot.slane %v9337_v57, 2  ;;  %v9296_v63 = vmax.f32 %v14928_v61, 0.0 }
 0x84b   : > { %v9455_v41 = vmul.f32 0.0625, %v9423_v19  ;;  %v9452_v21 = vmul.f32 0.0625, %v9402_v30  ;;  %v9351_v33 = vadd.f32 %v9350_v2, %v9349_v22  ;;  %v9329_v19 = vrot.slane %v9328_v44, 4 }
 0x84c   : > { %v9461_v4 = vadd.f32 1e-05, %v9453_v36  ;;  %v9454_v27 = vmul.f32 0.0625, %v9416_v40  ;;  %v9339_v8 = vadd.f32 %v9338_v18, %v9337_v57  ;;  %v9342_v6 = vadd.f32 %v9296_v63, %v9288_v62 }
 0x84d   : > { %v9463_v46 = vadd.f32 1e-05, %v9455_v41  ;;  %v9460_v45 = vadd.f32 1e-05, %v9452_v21  ;;  %v9352_v1 = vrot.slane %v9351_v33, 2  ;;  %v9508_v24 = vrot.slane %v14923_v49, %v14003_v17 }
 0x84e   : > { %12355 = vrsqrt.f32 %v9461_v4  ;;  %v9462_v48 = vadd.f32 1e-05, %v9454_v27  ;;  %v9340_v32 = vrot.slane %v9339_v8, 1  ;;  %v9330_v37 = vadd.f32 %v9329_v19, %v9328_v44 }
 0x84f   : > { %12357 = vrsqrt.f32 %v9463_v46  ;;  %v9353_v38 = vadd.f32 %v9352_v1, %v9351_v33  ;;  %v9343_v58 = vrot.slane %v9342_v6, 4  ;;  %v9565_v36 = vrot.slane %v14925_v50, %v14003_v17 }
 0x850   : > { %12359 = vrsqrt.f32 %v9460_v45  ;;  %v9496_v41 = vrot.slane %v14923_v49, %v13990_v9  ;;  %v9553_v30 = vrot.slane %v14925_v50, %v13990_v9  ;;  %v9341_v4 = vadd.f32 %v9340_v32, %v9339_v8 }
 0x851   : > { %12361 = vrsqrt.f32 %v9462_v48  ;;  %v9354_v40 = vrot.slane %v9353_v38, 1  ;;  %v9331_v46 = vrot.slane %v9330_v37, 2  ;;  %v9344_v60 = vadd.f32 %v9343_v58, %v9342_v6 }
 0x852   : > { %v9561_v17 = vrot.slane %v14925_v50, %v13997_v14  ;;  %v9361_v48 = vmul.f32 0.0625, %v9341_v4 }
 0x853   : > { %v9355_v28 = vadd.f32 %v9354_v40, %v9353_v38  ;;  %v9332_v2 = vadd.f32 %v9331_v46, %v9330_v37  ;;  %v9345_v1 = vrot.slane %v9344_v60, 2 }
 0x855   : > { %v9363_v44 = vmul.f32 0.0625, %v9355_v28  ;;  %v9346_v39 = vadd.f32 %v9345_v1, %v9344_v60 }
 0x858   : > { %v12356_v3 = vpop.eup %12355 }
 0x859   : > { %v12358_v21 = vpop.eup %12357  ;;  %v9477_v27 = vmul.f32 %v12356_v3, %v14856_v26  ;;  %v9485_v22 = vmul.f32 %v12356_v3, %v14858_v16 }
 0x85a   : > { %v9479_v45 = vmul.f32 %v12358_v21, %v14860_v42  ;;  %v9487_v9 = vmul.f32 %v12358_v21, %v14862_v47  ;;  %v12360_v57 = vpop.eup %12359  ;;  %v12319_v21 = vld [vmem:[#allocation22 + $0x148] sm:$0xff]  }
 0x85b   : > { %v9534_v33 = vmul.f32 %v9500_v11, %v9477_v27  ;;  %v9542_v18 = vmul.f32 %v9500_v11, %v9485_v22  ;;  %v12362_v8 = vpop.eup %12361  ;;  %v9476_v16 = vmul.f32 %v12360_v57, %v14872_v59  ;;  %v9484_v6 = vmul.f32 %v12360_v57, %v14874_v43  ;;  %v12320_v22 = vld [vmem:[#allocation22 + $0x1c8] sm:$0xff]  }
 0x85c   : > { %v9536_v19 = vmul.f32 %v9508_v24, %v9479_v45  ;;  %v9544_v26 = vmul.f32 %v9508_v24, %v9487_v9  ;;  %v9478_v42 = vmul.f32 %v12362_v8, %v14876_v29  ;;  %v9486_v47 = vmul.f32 %v12362_v8, %v14878_v31  ;;  %v12321_v9 = vld [vmem:[#allocation22 + $0x108] sm:$0xff]  }
 0x85d   : > { %v9591_v14 = vadd.f32 %v9557_v12, %v9534_v33  ;;  %v9599_v38 = vadd.f32 %v9557_v12, %v9542_v18  ;;  %v9533_v58 = vmul.f32 %v9496_v41, %v9476_v16  ;;  %v9541_v40 = vmul.f32 %v9496_v41, %v9484_v6  ;;  %v12326_v6 = vld [vmem:[#allocation22 + $0x190] sm:$0xff]  }
 0x85e   : > { %v9593_v32 = vadd.f32 %v9565_v36, %v9536_v19  ;;  %v9601_v37 = vadd.f32 %v9565_v36, %v9544_v26  ;;  %v9535_v3 = vmul.f32 %v9504_v15, %v9478_v42  ;;  %v9543_v4 = vmul.f32 %v9504_v15, %v9486_v47  ;;  %v12317_v36 = vld [vmem:[#allocation22 + $0x100] sm:$0xff]   ;;  %v12325_v26 = vld [vmem:[#allocation22 + $0x110] sm:$0xff]  }
 0x85f   : > { %v9735_v11 = vpack.c.bf16 %v9599_v38, %v9591_v14  ;;  %v14966_v24 = vsub.f32 %v9287_v13, %v9361_v48  ;;  %v9590_v46 = vadd.f32 %v9553_v30, %v9533_v58  ;;  %v9598_v43 = vadd.f32 %v9553_v30, %v9541_v40  ;;  %v12318_v13 = vld [vmem:[#allocation22 + $0x180] sm:$0xff]   ;;  %v12327_v14 = vld [vmem:[#allocation22 + $0x158] sm:$0xff]  }
 0x860   : > { %v9737_v59 = vpack.c.bf16 %v9601_v37, %v9593_v32  ;;  %v14970_v12 = vsub.f32 %v9295_v34, %v9361_v48  ;;  %v9592_v29 = vadd.f32 %v9561_v17, %v9535_v3  ;;  %v9600_v31 = vadd.f32 %v9561_v17, %v9543_v4  ;;  %v12329_v40 = vld [vmem:[#allocation22 + $0x118] sm:$0xff]  }
 0x861   : > { %10165 = vmatprep.mubr.bf16.mxu0 %v9735_v11  ;;  %v9385_v41 = vmul.f32 %v14966_v24, %v14966_v24  ;;  %v14976_v15 = vsub.f32 %v9289_v0, %v9363_v44  ;;  %v9734_v23 = vpack.c.bf16 %v9598_v43, %v9590_v46  ;;  %v14982_v34 = vsub.f32 %v9297_v52, %v9363_v44  ;;  %v12323_v52 = vld [vmem:[#allocation22 + $0x150] sm:$0xff]  }
 0x862   : > { %10206 = vmatprep.mubr.bf16.mxu1 %v9737_v59  ;;  %v9393_v10 = vmul.f32 %v14970_v12, %v14970_v12  ;;  %v9333_v30 = vrot.slane %v9332_v2, 1  ;;  %v9736_v27 = vpack.c.bf16 %v9600_v31, %v9592_v29  ;;  %v9347_v48 = vrot.slane %v9346_v39, 1  ;;  %v12324_v44 = vld [vmem:[#allocation22 + $0x1d0] sm:$0xff]  }
 0x863   : > { %v9387_v17 = vmul.f32 %v14976_v15, %v14976_v15  ;;  %10166 = vmatmul.mubr.bf16.vlgmr.msra.gmra.mrb[0].mxu0 %v9734_v23  ;;  %v9395_v28 = vmul.f32 %v14982_v34, %v14982_v34  ;;  %v12334_v23 = vld [vmem:[#allocation22 + $0x1a0] sm:$0xff]  }
 0x864   : > { %v9431_v0 = vadd.f32 %v9393_v10, %v9385_v41  ;;  %v9334_v45 = vadd.f32 %v9333_v30, %v9332_v2  ;;  %10207 = vmatmul.mubr.bf16.vlgmr.msra.gmra.mrb[0].mxu1 %v9736_v27  ;;  %11892 = vmatpush3.bf16.msra.mxu0 %v12317_v36  ;;  %v9348_v60 = vadd.f32 %v9347_v48, %v9346_v39  ;;  %v12333_v36 = vld [vmem:[#allocation22 + $0x120] sm:$0xff]   ;;  %v12336_v27 = vld [vmem:[#allocation22 + $0x1e8] sm:$0xff]   ;;  %v12339_v48 = vld [vmem:[#allocation22 + $0x170] sm:$0xff]  }
 0x865   : > { %11914 = vmatpush3.bf16.msra.mxu1 %v12318_v13  ;;  %11893 = vmatprep.subr.bf16.mxu0 %v12319_v21  ;;  %v9445_v33 = vadd.f32 %v9395_v28, %v9387_v17  ;;  %v12335_v13 = vld [vmem:[#allocation22 + $0x168] sm:$0xff]  }
 0x866   : > { %v9432_v57 = vrot.slane %v9431_v0, 4  ;;  %v9360_v18 = vmul.f32 0.0625, %v9334_v45  ;;  %11915 = vmatprep.subr.bf16.mxu1 %v12320_v22  ;;  %v9362_v16 = vmul.f32 0.0625, %v9348_v60  ;;  %v12337_v28 = vld [vmem:[#allocation22 + $0x128] sm:$0xff]  }
 0x867   : > { %v9446_v8 = vrot.slane %v9445_v33, 4 }
 0x868   : > { %v9433_v1 = vadd.f32 %v9432_v57, %v9431_v0  ;;  %v14990_v19 = vsub.f32 %v9286_v5, %v9360_v18  ;;  %v14994_v2 = vsub.f32 %v9294_v51, %v9360_v18  ;;  %11894 = vmatpush3.bf16.msra.mxu0 %v12321_v9  ;;  %v12328_v5 = vld [vmem:[#allocation22 + $0x1d8] sm:$0xff]   ;;  %v15002_v25 = vsub.f32 %v9288_v62, %v9362_v16  ;;  %v12331_v62 = vld [vmem:[#allocation22 + $0x160] sm:$0xff]   ;;  %v12338_v9 = vld [vmem:[#allocation22 + $0x1a8] sm:$0xff]  }
 0x869   : > { %11916 = vmatpush3.bf16.msra.mxu1 %v12322_v35  ;;  %11895 = vmatprep.subr.bf16.mxu0 %v12323_v52  ;;  %v9447_v42 = vadd.f32 %v9446_v8, %v9445_v33  ;;  %v15006_v51 = vsub.f32 %v9296_v63, %v9362_v16  ;;  %v12332_v63 = vld [vmem:[#allocation22 + $0x1e0] sm:$0xff]   ;;  %v12340_v57 = vld [vmem:[#allocation22 + $0x1f0] sm:$0xff]   ;;  %v12343_v8 = vld [vmem:[#allocation22 + $0x178] sm:$0xff]  }
 0x86a   : > { %v9434_v38 = vrot.slane %v9433_v1, 2  ;;  %v9384_v47 = vmul.f32 %v14990_v19, %v14990_v19  ;;  %v9392_v20 = vmul.f32 %v14994_v2, %v14994_v2  ;;  %11917 = vmatprep.subr.bf16.mxu1 %v12324_v44  ;;  %v9386_v11 = vmul.f32 %v15002_v25, %v15002_v25  ;;  %v12341_v44 = vld [vmem:[#allocation22 + $0x130] sm:$0xff]   ;;  %v12344_v16 = vld [vmem:[#allocation22 + $0x1f8] sm:$0xff]  }
 0x86b   : > { %v9448_v37 = vrot.slane %v9447_v42, 2  ;;  %v9394_v3 = vmul.f32 %v15006_v51, %v15006_v51 }
 0x86c   : > { %v9435_v32 = vadd.f32 %v9434_v38, %v9433_v1  ;;  %v9424_v58 = vadd.f32 %v9392_v20, %v9384_v47  ;;  %11896 = vmatpush3.bf16.msra.mxu0 %v12325_v26  ;;  %v12342_v1 = vld [vmem:[#allocation22 + $0x1b0] sm:$0xff]   ;;  %v12345_v38 = vld [vmem:[#allocation22 + $0x138] sm:$0xff]   ;;  %v9516_v20 = vrot.slane %v14923_v49, %v14428_v55 }
 0x86d   : > { %11918 = vmatpush3.bf16.msra.mxu1 %v12326_v6  ;;  %11897 = vmatprep.subr.bf16.mxu0 %v12327_v14  ;;  %v9449_v59 = vadd.f32 %v9448_v37, %v9447_v42  ;;  %v9438_v46 = vadd.f32 %v9394_v3, %v9386_v11  ;;  %v12346_v47 = vld [vmem:[#allocation22 + $0x1b8] sm:$0xff]   ;;  %v9573_v37 = vrot.slane %v14925_v50, %v14428_v55 }
 0x86e   : > { %v9436_v4 = vrot.slane %v9435_v32, 1  ;;  %v9425_v61 = vrot.slane %v9424_v58, 4  ;;  %11919 = vmatprep.subr.bf16.mxu1 %v12328_v5  ;;  %v9524_v11 = vrot.slane %v14923_v49, %v14431_v56 }
 0x86f   : > { %v9450_v29 = vrot.slane %v9449_v59, 1  ;;  %v9439_v41 = vrot.slane %v9438_v46, 4 }
 0x870   : > { %v9437_v43 = vadd.f32 %v9436_v4, %v9435_v32  ;;  %v9426_v31 = vadd.f32 %v9425_v61, %v9424_v58  ;;  %11898 = vmatpush3.bf16.msra.mxu0 %v12329_v40 }
 0x871   : > { %11920 = vmatpush3.bf16.msra.mxu1 %v12330_v7  ;;  %11899 = vmatprep.subr.bf16.mxu0 %v12331_v62  ;;  %v9451_v10 = vadd.f32 %v9450_v29, %v9449_v59  ;;  %v9440_v22 = vadd.f32 %v9439_v41, %v9438_v46  ;;  %v9581_v7 = vrot.slane %v14925_v50, %v14431_v56 }
 0x872   : > { %v9457_v21 = vmul.f32 0.0625, %v9437_v43  ;;  %v9427_v30 = vrot.slane %v9426_v31, 2  ;;  %11921 = vmatprep.subr.bf16.mxu1 %v12332_v63 }
 0x873   : > { %v9459_v39 = vmul.f32 0.0625, %v9451_v10  ;;  %v9441_v45 = vrot.slane %v9440_v22, 2 }
 0x874   : > { %v9465_v17 = vadd.f32 1e-05, %v9457_v21  ;;  %v9428_v0 = vadd.f32 %v9427_v30, %v9426_v31  ;;  %11900 = vmatpush3.bf16.msra.mxu0 %v12333_v36  ;;  %v9512_v31 = vrot.slane %v14923_v49, %v14422_v53 }
 0x875   : > { %11922 = vmatpush3.bf16.msra.mxu1 %v12334_v23  ;;  %11901 = vmatprep.subr.bf16.mxu0 %v12335_v13  ;;  %v9467_v35 = vadd.f32 1e-05, %v9459_v39  ;;  %v9442_v33 = vadd.f32 %v9441_v45, %v9440_v22  ;;  %v9577_v22 = vrot.slane %v14925_v50, %v14425_v54  ;;  %v12347_v45 = vld [vmem:[#allocation25] sm:$0xff]  }
 0x876   : > { %12363 = vrsqrt.f32 %v9465_v17  ;;  %v9429_v52 = vrot.slane %v9428_v0, 1  ;;  %11923 = vmatprep.subr.bf16.mxu1 %v12336_v27 }
 0x877   : > { %12365 = vrsqrt.f32 %v9467_v35  ;;  %v9443_v60 = vrot.slane %v9442_v33, 1  ;;  %v12353_v35 = vld [vmem:[#allocation25 + $0x30] sm:$0xff]  }
 0x878   : > { %v9430_v18 = vadd.f32 %v9429_v52, %v9428_v0  ;;  %11902 = vmatpush3.bf16.msra.mxu0 %v12337_v28  ;;  %v12354_v52 = vld [vmem:[#allocation25 + $0x38] sm:$0xff]  }
 0x879   : > { %11924 = vmatpush3.bf16.msra.mxu1 %v12338_v9  ;;  %11903 = vmatprep.subr.bf16.mxu0 %v12339_v48  ;;  %v9444_v6 = vadd.f32 %v9443_v60, %v9442_v33  ;;  %v12923_v9 = vmov 0.0   ;;  %v12352_v48 = vld [vmem:[#allocation25 + $0x28] sm:$0xff]  }
 0x87a   : > { %v9456_v26 = vmul.f32 0.0625, %v9430_v18  ;;  %11925 = vmatprep.subr.bf16.mxu1 %v12340_v57  ;;  %v11763_v18 = vld [vmem:[#allocation24] ss:$0 sm:$0xff] }
 0x87b   : > { %v9458_v42 = vmul.f32 0.0625, %v9444_v6 }
 0x87c   : > { %v9464_v14 = vadd.f32 1e-05, %v9456_v26  ;;  %11904 = vmatpush3.bf16.msra.mxu0 %v12341_v44 }
 0x87d   : > { %11926 = vmatpush3.bf16.msra.mxu1 %v12342_v1  ;;  %11905 = vmatprep.subr.bf16.mxu0 %v12343_v8  ;;  %v9466_v5 = vadd.f32 1e-05, %v9458_v42 }
 0x87e   : > { %12367 = vrsqrt.f32 %v9464_v14  ;;  %11927 = vmatprep.subr.bf16.mxu1 %v12344_v16 }
 0x87f   : > { %12369 = vrsqrt.f32 %v9466_v5 }
 0x880   : > { %v12364_v32 = vpop.eup %12363  ;;  %11906 = vmatpush3.bf16.msra.mxu0 %v12345_v38 }
 0x881   : > { %v9481_v58 = vmul.f32 %v12364_v32, %v14966_v24  ;;  %v9489_v40 = vmul.f32 %v12364_v32, %v14970_v12  ;;  %v12366_v3 = vpop.eup %12365  ;;  %11928 = vmatpush3.bf16.msra.mxu1 %v12346_v47  ;;  %11944 = vmatprep.subr.bf16.mxu0 %v12923_v9 }
 0x882   : > { %v9483_v59 = vmul.f32 %v12366_v3, %v14976_v15  ;;  %v9491_v55 = vmul.f32 %v12366_v3, %v14982_v34  ;;  %v9569_v15 = vrot.slane %v14925_v50, %v14422_v53  ;;  %v9520_v34 = vrot.slane %v14923_v49, %v14425_v54  ;;  %v12350_v54 = vld [vmem:[#allocation25 + $0x18] sm:$0xff]   ;;  %v12351_v50 = vld [vmem:[#allocation25 + $0x20] sm:$0xff]  }
 0x883   : > { %v9538_v62 = vmul.f32 %v9516_v20, %v9481_v58  ;;  %v9546_v4 = vmul.f32 %v9516_v20, %v9489_v40 }
 0x884   : > { %v9540_v24 = vmul.f32 %v9524_v11, %v9483_v59  ;;  %v9548_v46 = vmul.f32 %v9524_v11, %v9491_v55 }
 0x885   : > { %v9595_v61 = vadd.f32 %v9573_v37, %v9538_v62  ;;  %v9603_v63 = vadd.f32 %v9573_v37, %v9546_v4 }
 0x886   : > { %v9597_v43 = vadd.f32 %v9581_v7, %v9540_v24  ;;  %v9605_v29 = vadd.f32 %v9581_v7, %v9548_v46 }
 0x887   : > { %v9739_v12 = vpack.c.bf16 %v9603_v63, %v9595_v61 }
 0x888   : > { %v12368_v36 = vpop.eup %12367  ;;  %v9741_v41 = vpack.c.bf16 %v9605_v29, %v9597_v43 }
 0x889   : > { %10247 = vmatprep.mubr.bf16.mxu0 %v9739_v12  ;;  %v9480_v56 = vmul.f32 %v12368_v36, %v14990_v19  ;;  %v9488_v23 = vmul.f32 %v12368_v36, %v14994_v2  ;;  %v12370_v13 = vpop.eup %12369 }
 0x88a   : > { %10288 = vmatprep.mubr.bf16.mxu1 %v9741_v41  ;;  %v9482_v30 = vmul.f32 %v12370_v13, %v15002_v25  ;;  %v9490_v27 = vmul.f32 %v12370_v13, %v15006_v51  ;;  %v12348_v25 = vld [vmem:[#allocation25 + $0x8] sm:$0xff]   ;;  %v12349_v51 = vld [vmem:[#allocation25 + $0x10] sm:$0xff]   ;;  %v11828_v41 = vld [vmem:[#allocation27] ss:$0 sm:$0xff] }
 0x88b   : > { %v9537_v21 = vmul.f32 %v9512_v31, %v9480_v56  ;;  %v9545_v10 = vmul.f32 %v9512_v31, %v9488_v23 }
 0x88c   : > { %v9539_v2 = vmul.f32 %v9520_v34, %v9482_v30  ;;  %v9547_v39 = vmul.f32 %v9520_v34, %v9490_v27 }
 0x88d   : > { %v9594_v19 = vadd.f32 %v9569_v15, %v9537_v21  ;;  %v9602_v17 = vadd.f32 %v9569_v15, %v9545_v10 }
 0x88e   : > { %v9596_v53 = vadd.f32 %v9577_v22, %v9539_v2  ;;  %v9604_v28 = vadd.f32 %v9577_v22, %v9547_v39 }
 0x88f   : > { %v9738_v0 = vpack.c.bf16 %v9602_v17, %v9594_v19 }
 0x890   : > { %v9740_v49 = vpack.c.bf16 %v9604_v28, %v9596_v53 }
 0x891   : > { %10248 = vmatmul.mubr.bf16.vlgmr.msra.gmra.mrb[4].mxu0 %v9738_v0 }
 0x892   : > { %10289 = vmatmul.mubr.bf16.vlgmr.msra.gmra.mrb[4].mxu1 %v9740_v49  ;;  %11945 = vmatpush3.bf16.msra.mxu0 %v12347_v45 }
 0x893   : > { %11946 = vmatprep.subr.bf16.mxu0 %v12923_v9  ;;  %11960 = vmatprep.mubr.msk.bf16.mxu0 %vm12924_vm1, %v12923_v9 }
 0x896   : > { %11947 = vmatpush3.bf16.msra.mxu0 %v12348_v25 }
 0x897   : > { %11948 = vmatprep.subr.bf16.mxu0 %v12923_v9 }
 0x89a   : > { %11949 = vmatpush3.bf16.msra.mxu0 %v12349_v51 }
 0x89b   : > { %11950 = vmatprep.subr.bf16.mxu0 %v12923_v9 }
 0x89e   : > { %11951 = vmatpush3.bf16.msra.mxu0 %v12350_v54 }
 0x89f   : > { %11952 = vmatprep.subr.bf16.mxu0 %v12923_v9 }
 0x8a2   : > { %11953 = vmatpush3.bf16.msra.mxu0 %v12351_v50 }
 0x8a3   : > { %11954 = vmatprep.subr.bf16.mxu0 %v12923_v9 }
 0x8a6   : > { %11955 = vmatpush3.bf16.msra.mxu0 %v12352_v48 }
 0x8a7   : > { %11956 = vmatprep.subr.bf16.mxu0 %v12923_v9 }
 0x8aa   : > { %11957 = vmatpush3.bf16.msra.mxu0 %v12353_v35 }
 0x8ab   : > { %11958 = vmatprep.subr.bf16.mxu0 %v12923_v9 }
 0x8ae   : > { %11959 = vmatpush3.bf16.msra.mxu0 %v12354_v52 }
 0x936   : > { %v11863_v57 = vpop.f32.mrb[0].mxu0 }
 0x937   : > { %v11885_v33 = vpop.f32.mrb[0].mxu1  ;;  %v11864_v44 = vpop.f32.mrb[1].mxu0 }
 0x938   : > { %v11865_v60 = vadd.f32 %v11864_v44, %v11863_v57  ;;  %v11886_v1 = vpop.f32.mrb[1].mxu1  ;;  %v11866_v8 = vpop.f32.mrb[2].mxu0 }
 0x939   : > { %v11887_v26 = vadd.f32 %v11886_v1, %v11885_v33  ;;  %v11888_v16 = vpop.f32.mrb[2].mxu1  ;;  %v11867_v6 = vpop.f32.mrb[3].mxu0 }
 0x93a   : > { %v10168_v14 = vadd.f32 %v11865_v60, %v11763_v18  ;;  %v11868_v38 = vadd.f32 %v11867_v6, %v11866_v8  ;;  %v11889_v42 = vpop.f32.mrb[3].mxu1 }
 0x93b   : > { %v11890_v47 = vadd.f32 %v11889_v42, %v11888_v16 }
 0x93c   : > { %v10209_v20 = vadd.f32 %v11887_v26, %v10168_v14  ;;  %v10171_v5 = vadd.f32 %v11868_v38, %v11763_v18 }
 0x93e   : > { %v10212_v32 = vadd.f32 %v11890_v47, %v10171_v5 }
 0x964   : > { %v11907_v37 = vpop.f32.mrb[4].mxu0 }
 0x965   : > { %v11908_v58 = vpop.f32.mrb[5].mxu0  ;;  %v11929_v3 = vpop.f32.mrb[4].mxu1 }
 0x966   : > { %v11909_v40 = vadd.f32 %v11908_v58, %v11907_v37  ;;  %v11910_v11 = vpop.f32.mrb[6].mxu0  ;;  %v11930_v4 = vpop.f32.mrb[5].mxu1 }
 0x967   : > { %v11911_v7 = vpop.f32.mrb[7].mxu0  ;;  %v11931_v55 = vadd.f32 %v11930_v4, %v11929_v3  ;;  %v11932_v61 = vpop.f32.mrb[6].mxu1 }
 0x968   : > { %v10250_v62 = vadd.f32 %v11909_v40, %v10209_v20  ;;  %v11912_v59 = vadd.f32 %v11911_v7, %v11910_v11  ;;  %v11933_v24 = vpop.f32.mrb[7].mxu1 }
 0x969   : > { %v11934_v12 = vadd.f32 %v11933_v24, %v11932_v61 }
 0x96a   : > { %v10253_v63 = vadd.f32 %v11912_v59, %v10212_v32  ;;  %v10291_v46 = vadd.f32 %v11931_v55, %v10250_v62 }
 0x96c   : > { %v10294_v43 = vadd.f32 %v11934_v12, %v10253_v63  ;;  %v10297_v29 = vmax.f32 %v10291_v46, 0.0 }
 0x96e   : > { %v10298_v31 = vmax.f32 %v10294_v43, 0.0 }
 0x970   : > { %v10315_v36 = vpack.c.bf16 %v10298_v31, %v10297_v29 }
 0x972   : > { %11961 = vmatmul.mubr.bf16.vlgmr.msra.gmra.mrb[8].mxu0 %v10315_v36 }
 0xa45   : > { %v10405_v56 = vpop.f32.mrb[8].mxu0 }
 0xa46   : > { %v10406_v23 = vadd.f32 %v11828_v41, %v10405_v56  ;;  %v11962_v15 = vpop.f32.mrb[9].mxu0 }
 0xa47   : > { %v10408_v34 = vpop.f32.mrb[10].mxu0 }
 0xa48   : > { %10412 = vst [vmem:[#allocation28] sm:$0xff] %v10406_v23  ;;  %v10409_v13 = vadd.f32 %v11828_v41, %v10408_v34  ;;  %v11963_v21 = vpop.f32.mrb[11].mxu0 }
 0xa4a   : > { %10413 = vst [vmem:[#allocation28 + $0x8] sm:$0xff] %v10409_v13 }
 0xa4b PF: > { %p12198_p0 = scmp.eq.s32.totalorder %s13029_s24, 4  ;;  %s12925_s5 = smov [#allocation28]  }
 0xa4c   : > { %s10420_s7 = sshll.u32 %s12925_s5, 4  ;;  %s10421_s7 = int_to_ptr.vmem [resolvable:$true] %s10420_s7 }
 0xa4d   : > { %s12801_s27 = scalar_lea.vmem %s10421_s7, 256  ;;  %p12808_p7 = scmp.lt.s32.totalorder %s10421_s7, %s10421_s7 }
 0xa4e   : > { %p12802_p2 = scmp.ne.s32.totalorder %s10421_s7, %s12801_s27  ;;  %p12809_p9 = scmp.lt.s32.totalorder %s12801_s27, %s12801_s27 }
 0xa50   : > { %p12803_p5 = pnand %p12802_p2, %p12198_p0  ;;  %p12810_p10 = por %p12809_p9, %p12808_p7 }
 0xa52   : > { %p12804_p13 = pneg %p12803_p5 }
 0xa54   : > { %p12811_p4 = pnand %p12810_p10, %p12804_p13 }
 0xa56   : > { %12814 = shalt.err (!%p12811_p4)
}
 0xa57   : > { %s15183_s23 = sld [smem:[#allocation57_spill]] }
 0xa5d   : > { %s12815_s30 = scalar_lea.hbm %s15183_s23, 256 }
 0xa5e   : > { %p12816_p11 = scmp.ne.s32.totalorder %s15183_s23, %s12815_s30  ;;  %p12821_p1 = scmp.lt.u32.totalorder %s12815_s30, %s15183_s23 }
 0xa60   : > { %p12817_p12 = pnand %p12816_p11, %p12198_p0 }
 0xa62   : > { %p12818_p8 = pneg %p12817_p12 }
 0xa64   : > { %p12823_p3 = pnand %p12821_p1, %p12818_p8 }
 0xa66   : > { %12826 = shalt.err (!%p12823_p3)
}
 0xa67   : > { %s12926_s9 = smov 128   ;;  %s12927_s12 = smov 8  }
 0xa68   : > { %12127 = dma.vmem_to_hbm [thread:$0]  (%p12198_p0), %s10421_s7, 256, %s15183_s23, [#allocation6], %s12926_s9, %s12926_s9, %s12927_s12  }
 0xa69   : > { %12880 = dma.done.wait (%p12198_p0), [#allocation6], 256  }
 0xa6a   : > { %12882 = vsyncadd (%p12198_p0), [#allocation6], 4294967040 }
 0xa6b PF: > { %s15184_s21 = sld [smem:[#allocation42_spill]]  ;;  %s15185_s18 = sld [smem:[#allocation39_spill]] }
 0xa6c   : > { %s15186_s19 = sld [smem:[#allocation40_spill]]  ;;  %s15187_s20 = sld [smem:[#allocation43_spill]] }
 0xa71   : > { %p37_p6 = scmp.ge.s32.totalorder %s15184_s21, 7  }
 0xa73   :  { %39 = sbr.rel (!%p37_p6) target bundleno = 27 (0x1b), region = 214 }
 0xa7a   :  { %10436 = vsyncpa [#allocation5], 1 }
 0xa7b   :  { %10438 = vsyncpa [#allocation5 + $0x1], 1 }
 0xa7c   :  { %10439 = vsyncpa [#allocation8], 1 }
 0xa7d   :  { %10440 = vsyncpa [#allocation11], 1 }
 0xa7e   :  { %10442 = vsyncpa [#allocation11 + $0x1], 1 }
 0xa7f   :  { %10443 = vsyncpa [#allocation14], 1 }
 0xa80   :  { %10445 = vsyncpa [#allocation14 + $0x1], 1 }
 0xa81   :  { %10446 = vsyncpa [#allocation17], 1 }
 0xa82   :  { %10448 = vsyncpa [#allocation17 + $0x1], 1 }
 0xa83   :  { %10449 = vsyncpa [#allocation20], 1 }
 0xa84   :  { %10450 = vsyncpa [#allocation23], 1 }
 0xa85   :  { %10451 = vsyncpa [#allocation26], 1 }
 0xa86   :  { %10452 = vsyncpa [#allocation6], 1 }
 0xa87   :  { %10454 = vsyncpa [#allocation6 + $0x1], 1 }

</bundles_post_ra>
